<compile_context>
chip_gen: v7x
topology: tpu7x:2x2x1
jax: 0.10.0
libtpu: 0.0.40
codegen_flags: <defaults>
</compile_context>

<pallas_src>
import functools

import numpy as np
import jax
import jax.numpy as jnp
from jax import lax
from jax.experimental import pallas as pl
from jax.experimental.pallas import tpu as pltpu

NODE_IN = 42                       # node_input_dim
EDGE_IN = 10                       # edge_input_dim
HID = 42                           # node_hidden_dim
EDGE_HID = 42                      # edge_hidden_dim
KBIG = EDGE_HID * HID              # 1764 — big contraction dim
NUM_STEPS = 3                      # num_step_message_passing

HID_P = 128                        # lane-padded hidden width
KBIG_P = ((KBIG + 127) // 128) * 128   # 1792 = 14 * 128


# ---------------------------------------------------------------------------
# Constant 0/1 expansion matrices (numpy, built once):
#   rexp[k, k*HID + d] = 1  ("repeat" h columns HID times)
#   texp[d, k*HID + d] = 1  ("tile"   x_src columns EDGE_HID times)
# Padded rows/cols are zero so padded lanes contribute nothing.
# ---------------------------------------------------------------------------
def _expansion_constants_np():
    rexp = np.zeros((HID_P, KBIG_P), np.float32)
    texp = np.zeros((HID_P, KBIG_P), np.float32)
    for k in range(EDGE_HID):
        rexp[k, k * HID:(k + 1) * HID] = 1.0
    for d in range(HID):
        texp[d, d:KBIG:HID] = 1.0
    return rexp, texp


@functools.lru_cache(maxsize=None)
def _expansion_constants():
    rexp, texp = _expansion_constants_np()
    return (jnp.asarray(rexp, dtype=jnp.bfloat16),
            jnp.asarray(texp, dtype=jnp.bfloat16))


# ---------------------------------------------------------------------------
# Kernel
# ---------------------------------------------------------------------------
def gather_model_kernel(x_ref, ea_ref, src_ref, dst_ref,
                        l0w_ref, l0b_ref, ew1_ref, eb1_ref,
                        ew2f_ref, b2m_ref, rexp_ref, texp_ref,
                        root_ref, cb_ref, mwm_ref, mwo_ref, mb_ref,
                        out_ref,
                        out_s, out_bf_s, aggr_s, hh_cache):
    f32 = jnp.float32
    bf16 = jnp.bfloat16
    step = pl.program_id(0)
    et = pl.program_id(1)
    n_tiles = pl.num_programs(1)
    n_pad = out_s.shape[0]
    tile_e = ea_ref.shape[0]

    # ---- one-time init: out = relu(lin0(x)); keep a bf16 copy for the MXU ----
    @pl.when(jnp.logical_and(step == 0, et == 0))
    def _init_out():
        o0 = jnp.maximum(
            jnp.dot(x_ref[...], l0w_ref[...], preferred_element_type=f32)
            + l0b_ref[...], 0.0)
        out_s[...] = o0
        out_bf_s[...] = o0.astype(bf16)

    # ---- per-step init: fold NNConv root/bias into the scatter accumulator ----
    @pl.when(et == 0)
    def _init_aggr():
        aggr_s[...] = (
            jnp.dot(out_s[...], root_ref[...], preferred_element_type=f32)
            + cb_ref[...])

    # ---- step-invariant edge-network work, computed once and cached (bf16) ----
    @pl.when(step == 0)
    def _build_hh():
        h_t = jnp.maximum(
            jnp.dot(ea_ref[...], ew1_ref[...], preferred_element_type=f32)
            + eb1_ref[...], 0.0)                                   # (tile_e, HID_P)
        hh_cache[et] = jnp.dot(h_t.astype(bf16), rexp_ref[...],
                               preferred_element_type=f32).astype(bf16)

    hh = hh_cache[et]                                              # (tile_e, KBIG_P) bf16

    src_col = src_ref[...]                                         # (tile_e, 1) int32
    dst_row = dst_ref[...]                                         # (1, tile_e) int32

    # Gather x_src = out[src] via a per-tile one-hot built from indices.
    # Padded edges carry an out-of-range id -> all-zero one-hot row -> neutral.
    # TODO(synk): for very large N, replace the (tile_e, N) one-hot matmuls with
    # a true index-driven gather (scalar-prefetched indices + per-row slices)
    # and a dst-sorted scatter; cost here is O(E*N*HID) per step.
    src_oh = (lax.broadcasted_iota(jnp.int32, (tile_e, n_pad), 1) == src_col
              ).astype(f32).astype(bf16)                           # (tile_e, n_pad)
    x_src = jnp.dot(src_oh, out_bf_s[...], preferred_element_type=f32)
    x_src_bf = x_src.astype(bf16)                                  # (tile_e, HID_P)

    # "tile" expansion xx[e, k*HID+d] = x_src[e, d]; outer = hh * xx, then one
    # big K = KBIG_P contraction against the flattened edge-net weight, plus
    # the edge-net bias path.
    xx = jnp.dot(x_src_bf, texp_ref[...],
                 preferred_element_type=f32).astype(bf16)          # (tile_e, KBIG_P)
    msgs = (jnp.dot(hh * xx, ew2f_ref[...], preferred_element_type=f32)
            + jnp.dot(x_src_bf, b2m_ref[...], preferred_element_type=f32))

    # Scatter-add messages to destination nodes via a transposed one-hot.
    dst_ohT = (lax.broadcasted_iota(jnp.int32, (n_pad, tile_e), 0) == dst_row
               ).astype(f32).astype(bf16)                          # (n_pad, tile_e)
    aggr_s[...] = aggr_s[...] + jnp.dot(dst_ohT, msgs.astype(bf16),
                                        preferred_element_type=f32)

    # ---- per-step finalize: relu + message_layer (root/bias already in aggr) ----
    @pl.when(et == n_tiles - 1)
    def _finish_step():
        out_v = out_s[...]
        m = jnp.maximum(aggr_s[...], 0.0)
        # message_layer(cat([m, out], dim=1)) without materializing the concat.
        new_out = (jnp.dot(m, mwm_ref[...], preferred_element_type=f32)
                   + jnp.dot(out_v, mwo_ref[...], preferred_element_type=f32)
                   + mb_ref[...])
        out_s[...] = new_out
        out_bf_s[...] = new_out.astype(bf16)

    # ---- final residual write ----
    @pl.when(jnp.logical_and(step == NUM_STEPS - 1, et == n_tiles - 1))
    def _write_out():
        out_ref[...] = out_s[...] + x_ref[...]


# ---------------------------------------------------------------------------
# Host-side helpers
# ---------------------------------------------------------------------------
def _round_up(v, m):
    return (v + m - 1) // m * m


def _nbytes(a):
    return int(np.prod(a.shape)) * jnp.dtype(a.dtype).itemsize


def _vmem_budget_bytes(inputs, n_pad, n_tiles, tile_e):
    const_bytes = _nbytes(inputs[0]) + sum(_nbytes(a) for a in inputs[4:])
    edge_tile_bytes = tile_e * (EDGE_IN * 4 + 4 + 4)
    scratch_bytes = (2 * n_pad * HID_P * 4 + n_pad * HID_P * 2
                     + n_tiles * tile_e * KBIG_P * 2)
    out_bytes = n_pad * HID_P * 4
    temp_bytes = (3 * tile_e * KBIG_P * 2        # hh, xx, hh*xx (bf16)
                  + 2 * tile_e * n_pad * 2       # one-hots (bf16)
                  + 6 * tile_e * HID_P * 4)      # x_src / msgs temporaries
    return (2 * const_bytes + 2 * edge_tile_bytes + scratch_bytes
            + 2 * out_bytes + temp_bytes)


def _cost_estimate(n_pad, e_pad, inputs):
    per_step_edges = (
        2 * e_pad * n_pad * HID_P * 2            # one-hot gather + scatter
        + 2 * e_pad * HID_P * KBIG_P             # xx expansion
        + 2 * e_pad * KBIG_P * HID_P             # main big-K contraction
        + 2 * e_pad * HID_P * HID_P)             # edge-net bias path
    per_step_nodes = 2 * 3 * n_pad * HID_P * HID_P   # root fold + message layer
    step0_extra = (2 * e_pad * EDGE_IN * HID_P       # edge-net layer 1
                   + 2 * e_pad * HID_P * KBIG_P)     # hh expansion (cached)
    flops = (NUM_STEPS * (per_step_edges + per_step_nodes)
             + step0_extra + 2 * n_pad * HID_P * HID_P)
    bytes_accessed = (sum(_nbytes(a) for a in inputs)
                      + 2 * (e_pad * EDGE_IN * 4 + e_pad * 8)      # edge re-fetches
                      + n_pad * HID_P * 4)
    return int(flops), int(bytes_accessed)


def init_params(key):
    """Deterministic PyTorch-Linear-style init (U(-1/sqrt(fan_in), 1/sqrt(fan_in)))."""
    def linear(k, fan_in, fan_out):
        k1, k2 = jax.random.split(k)
        bound = 1.0 / np.sqrt(fan_in)
        w = jax.random.uniform(k1, (fan_in, fan_out), jnp.float32, -bound, bound)
        b = jax.random.uniform(k2, (fan_out,), jnp.float32, -bound, bound)
        return w, b

    keys = jax.random.split(key, 6)
    l0w, l0b = linear(keys[0], NODE_IN, HID)                 # lin0
    ew1, eb1 = linear(keys[1], EDGE_IN, EDGE_HID)            # edge_network[0]
    ew2, eb2 = linear(keys[2], EDGE_HID, HID * HID)          # edge_network[2]
    mw, mb = linear(keys[3], 2 * HID, HID)                   # message_layer
    rb = 1.0 / np.sqrt(HID)
    root = jax.random.uniform(keys[4], (HID, HID), jnp.float32, -rb, rb)   # NNConv root
    cbias = jax.random.uniform(keys[5], (HID,), jnp.float32, -rb, rb)      # NNConv bias
    return dict(l0w=l0w, l0b=l0b, ew1=ew1, eb1=eb1, ew2=ew2, eb2=eb2,
                mw=mw, mb=mb, root=root, cbias=cbias)


def gather_model_forward(x, edge_index, edge_attr, params, *, tile_e=256,
                         vmem_limit_bytes=None):
    """Forward pass of GatherModel.  tile_e is the main perf knob
    (>=256 on v6e/v7x, ~128 on v5e's 128-wide MXU)."""
    N = x.shape[0]
    E = edge_attr.shape[0]
    assert x.shape[1] == NODE_IN
    assert tile_e % 8 == 0
    # TODO(synk): the len(edge_attr)==0 branch (m = relu(conv.bias + out)) is not
    # implemented in the kernel; this wrapper assumes at least one edge.
    assert E >= 1

    f32, bf16, i32 = jnp.float32, jnp.bfloat16, jnp.int32

    n_pad = _round_up(N, 8)                 # sublane-aligned node count
    e_pad = _round_up(E, tile_e)            # whole number of edge tiles
    n_tiles = e_pad // tile_e
    sentinel = n_pad                        # out-of-range id -> all-zero one-hot

    # Node features zero-padded to lane-dense (n_pad, HID_P); serves lin0 input
    # and the final residual (node_input_dim == node_hidden_dim in this module).
    x_p = jnp.zeros((n_pad, HID_P), f32).at[:N, :NODE_IN].set(x)

    ea_p = jnp.zeros((e_pad, EDGE_IN), f32).at[:E].set(edge_attr)
    ea_t = ea_p.reshape(n_tiles, tile_e, EDGE_IN)
    pad_idx = jnp.full((e_pad - E,), sentinel, i32)
    src_p = jnp.concatenate([edge_index[0].astype(i32), pad_idx]
                            ).reshape(n_tiles, tile_e, 1)
    dst_p = jnp.concatenate([edge_index[1].astype(i32), pad_idx]
                            ).reshape(n_tiles, 1, tile_e)

    rexp, texp = _expansion_constants()

    def pad2(w, r, c, dtype=f32):
        return jnp.zeros((r, c), f32).at[:w.shape[0], :w.shape[1]].set(w).astype(dtype)

    l0w_p = pad2(params['l0w'], HID_P, HID_P)
    l0b_p = pad2(params['l0b'].reshape(1, HID), 1, HID_P)
    ew1_p = pad2(params['ew1'], EDGE_IN, HID_P)
    eb1_p = pad2(params['eb1'].reshape(1, EDGE_HID), 1, HID_P)

    # torch view(-1, in_channels, out_channels): flat index d*HID + o -> [d, o];
    # reshaped so row index k*HID + d matches the outer-product layout, then
    # zero-padded to (KBIG_P, HID_P) and committed to bf16 (MXU operand).
    ew2f_p = pad2(params['ew2'].reshape(EDGE_HID * HID, HID), KBIG_P, HID_P, bf16)
    b2m_p = pad2(params['eb2'].reshape(HID, HID), HID_P, HID_P, bf16)

    root_p = pad2(params['root'], HID_P, HID_P)
    cb_p = pad2(params['cbias'].reshape(1, HID), 1, HID_P)
    mwm_p = pad2(params['mw'][:HID, :], HID_P, HID_P)
    mwo_p = pad2(params['mw'][HID:, :], HID_P, HID_P)
    mb_p = pad2(params['mb'].reshape(1, HID), 1, HID_P)

    inputs = [x_p, ea_t, src_p, dst_p,
              l0w_p, l0b_p, ew1_p, eb1_p,
              ew2f_p, b2m_p, rexp, texp,
              root_p, cb_p, mwm_p, mwo_p, mb_p]

    def _const_spec(arr):
        ndim = arr.ndim
        return pl.BlockSpec(tuple(int(d) for d in arr.shape),
                            lambda *_: (0,) * ndim)

    in_specs = [
        _const_spec(x_p),
        pl.BlockSpec((None, tile_e, EDGE_IN), lambda s, e: (e, 0, 0)),
        pl.BlockSpec((None, tile_e, 1), lambda s, e: (e, 0, 0)),
        pl.BlockSpec((None, 1, tile_e), lambda s, e: (e, 0, 0)),
    ] + [_const_spec(a) for a in inputs[4:]]

    # TODO(synk): the hh cache scales with e_pad; for very large edge counts,
    # recompute hh per step (or stream it) instead of caching it in VMEM.
    scratch_shapes = [
        pltpu.VMEM((n_pad, HID_P), f32),                 # out  (running node state)
        pltpu.VMEM((n_pad, HID_P), bf16),                # bf16 copy of out (gather RHS)
        pltpu.VMEM((n_pad, HID_P), f32),                 # scatter accumulator
        pltpu.VMEM((n_tiles, tile_e, KBIG_P), bf16),     # cached hh (step-invariant)
    ]

    if vmem_limit_bytes is None:
        needed = _vmem_budget_bytes(inputs, n_pad, n_tiles, tile_e)
        # 64 MiB cap is physically safe on v5e/v6e (128 MiB) and v7x (64 MiB).
        vmem_limit_bytes = int(min(max(needed + (8 << 20), 32 << 20), 64 << 20))

    flops, bytes_accessed = _cost_estimate(n_pad, e_pad, inputs)

    # TODO(synk): on v7x, split the edge-tile axis across the 2 TensorCores
    # (core_map + per-core partial aggregators) for ~2x on the edge path.
    out = pl.pallas_call(
        gather_model_kernel,
        out_shape=jax.ShapeDtypeStruct((n_pad, HID_P), f32),
        grid=(NUM_STEPS, n_tiles),
        in_specs=in_specs,
        out_specs=pl.BlockSpec((n_pad, HID_P), lambda s, e: (0, 0)),
        scratch_shapes=scratch_shapes,
        compiler_params=pltpu.CompilerParams(
            dimension_semantics=("arbitrary", "arbitrary"),
            vmem_limit_bytes=vmem_limit_bytes),
        cost_estimate=pl.CostEstimate(flops=flops, transcendentals=0,
                                      bytes_accessed=bytes_accessed),
    )(*inputs)
    return out[:N, :HID]


def gather_model_reference(x, edge_index, edge_attr, params):
    """Pure-JAX reference of the PyTorch forward (for validation)."""
    N = x.shape[0]
    init = x
    out = jax.nn.relu(x @ params['l0w'] + params['l0b'])
    h = jax.nn.relu(edge_attr @ params['ew1'] + params['eb1'])
    We = (h @ params['ew2'] + params['eb2']).reshape(-1, HID, HID)
    src, dst = edge_index[0], edge_index[1]
    for _ in range(NUM_STEPS):
        x_src = out[src]
        msgs = jnp.einsum('ed,edo->eo', x_src, We)
        aggr = jax.ops.segment_sum(msgs, dst, num_segments=N)
        m = jax.nn.relu(aggr + out @ params['root'] + params['cbias'])
        out = jnp.concatenate([m, out], axis=1) @ params['mw'] + params['mb']
    return out + init


if __name__ == "__main__":
    key = jax.random.PRNGKey(0)
    kx, ke, kei, kp = jax.random.split(key, 4)

    # Small shapes; N, E deliberately not tile multiples to exercise padding.
    N, E = 10, 20
    x = jax.random.normal(kx, (N, NODE_IN), dtype=jnp.float32)
    edge_attr = jax.random.normal(ke, (E, EDGE_IN), dtype=jnp.float32)
    src = jax.random.randint(kei, (E,), 0, N)
    dst = jax.random.randint(jax.random.fold_in(kei, 1), (E,), 0, N)
    edge_index = jnp.stack([src, dst])

    params = init_params(kp)

    out = gather_model_forward(x, edge_index, edge_attr, params)
    out = jax.block_until_ready(out)

    ref = gather_model_reference(x, edge_index, edge_attr, params)
    assert out.shape == (N, HID)
    # Kernel explicitly commits to bf16 MXU operands (per review), so compare
    # against the f32 reference at bf16-appropriate tolerance.
    np.testing.assert_allclose(np.asarray(out), np.asarray(ref),
                               rtol=3e-2, atol=3e-2)

    print("KERNEL_OK")
</pallas_src>

<mosaic_0001>
module attributes {stable_mosaic.version = 11 : i64} {
  func.func @gather_model_kernel(%arg0: i32, %arg1: i32, %arg2: memref<16x128xf32, #tpu.memory_space<vmem>>, %arg3: memref<1x256x10xf32, #tpu.memory_space<vmem>>, %arg4: memref<1x256x1xi32, #tpu.memory_space<vmem>>, %arg5: memref<1x1x256xi32, #tpu.memory_space<vmem>>, %arg6: memref<128x128xf32, #tpu.memory_space<vmem>>, %arg7: memref<1x128xf32, #tpu.memory_space<vmem>>, %arg8: memref<10x128xf32, #tpu.memory_space<vmem>>, %arg9: memref<1x128xf32, #tpu.memory_space<vmem>>, %arg10: memref<1792x128xbf16, #tpu.memory_space<vmem>>, %arg11: memref<128x128xbf16, #tpu.memory_space<vmem>>, %arg12: memref<128x1792xbf16, #tpu.memory_space<vmem>>, %arg13: memref<128x1792xbf16, #tpu.memory_space<vmem>>, %arg14: memref<128x128xf32, #tpu.memory_space<vmem>>, %arg15: memref<1x128xf32, #tpu.memory_space<vmem>>, %arg16: memref<128x128xf32, #tpu.memory_space<vmem>>, %arg17: memref<128x128xf32, #tpu.memory_space<vmem>>, %arg18: memref<1x128xf32, #tpu.memory_space<vmem>>, %arg19: memref<16x128xf32, #tpu.memory_space<vmem>>, %arg20: memref<16x128xf32, #tpu.memory_space<vmem>>, %arg21: memref<16x128xbf16, #tpu.memory_space<vmem>>, %arg22: memref<16x128xf32, #tpu.memory_space<vmem>>, %arg23: memref<1x256x1792xbf16, #tpu.memory_space<vmem>>) attributes {dimension_semantics = [#tpu.dimension_semantics<arbitrary>, #tpu.dimension_semantics<arbitrary>], iteration_bounds = array<i64: 3, 1>, scalar_prefetch = 0 : i64, scratch_operands = 4 : i64, tpu.core_type = #tpu.core_type<tc>, window_params = [{pipeline_mode = #tpu.pipeline_mode<synchronous>, transform_indices = @transform_0, window_bounds = array<i64: 16, 128>}, {transform_indices = @transform_1, window_bounds = array<i64: 1, 256, 10>}, {transform_indices = @transform_2, window_bounds = array<i64: 1, 256, 1>}, {transform_indices = @transform_3, window_bounds = array<i64: 1, 1, 256>}, {pipeline_mode = #tpu.pipeline_mode<synchronous>, transform_indices = @transform_4, window_bounds = array<i64: 128, 128>}, {pipeline_mode = #tpu.pipeline_mode<synchronous>, transform_indices = @transform_5, window_bounds = array<i64: 1, 128>}, {pipeline_mode = #tpu.pipeline_mode<synchronous>, transform_indices = @transform_6, window_bounds = array<i64: 10, 128>}, {pipeline_mode = #tpu.pipeline_mode<synchronous>, transform_indices = @transform_7, window_bounds = array<i64: 1, 128>}, {pipeline_mode = #tpu.pipeline_mode<synchronous>, transform_indices = @transform_8, window_bounds = array<i64: 1792, 128>}, {pipeline_mode = #tpu.pipeline_mode<synchronous>, transform_indices = @transform_9, window_bounds = array<i64: 128, 128>}, {pipeline_mode = #tpu.pipeline_mode<synchronous>, transform_indices = @transform_10, window_bounds = array<i64: 128, 1792>}, {pipeline_mode = #tpu.pipeline_mode<synchronous>, transform_indices = @transform_11, window_bounds = array<i64: 128, 1792>}, {pipeline_mode = #tpu.pipeline_mode<synchronous>, transform_indices = @transform_12, window_bounds = array<i64: 128, 128>}, {pipeline_mode = #tpu.pipeline_mode<synchronous>, transform_indices = @transform_13, window_bounds = array<i64: 1, 128>}, {pipeline_mode = #tpu.pipeline_mode<synchronous>, transform_indices = @transform_14, window_bounds = array<i64: 128, 128>}, {pipeline_mode = #tpu.pipeline_mode<synchronous>, transform_indices = @transform_15, window_bounds = array<i64: 128, 128>}, {pipeline_mode = #tpu.pipeline_mode<synchronous>, transform_indices = @transform_16, window_bounds = array<i64: 1, 128>}, {pipeline_mode = #tpu.pipeline_mode<synchronous>, transform_indices = @transform_17, window_bounds = array<i64: 16, 128>}]} {
    %c0_i32 = arith.constant 0 : i32
    %0 = arith.cmpi eq, %arg0, %c0_i32 : i32
    %c0_i32_0 = arith.constant 0 : i32
    %1 = arith.cmpi eq, %arg1, %c0_i32_0 : i32
    %2 = arith.andi %0, %1 : i1
    %3 = arith.extui %2 : i1 to i32
    %c0_i32_1 = arith.constant 0 : i32
    %4 = arith.cmpi ne, %3, %c0_i32_1 : i32
    scf.if %4 {
      %c0_33 = arith.constant 0 : index
      %c0_34 = arith.constant 0 : index
      %55 = vector.load %arg2[%c0_33, %c0_34] : memref<16x128xf32, #tpu.memory_space<vmem>>, vector<16x128xf32>
      %c0_35 = arith.constant 0 : index
      %c0_36 = arith.constant 0 : index
      %56 = vector.load %arg6[%c0_35, %c0_36] : memref<128x128xf32, #tpu.memory_space<vmem>>, vector<128x128xf32>
      %cst_37 = arith.constant dense<0.000000e+00> : vector<16x128xf32>
      %57 = tpu.matmul %55, %56, %cst_37 {dimension_numbers = #tpu.dot_dimension_numbers<[1], [0], [0], [1], [0, 0, 1, 1], [], []>} : vector<16x128xf32>, vector<128x128xf32>, vector<16x128xf32> -> vector<16x128xf32>
      %c0_38 = arith.constant 0 : index
      %c0_39 = arith.constant 0 : index
      %58 = vector.load %arg7[%c0_38, %c0_39] : memref<1x128xf32, #tpu.memory_space<vmem>>, vector<1x128xf32>
      %59 = vector.broadcast %58 : vector<1x128xf32> to vector<16x128xf32>
      %60 = arith.addf %57, %59 : vector<16x128xf32>
      %cst_40 = arith.constant 0.000000e+00 : f32
      %61 = vector.broadcast %cst_40 : f32 to vector<16x128xf32>
      %62 = arith.maximumf %60, %61 : vector<16x128xf32>
      %c0_41 = arith.constant 0 : index
      %c0_42 = arith.constant 0 : index
      %63 = vector.load %arg20[%c0_41, %c0_42] : memref<16x128xf32, #tpu.memory_space<vmem>>, vector<16x128xf32>
      tpu.vector_store %arg20[%c0_41, %c0_42], %62 {strides = array<i32>} : memref<16x128xf32, #tpu.memory_space<vmem>>, vector<16x128xf32>,
      %64 = arith.truncf %62 : vector<16x128xf32> to vector<16x128xbf16>
      %c0_43 = arith.constant 0 : index
      %c0_44 = arith.constant 0 : index
      %65 = vector.load %arg21[%c0_43, %c0_44] : memref<16x128xbf16, #tpu.memory_space<vmem>>, vector<16x128xbf16>
      tpu.vector_store %arg21[%c0_43, %c0_44], %64 {strides = array<i32>} : memref<16x128xbf16, #tpu.memory_space<vmem>>, vector<16x128xbf16>,
    } else {
    }
    %c0_i32_2 = arith.constant 0 : i32
    %5 = arith.cmpi eq, %arg1, %c0_i32_2 : i32
    %6 = arith.extui %5 : i1 to i32
    %c0_i32_3 = arith.constant 0 : i32
    %7 = arith.cmpi ne, %6, %c0_i32_3 : i32
    scf.if %7 {
      %c0_33 = arith.constant 0 : index
      %c0_34 = arith.constant 0 : index
      %55 = vector.load %arg20[%c0_33, %c0_34] : memref<16x128xf32, #tpu.memory_space<vmem>>, vector<16x128xf32>
      %c0_35 = arith.constant 0 : index
      %c0_36 = arith.constant 0 : index
      %56 = vector.load %arg14[%c0_35, %c0_36] : memref<128x128xf32, #tpu.memory_space<vmem>>, vector<128x128xf32>
      %cst_37 = arith.constant dense<0.000000e+00> : vector<16x128xf32>
      %57 = tpu.matmul %55, %56, %cst_37 {dimension_numbers = #tpu.dot_dimension_numbers<[1], [0], [0], [1], [0, 0, 1, 1], [], []>} : vector<16x128xf32>, vector<128x128xf32>, vector<16x128xf32> -> vector<16x128xf32>
      %c0_38 = arith.constant 0 : index
      %c0_39 = arith.constant 0 : index
      %58 = vector.load %arg15[%c0_38, %c0_39] : memref<1x128xf32, #tpu.memory_space<vmem>>, vector<1x128xf32>
      %59 = vector.broadcast %58 : vector<1x128xf32> to vector<16x128xf32>
      %60 = arith.addf %57, %59 : vector<16x128xf32>
      %c0_40 = arith.constant 0 : index
      %c0_41 = arith.constant 0 : index
      %61 = vector.load %arg22[%c0_40, %c0_41] : memref<16x128xf32, #tpu.memory_space<vmem>>, vector<16x128xf32>
      tpu.vector_store %arg22[%c0_40, %c0_41], %60 {strides = array<i32>} : memref<16x128xf32, #tpu.memory_space<vmem>>, vector<16x128xf32>,
    } else {
    }
    %c0_i32_4 = arith.constant 0 : i32
    %8 = arith.cmpi eq, %arg0, %c0_i32_4 : i32
    %9 = arith.extui %8 : i1 to i32
    %c0_i32_5 = arith.constant 0 : i32
    %10 = arith.cmpi ne, %9, %c0_i32_5 : i32
    scf.if %10 {
      %c0_33 = arith.constant 0 : index
      %c0_34 = arith.constant 0 : index
      %c0_35 = arith.constant 0 : index
      %55 = vector.load %arg3[%c0_33, %c0_34, %c0_35] : memref<1x256x10xf32, #tpu.memory_space<vmem>>, vector<1x256x10xf32>
      %56 = vector.shape_cast %55 : vector<1x256x10xf32> to vector<256x10xf32>
      %c0_36 = arith.constant 0 : index
      %c0_37 = arith.constant 0 : index
      %57 = vector.load %arg8[%c0_36, %c0_37] : memref<10x128xf32, #tpu.memory_space<vmem>>, vector<10x128xf32>
      %cst_38 = arith.constant dense<0.000000e+00> : vector<256x128xf32>
      %58 = tpu.matmul %56, %57, %cst_38 {dimension_numbers = #tpu.dot_dimension_numbers<[1], [0], [0], [1], [0, 0, 1, 1], [], []>} : vector<256x10xf32>, vector<10x128xf32>, vector<256x128xf32> -> vector<256x128xf32>
      %c0_39 = arith.constant 0 : index
      %c0_40 = arith.constant 0 : index
      %59 = vector.load %arg9[%c0_39, %c0_40] : memref<1x128xf32, #tpu.memory_space<vmem>>, vector<1x128xf32>
      %60 = vector.broadcast %59 : vector<1x128xf32> to vector<256x128xf32>
      %61 = arith.addf %58, %60 : vector<256x128xf32>
      %cst_41 = arith.constant 0.000000e+00 : f32
      %62 = vector.broadcast %cst_41 : f32 to vector<256x128xf32>
      %63 = arith.maximumf %61, %62 : vector<256x128xf32>
      %64 = arith.truncf %63 : vector<256x128xf32> to vector<256x128xbf16>
      %c0_42 = arith.constant 0 : index
      %c0_43 = arith.constant 0 : index
      %65 = vector.load %arg12[%c0_42, %c0_43] : memref<128x1792xbf16, #tpu.memory_space<vmem>>, vector<128x1792xbf16>
      %cst_44 = arith.constant dense<0.000000e+00> : vector<256x1792xf32>
      %66 = tpu.matmul %64, %65, %cst_44 {dimension_numbers = #tpu.dot_dimension_numbers<[1], [0], [0], [1], [0, 0, 1, 1], [], []>} : vector<256x128xbf16>, vector<128x1792xbf16>, vector<256x1792xf32> -> vector<256x1792xf32>
      %67 = arith.truncf %66 : vector<256x1792xf32> to vector<256x1792xbf16>
      %68 = arith.index_cast %arg1 : i32 to index
      %c0_45 = arith.constant 0 : index
      %c0_46 = arith.constant 0 : index
      %69 = vector.load %arg23[%68, %c0_45, %c0_46] : memref<1x256x1792xbf16, #tpu.memory_space<vmem>>, vector<1x256x1792xbf16>
      %70 = vector.shape_cast %69 : vector<1x256x1792xbf16> to vector<256x1792xbf16>
      %71 = vector.shape_cast %67 : vector<256x1792xbf16> to vector<1x256x1792xbf16>
      tpu.vector_store %arg23[%68, %c0_45, %c0_46], %71 {strides = array<i32>} : memref<1x256x1792xbf16, #tpu.memory_space<vmem>>, vector<1x256x1792xbf16>,
    } else {
    }
    %11 = arith.index_cast %arg1 : i32 to index
    %c0 = arith.constant 0 : index
    %c0_6 = arith.constant 0 : index
    %12 = vector.load %arg23[%11, %c0, %c0_6] : memref<1x256x1792xbf16, #tpu.memory_space<vmem>>, vector<1x256x1792xbf16>
    %13 = vector.shape_cast %12 : vector<1x256x1792xbf16> to vector<256x1792xbf16>
    %c0_7 = arith.constant 0 : index
    %c0_8 = arith.constant 0 : index
    %c0_9 = arith.constant 0 : index
    %14 = vector.load %arg4[%c0_7, %c0_8, %c0_9] : memref<1x256x1xi32, #tpu.memory_space<vmem>>, vector<1x256x1xi32>
    %15 = vector.shape_cast %14 : vector<1x256x1xi32> to vector<256x1xi32>
    %c0_10 = arith.constant 0 : index
    %c0_11 = arith.constant 0 : index
    %c0_12 = arith.constant 0 : index
    %16 = vector.load %arg5[%c0_10, %c0_11, %c0_12] : memref<1x1x256xi32, #tpu.memory_space<vmem>>, vector<1x1x256xi32>
    %17 = vector.shape_cast %16 : vector<1x1x256xi32> to vector<1x256xi32>
    %18 = tpu.iota {dimensions = array<i32: 1>} : vector<256x16xi32>
    %19 = vector.broadcast %15 : vector<256x1xi32> to vector<256x16xi32>
    %20 = arith.cmpi eq, %18, %19 : vector<256x16xi32>
    %21 = arith.extui %20 : vector<256x16xi1> to vector<256x16xi32>
    %22 = arith.sitofp %21 : vector<256x16xi32> to vector<256x16xf32>
    %23 = arith.truncf %22 : vector<256x16xf32> to vector<256x16xbf16>
    %c0_13 = arith.constant 0 : index
    %c0_14 = arith.constant 0 : index
    %24 = vector.load %arg21[%c0_13, %c0_14] : memref<16x128xbf16, #tpu.memory_space<vmem>>, vector<16x128xbf16>
    %cst = arith.constant dense<0.000000e+00> : vector<256x128xf32>
    %25 = tpu.matmul %23, %24, %cst {dimension_numbers = #tpu.dot_dimension_numbers<[1], [0], [0], [1], [0, 0, 1, 1], [], []>} : vector<256x16xbf16>, vector<16x128xbf16>, vector<256x128xf32> -> vector<256x128xf32>
    %26 = arith.truncf %25 : vector<256x128xf32> to vector<256x128xbf16>
    %c0_15 = arith.constant 0 : index
    %c0_16 = arith.constant 0 : index
    %27 = vector.load %arg13[%c0_15, %c0_16] : memref<128x1792xbf16, #tpu.memory_space<vmem>>, vector<128x1792xbf16>
    %cst_17 = arith.constant dense<0.000000e+00> : vector<256x1792xf32>
    %28 = tpu.matmul %26, %27, %cst_17 {dimension_numbers = #tpu.dot_dimension_numbers<[1], [0], [0], [1], [0, 0, 1, 1], [], []>} : vector<256x128xbf16>, vector<128x1792xbf16>, vector<256x1792xf32> -> vector<256x1792xf32>
    %29 = arith.truncf %28 : vector<256x1792xf32> to vector<256x1792xbf16>
    %30 = arith.mulf %13, %29 : vector<256x1792xbf16>
    %c0_18 = arith.constant 0 : index
    %c0_19 = arith.constant 0 : index
    %31 = vector.load %arg10[%c0_18, %c0_19] : memref<1792x128xbf16, #tpu.memory_space<vmem>>, vector<1792x128xbf16>
    %cst_20 = arith.constant dense<0.000000e+00> : vector<256x128xf32>
    %32 = tpu.matmul %30, %31, %cst_20 {dimension_numbers = #tpu.dot_dimension_numbers<[1], [0], [0], [1], [0, 0, 1, 1], [], []>} : vector<256x1792xbf16>, vector<1792x128xbf16>, vector<256x128xf32> -> vector<256x128xf32>
    %c0_21 = arith.constant 0 : index
    %c0_22 = arith.constant 0 : index
    %33 = vector.load %arg11[%c0_21, %c0_22] : memref<128x128xbf16, #tpu.memory_space<vmem>>, vector<128x128xbf16>
    %cst_23 = arith.constant dense<0.000000e+00> : vector<256x128xf32>
    %34 = tpu.matmul %26, %33, %cst_23 {dimension_numbers = #tpu.dot_dimension_numbers<[1], [0], [0], [1], [0, 0, 1, 1], [], []>} : vector<256x128xbf16>, vector<128x128xbf16>, vector<256x128xf32> -> vector<256x128xf32>
    %35 = arith.addf %32, %34 : vector<256x128xf32>
    %36 = tpu.iota {dimensions = array<i32: 0>} : vector<16x256xi32>
    %37 = vector.broadcast %17 : vector<1x256xi32> to vector<16x256xi32>
    %38 = arith.cmpi eq, %36, %37 : vector<16x256xi32>
    %39 = arith.extui %38 : vector<16x256xi1> to vector<16x256xi32>
    %40 = arith.sitofp %39 : vector<16x256xi32> to vector<16x256xf32>
    %41 = arith.truncf %40 : vector<16x256xf32> to vector<16x256xbf16>
    %c0_24 = arith.constant 0 : index
    %c0_25 = arith.constant 0 : index
    %42 = vector.load %arg22[%c0_24, %c0_25] : memref<16x128xf32, #tpu.memory_space<vmem>>, vector<16x128xf32>
    %43 = arith.truncf %35 : vector<256x128xf32> to vector<256x128xbf16>
    %cst_26 = arith.constant dense<0.000000e+00> : vector<16x128xf32>
    %44 = tpu.matmul %41, %43, %cst_26 {dimension_numbers = #tpu.dot_dimension_numbers<[1], [0], [0], [1], [0, 0, 1, 1], [], []>} : vector<16x256xbf16>, vector<256x128xbf16>, vector<16x128xf32> -> vector<16x128xf32>
    %45 = arith.addf %42, %44 : vector<16x128xf32>
    %c0_27 = arith.constant 0 : index
    %c0_28 = arith.constant 0 : index
    %46 = vector.load %arg22[%c0_27, %c0_28] : memref<16x128xf32, #tpu.memory_space<vmem>>, vector<16x128xf32>
    tpu.vector_store %arg22[%c0_27, %c0_28], %45 {strides = array<i32>} : memref<16x128xf32, #tpu.memory_space<vmem>>, vector<16x128xf32>,
    %c0_i32_29 = arith.constant 0 : i32
    %47 = arith.cmpi eq, %arg1, %c0_i32_29 : i32
    %48 = arith.extui %47 : i1 to i32
    %c0_i32_30 = arith.constant 0 : i32
    %49 = arith.cmpi ne, %48, %c0_i32_30 : i32
    scf.if %49 {
      %c0_33 = arith.constant 0 : index
      %c0_34 = arith.constant 0 : index
      %55 = vector.load %arg20[%c0_33, %c0_34] : memref<16x128xf32, #tpu.memory_space<vmem>>, vector<16x128xf32>
      %c0_35 = arith.constant 0 : index
      %c0_36 = arith.constant 0 : index
      %56 = vector.load %arg22[%c0_35, %c0_36] : memref<16x128xf32, #tpu.memory_space<vmem>>, vector<16x128xf32>
      %cst_37 = arith.constant 0.000000e+00 : f32
      %57 = vector.broadcast %cst_37 : f32 to vector<16x128xf32>
      %58 = arith.maximumf %56, %57 : vector<16x128xf32>
      %c0_38 = arith.constant 0 : index
      %c0_39 = arith.constant 0 : index
      %59 = vector.load %arg16[%c0_38, %c0_39] : memref<128x128xf32, #tpu.memory_space<vmem>>, vector<128x128xf32>
      %cst_40 = arith.constant dense<0.000000e+00> : vector<16x128xf32>
      %60 = tpu.matmul %58, %59, %cst_40 {dimension_numbers = #tpu.dot_dimension_numbers<[1], [0], [0], [1], [0, 0, 1, 1], [], []>} : vector<16x128xf32>, vector<128x128xf32>, vector<16x128xf32> -> vector<16x128xf32>
      %c0_41 = arith.constant 0 : index
      %c0_42 = arith.constant 0 : index
      %61 = vector.load %arg17[%c0_41, %c0_42] : memref<128x128xf32, #tpu.memory_space<vmem>>, vector<128x128xf32>
      %cst_43 = arith.constant dense<0.000000e+00> : vector<16x128xf32>
      %62 = tpu.matmul %55, %61, %cst_43 {dimension_numbers = #tpu.dot_dimension_numbers<[1], [0], [0], [1], [0, 0, 1, 1], [], []>} : vector<16x128xf32>, vector<128x128xf32>, vector<16x128xf32> -> vector<16x128xf32>
      %63 = arith.addf %60, %62 : vector<16x128xf32>
      %c0_44 = arith.constant 0 : index
      %c0_45 = arith.constant 0 : index
      %64 = vector.load %arg18[%c0_44, %c0_45] : memref<1x128xf32, #tpu.memory_space<vmem>>, vector<1x128xf32>
      %65 = vector.broadcast %64 : vector<1x128xf32> to vector<16x128xf32>
      %66 = arith.addf %63, %65 : vector<16x128xf32>
      %c0_46 = arith.constant 0 : index
      %c0_47 = arith.constant 0 : index
      %67 = vector.load %arg20[%c0_46, %c0_47] : memref<16x128xf32, #tpu.memory_space<vmem>>, vector<16x128xf32>
      tpu.vector_store %arg20[%c0_46, %c0_47], %66 {strides = array<i32>} : memref<16x128xf32, #tpu.memory_space<vmem>>, vector<16x128xf32>,
      %68 = arith.truncf %66 : vector<16x128xf32> to vector<16x128xbf16>
      %c0_48 = arith.constant 0 : index
      %c0_49 = arith.constant 0 : index
      %69 = vector.load %arg21[%c0_48, %c0_49] : memref<16x128xbf16, #tpu.memory_space<vmem>>, vector<16x128xbf16>
      tpu.vector_store %arg21[%c0_48, %c0_49], %68 {strides = array<i32>} : memref<16x128xbf16, #tpu.memory_space<vmem>>, vector<16x128xbf16>,
    } else {
    }
    %c2_i32 = arith.constant 2 : i32
    %50 = arith.cmpi eq, %arg0, %c2_i32 : i32
    %c0_i32_31 = arith.constant 0 : i32
    %51 = arith.cmpi eq, %arg1, %c0_i32_31 : i32
    %52 = arith.andi %50, %51 : i1
    %53 = arith.extui %52 : i1 to i32
    %c0_i32_32 = arith.constant 0 : i32
    %54 = arith.cmpi ne, %53, %c0_i32_32 : i32
    scf.if %54 {
      %c0_33 = arith.constant 0 : index
      %c0_34 = arith.constant 0 : index
      %55 = vector.load %arg20[%c0_33, %c0_34] : memref<16x128xf32, #tpu.memory_space<vmem>>, vector<16x128xf32>
      %c0_35 = arith.constant 0 : index
      %c0_36 = arith.constant 0 : index
      %56 = vector.load %arg2[%c0_35, %c0_36] : memref<16x128xf32, #tpu.memory_space<vmem>>, vector<16x128xf32>
      %57 = arith.addf %55, %56 : vector<16x128xf32>
      %c0_37 = arith.constant 0 : index
      %c0_38 = arith.constant 0 : index
      %58 = vector.load %arg19[%c0_37, %c0_38] : memref<16x128xf32, #tpu.memory_space<vmem>>, vector<16x128xf32>
      tpu.vector_store %arg19[%c0_37, %c0_38], %57 {strides = array<i32>} : memref<16x128xf32, #tpu.memory_space<vmem>>, vector<16x128xf32>,
    } else {
    }
    return
  }
  func.func @transform_0(%arg0: i32, %arg1: i32) -> (i32, i32) {
    %c0_i32 = arith.constant 0 : i32
    %c0_i32_0 = arith.constant 0 : i32
    %c0_i32_1 = arith.constant 0 : i32
    return %c0_i32, %c0_i32_0 : i32, i32
  }
  func.func @transform_1(%arg0: i32, %arg1: i32) -> (i32, i32, i32) {
    %c0_i32 = arith.constant 0 : i32
    %c0_i32_0 = arith.constant 0 : i32
    %c0_i32_1 = arith.constant 0 : i32
    return %arg1, %c0_i32, %c0_i32_0 : i32, i32, i32
  }
  func.func @transform_2(%arg0: i32, %arg1: i32) -> (i32, i32, i32) {
    %c0_i32 = arith.constant 0 : i32
    %c0_i32_0 = arith.constant 0 : i32
    %c0_i32_1 = arith.constant 0 : i32
    return %arg1, %c0_i32, %c0_i32_0 : i32, i32, i32
  }
  func.func @transform_3(%arg0: i32, %arg1: i32) -> (i32, i32, i32) {
    %c0_i32 = arith.constant 0 : i32
    %c0_i32_0 = arith.constant 0 : i32
    %c0_i32_1 = arith.constant 0 : i32
    return %arg1, %c0_i32, %c0_i32_0 : i32, i32, i32
  }
  func.func @transform_4(%arg0: i32, %arg1: i32) -> (i32, i32) {
    %c0_i32 = arith.constant 0 : i32
    %c0_i32_0 = arith.constant 0 : i32
    %c0_i32_1 = arith.constant 0 : i32
    return %c0_i32, %c0_i32_0 : i32, i32
  }
  func.func @transform_5(%arg0: i32, %arg1: i32) -> (i32, i32) {
    %c0_i32 = arith.constant 0 : i32
    %c0_i32_0 = arith.constant 0 : i32
    %c0_i32_1 = arith.constant 0 : i32
    return %c0_i32, %c0_i32_0 : i32, i32
  }
  func.func @transform_6(%arg0: i32, %arg1: i32) -> (i32, i32) {
    %c0_i32 = arith.constant 0 : i32
    %c0_i32_0 = arith.constant 0 : i32
    %c0_i32_1 = arith.constant 0 : i32
    return %c0_i32, %c0_i32_0 : i32, i32
  }
  func.func @transform_7(%arg0: i32, %arg1: i32) -> (i32, i32) {
    %c0_i32 = arith.constant 0 : i32
    %c0_i32_0 = arith.constant 0 : i32
    %c0_i32_1 = arith.constant 0 : i32
    return %c0_i32, %c0_i32_0 : i32, i32
  }
  func.func @transform_8(%arg0: i32, %arg1: i32) -> (i32, i32) {
    %c0_i32 = arith.constant 0 : i32
    %c0_i32_0 = arith.constant 0 : i32
    %c0_i32_1 = arith.constant 0 : i32
    return %c0_i32, %c0_i32_0 : i32, i32
  }
  func.func @transform_9(%arg0: i32, %arg1: i32) -> (i32, i32) {
    %c0_i32 = arith.constant 0 : i32
    %c0_i32_0 = arith.constant 0 : i32
    %c0_i32_1 = arith.constant 0 : i32
    return %c0_i32, %c0_i32_0 : i32, i32
  }
  func.func @transform_10(%arg0: i32, %arg1: i32) -> (i32, i32) {
    %c0_i32 = arith.constant 0 : i32
    %c0_i32_0 = arith.constant 0 : i32
    %c0_i32_1 = arith.constant 0 : i32
    return %c0_i32, %c0_i32_0 : i32, i32
  }
  func.func @transform_11(%arg0: i32, %arg1: i32) -> (i32, i32) {
    %c0_i32 = arith.constant 0 : i32
    %c0_i32_0 = arith.constant 0 : i32
    %c0_i32_1 = arith.constant 0 : i32
    return %c0_i32, %c0_i32_0 : i32, i32
  }
  func.func @transform_12(%arg0: i32, %arg1: i32) -> (i32, i32) {
    %c0_i32 = arith.constant 0 : i32
    %c0_i32_0 = arith.constant 0 : i32
    %c0_i32_1 = arith.constant 0 : i32
    return %c0_i32, %c0_i32_0 : i32, i32
  }
  func.func @transform_13(%arg0: i32, %arg1: i32) -> (i32, i32) {
    %c0_i32 = arith.constant 0 : i32
    %c0_i32_0 = arith.constant 0 : i32
    %c0_i32_1 = arith.constant 0 : i32
    return %c0_i32, %c0_i32_0 : i32, i32
  }
  func.func @transform_14(%arg0: i32, %arg1: i32) -> (i32, i32) {
    %c0_i32 = arith.constant 0 : i32
    %c0_i32_0 = arith.constant 0 : i32
    %c0_i32_1 = arith.constant 0 : i32
    return %c0_i32, %c0_i32_0 : i32, i32
  }
  func.func @transform_15(%arg0: i32, %arg1: i32) -> (i32, i32) {
    %c0_i32 = arith.constant 0 : i32
    %c0_i32_0 = arith.constant 0 : i32
    %c0_i32_1 = arith.constant 0 : i32
    return %c0_i32, %c0_i32_0 : i32, i32
  }
  func.func @transform_16(%arg0: i32, %arg1: i32) -> (i32, i32) {
    %c0_i32 = arith.constant 0 : i32
    %c0_i32_0 = arith.constant 0 : i32
    %c0_i32_1 = arith.constant 0 : i32
    return %c0_i32, %c0_i32_0 : i32, i32
  }
  func.func @transform_17(%arg0: i32, %arg1: i32) -> (i32, i32) {
    %c0_i32 = arith.constant 0 : i32
    %c0_i32_0 = arith.constant 0 : i32
    %c0_i32_1 = arith.constant 0 : i32
    return %c0_i32, %c0_i32_0 : i32, i32
  }
}

</mosaic_0001>

<bundles_post_ra>
// kernel: tpu_custom_call.1
= control target key start
LH: loop header
LB: loop body
LE: loop exit
PB: predicated region body
PF: predicated region fallthrough
CT: control target
= control target key end

     0   :  { %s16328_s0 = inlined_call_operand.vmem [shape: f32[16,128], index: 0, kind: input, shape index: {}]   ;;  %s16329_s1 = inlined_call_operand.vmem [shape: f32[1,256,10], index: 1, kind: input, shape index: {}]   ;;  %s16330_s2 = inlined_call_operand.vmem [shape: s32[1,256,1], index: 2, kind: input, shape index: {}]   ;;  %s16331_s3 = inlined_call_operand.vmem [shape: s32[1,1,256], index: 3, kind: input, shape index: {}]   ;;  %s16332_s4 = inlined_call_operand.vmem [shape: f32[128,128], index: 4, kind: input, shape index: {}]   ;;  %s16333_s5 = inlined_call_operand.vmem [shape: f32[1,128], index: 5, kind: input, shape index: {}]   ;;  %s16334_s6 = inlined_call_operand.vmem [shape: f32[10,128], index: 6, kind: input, shape index: {}]   ;;  %s16335_s7 = inlined_call_operand.vmem [shape: f32[1,128], index: 7, kind: input, shape index: {}]   ;;  %s16336_s8 = inlined_call_operand.hbm [shape: bf16[1792,128], index: 8, kind: input, shape index: {}]   ;;  %s16337_s9 = inlined_call_operand.hbm [shape: bf16[128,128], index: 9, kind: input, shape index: {}]   ;;  %s16338_s10 = inlined_call_operand.hbm [shape: bf16[128,1792], index: 10, kind: input, shape index: {}]   ;;  %s16339_s11 = inlined_call_operand.hbm [shape: bf16[128,1792], index: 11, kind: input, shape index: {}]   ;;  %s16340_s12 = inlined_call_operand.vmem [shape: f32[128,128], index: 12, kind: input, shape index: {}]   ;;  %s16341_s13 = inlined_call_operand.vmem [shape: f32[1,128], index: 13, kind: input, shape index: {}]   ;;  %s16342_s14 = inlined_call_operand.vmem [shape: f32[128,128], index: 14, kind: input, shape index: {}]   ;;  %s16343_s15 = inlined_call_operand.vmem [shape: f32[128,128], index: 15, kind: input, shape index: {}]   ;;  %s16344_s16 = inlined_call_operand.vmem [shape: f32[1,128], index: 16, kind: input, shape index: {}]   ;;  %s16345_s17 = inlined_call_operand.hbm [shape: f32[16,128], index: 17, kind: output, shape index: {}]  }
   0x1   :  { %16746 = sst [smem:[#allocation257_spill]] %s16328_s0 }
   0x2   :  { %16747 = sst [smem:[#allocation258_spill]] %s16329_s1 }
   0x3   :  { %16748 = sst [smem:[#allocation259_spill]] %s16331_s3 }
   0x4   :  { %16749 = sst [smem:[#allocation260_spill]] %s16342_s14 }
   0x5   :  { %16750 = sst [smem:[#allocation261_spill]] %s16343_s15 }
   0x6   :  { %16751 = sst [smem:[#allocation262_spill]] %s16344_s16 }
   0x7   :  { %16752 = sst [smem:[#allocation263_spill]] %s16345_s17 }
   0x8   :  { %22 = vsyncpa [#allocation7], 0 }
   0x9   :  { %23 = vsyncpa [#allocation10], 0 }
   0xa   :  { %24 = vsyncpa [#allocation13], 0 }
   0xb   :  { %25 = vsyncpa [#allocation8], 0  ;;  %s12275_s24 = smov 0   ;;  %s12277_s25 = smov 0  }
   0xc   :  { %s12279_s26 = smov 0  }
   0xd LB: > { %16753 = sst [smem:[#allocation19_spill]] %s12163_s25  ;;  %s16349_s27 = sadd.s32 4294967295, %s12167_s26   ;;  %s12167_s26 = sphi %s12279_s26, %s31_s26   ;;  %s12163_s25 = sphi %s12277_s25, %s17806_s25   ;;  %s12159_s24 = sphi %s12275_s24, %s17805_s24  }
   0xe   : > { %16754 = sst [smem:[#allocation20_spill]] %s12167_s26  ;;  %p9610_p0 = scmp.ge.s32.totalorder %s12167_s26, 1 }
   0xf   : > { %p441_p1 = scmp.lt.s32.totalorder %s12167_s26, 4  ;;  %p12295_p2 = scmp.eq.s32.totalorder %s16349_s27, 0 }
  0x10   : > { %s12169_s0 = smov [#allocation9]   ;;  %s43_s19 = sadd.s32 1, %s12163_s25 }
  0x11   : > { %s16755_s28 = scalar_select %p12295_p2, 1, 0 }
  0x12   : > { %p12299_p3 = pnand %p9610_p0, %p441_p1  ;;  %s504_s30 = sshll.u32 %s12169_s0, 4  ;;  %s12303_s30 = int_to_ptr.vmem [resolvable:$true] %s504_s30 }
  0x13   : > { %p12314_p6 = scmp.ge.s32.totalorder %s43_s19, 3  ;;  %s12170_s20 = smov [#allocation6]  }
  0x14   : > { %s16756_s29 = scalar_select %p12299_p3, 1, 0 }
  0x15   : > { %p11470_p4 = pneg %p12299_p3  ;;  %s491_s21 = sshll.u32 %s12170_s20, 4  ;;  %s492_s21 = int_to_ptr.vmem [resolvable:$true] %s491_s21 }
  0x16   : > { %s11991_s0 = scalar_lea.hbm %s16337_s9, 1024 }
  0x17   : > { %p12309_p5 = pnand %p12295_p2, %p11470_p4  ;;  %p11992_p7 = scmp.ne.s32.totalorder %s16337_s9, %s11991_s0 }
  0x18   : > { %p11998_p11 = scmp.lt.u32.totalorder %s11991_s0, %s16337_s9 }
  0x19   : > { %p12326_p8 = pneg %p12309_p5 }
  0x1b   : > { %p11994_p9 = pnand %p12326_p8, %p11992_p7 }
  0x1d   : > { %p11995_p10 = pneg %p11994_p9 }
  0x1f   : > { %p12000_p12 = pnand %p11998_p11, %p11995_p10 }
  0x21   : > { %12003 = shalt.err (!%p12000_p12)
}
  0x22   : > { %s12004_s17 = scalar_lea.vmem %s12303_s30, 1024  ;;  %p12012_p4 = scmp.lt.s32.totalorder %s12303_s30, %s12303_s30 }
  0x23   : > { %p12005_p13 = scmp.ne.s32.totalorder %s12303_s30, %s12004_s17  ;;  %p12013_p2 = scmp.lt.s32.totalorder %s12004_s17, %s12004_s17 }
  0x25   : > { %p12007_p0 = pnand %p12005_p13, %p12326_p8  ;;  %p12014_p7 = por %p12013_p2, %p12012_p4 }
  0x27   : > { %p12008_p1 = pneg %p12007_p0 }
  0x29   : > { %p12015_p9 = pnand %p12014_p7, %p12008_p1 }
  0x2b   : > { %12018 = shalt.err (!%p12015_p9)
}
  0x2c   : > { %s12171_s27 = smov 64   ;;  %s12172_s16 = smov 4  }
  0x2d   : > { %11476 = dma.hbm_to_vmem [thread:$0]  (!%p12309_p5), %s16337_s9, 1024, %s12303_s30, [#allocation10], %s12171_s27, %s12171_s27, %s12172_s16  }
  0x2e   : > { %s17808_s19 = smov (%p12314_p6, %s43_s19), 0  ;;  %s12019_s0 = scalar_lea.hbm %s16336_s8, 14336 }
  0x2f   : > { %p12020_p2 = scmp.ne.s32.totalorder %s16336_s8, %s12019_s0  ;;  %p12026_p12 = scmp.lt.u32.totalorder %s12019_s0, %s16336_s8 }
  0x31   : > { %p12022_p10 = pnand %p12020_p2, %p12326_p8 }
  0x33   : > { %p12023_p11 = pneg %p12022_p10 }
  0x35   : > { %p12028_p13 = pnand %p12026_p12, %p12023_p11 }
  0x37   : > { %12031 = shalt.err (!%p12028_p13)
}
  0x38   : > { %s12032_s30 = scalar_lea.vmem %s492_s21, 14336  ;;  %p12040_p4 = scmp.lt.s32.totalorder %s492_s21, %s492_s21 }
  0x39   : > { %p12033_p6 = scmp.ne.s32.totalorder %s492_s21, %s12032_s30  ;;  %p12041_p7 = scmp.lt.s32.totalorder %s12032_s30, %s12032_s30 }
  0x3b   : > { %p12035_p0 = pnand %p12033_p6, %p12326_p8  ;;  %p12042_p9 = por %p12041_p7, %p12040_p4 }
  0x3d   : > { %p12036_p1 = pneg %p12035_p0 }
  0x3f   : > { %p12043_p3 = pnand %p12042_p9, %p12036_p1 }
  0x41   : > { %12046 = shalt.err (!%p12043_p3)
}
  0x42   : > { %11473 = dma.hbm_to_vmem [thread:$0]  (!%p12309_p5), %s16336_s8, 14336, %s492_s21, [#allocation7], %s12171_s27, %s12171_s27, %s12172_s16  }
  0x43   : > { %s12173_s3 = smov [#allocation11]   ;;  %s12047_s22 = scalar_lea.hbm %s16338_s10, 14336 }
  0x44   : > { %s517_s15 = sshll.u32 %s12173_s3, 4  ;;  %p12048_p2 = scmp.ne.s32.totalorder %s16338_s10, %s12047_s22  ;;  %s518_s15 = int_to_ptr.vmem [resolvable:$true] %s517_s15 }
  0x45   : > { %p12054_p11 = scmp.lt.u32.totalorder %s12047_s22, %s16338_s10 }
  0x46   : > { %p12050_p3 = pnand %p12048_p2, %p12326_p8 }
  0x48   : > { %p12051_p10 = pneg %p12050_p3 }
  0x4a   : > { %p12056_p12 = pnand %p12054_p11, %p12051_p10 }
  0x4c   : > { %12059 = shalt.err (!%p12056_p12)
}
  0x4d   : > { %s12060_s21 = scalar_lea.vmem %s518_s15, 14336  ;;  %p12068_p1 = scmp.lt.s32.totalorder %s518_s15, %s518_s15 }
  0x4e   : > { %p12061_p13 = scmp.ne.s32.totalorder %s518_s15, %s12060_s21  ;;  %p12069_p4 = scmp.lt.s32.totalorder %s12060_s21, %s12060_s21 }
  0x50   : > { %p12063_p6 = pnand %p12061_p13, %p12326_p8  ;;  %p12070_p7 = por %p12069_p4, %p12068_p1 }
  0x52   : > { %p12064_p0 = pneg %p12063_p6 }
  0x54   : > { %p12071_p9 = pnand %p12070_p7, %p12064_p0 }
  0x56   : > { %12074 = shalt.err (!%p12071_p9)
}
  0x57   : > { %s12174_s27 = smov 896   ;;  %s12175_s16 = smov 56  }
  0x58   : > { %11479 = dma.hbm_to_vmem [thread:$0]  (!%p12309_p5), %s16338_s10, 14336, %s518_s15, [#allocation10], %s12174_s27, %s12174_s27, %s12175_s16  }
  0x59   : > { %s12176_s3 = smov [#allocation12]   ;;  %s12075_s23 = scalar_lea.hbm %s16339_s11, 14336 }
  0x5a   : > { %s530_s25 = sshll.u32 %s12176_s3, 4  ;;  %p12076_p2 = scmp.ne.s32.totalorder %s16339_s11, %s12075_s23  ;;  %s531_s25 = int_to_ptr.vmem [resolvable:$true] %s530_s25 }
  0x5b   : > { %p12082_p11 = scmp.lt.u32.totalorder %s12075_s23, %s16339_s11 }
  0x5c   : > { %p12078_p3 = pnand %p12076_p2, %p12326_p8 }
  0x5e   : > { %p12079_p10 = pneg %p12078_p3 }
  0x60   : > { %p12084_p12 = pnand %p12082_p11, %p12079_p10 }
  0x62   : > { %12087 = shalt.err (!%p12084_p12)
}
  0x63   : > { %s12088_s15 = scalar_lea.vmem %s531_s25, 14336  ;;  %p12096_p1 = scmp.lt.s32.totalorder %s531_s25, %s531_s25 }
  0x64   : > { %p12089_p13 = scmp.ne.s32.totalorder %s531_s25, %s12088_s15  ;;  %p12097_p4 = scmp.lt.s32.totalorder %s12088_s15, %s12088_s15 }
  0x66   : > { %p12091_p6 = pnand %p12089_p13, %p12326_p8  ;;  %p12098_p7 = por %p12097_p4, %p12096_p1 }
  0x68   : > { %p12092_p0 = pneg %p12091_p6 }
  0x6a   : > { %p12099_p9 = pnand %p12098_p7, %p12092_p0 }
  0x6c   : > { %12102 = shalt.err (!%p12099_p9)
}
  0x6d   : > { %11482 = dma.hbm_to_vmem [thread:$0]  (!%p12309_p5), %s16339_s11, 14336, %s531_s25, [#allocation13], %s12174_s27, %s12174_s27, %s12175_s16  }
  0x6e   : > { %p16760_p2 = scmp.ne.s32.totalorder %s16756_s29, 0 }
  0x70   : > { %561 = sbr.rel (%p16760_p2) target bundleno = 3566 (0xdee), region = 88 }
  0x77   : > { %p16761_p3 = scmp.ne.s32.totalorder %s16755_s28, 0 }
  0x79   : > { %12142 = dma.done.wait (%p16761_p3), [#allocation7], 14336  }
  0x7a   : > { %12144 = vsyncadd (%p16761_p3), [#allocation7], 4294952960 }
  0x7b   : > { %12146 = dma.done.wait (%p16761_p3), [#allocation10], 15360  }
  0x7c   : > { %12148 = vsyncadd (%p16761_p3), [#allocation10], 4294951936 }
  0x7d   : > { %12150 = dma.done.wait (%p16761_p3), [#allocation13], 14336  }
  0x7e   : > { %12152 = vsyncadd (%p16761_p3), [#allocation13], 4294952960  ;;  %p644_p5 = scmp.eq.s32.totalorder %s12159_s24, 0 }
  0x7f   : > { %v652_v0 = vld [vmem:[%s16332_s4] sm:$0xff] (%p644_p5)  ;;  %v653_v1 = vld [vmem:[%s16332_s4 + $0x8] sm:$0xff] (%p644_p5)  ;;  %v654_v2 = vld [vmem:[%s16332_s4 + $0x10] sm:$0xff] (%p644_p5)  ;;  %s16762_s21 = sld [smem:[#allocation257_spill]] (%p644_p5) }
  0x80   : > { %649 = sbr.rel (!%p644_p5) target bundleno = 382 (0x17e), region = 108  ;;  %v11296_v3 = vpack.c.bf16 (%p644_p5), %v653_v1, %v652_v0  ;;  %v655_v4 = vld [vmem:[%s16332_s4 + $0x18] sm:$0xff] (%p644_p5)  ;;  %v656_v6 = vld [vmem:[%s16332_s4 + $0x20] sm:$0xff] (%p644_p5)  ;;  %v657_v7 = vld [vmem:[%s16332_s4 + $0x28] sm:$0xff] (%p644_p5) }
  0x81   : > { %v11300_v5 = vpack.c.bf16 (%p644_p5), %v655_v4, %v654_v2  ;;  %v11304_v8 = vpack.c.bf16 (%p644_p5), %v657_v7, %v656_v6  ;;  %v658_v10 = vld [vmem:[%s16332_s4 + $0x30] sm:$0xff] (%p644_p5)  ;;  %v659_v11 = vld [vmem:[%s16332_s4 + $0x38] sm:$0xff] (%p644_p5)  ;;  %v660_v13 = vld [vmem:[%s16332_s4 + $0x40] sm:$0xff] (%p644_p5) }
  0x82   : > { %11297 = vmatprep.subr.bf16.mxu0 (%p644_p5), %v11296_v3  ;;  %v11308_v12 = vpack.c.bf16 (%p644_p5), %v659_v11, %v658_v10  ;;  %v661_v14 = vld [vmem:[%s16332_s4 + $0x48] sm:$0xff] (%p644_p5)  ;;  %v662_v16 = vld [vmem:[%s16332_s4 + $0x50] sm:$0xff] (%p644_p5)  ;;  %v663_v17 = vld [vmem:[%s16332_s4 + $0x58] sm:$0xff] (%p644_p5) }
  0x83   : > { %11299 = vmatpush3.bf16.msra.mxu0 (%p644_p5), %v11296_v3  ;;  %v11312_v15 = vpack.c.bf16 (%p644_p5), %v661_v14, %v660_v13  ;;  %v11316_v18 = vpack.c.bf16 (%p644_p5), %v663_v17, %v662_v16  ;;  %v664_v19 = vld [vmem:[%s16332_s4 + $0x60] sm:$0xff] (%p644_p5)  ;;  %v665_v20 = vld [vmem:[%s16332_s4 + $0x68] sm:$0xff] (%p644_p5)  ;;  %v666_v22 = vld [vmem:[%s16332_s4 + $0x70] sm:$0xff] (%p644_p5) }
  0x84   : > { %11301 = vmatprep.subr.bf16.mxu0 (%p644_p5), %v11300_v5  ;;  %v11320_v21 = vpack.c.bf16 (%p644_p5), %v665_v20, %v664_v19  ;;  %v667_v23 = vld [vmem:[%s16332_s4 + $0x78] sm:$0xff] (%p644_p5)  ;;  %v9624_v26 = vld [vmem:[%s16333_s5] ss:$0 sm:$0xff] (%p644_p5) }
  0x85   : > { %v650_v9 = vld [vmem:[%s16762_s21] sm:$0xff] (%p644_p5)  ;;  %v11324_v24 = vpack.c.bf16 (%p644_p5), %v667_v23, %v666_v22  ;;  %v651_v25 = vld [vmem:[%s16762_s21 + $0x8] sm:$0xff] (%p644_p5) }
  0x86   : > { %11054 = vmatprep.mubr.f32.mxu0 (%p644_p5), %v650_v9 }
  0x87   : > { %11303 = vmatpush3.bf16.msra.mxu0 %v11300_v5 }
  0x88   : > { %11305 = vmatprep.subr.bf16.mxu0 %v11304_v8 }
  0x8b   : > { %11307 = vmatpush3.bf16.msra.mxu0 %v11304_v8 }
  0x8c   : > { %11309 = vmatprep.subr.bf16.mxu0 %v11308_v12 }
  0x8f   : > { %11311 = vmatpush3.bf16.msra.mxu0 %v11308_v12 }
  0x90   : > { %11313 = vmatprep.subr.bf16.mxu0 %v11312_v15 }
  0x93   : > { %11315 = vmatpush3.bf16.msra.mxu0 %v11312_v15 }
  0x94   : > { %11317 = vmatprep.subr.bf16.mxu0 %v11316_v18 }
  0x97   : > { %11319 = vmatpush3.bf16.msra.mxu0 %v11316_v18 }
  0x98   : > { %11321 = vmatprep.subr.bf16.mxu0 %v11320_v21 }
  0x9b   : > { %11323 = vmatpush3.bf16.msra.mxu0 %v11320_v21 }
  0x9c   : > { %11325 = vmatprep.subr.bf16.mxu0 %v11324_v24 }
  0x9f   : > { %11327 = vmatpush3.bf16.msra.mxu0 %v11324_v24 }
  0xa2   : > { %11055 = vmatmul.mubr.f32.vlgmr.msra.gmra.mrb[0].mxu0 %v651_v25 }
 0x175   : > { %v11056_v27 = vpop.f32.mrb[0].mxu0 }
 0x176   : > { %v747_v28 = vadd.f32 %v11056_v27, %v9624_v26  ;;  %v741_v29 = vpop.f32.mrb[1].mxu0 }
 0x177   : > { %v742_v30 = vadd.f32 %v9624_v26, %v741_v29 }
 0x178   : > { %v751_v31 = vmax.f32 %v747_v28, 0.0 }
 0x179   : > { %v750_v32 = vmax.f32 %v742_v30, 0.0 }
 0x17a   : > { %753 = vst [vmem:[#allocation2 + $0x8] sm:$0xff] %v751_v31 }
 0x17b   : > { %752 = vst [vmem:[#allocation2] sm:$0xff] %v750_v32  ;;  %v754_v33 = vpack.c.bf16 %v751_v31, %v750_v32 }
 0x17d   : > { %755 = vst [vmem:[#allocation3] sm:$0xff] %v754_v33 }
 0x17e PF: > { %v761_v34 = vld [vmem:[%s16340_s12] sm:$0xff]  ;;  %v762_v35 = vld [vmem:[%s16340_s12 + $0x8] sm:$0xff]  ;;  %v763_v36 = vld [vmem:[%s16340_s12 + $0x10] sm:$0xff]  ;;  %p9626_p8 = scmp.ne.s32.totalorder %s12159_s24, 0 }
 0x17f   : > { %v11328_v37 = vpack.c.bf16 %v762_v35, %v761_v34  ;;  %v764_v38 = vld [vmem:[%s16340_s12 + $0x18] sm:$0xff]  ;;  %v765_v40 = vld [vmem:[%s16340_s12 + $0x20] sm:$0xff]  ;;  %v766_v41 = vld [vmem:[%s16340_s12 + $0x28] sm:$0xff]  ;;  %vm1002_vm0 = vcmask (!%p9626_p8), 1041408   ;;  %s16763_s20 = sld [smem:[#allocation258_spill]] (!%p9626_p8)  ;;  %vm12177_vm1 = vmmov (!%p9626_p8), 1  }
 0x180   : > { %v11332_v39 = vpack.c.bf16 %v764_v38, %v763_v36  ;;  %v11336_v42 = vpack.c.bf16 %v766_v41, %v765_v40  ;;  %v767_v44 = vld [vmem:[%s16340_s12 + $0x30] sm:$0xff]  ;;  %v768_v45 = vld [vmem:[%s16340_s12 + $0x38] sm:$0xff]  ;;  %v769_v47 = vld [vmem:[%s16340_s12 + $0x40] sm:$0xff]  ;;  %vm905_vm3 = vcmask (!%p9626_p8), 80896  }
 0x181   : > { %11329 = vmatprep.subr.bf16.mxu0 %v11328_v37  ;;  %v11340_v46 = vpack.c.bf16 %v768_v45, %v767_v44  ;;  %v770_v48 = vld [vmem:[%s16340_s12 + $0x48] sm:$0xff]  ;;  %v771_v50 = vld [vmem:[%s16340_s12 + $0x50] sm:$0xff]  ;;  %v772_v51 = vld [vmem:[%s16340_s12 + $0x58] sm:$0xff] }
 0x182   : > { %11331 = vmatpush3.bf16.msra.mxu0 %v11328_v37  ;;  %v759_v43 = vld [vmem:[#allocation2] sm:$0xff]  ;;  %v11344_v49 = vpack.c.bf16 %v770_v48, %v769_v47  ;;  %v11348_v52 = vpack.c.bf16 %v772_v51, %v771_v50  ;;  %v774_v54 = vld [vmem:[%s16340_s12 + $0x68] sm:$0xff]  ;;  %v775_v56 = vld [vmem:[%s16340_s12 + $0x70] sm:$0xff] }
 0x183   : > { %11333 = vmatprep.subr.bf16.mxu0 %v11332_v39  ;;  %11089 = vmatprep.mubr.f32.mxu0 %v759_v43  ;;  %v773_v53 = vld [vmem:[%s16340_s12 + $0x60] sm:$0xff]  ;;  %v776_v57 = vld [vmem:[%s16340_s12 + $0x78] sm:$0xff]  ;;  %v760_v59 = vld [vmem:[#allocation2 + $0x8] sm:$0xff] }
 0x184   : > { %v11352_v55 = vpack.c.bf16 %v774_v54, %v773_v53  ;;  %v11356_v58 = vpack.c.bf16 %v776_v57, %v775_v56  ;;  %v9625_v60 = vld [vmem:[%s16341_s13] ss:$0 sm:$0xff]  ;;  %v897_v2 = vld [vmem:[%s16334_s6 + $0x8] sm:$0x3] (!%p9626_p8)  ;;  %vm11361_vm2 = vmpackc.low (!%p9626_p8), %vm1002_vm0, %vm12177_vm1 }
 0x185   : > { %v896_v1 = vld [vmem:[%s16334_s6] sm:$0xff] (!%p9626_p8)  ;;  %v865_v5 = vld [vmem:[%s16763_s20 + $0x8] sm:$0xff] (!%p9626_p8)  ;;  %v866_v6 = vld [vmem:[%s16763_s20 + $0x10] sm:$0xff] (!%p9626_p8) }
 0x186   : > { %11335 = vmatpush3.bf16.msra.mxu0 %v11332_v39  ;;  %v864_v3 = vld [vmem:[%s16763_s20] sm:$0xff] (!%p9626_p8)  ;;  %v11360_v4 = vpack.c.bf16 (!%p9626_p8), %v897_v2, %v896_v1  ;;  %v867_v7 = vld [vmem:[%s16763_s20 + $0x18] sm:$0xff] (!%p9626_p8)  ;;  %v869_v9 = vld [vmem:[%s16763_s20 + $0x28] sm:$0xff] (!%p9626_p8) }
 0x187   : > { %11337 = vmatprep.subr.bf16.mxu0 %v11336_v42  ;;  %v868_v8 = vld [vmem:[%s16763_s20 + $0x20] sm:$0xff] (!%p9626_p8)  ;;  %v870_v12 = vld [vmem:[%s16763_s20 + $0x30] sm:$0xff] (!%p9626_p8)  ;;  %v871_v14 = vld [vmem:[%s16763_s20 + $0x38] sm:$0xff] (!%p9626_p8) }
 0x188   : > { %v11533_v10 = vld [vmem:[#allocation11] ss:$56 sps:$4 sm:$0xff] (!%p9626_p8)   ;;  %v11535_v11 = vld [vmem:[#allocation11 + $0x4] ss:$56 sps:$4 sm:$0xff] (!%p9626_p8)   ;;  %v11538_v13 = vld [vmem:[#allocation11 + $0x74] ss:$56 sps:$4 sm:$0xff] (!%p9626_p8)  }
 0x189   : > { %11430 = vmatprep.subr.bf16.mxu1 (!%p9626_p8), %v11535_v11  ;;  %v872_v15 = vld [vmem:[%s16763_s20 + $0x40] sm:$0xff] (!%p9626_p8)  ;;  %v11536_v16 = vld [vmem:[#allocation11 + $0x70] ss:$56 sps:$4 sm:$0xff] (!%p9626_p8)   ;;  %v873_v18 = vld [vmem:[%s16763_s20 + $0x48] sm:$0xff] (!%p9626_p8) }
 0x18a   : > { %11339 = vmatpush3.bf16.msra.mxu0 %v11336_v42  ;;  %11438 = vmatpush1.bf16.msra.mxu1 (!%p9626_p8), %v11533_v10  ;;  %v11541_v17 = vld [vmem:[#allocation11 + $0xe4] ss:$56 sps:$4 sm:$0xff] (!%p9626_p8)   ;;  %v874_v19 = vld [vmem:[%s16763_s20 + $0x50] sm:$0xff] (!%p9626_p8)  ;;  %v11539_v20 = vld [vmem:[#allocation11 + $0xe0] ss:$56 sps:$4 sm:$0xff] (!%p9626_p8)  }
 0x18b   : > { %11341 = vmatprep.subr.bf16.mxu0 %v11340_v46  ;;  %11431 = vmatprep.subr.bf16.mxu1 (!%p9626_p8), %v11538_v13  ;;  %v11544_v21 = vld [vmem:[#allocation11 + $0x154] ss:$56 sps:$4 sm:$0xff] (!%p9626_p8)   ;;  %v11542_v23 = vld [vmem:[#allocation11 + $0x150] ss:$56 sps:$4 sm:$0xff] (!%p9626_p8)   ;;  %v876_v24 = vld [vmem:[%s16763_s20 + $0x60] sm:$0xff] (!%p9626_p8) }
 0x18c   : > { %v875_v22 = vld [vmem:[%s16763_s20 + $0x58] sm:$0xff] (!%p9626_p8)  ;;  %v11547_v25 = vld [vmem:[#allocation11 + $0x1c4] ss:$56 sps:$4 sm:$0xff] (!%p9626_p8)   ;;  %v11545_v27 = vld [vmem:[#allocation11 + $0x1c0] ss:$56 sps:$4 sm:$0xff] (!%p9626_p8)  }
 0x18d   : > { %v877_v26 = vld [vmem:[%s16763_s20 + $0x68] sm:$0xff] (!%p9626_p8)  ;;  %v878_v28 = vld [vmem:[%s16763_s20 + $0x70] sm:$0xff] (!%p9626_p8)  ;;  %v879_v30 = vld [vmem:[%s16763_s20 + $0x78] sm:$0xff] (!%p9626_p8) }
 0x18e   : > { %11343 = vmatpush3.bf16.msra.mxu0 %v11340_v46  ;;  %11439 = vmatpush1.bf16.msra.mxu1 (!%p9626_p8), %v11536_v16  ;;  %v11550_v29 = vld [vmem:[#allocation11 + $0x234] ss:$56 sps:$4 sm:$0xff] (!%p9626_p8)   ;;  %v11548_v31 = vld [vmem:[#allocation11 + $0x230] ss:$56 sps:$4 sm:$0xff] (!%p9626_p8)   ;;  %v880_v32 = vld [vmem:[%s16763_s20 + $0x80] sm:$0xff] (!%p9626_p8) }
 0x18f   : > { %11345 = vmatprep.subr.bf16.mxu0 %v11344_v49  ;;  %11432 = vmatprep.subr.bf16.mxu1 (!%p9626_p8), %v11541_v17  ;;  %v881_v33 = vld [vmem:[%s16763_s20 + $0x88] sm:$0xff] (!%p9626_p8)  ;;  %v882_v34 = vld [vmem:[%s16763_s20 + $0x90] sm:$0xff] (!%p9626_p8)  ;;  %v883_v35 = vld [vmem:[%s16763_s20 + $0x98] sm:$0xff] (!%p9626_p8) }
 0x190   : > { %v884_v36 = vld [vmem:[%s16763_s20 + $0xa0] sm:$0xff] (!%p9626_p8)  ;;  %v885_v37 = vld [vmem:[%s16763_s20 + $0xa8] sm:$0xff] (!%p9626_p8)  ;;  %v886_v38 = vld [vmem:[%s16763_s20 + $0xb0] sm:$0xff] (!%p9626_p8) }
 0x191   : > { %v887_v39 = vld [vmem:[%s16763_s20 + $0xb8] sm:$0xff] (!%p9626_p8)  ;;  %v888_v40 = vld [vmem:[%s16763_s20 + $0xc0] sm:$0xff] (!%p9626_p8)  ;;  %v889_v41 = vld [vmem:[%s16763_s20 + $0xc8] sm:$0xff] (!%p9626_p8) }
 0x192   : > { %11347 = vmatpush3.bf16.msra.mxu0 %v11344_v49  ;;  %11440 = vmatpush1.bf16.msra.mxu1 (!%p9626_p8), %v11539_v20  ;;  %v890_v42 = vld [vmem:[%s16763_s20 + $0xd0] sm:$0xff] (!%p9626_p8)  ;;  %v891_v43 = vld [vmem:[%s16763_s20 + $0xd8] sm:$0xff] (!%p9626_p8)  ;;  %v892_v44 = vld [vmem:[%s16763_s20 + $0xe0] sm:$0xff] (!%p9626_p8) }
 0x193   : > { %11349 = vmatprep.subr.bf16.mxu0 %v11348_v52  ;;  %11433 = vmatprep.subr.bf16.mxu1 (!%p9626_p8), %v11544_v21  ;;  %v893_v45 = vld [vmem:[%s16763_s20 + $0xe8] sm:$0xff] (!%p9626_p8)  ;;  %v894_v46 = vld [vmem:[%s16763_s20 + $0xf0] sm:$0xff] (!%p9626_p8)  ;;  %v895_v47 = vld [vmem:[%s16763_s20 + $0xf8] sm:$0xff] (!%p9626_p8) }
 0x194   : > { %v11553_v48 = vld [vmem:[#allocation11 + $0x2a4] ss:$56 sps:$4 sm:$0xff] (!%p9626_p8)   ;;  %v11551_v49 = vld [vmem:[#allocation11 + $0x2a0] ss:$56 sps:$4 sm:$0xff] (!%p9626_p8)   ;;  %v11556_v50 = vld [vmem:[#allocation11 + $0x314] ss:$56 sps:$4 sm:$0xff] (!%p9626_p8)  }
 0x195   : > { %v11554_v51 = vld [vmem:[#allocation11 + $0x310] ss:$56 sps:$4 sm:$0xff] (!%p9626_p8)   ;;  %v11559_v53 = vld [vmem:[#allocation11 + $0xc] ss:$56 sps:$4 sm:$0xff] (!%p9626_p8)  }
 0x196   : > { %11351 = vmatpush3.bf16.msra.mxu0 %v11348_v52  ;;  %11441 = vmatpush1.bf16.msra.mxu1 (!%p9626_p8), %v11542_v23  ;;  %v12178_v52 = vmov (!%p9626_p8), 0   ;;  %v11568_v54 = vld [vmem:[#allocation11 + $0x14] ss:$56 sps:$4 sm:$0xff] (!%p9626_p8)   ;;  %v11557_v1 = vld [vmem:[#allocation11 + $0x8] ss:$56 sps:$4 sm:$0xff] (!%p9626_p8)  }
 0x197   : > { %11353 = vmatprep.subr.bf16.mxu0 %v11352_v55  ;;  %11434 = vmatprep.subr.bf16.mxu1 (!%p9626_p8), %v11547_v25 }
 0x198   : > { %2033 = vmatprep.mubr.bf16.mxu1 (!%p9626_p8), %v12178_v52 }
 0x19a   : > { %11355 = vmatpush3.bf16.msra.mxu0 %v11352_v55  ;;  %11442 = vmatpush1.bf16.msra.mxu1 (!%p9626_p8), %v11545_v27  ;;  %v12668_v55 = vld [vmem:[%s16335_s7] ss:$0 sm:$0xff] (!%p9626_p8) }
 0x19b   : > { %11357 = vmatprep.subr.bf16.mxu0 %v11356_v58  ;;  %11435 = vmatprep.subr.bf16.mxu1 (!%p9626_p8), %v11550_v29 }
 0x19e   : > { %11359 = vmatpush3.bf16.msra.mxu0 %v11356_v58  ;;  %11443 = vmatpush1.bf16.msra.mxu1 (!%p9626_p8), %v11548_v31 }
 0x19f   : > { %11362 = vmatprep.subr.msk.bf16.mxu0 (!%p9626_p8), %vm11361_vm2, %v11360_v4  ;;  %11436 = vmatprep.subr.bf16.mxu1 (!%p9626_p8), %v11553_v48 }
 0x1a1   : > { %11090 = vmatmul.mubr.f32.vlgmr.msra.gmra.mrb[0].mxu0 %v760_v59 }
 0x1a2   : > { %11096 = vmatprep.mubr.msk.f32.mxu0 (!%p9626_p8), %vm905_vm3, %v864_v3  ;;  %11365 = vmatpush3.bf16.msk.msra.mxu0 (!%p9626_p8), %vm11361_vm2, %v11360_v4  ;;  %v11562_v4 = vld [vmem:[#allocation11 + $0x7c] ss:$56 sps:$4 sm:$0xff] (!%p9626_p8)  }
 0x1a3   : > { %1951 = vmatprep.subr.bf16.mxu0 (!%p9626_p8), %v11535_v11  ;;  %11444 = vmatpush1.bf16.msra.mxu1 (!%p9626_p8), %v11551_v49 }
 0x1a4   : > { %11437 = vmatprep.subr.bf16.mxu1 (!%p9626_p8), %v11556_v50 }
 0x1a7   : > { %11445 = vmatpush1.bf16.msra.mxu1 (!%p9626_p8), %v11554_v51 }
 0x1a8   : > { %2337 = vmatprep.subr.bf16.mxu1 (!%p9626_p8), %v11568_v54 }
 0x272   : > { %863 = sbr.rel (%p9626_p8) target bundleno = 1550 (0x60e), region = 116 }
 0x274   : > { %v11091_v61 = vpop.f32.mrb[0].mxu0 }
 0x275   : > { %v856_v62 = vadd.f32 %v11091_v61, %v9625_v60  ;;  %v850_v63 = vpop.f32.mrb[1].mxu0  ;;  %11097 = vmatmul.mubr.msk.f32.vlgmr.msra.gmra.mrb[0].mxu0 (!%p9626_p8), %vm905_vm3, %v865_v5 }
 0x276   : > { %v851_v0 = vadd.f32 %v9625_v60, %v850_v63  ;;  %11099 = vmatprep.mubr.msk.f32.mxu0 (!%p9626_p8), %vm905_vm3, %v866_v6  ;;  %1952 = vmatpush1.bf16.msra.mxu0 (!%p9626_p8), %v11533_v10  ;;  %v11560_v10 = vld [vmem:[#allocation11 + $0x78] ss:$56 sps:$4 sm:$0xff] (!%p9626_p8)  }
 0x277   : > { %860 = vst [vmem:[#allocation4 + $0x8] sm:$0xff] %v856_v62  ;;  %1953 = vmatprep.subr.bf16.mxu0 (!%p9626_p8), %v11538_v13  ;;  %v11565_v13 = vld [vmem:[#allocation11 + $0xec] ss:$56 sps:$4 sm:$0xff] (!%p9626_p8)  }
 0x278   : > { %859 = vst [vmem:[#allocation4] sm:$0xff] %v851_v0 }
 0x279   : > { %11100 = vmatmul.mubr.msk.f32.gmra.mrb[2].mxu0 %vm905_vm3, %v867_v7 }
 0x27a   : > { %11102 = vmatprep.mubr.msk.f32.mxu0 %vm905_vm3, %v868_v8  ;;  %1954 = vmatpush1.bf16.msra.mxu0 %v11536_v16 }
 0x27b   : > { %1955 = vmatprep.subr.bf16.mxu0 %v11541_v17 }
 0x27d   : > { %11103 = vmatmul.mubr.msk.f32.gmra.mrb[4].mxu0 %vm905_vm3, %v869_v9 }
 0x27e   : > { %11105 = vmatprep.mubr.msk.f32.mxu0 %vm905_vm3, %v870_v12  ;;  %1956 = vmatpush1.bf16.msra.mxu0 %v11539_v20 }
 0x27f   : > { %1957 = vmatprep.subr.bf16.mxu0 %v11544_v21 }
 0x281   : > { %11106 = vmatmul.mubr.msk.f32.gmra.mrb[6].mxu0 %vm905_vm3, %v871_v14 }
 0x282   : > { %11108 = vmatprep.mubr.msk.f32.mxu0 %vm905_vm3, %v872_v15  ;;  %1958 = vmatpush1.bf16.msra.mxu0 %v11542_v23 }
 0x283   : > { %1959 = vmatprep.subr.bf16.mxu0 %v11547_v25 }
 0x285   : > { %11109 = vmatmul.mubr.msk.f32.gmra.mrb[8].mxu0 %vm905_vm3, %v873_v18 }
 0x286   : > { %11111 = vmatprep.mubr.msk.f32.mxu0 %vm905_vm3, %v874_v19  ;;  %1960 = vmatpush1.bf16.msra.mxu0 %v11545_v27  ;;  %v11563_v19 = vld [vmem:[#allocation11 + $0xe8] ss:$56 sps:$4 sm:$0xff]  }
 0x287   : > { %1961 = vmatprep.subr.bf16.mxu0 %v11550_v29 }
 0x289   : > { %11112 = vmatmul.mubr.msk.f32.gmra.mrb[10].mxu0 %vm905_vm3, %v875_v22  ;;  %v11571_v22 = vld [vmem:[#allocation11 + $0x15c] ss:$56 sps:$4 sm:$0xff]  }
 0x28a   : > { %11114 = vmatprep.mubr.msk.f32.mxu0 %vm905_vm3, %v876_v24  ;;  %1962 = vmatpush1.bf16.msra.mxu0 %v11548_v31  ;;  %v11574_v31 = vld [vmem:[#allocation11 + $0x1cc] ss:$56 sps:$4 sm:$0xff]  }
 0x28b   : > { %1963 = vmatprep.subr.bf16.mxu0 %v11553_v48 }
 0x28d   : > { %11115 = vmatmul.mubr.msk.f32.gmra.mrb[12].mxu0 %vm905_vm3, %v877_v26 }
 0x28e   : > { %11117 = vmatprep.mubr.msk.f32.mxu0 %vm905_vm3, %v878_v28  ;;  %1964 = vmatpush1.bf16.msra.mxu0 %v11551_v49  ;;  %v11569_v28 = vld [vmem:[#allocation11 + $0x158] ss:$56 sps:$4 sm:$0xff]  }
 0x28f   : > { %1965 = vmatprep.subr.bf16.mxu0 %v11556_v50  ;;  %v11575_v49 = vld [vmem:[#allocation11 + $0x238] ss:$56 sps:$4 sm:$0xff]   ;;  %v11580_v50 = vld [vmem:[#allocation11 + $0x84] ss:$56 sps:$4 sm:$0xff]  }
 0x291   : > { %11118 = vmatmul.mubr.msk.f32.gmra.mrb[14].mxu0 %vm905_vm3, %v879_v30 }
 0x292   : > { %11120 = vmatprep.mubr.msk.f32.mxu0 %vm905_vm3, %v880_v32  ;;  %1966 = vmatpush1.bf16.msra.mxu0 %v11554_v51 }
 0x293   : > { %2144 = vmatprep.subr.bf16.mxu0 %v11559_v53  ;;  %v11583_v53 = vld [vmem:[#allocation11 + $0x2ac] ss:$56 sps:$4 sm:$0xff]  }
 0x295   : > { %11121 = vmatmul.mubr.msk.f32.gmra.mrb[16].mxu0 %vm905_vm3, %v881_v33 }
 0x296   : > { %11123 = vmatprep.mubr.msk.f32.mxu0 %vm905_vm3, %v882_v34 }
 0x299   : > { %11124 = vmatmul.mubr.msk.f32.gmra.mrb[18].mxu0 %vm905_vm3, %v883_v35 }
 0x29a   : > { %11126 = vmatprep.mubr.msk.f32.mxu0 %vm905_vm3, %v884_v36 }
 0x29d   : > { %11127 = vmatmul.mubr.msk.f32.gmra.mrb[20].mxu0 %vm905_vm3, %v885_v37  ;;  %v11572_v37 = vld [vmem:[#allocation11 + $0x1c8] ss:$56 sps:$4 sm:$0xff]  }
 0x29e   : > { %11129 = vmatprep.mubr.msk.f32.mxu0 %vm905_vm3, %v886_v38 }
 0x2a1   : > { %11130 = vmatmul.mubr.msk.f32.gmra.mrb[22].mxu0 %vm905_vm3, %v887_v39 }
 0x2a2   : > { %11132 = vmatprep.mubr.msk.f32.mxu0 %vm905_vm3, %v888_v40  ;;  %v11577_v40 = vld [vmem:[#allocation11 + $0x23c] ss:$56 sps:$4 sm:$0xff]  }
 0x2a5   : > { %11133 = vmatmul.mubr.msk.f32.gmra.mrb[24].mxu0 %vm905_vm3, %v889_v41 }
 0x2a6   : > { %11135 = vmatprep.mubr.msk.f32.mxu0 %vm905_vm3, %v890_v42 }
 0x2a9   : > { %11136 = vmatmul.mubr.msk.f32.gmra.mrb[26].mxu0 %vm905_vm3, %v891_v43 }
 0x2aa   : > { %11138 = vmatprep.mubr.msk.f32.mxu0 %vm905_vm3, %v892_v44 }
 0x2ad   : > { %11139 = vmatmul.mubr.msk.f32.gmra.mrb[28].mxu0 %vm905_vm3, %v893_v45  ;;  %v11566_v45 = vld [vmem:[#allocation11 + $0x10] ss:$56 sps:$4 sm:$0xff]  }
 0x2ae   : > { %11141 = vmatprep.mubr.msk.f32.mxu0 %vm905_vm3, %v894_v46 }
 0x2b1   : > { %11142 = vmatmul.mubr.msk.f32.gmra.mrb[30].mxu0 %vm905_vm3, %v895_v47 }
 0x2b2   : > { %1983 = vmatprep.mubr.bf16.mxu0 %v12178_v52 }
 0x348   : > { %v11098_v56 = vpop.f32.mrb[0].mxu0 }
 0x349   : > { %v1078_v57 = vadd.f32 %v11098_v56, %v12668_v55  ;;  %v1072_v58 = vpop.f32.mrb[1].mxu0 }
 0x34a   : > { %v1073_v59 = vadd.f32 %v12668_v55, %v1072_v58 }
 0x34b   : > { %v1232_v60 = vmax.f32 %v1078_v57, 0.0 }
 0x34c   : > { %v1231_v61 = vmax.f32 %v1073_v59, 0.0  ;;  %v11101_v62 = vpop.f32.mrb[2].mxu0  ;;  %v11578_v59 = vld [vmem:[#allocation11 + $0x80] ss:$56 sps:$4 sm:$0xff]  }
 0x34d   : > { %v1088_v63 = vadd.f32 %v11101_v62, %v12668_v55  ;;  %v1082_v0 = vpop.f32.mrb[3].mxu0  ;;  %v11581_v62 = vld [vmem:[#allocation11 + $0x2a8] ss:$56 sps:$4 sm:$0xff]  }
 0x34e   : > { %v12673_v2 = vpack.c.bf16 %v1232_v60, %v1231_v61  ;;  %v1083_v3 = vadd.f32 %v12668_v55, %v1082_v0 }
 0x34f   : > { %v1234_v5 = vmax.f32 %v1088_v63, 0.0  ;;  %v11589_v63 = vld [vmem:[#allocation11 + $0xf4] ss:$56 sps:$4 sm:$0xff]  }
 0x350   : > { %v1233_v6 = vmax.f32 %v1083_v3, 0.0  ;;  %v11104_v7 = vpop.f32.mrb[4].mxu0  ;;  %1984 = vmatmul.mubr.bf16.vlgmr.msra.gmra.mrb[32].mxu0 %v12673_v2 }
 0x351   : > { %v1098_v8 = vadd.f32 %v11104_v7, %v12668_v55  ;;  %v1092_v9 = vpop.f32.mrb[5].mxu0  ;;  %1993 = vmatprep.mubr.bf16.mxu0 %v12178_v52  ;;  %2145 = vmatpush1.bf16.msra.mxu0 %v11557_v1  ;;  %v11586_v1 = vld [vmem:[#allocation11 + $0x31c] ss:$56 sps:$4 sm:$0xff]   ;;  %v11587_v7 = vld [vmem:[#allocation11 + $0xf0] ss:$56 sps:$4 sm:$0xff]  }
 0x352   : > { %v12679_v11 = vpack.c.bf16 %v1234_v5, %v1233_v6  ;;  %v1093_v12 = vadd.f32 %v12668_v55, %v1092_v9  ;;  %2146 = vmatprep.subr.bf16.mxu0 %v11562_v4 }
 0x353   : > { %v1236_v14 = vmax.f32 %v1098_v8, 0.0 }
 0x354   : > { %v1235_v15 = vmax.f32 %v1093_v12, 0.0  ;;  %v11107_v16 = vpop.f32.mrb[6].mxu0  ;;  %v11592_v12 = vld [vmem:[#allocation11 + $0x164] ss:$56 sps:$4 sm:$0xff]  }
 0x355   : > { %v1108_v17 = vadd.f32 %v11107_v16, %v12668_v55  ;;  %v1102_v18 = vpop.f32.mrb[7].mxu0  ;;  %2147 = vmatpush1.bf16.msra.mxu0 %v11560_v10  ;;  %v11584_v10 = vld [vmem:[#allocation11 + $0x318] ss:$56 sps:$4 sm:$0xff]  }
 0x356   : > { %v12683_v20 = vpack.c.bf16 %v1236_v14, %v1235_v15  ;;  %v1103_v21 = vadd.f32 %v12668_v55, %v1102_v18  ;;  %2148 = vmatprep.subr.bf16.mxu0 %v11565_v13  ;;  %v11607_v14 = vld [vmem:[#allocation11 + $0x1c] ss:$56 sps:$4 sm:$0xff]  }
 0x357   : > { %v1238_v23 = vmax.f32 %v1108_v17, 0.0 }
 0x358   : > { %v1237_v24 = vmax.f32 %v1103_v21, 0.0  ;;  %v11110_v25 = vpop.f32.mrb[8].mxu0  ;;  %1994 = vmatmul.mubr.bf16.gmra.mrb[36].mxu0 %v12679_v11 }
 0x359   : > { %v1118_v26 = vadd.f32 %v11110_v25, %v12668_v55  ;;  %v1112_v27 = vpop.f32.mrb[9].mxu0  ;;  %2003 = vmatprep.mubr.bf16.mxu0 %v12178_v52  ;;  %2149 = vmatpush1.bf16.msra.mxu0 %v11563_v19  ;;  %v11590_v19 = vld [vmem:[#allocation11 + $0x160] ss:$56 sps:$4 sm:$0xff]  }
 0x35a   : > { %v12689_v29 = vpack.c.bf16 %v1238_v23, %v1237_v24  ;;  %v1113_v30 = vadd.f32 %v12668_v55, %v1112_v27  ;;  %2150 = vmatprep.subr.bf16.mxu0 %v11571_v22  ;;  %v11595_v23 = vld [vmem:[#allocation11 + $0x1d4] ss:$56 sps:$4 sm:$0xff]  }
 0x35b   : > { %v1240_v32 = vmax.f32 %v1118_v26, 0.0 }
 0x35c   : > { %v1239_v33 = vmax.f32 %v1113_v30, 0.0  ;;  %v11113_v34 = vpop.f32.mrb[10].mxu0  ;;  %v11593_v30 = vld [vmem:[#allocation11 + $0x1d0] ss:$56 sps:$4 sm:$0xff]  }
 0x35d   : > { %v1128_v35 = vadd.f32 %v11113_v34, %v12668_v55  ;;  %v1122_v36 = vpop.f32.mrb[11].mxu0  ;;  %2151 = vmatpush1.bf16.msra.mxu0 %v11569_v28 }
 0x35e   : > { %v12693_v38 = vpack.c.bf16 %v1240_v32, %v1239_v33  ;;  %v1123_v39 = vadd.f32 %v12668_v55, %v1122_v36  ;;  %2152 = vmatprep.subr.bf16.mxu0 %v11574_v31  ;;  %v11598_v33 = vld [vmem:[#allocation11 + $0x244] ss:$56 sps:$4 sm:$0xff]  }
 0x35f   : > { %v1242_v41 = vmax.f32 %v1128_v35, 0.0 }
 0x360   : > { %v1241_v42 = vmax.f32 %v1123_v39, 0.0  ;;  %2004 = vmatmul.mubr.bf16.gmra.mrb[40].mxu0 %v12683_v20  ;;  %v11116_v43 = vpop.f32.mrb[12].mxu0 }
 0x361   : > { %v1138_v44 = vadd.f32 %v11116_v43, %v12668_v55  ;;  %v1132_v46 = vpop.f32.mrb[13].mxu0  ;;  %2013 = vmatprep.mubr.bf16.mxu0 %v12178_v52  ;;  %2153 = vmatpush1.bf16.msra.mxu0 %v11572_v37  ;;  %v11601_v43 = vld [vmem:[#allocation11 + $0x2b4] ss:$56 sps:$4 sm:$0xff]  }
 0x362   : > { %v12699_v47 = vpack.c.bf16 %v1242_v41, %v1241_v42  ;;  %v1133_v48 = vadd.f32 %v12668_v55, %v1132_v46  ;;  %2154 = vmatprep.subr.bf16.mxu0 %v11577_v40  ;;  %v11596_v40 = vld [vmem:[#allocation11 + $0x240] ss:$56 sps:$4 sm:$0xff]   ;;  %v11613_v46 = vld [vmem:[#allocation11 + $0x8c] ss:$56 sps:$4 sm:$0xff]  }
 0x363   : > { %v1244_v51 = vmax.f32 %v1138_v44, 0.0  ;;  %v11605_v44 = vld [vmem:[#allocation11 + $0x18] ss:$56 sps:$4 sm:$0xff]  }
 0x364   : > { %v1243_v54 = vmax.f32 %v1133_v48, 0.0  ;;  %2034 = vmatmul.mubr.bf16.vlgmr.msra.gmra.mrb[0].mxu1 %v12699_v47  ;;  %v11119_v56 = vpop.f32.mrb[14].mxu0 }
 0x365   : > { %2338 = vmatpush1.bf16.msra.mxu1 %v11566_v45  ;;  %v1148_v57 = vadd.f32 %v11119_v56, %v12668_v55  ;;  %2043 = vmatprep.mubr.bf16.mxu1 %v12178_v52  ;;  %v1142_v58 = vpop.f32.mrb[15].mxu0 }
 0x366   : > { %v12705_v60 = vpack.c.bf16 %v1244_v51, %v1243_v54  ;;  %v1143_v61 = vadd.f32 %v12668_v55, %v1142_v58  ;;  %2155 = vmatpush1.bf16.msra.mxu0 %v11575_v49  ;;  %2339 = vmatprep.subr.bf16.mxu1 %v11580_v50  ;;  %v11611_v58 = vld [vmem:[#allocation11 + $0x88] ss:$56 sps:$4 sm:$0xff]  }
 0x367   : > { %v1246_v0 = vmax.f32 %v1148_v57, 0.0  ;;  %2156 = vmatprep.subr.bf16.mxu0 %v11583_v53  ;;  %v11599_v53 = vld [vmem:[#allocation11 + $0x2b0] ss:$56 sps:$4 sm:$0xff]   ;;  %v11604_v57 = vld [vmem:[#allocation11 + $0x324] ss:$56 sps:$4 sm:$0xff]  }
 0x368   : > { %2014 = vmatmul.mubr.bf16.gmra.mrb[44].mxu0 %v12689_v29  ;;  %v1245_v3 = vmax.f32 %v1143_v61, 0.0  ;;  %v11122_v4 = vpop.f32.mrb[16].mxu0  ;;  %v11619_v61 = vld [vmem:[#allocation11 + $0xfc] ss:$56 sps:$4 sm:$0xff]  }
 0x369   : > { %2023 = vmatprep.mubr.bf16.mxu0 %v12178_v52  ;;  %2340 = vmatpush1.bf16.msra.mxu1 %v11578_v59  ;;  %v1158_v5 = vadd.f32 %v11122_v4, %v12668_v55  ;;  %v1152_v6 = vpop.f32.mrb[17].mxu0 }
 0x36a   : > { %v12711_v8 = vpack.c.bf16 %v1246_v0, %v1245_v3  ;;  %2157 = vmatpush1.bf16.msra.mxu0 %v11581_v62  ;;  %v1153_v9 = vadd.f32 %v12668_v55, %v1152_v6  ;;  %2341 = vmatprep.subr.bf16.mxu1 %v11589_v63  ;;  %v11602_v3 = vld [vmem:[#allocation11 + $0x320] ss:$56 sps:$4 sm:$0xff]   ;;  %v11610_v6 = vld [vmem:[#allocation11 + $0x24] ss:$56 sps:$4 sm:$0xff]  }
 0x36b   : > { %v1248_v13 = vmax.f32 %v1158_v5, 0.0  ;;  %2158 = vmatprep.subr.bf16.mxu0 %v11586_v1 }
 0x36c   : > { %2044 = vmatmul.mubr.bf16.gmra.mrb[4].mxu1 %v12705_v60  ;;  %v1247_v15 = vmax.f32 %v1153_v9, 0.0  ;;  %v11125_v16 = vpop.f32.mrb[18].mxu0 }
 0x36d   : > { %2053 = vmatprep.mubr.bf16.mxu1 %v12178_v52  ;;  %2342 = vmatpush1.bf16.msra.mxu1 %v11587_v7  ;;  %v1168_v17 = vadd.f32 %v11125_v16, %v12668_v55  ;;  %v1162_v18 = vpop.f32.mrb[19].mxu0  ;;  %v11617_v7 = vld [vmem:[#allocation11 + $0xf8] ss:$56 sps:$4 sm:$0xff]  }
 0x36e   : > { %v12717_v21 = vpack.c.bf16 %v1248_v13, %v1247_v15  ;;  %2159 = vmatpush1.bf16.msra.mxu0 %v11584_v10  ;;  %v1163_v22 = vadd.f32 %v12668_v55, %v1162_v18  ;;  %2343 = vmatprep.subr.bf16.mxu1 %v11592_v12  ;;  %v11625_v10 = vld [vmem:[#allocation11 + $0x16c] ss:$56 sps:$4 sm:$0xff]   ;;  %v11623_v18 = vld [vmem:[#allocation11 + $0x168] ss:$56 sps:$4 sm:$0xff]  }
 0x36f   : > { %v1250_v24 = vmax.f32 %v1168_v17, 0.0  ;;  %2530 = vmatprep.subr.bf16.mxu0 %v11607_v14 }
 0x370   : > { %2024 = vmatmul.mubr.bf16.gmra.mrb[48].mxu0 %v12693_v38  ;;  %v1249_v25 = vmax.f32 %v1163_v22, 0.0  ;;  %v11128_v26 = vpop.f32.mrb[20].mxu0  ;;  %v11628_v22 = vld [vmem:[#allocation11 + $0x1dc] ss:$56 sps:$4 sm:$0xff]  }
 0x371   : > { %2176 = vmatprep.mubr.bf16.mxu0 %v12178_v52  ;;  %v1178_v27 = vadd.f32 %v11128_v26, %v12668_v55  ;;  %v1172_v28 = vpop.f32.mrb[21].mxu0  ;;  %2344 = vmatpush1.bf16.msra.mxu1 %v11590_v19 }
 0x372   : > { %v12723_v31 = vpack.c.bf16 %v1250_v24, %v1249_v25  ;;  %v1173_v32 = vadd.f32 %v12668_v55, %v1172_v28  ;;  %2345 = vmatprep.subr.bf16.mxu1 %v11595_v23 }
 0x373   : > { %v1252_v34 = vmax.f32 %v1178_v27, 0.0 }
 0x374   : > { %2054 = vmatmul.mubr.bf16.gmra.mrb[8].mxu1 %v12711_v8  ;;  %v1251_v35 = vmax.f32 %v1173_v32, 0.0  ;;  %v11131_v36 = vpop.f32.mrb[22].mxu0 }
 0x375   : > { %2063 = vmatprep.mubr.bf16.mxu1 %v12178_v52  ;;  %v1188_v37 = vadd.f32 %v11131_v36, %v12668_v55  ;;  %v1182_v39 = vpop.f32.mrb[23].mxu0  ;;  %2346 = vmatpush1.bf16.msra.mxu1 %v11593_v30  ;;  %v11626_v30 = vld [vmem:[#allocation11 + $0x1d8] ss:$56 sps:$4 sm:$0xff]   ;;  %v11632_v36 = vld [vmem:[#allocation11 + $0x248] ss:$56 sps:$4 sm:$0xff]  }
 0x376   : > { %v12729_v41 = vpack.c.bf16 %v1252_v34, %v1251_v35  ;;  %v1183_v42 = vadd.f32 %v12668_v55, %v1182_v39  ;;  %2347 = vmatprep.subr.bf16.mxu1 %v11598_v33  ;;  %v11634_v33 = vld [vmem:[#allocation11 + $0x24c] ss:$56 sps:$4 sm:$0xff]  }
 0x377   : > { %v1254_v45 = vmax.f32 %v1188_v37, 0.0  ;;  %v11637_v37 = vld [vmem:[#allocation11 + $0x2bc] ss:$56 sps:$4 sm:$0xff]   ;;  %v11640_v39 = vld [vmem:[#allocation11 + $0x32c] ss:$56 sps:$4 sm:$0xff]  }
 0x378   : > { %2177 = vmatmul.mubr.bf16.vlgmr.msra.gmra.mrb[52].mxu0 %v12673_v2  ;;  %v1253_v48 = vmax.f32 %v1183_v42, 0.0  ;;  %v11134_v49 = vpop.f32.mrb[24].mxu0  ;;  %v11608_v42 = vld [vmem:[#allocation11 + $0x20] ss:$56 sps:$4 sm:$0xff]  }
 0x379   : > { %2186 = vmatprep.mubr.bf16.mxu0 %v12178_v52  ;;  %v1198_v50 = vadd.f32 %v11134_v49, %v12668_v55  ;;  %v1192_v51 = vpop.f32.mrb[25].mxu0  ;;  %2348 = vmatpush1.bf16.msra.mxu1 %v11596_v40  ;;  %v11638_v40 = vld [vmem:[#allocation11 + $0x328] ss:$56 sps:$4 sm:$0xff]   ;;  %v11631_v49 = vld [vmem:[#allocation11 + $0x174] ss:$56 sps:$4 sm:$0xff]  }
 0x37a   : > { %v12735_v54 = vpack.c.bf16 %v1254_v45, %v1253_v48  ;;  %v1193_v56 = vadd.f32 %v12668_v55, %v1192_v51  ;;  %2349 = vmatprep.subr.bf16.mxu1 %v11601_v43  ;;  %2531 = vmatpush1.bf16.msra.mxu0 %v11605_v44  ;;  %v11616_v43 = vld [vmem:[#allocation11 + $0x94] ss:$56 sps:$4 sm:$0xff]   ;;  %v11614_v44 = vld [vmem:[#allocation11 + $0x90] ss:$56 sps:$4 sm:$0xff]   ;;  %v11620_v48 = vld [vmem:[#allocation11 + $0x100] ss:$56 sps:$4 sm:$0xff]  }
 0x37b   : > { %v1256_v59 = vmax.f32 %v1198_v50, 0.0  ;;  %2532 = vmatprep.subr.bf16.mxu0 %v11613_v46  ;;  %v11655_v45 = vld [vmem:[#allocation11 + $0x2c] ss:$56 sps:$4 sm:$0xff]   ;;  %v11629_v50 = vld [vmem:[#allocation11 + $0x170] ss:$56 sps:$4 sm:$0xff]  }
 0x37c   : > { %2064 = vmatmul.mubr.bf16.gmra.mrb[12].mxu1 %v12717_v21  ;;  %v1255_v62 = vmax.f32 %v1193_v56, 0.0  ;;  %v11137_v63 = vpop.f32.mrb[26].mxu0  ;;  %v11622_v46 = vld [vmem:[#allocation11 + $0x104] ss:$56 sps:$4 sm:$0xff]   ;;  %v11646_v56 = vld [vmem:[#allocation11 + $0x254] ss:$56 sps:$4 sm:$0xff]  }
 0x37d   : > { %2073 = vmatprep.mubr.bf16.mxu1 %v12178_v52  ;;  %v1208_v0 = vadd.f32 %v11137_v63, %v12668_v55  ;;  %v1202_v1 = vpop.f32.mrb[27].mxu0  ;;  %2350 = vmatpush1.bf16.msra.mxu1 %v11599_v53  ;;  %v11643_v51 = vld [vmem:[#allocation11 + $0x1e4] ss:$56 sps:$4 sm:$0xff]   ;;  %v11641_v53 = vld [vmem:[#allocation11 + $0x1e0] ss:$56 sps:$4 sm:$0xff]  }
 0x37e   : > { %v12741_v4 = vpack.c.bf16 %v1256_v59, %v1255_v62  ;;  %v1203_v5 = vadd.f32 %v12668_v55, %v1202_v1  ;;  %2351 = vmatprep.subr.bf16.mxu1 %v11604_v57  ;;  %2533 = vmatpush1.bf16.msra.mxu0 %v11611_v58  ;;  %v11644_v57 = vld [vmem:[#allocation11 + $0x250] ss:$56 sps:$4 sm:$0xff]   ;;  %v11649_v58 = vld [vmem:[#allocation11 + $0x2c4] ss:$56 sps:$4 sm:$0xff]   ;;  %v11647_v59 = vld [vmem:[#allocation11 + $0x2c0] ss:$56 sps:$4 sm:$0xff]  }
 0x37f   : > { %v1258_v9 = vmax.f32 %v1208_v0, 0.0  ;;  %2534 = vmatprep.subr.bf16.mxu0 %v11619_v61  ;;  %v11652_v61 = vld [vmem:[#allocation11 + $0x334] ss:$56 sps:$4 sm:$0xff]   ;;  %v11650_v62 = vld [vmem:[#allocation11 + $0x330] ss:$56 sps:$4 sm:$0xff]  }
 0x380   : > { %2187 = vmatmul.mubr.bf16.gmra.mrb[56].mxu0 %v12679_v11  ;;  %v1257_v12 = vmax.f32 %v1203_v5, 0.0  ;;  %v11140_v13 = vpop.f32.mrb[28].mxu0  ;;  %v11658_v63 = vld [vmem:[#allocation11 + $0x34] ss:$56 sps:$4 sm:$0xff]   ;;  %v11653_v0 = vld [vmem:[#allocation11 + $0x28] ss:$56 sps:$4 sm:$0xff]  }
 0x381   : > { %2196 = vmatprep.mubr.bf16.mxu0 %v12178_v52  ;;  %v1218_v14 = vadd.f32 %v11140_v13, %v12668_v55  ;;  %v1212_v15 = vpop.f32.mrb[29].mxu0  ;;  %2352 = vmatpush1.bf16.msra.mxu1 %v11602_v3  ;;  %v11661_v1 = vld [vmem:[#allocation11 + $0x9c] ss:$56 sps:$4 sm:$0xff]   ;;  %v11659_v3 = vld [vmem:[#allocation11 + $0x98] ss:$56 sps:$4 sm:$0xff]  }
 0x382   : > { %v12747_v16 = vpack.c.bf16 %v1258_v9, %v1257_v12  ;;  %v1213_v17 = vadd.f32 %v12668_v55, %v1212_v15  ;;  %2723 = vmatprep.subr.bf16.mxu1 %v11610_v6  ;;  %2535 = vmatpush1.bf16.msra.mxu0 %v11617_v7  ;;  %v11667_v5 = vld [vmem:[#allocation11 + $0x10c] ss:$56 sps:$4 sm:$0xff]   ;;  %v11665_v6 = vld [vmem:[#allocation11 + $0x108] ss:$56 sps:$4 sm:$0xff]   ;;  %v11673_v7 = vld [vmem:[#allocation11 + $0x17c] ss:$56 sps:$4 sm:$0xff]  }
 0x383   : > { %v1260_v19 = vmax.f32 %v1218_v14, 0.0  ;;  %2536 = vmatprep.subr.bf16.mxu0 %v11625_v10  ;;  %v11671_v9 = vld [vmem:[#allocation11 + $0x178] ss:$56 sps:$4 sm:$0xff]   ;;  %v11676_v10 = vld [vmem:[#allocation11 + $0x1ec] ss:$56 sps:$4 sm:$0xff]  }
 0x384   : > { %2074 = vmatmul.mubr.bf16.gmra.mrb[16].mxu1 %v12723_v31  ;;  %v1259_v23 = vmax.f32 %v1213_v17, 0.0  ;;  %v11143_v24 = vpop.f32.mrb[30].mxu0  ;;  %v11674_v12 = vld [vmem:[#allocation11 + $0x1e8] ss:$56 sps:$4 sm:$0xff]   ;;  %v11682_v13 = vld [vmem:[#allocation11 + $0x25c] ss:$56 sps:$4 sm:$0xff]  }
 0x385   : > { %2083 = vmatprep.mubr.bf16.mxu1 %v12178_v52  ;;  %v1228_v25 = vadd.f32 %v11143_v24, %v12668_v55  ;;  %v1222_v26 = vpop.f32.mrb[31].mxu0  ;;  %v11680_v14 = vld [vmem:[#allocation11 + $0x258] ss:$56 sps:$4 sm:$0xff]   ;;  %v11685_v15 = vld [vmem:[#allocation11 + $0x2cc] ss:$56 sps:$4 sm:$0xff]  }
 0x386   : > { %v12753_v27 = vpack.c.bf16 %v1260_v19, %v1259_v23  ;;  %v1223_v28 = vadd.f32 %v12668_v55, %v1222_v26  ;;  %2537 = vmatpush1.bf16.msra.mxu0 %v11623_v18  ;;  %v11635_v55 = vld [vmem:[#allocation11 + $0x2b8] ss:$56 sps:$4 sm:$0xff]   ;;  %v11683_v17 = vld [vmem:[#allocation11 + $0x2c8] ss:$56 sps:$4 sm:$0xff]   ;;  %v11688_v18 = vld [vmem:[#allocation11 + $0x33c] ss:$56 sps:$4 sm:$0xff]  }
 0x387   : > { %v1262_v32 = vmax.f32 %v1228_v25, 0.0  ;;  %2538 = vmatprep.subr.bf16.mxu0 %v11628_v22  ;;  %v11686_v19 = vld [vmem:[#allocation11 + $0x338] ss:$56 sps:$4 sm:$0xff]  }
 0x388   : > { %2197 = vmatmul.mubr.bf16.gmra.mrb[60].mxu0 %v12683_v20  ;;  %v1261_v34 = vmax.f32 %v1223_v28, 0.0 }
 0x389   : > { %2206 = vmatprep.mubr.bf16.mxu0 %v12178_v52 }
 0x38a   : > { %v12758_v35 = vpack.c.bf16 %v1262_v32, %v1261_v34  ;;  %2539 = vmatpush1.bf16.msra.mxu0 %v11626_v30 }
 0x38b   : > { %2540 = vmatprep.subr.bf16.mxu0 %v11634_v33 }
 0x38c   : > { %2084 = vmatmul.mubr.bf16.gmra.mrb[20].mxu1 %v12729_v41 }
 0x38d   : > { %2093 = vmatprep.mubr.bf16.mxu1 %v12178_v52 }
 0x38e   : > { %2541 = vmatpush1.bf16.msra.mxu0 %v11632_v36 }
 0x38f   : > { %2542 = vmatprep.subr.bf16.mxu0 %v11637_v37 }
 0x390   : > { %2207 = vmatmul.mubr.bf16.gmra.mrb[64].mxu0 %v12689_v29 }
 0x391   : > { %2216 = vmatprep.mubr.bf16.mxu0 %v12178_v52 }
 0x392   : > { %2543 = vmatpush1.bf16.msra.mxu0 %v11635_v55 }
 0x393   : > { %2544 = vmatprep.subr.bf16.mxu0 %v11640_v39 }
 0x394   : > { %2094 = vmatmul.mubr.bf16.gmra.mrb[24].mxu1 %v12735_v54 }
 0x395   : > { %2103 = vmatprep.mubr.bf16.mxu1 %v12178_v52 }
 0x396   : > { %2545 = vmatpush1.bf16.msra.mxu0 %v11638_v40 }
 0x397   : > { %2916 = vmatprep.subr.bf16.mxu0 %v11655_v45 }
 0x398   : > { %2217 = vmatmul.mubr.bf16.gmra.mrb[68].mxu0 %v12693_v38 }
 0x399   : > { %2226 = vmatprep.mubr.bf16.mxu0 %v12178_v52 }
 0x39c   : > { %2104 = vmatmul.mubr.bf16.gmra.mrb[28].mxu1 %v12741_v4 }
 0x39d   : > { %2113 = vmatprep.mubr.bf16.mxu1 %v12178_v52 }
 0x3a0   : > { %2227 = vmatmul.mubr.bf16.gmra.mrb[72].mxu0 %v12699_v47 }
 0x3a1   : > { %2236 = vmatprep.mubr.bf16.mxu0 %v12178_v52 }
 0x3a4   : > { %2114 = vmatmul.mubr.bf16.gmra.mrb[32].mxu1 %v12747_v16 }
 0x3a5   : > { %2123 = vmatprep.mubr.bf16.mxu1 %v12178_v52 }
 0x3a8   : > { %2237 = vmatmul.mubr.bf16.gmra.mrb[76].mxu0 %v12705_v60 }
 0x3a9   : > { %2246 = vmatprep.mubr.bf16.mxu0 %v12178_v52 }
 0x3ac   : > { %2124 = vmatmul.mubr.bf16.gmra.mrb[36].mxu1 %v12753_v27 }
 0x3ad   : > { %2133 = vmatprep.mubr.bf16.mxu1 %v12178_v52 }
 0x3b0   : > { %2247 = vmatmul.mubr.bf16.gmra.mrb[80].mxu0 %v12711_v8 }
 0x3b1   : > { %2256 = vmatprep.mubr.bf16.mxu0 %v12178_v52 }
 0x3b4   : > { %2134 = vmatmul.mubr.bf16.gmra.mrb[40].mxu1 %v12758_v35 }
 0x3b5   : > { %2369 = vmatprep.mubr.bf16.mxu1 %v12178_v52 }
 0x3b8   : > { %2257 = vmatmul.mubr.bf16.gmra.mrb[84].mxu0 %v12717_v21 }
 0x3b9   : > { %2266 = vmatprep.mubr.bf16.mxu0 %v12178_v52 }
 0x3bc   : > { %2370 = vmatmul.mubr.bf16.vlgmr.msra.gmra.mrb[44].mxu1 %v12673_v2 }
 0x3bd   : > { %2724 = vmatpush1.bf16.msra.mxu1 %v11608_v42  ;;  %2379 = vmatprep.mubr.bf16.mxu1 %v12178_v52 }
 0x3be   : > { %2725 = vmatprep.subr.bf16.mxu1 %v11616_v43 }
 0x3c0   : > { %2267 = vmatmul.mubr.bf16.gmra.mrb[88].mxu0 %v12723_v31 }
 0x3c1   : > { %2276 = vmatprep.mubr.bf16.mxu0 %v12178_v52  ;;  %2726 = vmatpush1.bf16.msra.mxu1 %v11614_v44 }
 0x3c2   : > { %2727 = vmatprep.subr.bf16.mxu1 %v11622_v46 }
 0x3c4   : > { %2380 = vmatmul.mubr.bf16.gmra.mrb[48].mxu1 %v12679_v11 }
 0x3c5   : > { %2389 = vmatprep.mubr.bf16.mxu1 %v12178_v52  ;;  %2728 = vmatpush1.bf16.msra.mxu1 %v11620_v48 }
 0x3c6   : > { %2729 = vmatprep.subr.bf16.mxu1 %v11631_v49  ;;  %v11656_v49 = vld [vmem:[#allocation11 + $0x30] ss:$56 sps:$4 sm:$0xff]  }
 0x3c8   : > { %2277 = vmatmul.mubr.bf16.gmra.mrb[92].mxu0 %v12729_v41 }
 0x3c9   : > { %2286 = vmatprep.mubr.bf16.mxu0 %v12178_v52  ;;  %2730 = vmatpush1.bf16.msra.mxu1 %v11629_v50 }
 0x3ca   : > { %2731 = vmatprep.subr.bf16.mxu1 %v11643_v51 }
 0x3cc   : > { %2390 = vmatmul.mubr.bf16.gmra.mrb[52].mxu1 %v12683_v20 }
 0x3cd   : > { %2399 = vmatprep.mubr.bf16.mxu1 %v12178_v52  ;;  %2732 = vmatpush1.bf16.msra.mxu1 %v11641_v53  ;;  %v11664_v53 = vld [vmem:[#allocation11 + $0xa4] ss:$56 sps:$4 sm:$0xff]  }
 0x3ce   : > { %2733 = vmatprep.subr.bf16.mxu1 %v11646_v56 }
 0x3d0   : > { %2287 = vmatmul.mubr.bf16.gmra.mrb[96].mxu0 %v12735_v54 }
 0x3d1   : > { %2296 = vmatprep.mubr.bf16.mxu0 %v12178_v52  ;;  %2734 = vmatpush1.bf16.msra.mxu1 %v11644_v57 }
 0x3d2   : > { %2735 = vmatprep.subr.bf16.mxu1 %v11649_v58 }
 0x3d4   : > { %2400 = vmatmul.mubr.bf16.gmra.mrb[56].mxu1 %v12689_v29 }
 0x3d5   : > { %2409 = vmatprep.mubr.bf16.mxu1 %v12178_v52  ;;  %2736 = vmatpush1.bf16.msra.mxu1 %v11647_v59 }
 0x3d6   : > { %2737 = vmatprep.subr.bf16.mxu1 %v11652_v61  ;;  %v11662_v61 = vld [vmem:[#allocation11 + $0xa0] ss:$56 sps:$4 sm:$0xff]  }
 0x3d8   : > { %2297 = vmatmul.mubr.bf16.gmra.mrb[100].mxu0 %v12741_v4 }
 0x3d9   : > { %2306 = vmatprep.mubr.bf16.mxu0 %v12178_v52  ;;  %2738 = vmatpush1.bf16.msra.mxu1 %v11650_v62 }
 0x3da   : > { %3109 = vmatprep.subr.bf16.mxu1 %v11658_v63 }
 0x3dc   : > { %2410 = vmatmul.mubr.bf16.gmra.mrb[60].mxu1 %v12693_v38 }
 0x3dd   : > { %2419 = vmatprep.mubr.bf16.mxu1 %v12178_v52 }
 0x3e0   : > { %2307 = vmatmul.mubr.bf16.gmra.mrb[104].mxu0 %v12747_v16 }
 0x3e1   : > { %2316 = vmatprep.mubr.bf16.mxu0 %v12178_v52 }
 0x3e4   : > { %2420 = vmatmul.mubr.bf16.gmra.mrb[64].mxu1 %v12699_v47 }
 0x3e5   : > { %2429 = vmatprep.mubr.bf16.mxu1 %v12178_v52 }
 0x3e8   : > { %2317 = vmatmul.mubr.bf16.gmra.mrb[108].mxu0 %v12753_v27 }
 0x3e9   : > { %2326 = vmatprep.mubr.bf16.mxu0 %v12178_v52 }
 0x3ec   : > { %2430 = vmatmul.mubr.bf16.gmra.mrb[68].mxu1 %v12705_v60 }
 0x3ed   : > { %2439 = vmatprep.mubr.bf16.mxu1 %v12178_v52 }
 0x3f0   : > { %2327 = vmatmul.mubr.bf16.gmra.mrb[112].mxu0 %v12758_v35 }
 0x3f1   : > { %2562 = vmatprep.mubr.bf16.mxu0 %v12178_v52 }
 0x3f4   : > { %2440 = vmatmul.mubr.bf16.gmra.mrb[72].mxu1 %v12711_v8 }
 0x3f5   : > { %2449 = vmatprep.mubr.bf16.mxu1 %v12178_v52 }
 0x3f8   : > { %2563 = vmatmul.mubr.bf16.vlgmr.msra.gmra.mrb[116].mxu0 %v12673_v2 }
 0x3f9   : > { %2572 = vmatprep.mubr.bf16.mxu0 %v12178_v52  ;;  %2917 = vmatpush1.bf16.msra.mxu0 %v11653_v0  ;;  %v11670_v0 = vld [vmem:[#allocation11 + $0x114] ss:$56 sps:$4 sm:$0xff]  }
 0x3fa   : > { %2918 = vmatprep.subr.bf16.mxu0 %v11661_v1 }
 0x3fc   : > { %2450 = vmatmul.mubr.bf16.gmra.mrb[76].mxu1 %v12717_v21 }
 0x3fd   : > { %2459 = vmatprep.mubr.bf16.mxu1 %v12178_v52  ;;  %2919 = vmatpush1.bf16.msra.mxu0 %v11659_v3 }
 0x3fe   : > { %2920 = vmatprep.subr.bf16.mxu0 %v11667_v5 }
 0x400   : > { %2573 = vmatmul.mubr.bf16.gmra.mrb[120].mxu0 %v12679_v11 }
 0x401   : > { %2582 = vmatprep.mubr.bf16.mxu0 %v12178_v52  ;;  %2921 = vmatpush1.bf16.msra.mxu0 %v11665_v6 }
 0x402   : > { %2922 = vmatprep.subr.bf16.mxu0 %v11673_v7  ;;  %v11668_v7 = vld [vmem:[#allocation11 + $0x110] ss:$56 sps:$4 sm:$0xff]  }
 0x404   : > { %2460 = vmatmul.mubr.bf16.gmra.mrb[80].mxu1 %v12723_v31 }
 0x405   : > { %2469 = vmatprep.mubr.bf16.mxu1 %v12178_v52  ;;  %2923 = vmatpush1.bf16.msra.mxu0 %v11671_v9 }
 0x406   : > { %2924 = vmatprep.subr.bf16.mxu0 %v11676_v10 }
 0x408   : > { %2583 = vmatmul.mubr.bf16.gmra.mrb[124].mxu0 %v12683_v20 }
 0x409   : > { %2592 = vmatprep.mubr.bf16.mxu0 %v12178_v52  ;;  %2925 = vmatpush1.bf16.msra.mxu0 %v11674_v12  ;;  %v11679_v12 = vld [vmem:[#allocation11 + $0x184] ss:$56 sps:$4 sm:$0xff]  }
 0x40a   : > { %2926 = vmatprep.subr.bf16.mxu0 %v11682_v13 }
 0x40c   : > { %2470 = vmatmul.mubr.bf16.gmra.mrb[84].mxu1 %v12729_v41 }
 0x40d   : > { %2479 = vmatprep.mubr.bf16.mxu1 %v12178_v52  ;;  %2927 = vmatpush1.bf16.msra.mxu0 %v11680_v14 }
 0x40e   : > { %2928 = vmatprep.subr.bf16.mxu0 %v11685_v15 }
 0x410   : > { %2593 = vmatmul.mubr.bf16.gmra.mrb[128].mxu0 %v12689_v29 }
 0x411   : > { %2602 = vmatprep.mubr.bf16.mxu0 %v12178_v52  ;;  %2929 = vmatpush1.bf16.msra.mxu0 %v11683_v17 }
 0x412   : > { %2930 = vmatprep.subr.bf16.mxu0 %v11688_v18  ;;  %v11677_v18 = vld [vmem:[#allocation11 + $0x180] ss:$56 sps:$4 sm:$0xff]  }
 0x414   : > { %2480 = vmatmul.mubr.bf16.gmra.mrb[88].mxu1 %v12735_v54 }
 0x415   : > { %2489 = vmatprep.mubr.bf16.mxu1 %v12178_v52  ;;  %2931 = vmatpush1.bf16.msra.mxu0 %v11686_v19 }
 0x418   : > { %2603 = vmatmul.mubr.bf16.gmra.mrb[132].mxu0 %v12693_v38 }
 0x419   : > { %2612 = vmatprep.mubr.bf16.mxu0 %v12178_v52 }
 0x41c   : > { %2490 = vmatmul.mubr.bf16.gmra.mrb[92].mxu1 %v12741_v4 }
 0x41d   : > { %2499 = vmatprep.mubr.bf16.mxu1 %v12178_v52 }
 0x420   : > { %2613 = vmatmul.mubr.bf16.gmra.mrb[136].mxu0 %v12699_v47 }
 0x421   : > { %2622 = vmatprep.mubr.bf16.mxu0 %v12178_v52 }
 0x423   : > { %v1985_v22 = vpop.f32.mrb[32].mxu0 }
 0x424   : > { %v1987_v23 = vpop.f32.mrb[33].mxu0  ;;  %2500 = vmatmul.mubr.bf16.gmra.mrb[96].mxu1 %v12747_v16 }
 0x425   : > { %v1989_v24 = vpop.f32.mrb[34].mxu0  ;;  %2509 = vmatprep.mubr.bf16.mxu1 %v12178_v52 }
 0x426   : > { %v3302_v25 = vpack.c.bf16 %v1989_v24, %v1985_v22  ;;  %v1991_v26 = vpop.f32.mrb[35].mxu0 }
 0x427   : > { %v3303_v28 = vpack.c.bf16 %v1991_v26, %v1987_v23  ;;  %v11691_v23 = vld [vmem:[#allocation11 + $0x1f4] ss:$56 sps:$4 sm:$0xff]  }
 0x428   : > { %3529 = vst [vmem:[#allocation5] sm:$0xff] %v3302_v25  ;;  %2623 = vmatmul.mubr.bf16.gmra.mrb[140].mxu0 %v12705_v60 }
 0x429   : > { %3530 = vst [vmem:[#allocation5 + $0x8] sm:$0xff] %v3303_v28  ;;  %2632 = vmatprep.mubr.bf16.mxu0 %v12178_v52 }
 0x42b   : > { %v1995_v30 = vpop.f32.mrb[36].mxu0 }
 0x42c   : > { %v1997_v32 = vpop.f32.mrb[37].mxu0  ;;  %2510 = vmatmul.mubr.bf16.gmra.mrb[100].mxu1 %v12753_v27 }
 0x42d   : > { %v1999_v33 = vpop.f32.mrb[38].mxu0  ;;  %2519 = vmatprep.mubr.bf16.mxu1 %v12178_v52 }
 0x42e   : > { %v3316_v34 = vpack.c.bf16 %v1999_v33, %v1995_v30  ;;  %v2001_v36 = vpop.f32.mrb[39].mxu0  ;;  %v11689_v30 = vld [vmem:[#allocation11 + $0x1f0] ss:$56 sps:$4 sm:$0xff]  }
 0x42f   : > { %v3317_v37 = vpack.c.bf16 %v2001_v36, %v1997_v32 }
 0x430   : > { %3543 = vst [vmem:[#allocation5 + $0x70] sm:$0xff] %v3316_v34  ;;  %2633 = vmatmul.mubr.bf16.gmra.mrb[144].mxu0 %v12711_v8  ;;  %v11694_v34 = vld [vmem:[#allocation11 + $0x264] ss:$56 sps:$4 sm:$0xff]  }
 0x431   : > { %3544 = vst [vmem:[#allocation5 + $0x78] sm:$0xff] %v3317_v37  ;;  %2642 = vmatprep.mubr.bf16.mxu0 %v12178_v52 }
 0x433   : > { %v2005_v55 = vpop.f32.mrb[40].mxu0 }
 0x434   : > { %v2007_v39 = vpop.f32.mrb[41].mxu0  ;;  %2520 = vmatmul.mubr.bf16.gmra.mrb[104].mxu1 %v12758_v35 }
 0x435   : > { %v2009_v40 = vpop.f32.mrb[42].mxu0  ;;  %2755 = vmatprep.mubr.bf16.mxu1 %v12178_v52 }
 0x436   : > { %v3330_v42 = vpack.c.bf16 %v2009_v40, %v2005_v55  ;;  %v2011_v43 = vpop.f32.mrb[43].mxu0  ;;  %v11692_v40 = vld [vmem:[#allocation11 + $0x260] ss:$56 sps:$4 sm:$0xff]  }
 0x437   : > { %v3331_v44 = vpack.c.bf16 %v2011_v43, %v2007_v39  ;;  %v2035_v45 = vpop.f32.mrb[0].mxu1 }
 0x438   : > { %3557 = vst [vmem:[#allocation5 + $0xe0] sm:$0xff] %v3330_v42  ;;  %v2037_v46 = vpop.f32.mrb[1].mxu1  ;;  %2643 = vmatmul.mubr.bf16.gmra.mrb[148].mxu0 %v12717_v21 }
 0x439   : > { %3558 = vst [vmem:[#allocation5 + $0xe8] sm:$0xff] %v3331_v44  ;;  %v2039_v48 = vpop.f32.mrb[2].mxu1  ;;  %2652 = vmatprep.mubr.bf16.mxu0 %v12178_v52  ;;  %v11697_v44 = vld [vmem:[#allocation11 + $0x2d4] ss:$56 sps:$4 sm:$0xff]  }
 0x43a   : > { %v3372_v50 = vpack.c.bf16 %v2039_v48, %v2035_v45  ;;  %v2041_v51 = vpop.f32.mrb[3].mxu1 }
 0x43b   : > { %v3373_v56 = vpack.c.bf16 %v2041_v51, %v2037_v46  ;;  %v2015_v57 = vpop.f32.mrb[44].mxu0 }
 0x43c   : > { %3599 = vst [vmem:[#allocation5 + $0x230] sm:$0xff] %v3372_v50  ;;  %v2017_v58 = vpop.f32.mrb[45].mxu0  ;;  %2756 = vmatmul.mubr.bf16.vlgmr.msra.gmra.mrb[108].mxu1 %v12673_v2  ;;  %v11695_v50 = vld [vmem:[#allocation11 + $0x2d0] ss:$56 sps:$4 sm:$0xff]  }
 0x43d   : > { %3600 = vst [vmem:[#allocation5 + $0x238] sm:$0xff] %v3373_v56  ;;  %3110 = vmatpush1.bf16.msra.mxu1 %v11656_v49  ;;  %v2019_v59 = vpop.f32.mrb[46].mxu0  ;;  %2765 = vmatprep.mubr.bf16.mxu1 %v12178_v52  ;;  %v11700_v56 = vld [vmem:[#allocation11 + $0x344] ss:$56 sps:$4 sm:$0xff]  }
 0x43e   : > { %v3344_v62 = vpack.c.bf16 %v2019_v59, %v2015_v57  ;;  %v2021_v63 = vpop.f32.mrb[47].mxu0  ;;  %3111 = vmatprep.subr.bf16.mxu1 %v11664_v53 }
 0x43f   : > { %v3345_v1 = vpack.c.bf16 %v2021_v63, %v2017_v58  ;;  %v2045_v3 = vpop.f32.mrb[4].mxu1 }
 0x440   : > { %3571 = vst [vmem:[#allocation5 + $0x150] sm:$0xff] %v3344_v62  ;;  %v2047_v5 = vpop.f32.mrb[5].mxu1  ;;  %2653 = vmatmul.mubr.bf16.gmra.mrb[152].mxu0 %v12723_v31  ;;  %v11698_v62 = vld [vmem:[#allocation11 + $0x340] ss:$56 sps:$4 sm:$0xff]  }
 0x441   : > { %3572 = vst [vmem:[#allocation5 + $0x158] sm:$0xff] %v3345_v1  ;;  %v2049_v6 = vpop.f32.mrb[6].mxu1  ;;  %2662 = vmatprep.mubr.bf16.mxu0 %v12178_v52  ;;  %3112 = vmatpush1.bf16.msra.mxu1 %v11662_v61 }
 0x442   : > { %v3386_v9 = vpack.c.bf16 %v2049_v6, %v2045_v3  ;;  %v2051_v10 = vpop.f32.mrb[7].mxu1  ;;  %3113 = vmatprep.subr.bf16.mxu1 %v11670_v0 }
 0x443   : > { %v3387_v13 = vpack.c.bf16 %v2051_v10, %v2047_v5  ;;  %v2025_v14 = vpop.f32.mrb[48].mxu0 }
 0x444   : > { %3613 = vst [vmem:[#allocation5 + $0x2a0] sm:$0xff] %v3386_v9  ;;  %v2027_v15 = vpop.f32.mrb[49].mxu0  ;;  %2766 = vmatmul.mubr.bf16.gmra.mrb[112].mxu1 %v12679_v11 }
 0x445   : > { %3614 = vst [vmem:[#allocation5 + $0x2a8] sm:$0xff] %v3387_v13  ;;  %v2029_v17 = vpop.f32.mrb[50].mxu0  ;;  %2775 = vmatprep.mubr.bf16.mxu1 %v12178_v52  ;;  %3114 = vmatpush1.bf16.msra.mxu1 %v11668_v7 }
 0x446   : > { %v3358_v19 = vpack.c.bf16 %v2029_v17, %v2025_v14  ;;  %v2031_v22 = vpop.f32.mrb[51].mxu0  ;;  %3115 = vmatprep.subr.bf16.mxu1 %v11679_v12 }
 0x447   : > { %v3359_v24 = vpack.c.bf16 %v2031_v22, %v2027_v15  ;;  %v2055_v25 = vpop.f32.mrb[8].mxu1 }
 0x448   : > { %3585 = vst [vmem:[#allocation5 + $0x1c0] sm:$0xff] %v3358_v19  ;;  %v2057_v26 = vpop.f32.mrb[9].mxu1  ;;  %2663 = vmatmul.mubr.bf16.gmra.mrb[156].mxu0 %v12729_v41 }
 0x449   : > { %3586 = vst [vmem:[#allocation5 + $0x1c8] sm:$0xff] %v3359_v24  ;;  %v2059_v28 = vpop.f32.mrb[10].mxu1  ;;  %2672 = vmatprep.mubr.bf16.mxu0 %v12178_v52  ;;  %3116 = vmatpush1.bf16.msra.mxu1 %v11677_v18 }
 0x44a   : > { %v3400_v32 = vpack.c.bf16 %v2059_v28, %v2055_v25  ;;  %v2061_v33 = vpop.f32.mrb[11].mxu1  ;;  %3117 = vmatprep.subr.bf16.mxu1 %v11691_v23 }
 0x44b   : > { %v3401_v36 = vpack.c.bf16 %v2061_v33, %v2057_v26  ;;  %v2178_v37 = vpop.f32.mrb[52].mxu0 }
 0x44c   : > { %3627 = vst [vmem:[#allocation5 + $0x310] sm:$0xff] %v3400_v32  ;;  %v2180_v55 = vpop.f32.mrb[53].mxu0  ;;  %2776 = vmatmul.mubr.bf16.gmra.mrb[116].mxu1 %v12683_v20 }
 0x44d   : > { %3628 = vst [vmem:[#allocation5 + $0x318] sm:$0xff] %v3401_v36  ;;  %v2182_v39 = vpop.f32.mrb[54].mxu0  ;;  %2785 = vmatprep.mubr.bf16.mxu1 %v12178_v52  ;;  %3118 = vmatpush1.bf16.msra.mxu1 %v11689_v30 }
 0x44e   : > { %v3304_v42 = vpack.c.bf16 %v2182_v39, %v2178_v37  ;;  %v2184_v43 = vpop.f32.mrb[55].mxu0  ;;  %3119 = vmatprep.subr.bf16.mxu1 %v11694_v34 }
 0x44f   : > { %v3305_v45 = vpack.c.bf16 %v2184_v43, %v2180_v55  ;;  %v2065_v46 = vpop.f32.mrb[12].mxu1 }
 0x450   : > { %3531 = vst [vmem:[#allocation5 + $0x10] sm:$0xff] %v3304_v42  ;;  %v2067_v48 = vpop.f32.mrb[13].mxu1  ;;  %2673 = vmatmul.mubr.bf16.gmra.mrb[160].mxu0 %v12735_v54 }
 0x451   : > { %3532 = vst [vmem:[#allocation5 + $0x18] sm:$0xff] %v3305_v45  ;;  %v2069_v49 = vpop.f32.mrb[14].mxu1  ;;  %2682 = vmatprep.mubr.bf16.mxu0 %v12178_v52  ;;  %3120 = vmatpush1.bf16.msra.mxu1 %v11692_v40 }
 0x452   : > { %v3414_v51 = vpack.c.bf16 %v2069_v49, %v2065_v46  ;;  %v2071_v53 = vpop.f32.mrb[15].mxu1  ;;  %3121 = vmatprep.subr.bf16.mxu1 %v11697_v44 }
 0x453   : > { %v3415_v57 = vpack.c.bf16 %v2071_v53, %v2067_v48  ;;  %v2188_v58 = vpop.f32.mrb[56].mxu0 }
 0x454   : > { %3641 = vst [vmem:[#allocation5 + $0x380] sm:$0xff] %v3414_v51  ;;  %v2190_v59 = vpop.f32.mrb[57].mxu0  ;;  %2786 = vmatmul.mubr.bf16.gmra.mrb[120].mxu1 %v12689_v29 }
 0x455   : > { %3642 = vst [vmem:[#allocation5 + $0x388] sm:$0xff] %v3415_v57  ;;  %v2192_v61 = vpop.f32.mrb[58].mxu0  ;;  %2795 = vmatprep.mubr.bf16.mxu1 %v12178_v52  ;;  %3122 = vmatpush1.bf16.msra.mxu1 %v11695_v50 }
 0x456   : > { %v3318_v63 = vpack.c.bf16 %v2192_v61, %v2188_v58  ;;  %v2194_v0 = vpop.f32.mrb[59].mxu0  ;;  %3123 = vmatprep.subr.bf16.mxu1 %v11700_v56 }
 0x457   : > { %v3319_v1 = vpack.c.bf16 %v2194_v0, %v2190_v59  ;;  %v2075_v3 = vpop.f32.mrb[16].mxu1 }
 0x458   : > { %3545 = vst [vmem:[#allocation5 + $0x80] sm:$0xff] %v3318_v63  ;;  %v2077_v5 = vpop.f32.mrb[17].mxu1  ;;  %2683 = vmatmul.mubr.bf16.gmra.mrb[164].mxu0 %v12741_v4 }
 0x459   : > { %3546 = vst [vmem:[#allocation5 + $0x88] sm:$0xff] %v3319_v1  ;;  %v2079_v6 = vpop.f32.mrb[18].mxu1  ;;  %2692 = vmatprep.mubr.bf16.mxu0 %v12178_v52  ;;  %3124 = vmatpush1.bf16.msra.mxu1 %v11698_v62 }
 0x45a   : > { %v3428_v7 = vpack.c.bf16 %v2079_v6, %v2075_v3  ;;  %v2081_v9 = vpop.f32.mrb[19].mxu1 }
 0x45b   : > { %v3429_v10 = vpack.c.bf16 %v2081_v9, %v2077_v5  ;;  %v2198_v12 = vpop.f32.mrb[60].mxu0 }
 0x45c   : > { %3655 = vst [vmem:[#allocation5 + $0x3f0] sm:$0xff] %v3428_v7  ;;  %v2200_v13 = vpop.f32.mrb[61].mxu0  ;;  %2796 = vmatmul.mubr.bf16.gmra.mrb[124].mxu1 %v12693_v38 }
 0x45d   : > { %3656 = vst [vmem:[#allocation5 + $0x3f8] sm:$0xff] %v3429_v10  ;;  %v2202_v14 = vpop.f32.mrb[62].mxu0  ;;  %2805 = vmatprep.mubr.bf16.mxu1 %v12178_v52 }
 0x45e   : > { %v3332_v15 = vpack.c.bf16 %v2202_v14, %v2198_v12  ;;  %v2204_v17 = vpop.f32.mrb[63].mxu0 }
 0x45f   : > { %v3333_v18 = vpack.c.bf16 %v2204_v17, %v2200_v13  ;;  %v2085_v19 = vpop.f32.mrb[20].mxu1 }
 0x460   : > { %3559 = vst [vmem:[#allocation5 + $0xf0] sm:$0xff] %v3332_v15  ;;  %v2087_v22 = vpop.f32.mrb[21].mxu1  ;;  %2693 = vmatmul.mubr.bf16.gmra.mrb[168].mxu0 %v12747_v16 }
 0x461   : > { %3560 = vst [vmem:[#allocation5 + $0xf8] sm:$0xff] %v3333_v18  ;;  %v2089_v23 = vpop.f32.mrb[22].mxu1  ;;  %2702 = vmatprep.mubr.bf16.mxu0 %v12178_v52 }
 0x462   : > { %v3442_v24 = vpack.c.bf16 %v2089_v23, %v2085_v19  ;;  %v2091_v25 = vpop.f32.mrb[23].mxu1 }
 0x463   : > { %v3443_v26 = vpack.c.bf16 %v2091_v25, %v2087_v22  ;;  %v2208_v28 = vpop.f32.mrb[64].mxu0 }
 0x464   : > { %3669 = vst [vmem:[#allocation5 + $0x460] sm:$0xff] %v3442_v24  ;;  %v2210_v30 = vpop.f32.mrb[65].mxu0  ;;  %2806 = vmatmul.mubr.bf16.gmra.mrb[128].mxu1 %v12699_v47 }
 0x465   : > { %3670 = vst [vmem:[#allocation5 + $0x468] sm:$0xff] %v3443_v26  ;;  %v2212_v32 = vpop.f32.mrb[66].mxu0  ;;  %2815 = vmatprep.mubr.bf16.mxu1 %v12178_v52 }
 0x466   : > { %v3346_v33 = vpack.c.bf16 %v2212_v32, %v2208_v28  ;;  %v2214_v34 = vpop.f32.mrb[67].mxu0 }
 0x467   : > { %v3347_v36 = vpack.c.bf16 %v2214_v34, %v2210_v30  ;;  %v2095_v37 = vpop.f32.mrb[24].mxu1 }
 0x468   : > { %3573 = vst [vmem:[#allocation5 + $0x160] sm:$0xff] %v3346_v33  ;;  %v2097_v55 = vpop.f32.mrb[25].mxu1  ;;  %2703 = vmatmul.mubr.bf16.gmra.mrb[172].mxu0 %v12753_v27 }
 0x469   : > { %3574 = vst [vmem:[#allocation5 + $0x168] sm:$0xff] %v3347_v36  ;;  %v2099_v39 = vpop.f32.mrb[26].mxu1  ;;  %2712 = vmatprep.mubr.bf16.mxu0 %v12178_v52 }
 0x46a   : > { %v3456_v40 = vpack.c.bf16 %v2099_v39, %v2095_v37  ;;  %v2101_v42 = vpop.f32.mrb[27].mxu1 }
 0x46b   : > { %v3457_v43 = vpack.c.bf16 %v2101_v42, %v2097_v55  ;;  %v2218_v44 = vpop.f32.mrb[68].mxu0 }
 0x46c   : > { %3683 = vst [vmem:[#allocation5 + $0x4d0] sm:$0xff] %v3456_v40  ;;  %v2220_v45 = vpop.f32.mrb[69].mxu0  ;;  %2816 = vmatmul.mubr.bf16.gmra.mrb[132].mxu1 %v12705_v60 }
 0x46d   : > { %3684 = vst [vmem:[#allocation5 + $0x4d8] sm:$0xff] %v3457_v43  ;;  %v2222_v46 = vpop.f32.mrb[70].mxu0  ;;  %2825 = vmatprep.mubr.bf16.mxu1 %v12178_v52 }
 0x46e   : > { %v3360_v48 = vpack.c.bf16 %v2222_v46, %v2218_v44  ;;  %v2224_v49 = vpop.f32.mrb[71].mxu0 }
 0x46f   : > { %v3361_v50 = vpack.c.bf16 %v2224_v49, %v2220_v45  ;;  %v2105_v51 = vpop.f32.mrb[28].mxu1 }
 0x470   : > { %3587 = vst [vmem:[#allocation5 + $0x1d0] sm:$0xff] %v3360_v48  ;;  %v2107_v53 = vpop.f32.mrb[29].mxu1  ;;  %2713 = vmatmul.mubr.bf16.gmra.mrb[176].mxu0 %v12758_v35 }
 0x471   : > { %3588 = vst [vmem:[#allocation5 + $0x1d8] sm:$0xff] %v3361_v50  ;;  %v2109_v56 = vpop.f32.mrb[30].mxu1  ;;  %2948 = vmatprep.mubr.bf16.mxu0 %v12178_v52 }
 0x472   : > { %v3470_v57 = vpack.c.bf16 %v2109_v56, %v2105_v51  ;;  %v2111_v58 = vpop.f32.mrb[31].mxu1 }
 0x473   : > { %v3471_v59 = vpack.c.bf16 %v2111_v58, %v2107_v53  ;;  %v2228_v61 = vpop.f32.mrb[72].mxu0 }
 0x474   : > { %3697 = vst [vmem:[#allocation5 + $0x540] sm:$0xff] %v3470_v57  ;;  %v2230_v62 = vpop.f32.mrb[73].mxu0  ;;  %2826 = vmatmul.mubr.bf16.gmra.mrb[136].mxu1 %v12711_v8 }
 0x475   : > { %3698 = vst [vmem:[#allocation5 + $0x548] sm:$0xff] %v3471_v59  ;;  %v2232_v63 = vpop.f32.mrb[74].mxu0  ;;  %2835 = vmatprep.mubr.bf16.mxu1 %v12178_v52 }
 0x476   : > { %v3374_v0 = vpack.c.bf16 %v2232_v63, %v2228_v61  ;;  %v2234_v1 = vpop.f32.mrb[75].mxu0 }
 0x477   : > { %v3375_v3 = vpack.c.bf16 %v2234_v1, %v2230_v62  ;;  %v2115_v5 = vpop.f32.mrb[32].mxu1 }
 0x478   : > { %3601 = vst [vmem:[#allocation5 + $0x240] sm:$0xff] %v3374_v0  ;;  %v2117_v6 = vpop.f32.mrb[33].mxu1  ;;  %2949 = vmatmul.mubr.bf16.vlgmr.msra.gmra.mrb[180].mxu0 %v12673_v2 }
 0x479   : > { %3602 = vst [vmem:[#allocation5 + $0x248] sm:$0xff] %v3375_v3  ;;  %v2119_v7 = vpop.f32.mrb[34].mxu1  ;;  %2958 = vmatprep.mubr.bf16.mxu0 %v12178_v52 }
 0x47a   : > { %v3484_v9 = vpack.c.bf16 %v2119_v7, %v2115_v5  ;;  %v2121_v10 = vpop.f32.mrb[35].mxu1 }
 0x47b   : > { %v3485_v12 = vpack.c.bf16 %v2121_v10, %v2117_v6  ;;  %v2238_v13 = vpop.f32.mrb[76].mxu0 }
 0x47c   : > { %3711 = vst [vmem:[#allocation5 + $0x5b0] sm:$0xff] %v3484_v9  ;;  %v2240_v14 = vpop.f32.mrb[77].mxu0  ;;  %2836 = vmatmul.mubr.bf16.gmra.mrb[140].mxu1 %v12717_v21 }
 0x47d   : > { %3712 = vst [vmem:[#allocation5 + $0x5b8] sm:$0xff] %v3485_v12  ;;  %v2242_v15 = vpop.f32.mrb[78].mxu0  ;;  %2845 = vmatprep.mubr.bf16.mxu1 %v12178_v52 }
 0x47e   : > { %v3388_v17 = vpack.c.bf16 %v2242_v15, %v2238_v13  ;;  %v2244_v18 = vpop.f32.mrb[79].mxu0 }
 0x47f   : > { %v3389_v19 = vpack.c.bf16 %v2244_v18, %v2240_v14  ;;  %v2125_v22 = vpop.f32.mrb[36].mxu1 }
 0x480   : > { %3615 = vst [vmem:[#allocation5 + $0x2b0] sm:$0xff] %v3388_v17  ;;  %v2127_v23 = vpop.f32.mrb[37].mxu1  ;;  %2959 = vmatmul.mubr.bf16.gmra.mrb[184].mxu0 %v12679_v11 }
 0x481   : > { %3616 = vst [vmem:[#allocation5 + $0x2b8] sm:$0xff] %v3389_v19  ;;  %v2129_v24 = vpop.f32.mrb[38].mxu1  ;;  %2968 = vmatprep.mubr.bf16.mxu0 %v12178_v52 }
 0x482   : > { %v3498_v25 = vpack.c.bf16 %v2129_v24, %v2125_v22  ;;  %v2131_v26 = vpop.f32.mrb[39].mxu1 }
 0x483   : > { %v3499_v28 = vpack.c.bf16 %v2131_v26, %v2127_v23  ;;  %v2248_v30 = vpop.f32.mrb[80].mxu0 }
 0x484   : > { %3725 = vst [vmem:[#allocation5 + $0x620] sm:$0xff] %v3498_v25  ;;  %v2250_v32 = vpop.f32.mrb[81].mxu0  ;;  %2846 = vmatmul.mubr.bf16.gmra.mrb[144].mxu1 %v12723_v31 }
 0x485   : > { %3726 = vst [vmem:[#allocation5 + $0x628] sm:$0xff] %v3499_v28  ;;  %v2252_v33 = vpop.f32.mrb[82].mxu0  ;;  %2855 = vmatprep.mubr.bf16.mxu1 %v12178_v52 }
 0x486   : > { %v3402_v34 = vpack.c.bf16 %v2252_v33, %v2248_v30  ;;  %v2254_v36 = vpop.f32.mrb[83].mxu0 }
 0x487   : > { %v3403_v37 = vpack.c.bf16 %v2254_v36, %v2250_v32  ;;  %v2135_v55 = vpop.f32.mrb[40].mxu1 }
 0x488   : > { %3629 = vst [vmem:[#allocation5 + $0x320] sm:$0xff] %v3402_v34  ;;  %v2137_v39 = vpop.f32.mrb[41].mxu1  ;;  %2969 = vmatmul.mubr.bf16.gmra.mrb[188].mxu0 %v12683_v20 }
 0x489   : > { %3630 = vst [vmem:[#allocation5 + $0x328] sm:$0xff] %v3403_v37  ;;  %v2139_v40 = vpop.f32.mrb[42].mxu1  ;;  %2978 = vmatprep.mubr.bf16.mxu0 %v12178_v52 }
 0x48a   : > { %v3512_v42 = vpack.c.bf16 %v2139_v40, %v2135_v55  ;;  %v2141_v43 = vpop.f32.mrb[43].mxu1 }
 0x48b   : > { %v3513_v44 = vpack.c.bf16 %v2141_v43, %v2137_v39  ;;  %v2258_v45 = vpop.f32.mrb[84].mxu0 }
 0x48c   : > { %3739 = vst [vmem:[#allocation5 + $0x690] sm:$0xff] %v3512_v42  ;;  %v2260_v46 = vpop.f32.mrb[85].mxu0  ;;  %2856 = vmatmul.mubr.bf16.gmra.mrb[148].mxu1 %v12729_v41 }
 0x48d   : > { %3740 = vst [vmem:[#allocation5 + $0x698] sm:$0xff] %v3513_v44  ;;  %v2262_v48 = vpop.f32.mrb[86].mxu0  ;;  %2865 = vmatprep.mubr.bf16.mxu1 %v12178_v52 }
 0x48e   : > { %v3416_v49 = vpack.c.bf16 %v2262_v48, %v2258_v45  ;;  %v2264_v50 = vpop.f32.mrb[87].mxu0 }
 0x48f   : > { %v3417_v51 = vpack.c.bf16 %v2264_v50, %v2260_v46  ;;  %v2371_v53 = vpop.f32.mrb[44].mxu1 }
 0x490   : > { %3643 = vst [vmem:[#allocation5 + $0x390] sm:$0xff] %v3416_v49  ;;  %v2373_v56 = vpop.f32.mrb[45].mxu1  ;;  %2979 = vmatmul.mubr.bf16.gmra.mrb[192].mxu0 %v12689_v29 }
 0x491   : > { %3644 = vst [vmem:[#allocation5 + $0x398] sm:$0xff] %v3417_v51  ;;  %v2375_v57 = vpop.f32.mrb[46].mxu1  ;;  %2988 = vmatprep.mubr.bf16.mxu0 %v12178_v52 }
 0x492   : > { %v3306_v58 = vpack.c.bf16 %v2375_v57, %v2371_v53  ;;  %v2377_v59 = vpop.f32.mrb[47].mxu1 }
 0x493   : > { %v3307_v61 = vpack.c.bf16 %v2377_v59, %v2373_v56  ;;  %v2268_v62 = vpop.f32.mrb[88].mxu0 }
 0x494   : > { %3533 = vst [vmem:[#allocation5 + $0x20] sm:$0xff] %v3306_v58  ;;  %v2270_v63 = vpop.f32.mrb[89].mxu0  ;;  %2866 = vmatmul.mubr.bf16.gmra.mrb[152].mxu1 %v12735_v54 }
 0x495   : > { %3534 = vst [vmem:[#allocation5 + $0x28] sm:$0xff] %v3307_v61  ;;  %v2272_v0 = vpop.f32.mrb[90].mxu0  ;;  %2875 = vmatprep.mubr.bf16.mxu1 %v12178_v52 }
 0x496   : > { %v3430_v1 = vpack.c.bf16 %v2272_v0, %v2268_v62  ;;  %v2274_v3 = vpop.f32.mrb[91].mxu0 }
 0x497   : > { %v3431_v5 = vpack.c.bf16 %v2274_v3, %v2270_v63  ;;  %v2381_v6 = vpop.f32.mrb[48].mxu1 }
 0x498   : > { %3657 = vst [vmem:[#allocation5 + $0x400] sm:$0xff] %v3430_v1  ;;  %v2383_v7 = vpop.f32.mrb[49].mxu1  ;;  %2989 = vmatmul.mubr.bf16.gmra.mrb[196].mxu0 %v12693_v38 }
 0x499   : > { %3658 = vst [vmem:[#allocation5 + $0x408] sm:$0xff] %v3431_v5  ;;  %v2385_v9 = vpop.f32.mrb[50].mxu1  ;;  %2998 = vmatprep.mubr.bf16.mxu0 %v12178_v52 }
 0x49a   : > { %v3320_v10 = vpack.c.bf16 %v2385_v9, %v2381_v6  ;;  %v2387_v12 = vpop.f32.mrb[51].mxu1 }
 0x49b   : > { %v3321_v13 = vpack.c.bf16 %v2387_v12, %v2383_v7  ;;  %v2278_v14 = vpop.f32.mrb[92].mxu0 }
 0x49c   : > { %3547 = vst [vmem:[#allocation5 + $0x90] sm:$0xff] %v3320_v10  ;;  %v2280_v15 = vpop.f32.mrb[93].mxu0  ;;  %2876 = vmatmul.mubr.bf16.gmra.mrb[156].mxu1 %v12741_v4 }
 0x49d   : > { %3548 = vst [vmem:[#allocation5 + $0x98] sm:$0xff] %v3321_v13  ;;  %v2282_v17 = vpop.f32.mrb[94].mxu0  ;;  %2885 = vmatprep.mubr.bf16.mxu1 %v12178_v52 }
 0x49e   : > { %v3444_v18 = vpack.c.bf16 %v2282_v17, %v2278_v14  ;;  %v2284_v19 = vpop.f32.mrb[95].mxu0 }
 0x49f   : > { %v3445_v22 = vpack.c.bf16 %v2284_v19, %v2280_v15  ;;  %v2391_v23 = vpop.f32.mrb[52].mxu1 }
 0x4a0   : > { %3671 = vst [vmem:[#allocation5 + $0x470] sm:$0xff] %v3444_v18  ;;  %v2393_v24 = vpop.f32.mrb[53].mxu1  ;;  %2999 = vmatmul.mubr.bf16.gmra.mrb[200].mxu0 %v12699_v47 }
 0x4a1   : > { %3672 = vst [vmem:[#allocation5 + $0x478] sm:$0xff] %v3445_v22  ;;  %v2395_v25 = vpop.f32.mrb[54].mxu1  ;;  %3008 = vmatprep.mubr.bf16.mxu0 %v12178_v52 }
 0x4a2   : > { %v3334_v26 = vpack.c.bf16 %v2395_v25, %v2391_v23  ;;  %v2397_v28 = vpop.f32.mrb[55].mxu1 }
 0x4a3   : > { %v3335_v30 = vpack.c.bf16 %v2397_v28, %v2393_v24  ;;  %v2288_v32 = vpop.f32.mrb[96].mxu0 }
 0x4a4   : > { %3561 = vst [vmem:[#allocation5 + $0x100] sm:$0xff] %v3334_v26  ;;  %v2290_v33 = vpop.f32.mrb[97].mxu0  ;;  %2886 = vmatmul.mubr.bf16.gmra.mrb[160].mxu1 %v12747_v16 }
 0x4a5   : > { %3562 = vst [vmem:[#allocation5 + $0x108] sm:$0xff] %v3335_v30  ;;  %v2292_v34 = vpop.f32.mrb[98].mxu0  ;;  %2895 = vmatprep.mubr.bf16.mxu1 %v12178_v52 }
 0x4a6   : > { %v3458_v36 = vpack.c.bf16 %v2292_v34, %v2288_v32  ;;  %v2294_v37 = vpop.f32.mrb[99].mxu0 }
 0x4a7   : > { %v3459_v55 = vpack.c.bf16 %v2294_v37, %v2290_v33  ;;  %v2401_v39 = vpop.f32.mrb[56].mxu1 }
 0x4a8   : > { %3685 = vst [vmem:[#allocation5 + $0x4e0] sm:$0xff] %v3458_v36  ;;  %v2403_v40 = vpop.f32.mrb[57].mxu1  ;;  %3009 = vmatmul.mubr.bf16.gmra.mrb[204].mxu0 %v12705_v60 }
 0x4a9   : > { %3686 = vst [vmem:[#allocation5 + $0x4e8] sm:$0xff] %v3459_v55  ;;  %v2405_v42 = vpop.f32.mrb[58].mxu1  ;;  %3018 = vmatprep.mubr.bf16.mxu0 %v12178_v52 }
 0x4aa   : > { %v3348_v43 = vpack.c.bf16 %v2405_v42, %v2401_v39  ;;  %v2407_v44 = vpop.f32.mrb[59].mxu1 }
 0x4ab   : > { %v3349_v45 = vpack.c.bf16 %v2407_v44, %v2403_v40  ;;  %v2298_v46 = vpop.f32.mrb[100].mxu0 }
 0x4ac   : > { %3575 = vst [vmem:[#allocation5 + $0x170] sm:$0xff] %v3348_v43  ;;  %v2300_v48 = vpop.f32.mrb[101].mxu0  ;;  %2896 = vmatmul.mubr.bf16.gmra.mrb[164].mxu1 %v12753_v27 }
 0x4ad   : > { %3576 = vst [vmem:[#allocation5 + $0x178] sm:$0xff] %v3349_v45  ;;  %v2302_v49 = vpop.f32.mrb[102].mxu0  ;;  %2905 = vmatprep.mubr.bf16.mxu1 %v12178_v52 }
 0x4ae   : > { %v3472_v50 = vpack.c.bf16 %v2302_v49, %v2298_v46  ;;  %v2304_v51 = vpop.f32.mrb[103].mxu0 }
 0x4af   : > { %v3473_v53 = vpack.c.bf16 %v2304_v51, %v2300_v48  ;;  %v2411_v56 = vpop.f32.mrb[60].mxu1 }
 0x4b0   : > { %3699 = vst [vmem:[#allocation5 + $0x550] sm:$0xff] %v3472_v50  ;;  %v2413_v57 = vpop.f32.mrb[61].mxu1  ;;  %3019 = vmatmul.mubr.bf16.gmra.mrb[208].mxu0 %v12711_v8 }
 0x4b1   : > { %3700 = vst [vmem:[#allocation5 + $0x558] sm:$0xff] %v3473_v53  ;;  %v2415_v58 = vpop.f32.mrb[62].mxu1  ;;  %3028 = vmatprep.mubr.bf16.mxu0 %v12178_v52 }
 0x4b2   : > { %v3362_v59 = vpack.c.bf16 %v2415_v58, %v2411_v56  ;;  %v2417_v61 = vpop.f32.mrb[63].mxu1 }
 0x4b3   : > { %v3363_v62 = vpack.c.bf16 %v2417_v61, %v2413_v57  ;;  %v2308_v63 = vpop.f32.mrb[104].mxu0 }
 0x4b4   : > { %3589 = vst [vmem:[#allocation5 + $0x1e0] sm:$0xff] %v3362_v59  ;;  %v2310_v0 = vpop.f32.mrb[105].mxu0  ;;  %2906 = vmatmul.mubr.bf16.gmra.mrb[168].mxu1 %v12758_v35 }
 0x4b5   : > { %3590 = vst [vmem:[#allocation5 + $0x1e8] sm:$0xff] %v3363_v62  ;;  %v2312_v1 = vpop.f32.mrb[106].mxu0  ;;  %3141 = vmatprep.mubr.bf16.mxu1 %v12178_v52 }
 0x4b6   : > { %v3486_v3 = vpack.c.bf16 %v2312_v1, %v2308_v63  ;;  %v2314_v5 = vpop.f32.mrb[107].mxu0 }
 0x4b7   : > { %v3487_v6 = vpack.c.bf16 %v2314_v5, %v2310_v0  ;;  %v2421_v7 = vpop.f32.mrb[64].mxu1 }
 0x4b8   : > { %3713 = vst [vmem:[#allocation5 + $0x5c0] sm:$0xff] %v3486_v3  ;;  %v2423_v9 = vpop.f32.mrb[65].mxu1  ;;  %3029 = vmatmul.mubr.bf16.gmra.mrb[212].mxu0 %v12717_v21 }
 0x4b9   : > { %3714 = vst [vmem:[#allocation5 + $0x5c8] sm:$0xff] %v3487_v6  ;;  %v2425_v10 = vpop.f32.mrb[66].mxu1  ;;  %3038 = vmatprep.mubr.bf16.mxu0 %v12178_v52 }
 0x4ba   : > { %v3376_v12 = vpack.c.bf16 %v2425_v10, %v2421_v7  ;;  %v2427_v13 = vpop.f32.mrb[67].mxu1 }
 0x4bb   : > { %v3377_v14 = vpack.c.bf16 %v2427_v13, %v2423_v9  ;;  %v2318_v15 = vpop.f32.mrb[108].mxu0 }
 0x4bc   : > { %3603 = vst [vmem:[#allocation5 + $0x250] sm:$0xff] %v3376_v12  ;;  %v2320_v17 = vpop.f32.mrb[109].mxu0  ;;  %3142 = vmatmul.mubr.bf16.vlgmr.msra.gmra.mrb[172].mxu1 %v12673_v2 }
 0x4bd   : > { %3604 = vst [vmem:[#allocation5 + $0x258] sm:$0xff] %v3377_v14  ;;  %v2322_v18 = vpop.f32.mrb[110].mxu0  ;;  %3151 = vmatprep.mubr.bf16.mxu1 %v12178_v52 }
 0x4be   : > { %v3500_v19 = vpack.c.bf16 %v2322_v18, %v2318_v15  ;;  %v2324_v22 = vpop.f32.mrb[111].mxu0 }
 0x4bf   : > { %v3501_v23 = vpack.c.bf16 %v2324_v22, %v2320_v17  ;;  %v2431_v24 = vpop.f32.mrb[68].mxu1 }
 0x4c0   : > { %3727 = vst [vmem:[#allocation5 + $0x630] sm:$0xff] %v3500_v19  ;;  %v2433_v25 = vpop.f32.mrb[69].mxu1  ;;  %3039 = vmatmul.mubr.bf16.gmra.mrb[216].mxu0 %v12723_v31 }
 0x4c1   : > { %3728 = vst [vmem:[#allocation5 + $0x638] sm:$0xff] %v3501_v23  ;;  %v2435_v26 = vpop.f32.mrb[70].mxu1  ;;  %3048 = vmatprep.mubr.bf16.mxu0 %v12178_v52 }
 0x4c2   : > { %v3390_v28 = vpack.c.bf16 %v2435_v26, %v2431_v24  ;;  %v2437_v30 = vpop.f32.mrb[71].mxu1 }
 0x4c3   : > { %v3391_v32 = vpack.c.bf16 %v2437_v30, %v2433_v25  ;;  %v2328_v2 = vpop.f32.mrb[112].mxu0 }
 0x4c4   : > { %3617 = vst [vmem:[#allocation5 + $0x2c0] sm:$0xff] %v3390_v28  ;;  %v2330_v33 = vpop.f32.mrb[113].mxu0  ;;  %3152 = vmatmul.mubr.bf16.gmra.mrb[176].mxu1 %v12679_v11 }
 0x4c5   : > { %3618 = vst [vmem:[#allocation5 + $0x2c8] sm:$0xff] %v3391_v32  ;;  %v2332_v34 = vpop.f32.mrb[114].mxu0  ;;  %3161 = vmatprep.mubr.bf16.mxu1 %v12178_v52 }
 0x4c6   : > { %v3514_v36 = vpack.c.bf16 %v2332_v34, %v2328_v2  ;;  %v2334_v37 = vpop.f32.mrb[115].mxu0 }
 0x4c7   : > { %v3515_v55 = vpack.c.bf16 %v2334_v37, %v2330_v33  ;;  %v2441_v39 = vpop.f32.mrb[72].mxu1 }
 0x4c8   : > { %3741 = vst [vmem:[#allocation5 + $0x6a0] sm:$0xff] %v3514_v36  ;;  %v2443_v40 = vpop.f32.mrb[73].mxu1  ;;  %3049 = vmatmul.mubr.bf16.gmra.mrb[220].mxu0 %v12729_v41 }
 0x4c9   : > { %3742 = vst [vmem:[#allocation5 + $0x6a8] sm:$0xff] %v3515_v55  ;;  %v2445_v42 = vpop.f32.mrb[74].mxu1  ;;  %3058 = vmatprep.mubr.bf16.mxu0 %v12178_v52 }
 0x4ca   : > { %v3404_v43 = vpack.c.bf16 %v2445_v42, %v2441_v39  ;;  %v2447_v44 = vpop.f32.mrb[75].mxu1 }
 0x4cb   : > { %v3405_v45 = vpack.c.bf16 %v2447_v44, %v2443_v40  ;;  %v2564_v11 = vpop.f32.mrb[116].mxu0 }
 0x4cc   : > { %3631 = vst [vmem:[#allocation5 + $0x330] sm:$0xff] %v3404_v43  ;;  %v2566_v46 = vpop.f32.mrb[117].mxu0  ;;  %3162 = vmatmul.mubr.bf16.gmra.mrb[180].mxu1 %v12683_v20 }
 0x4cd   : > { %3632 = vst [vmem:[#allocation5 + $0x338] sm:$0xff] %v3405_v45  ;;  %v2568_v48 = vpop.f32.mrb[118].mxu0  ;;  %3171 = vmatprep.mubr.bf16.mxu1 %v12178_v52 }
 0x4ce   : > { %v3308_v49 = vpack.c.bf16 %v2568_v48, %v2564_v11  ;;  %v2570_v50 = vpop.f32.mrb[119].mxu0 }
 0x4cf   : > { %v3309_v51 = vpack.c.bf16 %v2570_v50, %v2566_v46  ;;  %v2451_v53 = vpop.f32.mrb[76].mxu1 }
 0x4d0   : > { %3535 = vst [vmem:[#allocation5 + $0x30] sm:$0xff] %v3308_v49  ;;  %v2453_v56 = vpop.f32.mrb[77].mxu1  ;;  %3059 = vmatmul.mubr.bf16.gmra.mrb[224].mxu0 %v12735_v54 }
 0x4d1   : > { %3536 = vst [vmem:[#allocation5 + $0x38] sm:$0xff] %v3309_v51  ;;  %v2455_v57 = vpop.f32.mrb[78].mxu1  ;;  %3068 = vmatprep.mubr.bf16.mxu0 %v12178_v52 }
 0x4d2   : > { %v3418_v58 = vpack.c.bf16 %v2455_v57, %v2451_v53  ;;  %v2457_v59 = vpop.f32.mrb[79].mxu1 }
 0x4d3   : > { %v3419_v61 = vpack.c.bf16 %v2457_v59, %v2453_v56  ;;  %v2574_v20 = vpop.f32.mrb[120].mxu0 }
 0x4d4   : > { %3645 = vst [vmem:[#allocation5 + $0x3a0] sm:$0xff] %v3418_v58  ;;  %v2576_v62 = vpop.f32.mrb[121].mxu0  ;;  %3172 = vmatmul.mubr.bf16.gmra.mrb[184].mxu1 %v12689_v29 }
 0x4d5   : > { %3646 = vst [vmem:[#allocation5 + $0x3a8] sm:$0xff] %v3419_v61  ;;  %v2578_v63 = vpop.f32.mrb[122].mxu0  ;;  %3181 = vmatprep.mubr.bf16.mxu1 %v12178_v52 }
 0x4d6   : > { %v3322_v0 = vpack.c.bf16 %v2578_v63, %v2574_v20  ;;  %v2580_v1 = vpop.f32.mrb[123].mxu0 }
 0x4d7   : > { %v3323_v3 = vpack.c.bf16 %v2580_v1, %v2576_v62  ;;  %v2461_v5 = vpop.f32.mrb[80].mxu1 }
 0x4d8   : > { %3549 = vst [vmem:[#allocation5 + $0xa0] sm:$0xff] %v3322_v0  ;;  %v2463_v6 = vpop.f32.mrb[81].mxu1  ;;  %3069 = vmatmul.mubr.bf16.gmra.mrb[228].mxu0 %v12741_v4 }
 0x4d9   : > { %3550 = vst [vmem:[#allocation5 + $0xa8] sm:$0xff] %v3323_v3  ;;  %v2465_v7 = vpop.f32.mrb[82].mxu1  ;;  %3078 = vmatprep.mubr.bf16.mxu0 %v12178_v52 }
 0x4da   : > { %v3432_v9 = vpack.c.bf16 %v2465_v7, %v2461_v5  ;;  %v2467_v10 = vpop.f32.mrb[83].mxu1 }
 0x4db   : > { %v3433_v12 = vpack.c.bf16 %v2467_v10, %v2463_v6  ;;  %v2584_v29 = vpop.f32.mrb[124].mxu0 }
 0x4dc   : > { %3659 = vst [vmem:[#allocation5 + $0x410] sm:$0xff] %v3432_v9  ;;  %v2586_v13 = vpop.f32.mrb[125].mxu0  ;;  %3182 = vmatmul.mubr.bf16.gmra.mrb[188].mxu1 %v12693_v38 }
 0x4dd   : > { %3660 = vst [vmem:[#allocation5 + $0x418] sm:$0xff] %v3433_v12  ;;  %v2588_v14 = vpop.f32.mrb[126].mxu0  ;;  %3191 = vmatprep.mubr.bf16.mxu1 %v12178_v52 }
 0x4de   : > { %v3336_v15 = vpack.c.bf16 %v2588_v14, %v2584_v29  ;;  %v2590_v17 = vpop.f32.mrb[127].mxu0 }
 0x4df   : > { %v3337_v18 = vpack.c.bf16 %v2590_v17, %v2586_v13  ;;  %v2471_v19 = vpop.f32.mrb[84].mxu1 }
 0x4e0   : > { %3563 = vst [vmem:[#allocation5 + $0x110] sm:$0xff] %v3336_v15  ;;  %v2473_v22 = vpop.f32.mrb[85].mxu1  ;;  %3079 = vmatmul.mubr.bf16.gmra.mrb[232].mxu0 %v12747_v16 }
 0x4e1   : > { %3564 = vst [vmem:[#allocation5 + $0x118] sm:$0xff] %v3337_v18  ;;  %v2475_v23 = vpop.f32.mrb[86].mxu1  ;;  %3088 = vmatprep.mubr.bf16.mxu0 %v12178_v52 }
 0x4e2   : > { %v3446_v24 = vpack.c.bf16 %v2475_v23, %v2471_v19  ;;  %v2477_v25 = vpop.f32.mrb[87].mxu1 }
 0x4e3   : > { %v3447_v26 = vpack.c.bf16 %v2477_v25, %v2473_v22  ;;  %v2594_v38 = vpop.f32.mrb[128].mxu0 }
 0x4e4   : > { %3673 = vst [vmem:[#allocation5 + $0x480] sm:$0xff] %v3446_v24  ;;  %v2596_v28 = vpop.f32.mrb[129].mxu0  ;;  %3192 = vmatmul.mubr.bf16.gmra.mrb[192].mxu1 %v12699_v47 }
 0x4e5   : > { %3674 = vst [vmem:[#allocation5 + $0x488] sm:$0xff] %v3447_v26  ;;  %v2598_v30 = vpop.f32.mrb[130].mxu0  ;;  %3201 = vmatprep.mubr.bf16.mxu1 %v12178_v52 }
 0x4e6   : > { %v3350_v32 = vpack.c.bf16 %v2598_v30, %v2594_v38  ;;  %v2600_v2 = vpop.f32.mrb[131].mxu0 }
 0x4e7   : > { %v3351_v33 = vpack.c.bf16 %v2600_v2, %v2596_v28  ;;  %v2481_v34 = vpop.f32.mrb[88].mxu1 }
 0x4e8   : > { %3577 = vst [vmem:[#allocation5 + $0x180] sm:$0xff] %v3350_v32  ;;  %v2483_v36 = vpop.f32.mrb[89].mxu1  ;;  %3089 = vmatmul.mubr.bf16.gmra.mrb[236].mxu0 %v12753_v27 }
 0x4e9   : > { %3578 = vst [vmem:[#allocation5 + $0x188] sm:$0xff] %v3351_v33  ;;  %v2485_v37 = vpop.f32.mrb[90].mxu1  ;;  %3098 = vmatprep.mubr.bf16.mxu0 %v12178_v52 }
 0x4ea   : > { %v3460_v55 = vpack.c.bf16 %v2485_v37, %v2481_v34  ;;  %v2487_v39 = vpop.f32.mrb[91].mxu1 }
 0x4eb   : > { %v3461_v40 = vpack.c.bf16 %v2487_v39, %v2483_v36  ;;  %v2604_v47 = vpop.f32.mrb[132].mxu0 }
 0x4ec   : > { %3687 = vst [vmem:[#allocation5 + $0x4f0] sm:$0xff] %v3460_v55  ;;  %v2606_v42 = vpop.f32.mrb[133].mxu0  ;;  %3202 = vmatmul.mubr.bf16.gmra.mrb[196].mxu1 %v12705_v60 }
 0x4ed   : > { %3688 = vst [vmem:[#allocation5 + $0x4f8] sm:$0xff] %v3461_v40  ;;  %v2608_v43 = vpop.f32.mrb[134].mxu0  ;;  %3211 = vmatprep.mubr.bf16.mxu1 %v12178_v52 }
 0x4ee   : > { %v3364_v44 = vpack.c.bf16 %v2608_v43, %v2604_v47  ;;  %v2610_v45 = vpop.f32.mrb[135].mxu0 }
 0x4ef   : > { %v3365_v11 = vpack.c.bf16 %v2610_v45, %v2606_v42  ;;  %v2491_v46 = vpop.f32.mrb[92].mxu1 }
 0x4f0   : > { %3591 = vst [vmem:[#allocation5 + $0x1f0] sm:$0xff] %v3364_v44  ;;  %v2493_v48 = vpop.f32.mrb[93].mxu1  ;;  %3099 = vmatmul.mubr.bf16.gmra.mrb[240].mxu0 %v12758_v35 }
 0x4f1   : > { %3592 = vst [vmem:[#allocation5 + $0x1f8] sm:$0xff] %v3365_v11  ;;  %v2495_v49 = vpop.f32.mrb[94].mxu1 }
 0x4f2   : > { %v3474_v50 = vpack.c.bf16 %v2495_v49, %v2491_v46  ;;  %v2497_v51 = vpop.f32.mrb[95].mxu1 }
 0x4f3   : > { %v3475_v53 = vpack.c.bf16 %v2497_v51, %v2493_v48  ;;  %v2614_v56 = vpop.f32.mrb[136].mxu0 }
 0x4f4   : > { %3701 = vst [vmem:[#allocation5 + $0x560] sm:$0xff] %v3474_v50  ;;  %v2616_v60 = vpop.f32.mrb[137].mxu0  ;;  %3212 = vmatmul.mubr.bf16.gmra.mrb[200].mxu1 %v12711_v8 }
 0x4f5   : > { %3702 = vst [vmem:[#allocation5 + $0x568] sm:$0xff] %v3475_v53  ;;  %v2618_v57 = vpop.f32.mrb[138].mxu0  ;;  %3221 = vmatprep.mubr.bf16.mxu1 %v12178_v52 }
 0x4f6   : > { %v3378_v58 = vpack.c.bf16 %v2618_v57, %v2614_v56  ;;  %v2620_v59 = vpop.f32.mrb[139].mxu0 }
 0x4f7   : > { %v3379_v61 = vpack.c.bf16 %v2620_v59, %v2616_v60  ;;  %v2501_v20 = vpop.f32.mrb[96].mxu1 }
 0x4f8   : > { %3605 = vst [vmem:[#allocation5 + $0x260] sm:$0xff] %v3378_v58  ;;  %v2503_v62 = vpop.f32.mrb[97].mxu1 }
 0x4f9   : > { %3606 = vst [vmem:[#allocation5 + $0x268] sm:$0xff] %v3379_v61  ;;  %v2505_v63 = vpop.f32.mrb[98].mxu1 }
 0x4fa   : > { %v3488_v0 = vpack.c.bf16 %v2505_v63, %v2501_v20  ;;  %v2507_v1 = vpop.f32.mrb[99].mxu1 }
 0x4fb   : > { %v3489_v3 = vpack.c.bf16 %v2507_v1, %v2503_v62  ;;  %v2624_v5 = vpop.f32.mrb[140].mxu0 }
 0x4fc   : > { %3715 = vst [vmem:[#allocation5 + $0x5d0] sm:$0xff] %v3488_v0  ;;  %v2626_v6 = vpop.f32.mrb[141].mxu0  ;;  %3222 = vmatmul.mubr.bf16.gmra.mrb[204].mxu1 %v12717_v21 }
 0x4fd   : > { %3716 = vst [vmem:[#allocation5 + $0x5d8] sm:$0xff] %v3489_v3  ;;  %v2628_v8 = vpop.f32.mrb[142].mxu0  ;;  %3231 = vmatprep.mubr.bf16.mxu1 %v12178_v52 }
 0x4fe   : > { %v3392_v7 = vpack.c.bf16 %v2628_v8, %v2624_v5  ;;  %v2630_v9 = vpop.f32.mrb[143].mxu0 }
 0x4ff   : > { %v3393_v10 = vpack.c.bf16 %v2630_v9, %v2626_v6  ;;  %v2511_v12 = vpop.f32.mrb[100].mxu1 }
 0x500   : > { %3619 = vst [vmem:[#allocation5 + $0x2d0] sm:$0xff] %v3392_v7  ;;  %v2513_v29 = vpop.f32.mrb[101].mxu1 }
 0x501   : > { %3620 = vst [vmem:[#allocation5 + $0x2d8] sm:$0xff] %v3393_v10  ;;  %v2515_v13 = vpop.f32.mrb[102].mxu1 }
 0x502   : > { %v3502_v14 = vpack.c.bf16 %v2515_v13, %v2511_v12  ;;  %v2517_v15 = vpop.f32.mrb[103].mxu1 }
 0x503   : > { %v3503_v17 = vpack.c.bf16 %v2517_v15, %v2513_v29  ;;  %v2634_v18 = vpop.f32.mrb[144].mxu0 }
 0x504   : > { %3729 = vst [vmem:[#allocation5 + $0x640] sm:$0xff] %v3502_v14  ;;  %v2636_v19 = vpop.f32.mrb[145].mxu0  ;;  %3232 = vmatmul.mubr.bf16.gmra.mrb[208].mxu1 %v12723_v31 }
 0x505   : > { %3730 = vst [vmem:[#allocation5 + $0x648] sm:$0xff] %v3503_v17  ;;  %v2638_v21 = vpop.f32.mrb[146].mxu0  ;;  %3241 = vmatprep.mubr.bf16.mxu1 %v12178_v52 }
 0x506   : > { %v3406_v22 = vpack.c.bf16 %v2638_v21, %v2634_v18  ;;  %v2640_v23 = vpop.f32.mrb[147].mxu0 }
 0x507   : > { %v3407_v24 = vpack.c.bf16 %v2640_v23, %v2636_v19  ;;  %v2521_v25 = vpop.f32.mrb[104].mxu1 }
 0x508   : > { %3633 = vst [vmem:[#allocation5 + $0x340] sm:$0xff] %v3406_v22  ;;  %v2523_v26 = vpop.f32.mrb[105].mxu1 }
 0x509   : > { %3634 = vst [vmem:[#allocation5 + $0x348] sm:$0xff] %v3407_v24  ;;  %v2525_v38 = vpop.f32.mrb[106].mxu1 }
 0x50a   : > { %v3516_v28 = vpack.c.bf16 %v2525_v38, %v2521_v25  ;;  %v2527_v30 = vpop.f32.mrb[107].mxu1 }
 0x50b   : > { %v3517_v32 = vpack.c.bf16 %v2527_v30, %v2523_v26  ;;  %v2644_v2 = vpop.f32.mrb[148].mxu0 }
 0x50c   : > { %3743 = vst [vmem:[#allocation5 + $0x6b0] sm:$0xff] %v3516_v28  ;;  %v2646_v33 = vpop.f32.mrb[149].mxu0  ;;  %3242 = vmatmul.mubr.bf16.gmra.mrb[212].mxu1 %v12729_v41 }
 0x50d   : > { %3744 = vst [vmem:[#allocation5 + $0x6b8] sm:$0xff] %v3517_v32  ;;  %v2648_v31 = vpop.f32.mrb[150].mxu0  ;;  %3251 = vmatprep.mubr.bf16.mxu1 %v12178_v52 }
 0x50e   : > { %v3420_v34 = vpack.c.bf16 %v2648_v31, %v2644_v2  ;;  %v2650_v36 = vpop.f32.mrb[151].mxu0 }
 0x50f   : > { %v3421_v37 = vpack.c.bf16 %v2650_v36, %v2646_v33  ;;  %v2757_v55 = vpop.f32.mrb[108].mxu1 }
 0x510   : > { %3647 = vst [vmem:[#allocation5 + $0x3b0] sm:$0xff] %v3420_v34  ;;  %v2759_v39 = vpop.f32.mrb[109].mxu1 }
 0x511   : > { %3648 = vst [vmem:[#allocation5 + $0x3b8] sm:$0xff] %v3421_v37  ;;  %v2761_v40 = vpop.f32.mrb[110].mxu1 }
 0x512   : > { %v3310_v47 = vpack.c.bf16 %v2761_v40, %v2757_v55  ;;  %v2763_v42 = vpop.f32.mrb[111].mxu1 }
 0x513   : > { %v3311_v43 = vpack.c.bf16 %v2763_v42, %v2759_v39  ;;  %v2654_v44 = vpop.f32.mrb[152].mxu0 }
 0x514   : > { %3537 = vst [vmem:[#allocation5 + $0x40] sm:$0xff] %v3310_v47  ;;  %v2656_v45 = vpop.f32.mrb[153].mxu0  ;;  %3252 = vmatmul.mubr.bf16.gmra.mrb[216].mxu1 %v12735_v54 }
 0x515   : > { %3538 = vst [vmem:[#allocation5 + $0x48] sm:$0xff] %v3311_v43  ;;  %v2658_v41 = vpop.f32.mrb[154].mxu0  ;;  %3261 = vmatprep.mubr.bf16.mxu1 %v12178_v52 }
 0x516   : > { %v3434_v11 = vpack.c.bf16 %v2658_v41, %v2654_v44  ;;  %v2660_v46 = vpop.f32.mrb[155].mxu0 }
 0x517   : > { %v3435_v48 = vpack.c.bf16 %v2660_v46, %v2656_v45  ;;  %v2767_v49 = vpop.f32.mrb[112].mxu1 }
 0x518   : > { %3661 = vst [vmem:[#allocation5 + $0x420] sm:$0xff] %v3434_v11  ;;  %v2769_v50 = vpop.f32.mrb[113].mxu1 }
 0x519   : > { %3662 = vst [vmem:[#allocation5 + $0x428] sm:$0xff] %v3435_v48  ;;  %v2771_v51 = vpop.f32.mrb[114].mxu1 }
 0x51a   : > { %v3324_v53 = vpack.c.bf16 %v2771_v51, %v2767_v49  ;;  %v2773_v56 = vpop.f32.mrb[115].mxu1 }
 0x51b   : > { %v3325_v60 = vpack.c.bf16 %v2773_v56, %v2769_v50  ;;  %v2664_v57 = vpop.f32.mrb[156].mxu0 }
 0x51c   : > { %3551 = vst [vmem:[#allocation5 + $0xb0] sm:$0xff] %v3324_v53  ;;  %v2666_v58 = vpop.f32.mrb[157].mxu0  ;;  %3262 = vmatmul.mubr.bf16.gmra.mrb[220].mxu1 %v12741_v4 }
 0x51d   : > { %3552 = vst [vmem:[#allocation5 + $0xb8] sm:$0xff] %v3325_v60  ;;  %v2668_v54 = vpop.f32.mrb[158].mxu0  ;;  %3271 = vmatprep.mubr.bf16.mxu1 %v12178_v52 }
 0x51e   : > { %v3448_v59 = vpack.c.bf16 %v2668_v54, %v2664_v57  ;;  %v2670_v61 = vpop.f32.mrb[159].mxu0 }
 0x51f   : > { %v3449_v20 = vpack.c.bf16 %v2670_v61, %v2666_v58  ;;  %v2777_v62 = vpop.f32.mrb[116].mxu1 }
 0x520   : > { %3675 = vst [vmem:[#allocation5 + $0x490] sm:$0xff] %v3448_v59  ;;  %v2779_v63 = vpop.f32.mrb[117].mxu1 }
 0x521   : > { %3676 = vst [vmem:[#allocation5 + $0x498] sm:$0xff] %v3449_v20  ;;  %v2781_v0 = vpop.f32.mrb[118].mxu1 }
 0x522   : > { %v3338_v1 = vpack.c.bf16 %v2781_v0, %v2777_v62  ;;  %v2783_v3 = vpop.f32.mrb[119].mxu1 }
 0x523   : > { %v3339_v5 = vpack.c.bf16 %v2783_v3, %v2779_v63  ;;  %v2674_v6 = vpop.f32.mrb[160].mxu0 }
 0x524   : > { %3565 = vst [vmem:[#allocation5 + $0x120] sm:$0xff] %v3338_v1  ;;  %v2676_v8 = vpop.f32.mrb[161].mxu0  ;;  %3272 = vmatmul.mubr.bf16.gmra.mrb[224].mxu1 %v12747_v16 }
 0x525   : > { %3566 = vst [vmem:[#allocation5 + $0x128] sm:$0xff] %v3339_v5  ;;  %v2678_v4 = vpop.f32.mrb[162].mxu0  ;;  %3281 = vmatprep.mubr.bf16.mxu1 %v12178_v52 }
 0x526   : > { %v3462_v7 = vpack.c.bf16 %v2678_v4, %v2674_v6  ;;  %v2680_v9 = vpop.f32.mrb[163].mxu0 }
 0x527   : > { %v3463_v10 = vpack.c.bf16 %v2680_v9, %v2676_v8  ;;  %v2787_v12 = vpop.f32.mrb[120].mxu1 }
 0x528   : > { %3689 = vst [vmem:[#allocation5 + $0x500] sm:$0xff] %v3462_v7  ;;  %v2789_v29 = vpop.f32.mrb[121].mxu1 }
 0x529   : > { %3690 = vst [vmem:[#allocation5 + $0x508] sm:$0xff] %v3463_v10  ;;  %v2791_v13 = vpop.f32.mrb[122].mxu1 }
 0x52a   : > { %v3352_v14 = vpack.c.bf16 %v2791_v13, %v2787_v12  ;;  %v2793_v15 = vpop.f32.mrb[123].mxu1 }
 0x52b   : > { %v3353_v17 = vpack.c.bf16 %v2793_v15, %v2789_v29  ;;  %v2684_v18 = vpop.f32.mrb[164].mxu0 }
 0x52c   : > { %3579 = vst [vmem:[#allocation5 + $0x190] sm:$0xff] %v3352_v14  ;;  %v2686_v19 = vpop.f32.mrb[165].mxu0  ;;  %3282 = vmatmul.mubr.bf16.gmra.mrb[228].mxu1 %v12753_v27 }
 0x52d   : > { %3580 = vst [vmem:[#allocation5 + $0x198] sm:$0xff] %v3353_v17  ;;  %v2688_v16 = vpop.f32.mrb[166].mxu0  ;;  %3291 = vmatprep.mubr.bf16.mxu1 %v12178_v52 }
 0x52e   : > { %v3476_v21 = vpack.c.bf16 %v2688_v16, %v2684_v18  ;;  %v2690_v22 = vpop.f32.mrb[167].mxu0 }
 0x52f   : > { %v3477_v23 = vpack.c.bf16 %v2690_v22, %v2686_v19  ;;  %v2797_v24 = vpop.f32.mrb[124].mxu1 }
 0x530   : > { %3703 = vst [vmem:[#allocation5 + $0x570] sm:$0xff] %v3476_v21  ;;  %v2799_v25 = vpop.f32.mrb[125].mxu1 }
 0x531   : > { %3704 = vst [vmem:[#allocation5 + $0x578] sm:$0xff] %v3477_v23  ;;  %v2801_v26 = vpop.f32.mrb[126].mxu1 }
 0x532   : > { %v3366_v38 = vpack.c.bf16 %v2801_v26, %v2797_v24  ;;  %v2803_v28 = vpop.f32.mrb[127].mxu1 }
 0x533   : > { %v3367_v30 = vpack.c.bf16 %v2803_v28, %v2799_v25  ;;  %v2694_v32 = vpop.f32.mrb[168].mxu0 }
 0x534   : > { %3593 = vst [vmem:[#allocation5 + $0x200] sm:$0xff] %v3366_v38  ;;  %v2696_v2 = vpop.f32.mrb[169].mxu0  ;;  %3292 = vmatmul.mubr.bf16.gmra.mrb[232].mxu1 %v12758_v35 }
 0x535   : > { %3594 = vst [vmem:[#allocation5 + $0x208] sm:$0xff] %v3367_v30  ;;  %v2698_v27 = vpop.f32.mrb[170].mxu0 }
 0x536   : > { %v3490_v33 = vpack.c.bf16 %v2698_v27, %v2694_v32  ;;  %v2700_v52 = vpop.f32.mrb[171].mxu0 }
 0x537   : > { %v3491_v31 = vpack.c.bf16 %v2700_v52, %v2696_v2  ;;  %v2807_v34 = vpop.f32.mrb[128].mxu1 }
 0x538   : > { %3717 = vst [vmem:[#allocation5 + $0x5e0] sm:$0xff] %v3490_v33  ;;  %v2809_v36 = vpop.f32.mrb[129].mxu1 }
 0x539   : > { %3718 = vst [vmem:[#allocation5 + $0x5e8] sm:$0xff] %v3491_v31  ;;  %v2811_v37 = vpop.f32.mrb[130].mxu1 }
 0x53a   : > { %v3380_v55 = vpack.c.bf16 %v2811_v37, %v2807_v34  ;;  %v2813_v39 = vpop.f32.mrb[131].mxu1 }
 0x53b   : > { %v3381_v40 = vpack.c.bf16 %v2813_v39, %v2809_v36  ;;  %v2704_v47 = vpop.f32.mrb[172].mxu0 }
 0x53c   : > { %3607 = vst [vmem:[#allocation5 + $0x270] sm:$0xff] %v3380_v55  ;;  %v2706_v42 = vpop.f32.mrb[173].mxu0 }
 0x53d   : > { %3608 = vst [vmem:[#allocation5 + $0x278] sm:$0xff] %v3381_v40  ;;  %v2708_v43 = vpop.f32.mrb[174].mxu0 }
 0x53e   : > { %v3504_v44 = vpack.c.bf16 %v2708_v43, %v2704_v47  ;;  %v2710_v35 = vpop.f32.mrb[175].mxu0 }
 0x53f   : > { %v3505_v45 = vpack.c.bf16 %v2710_v35, %v2706_v42  ;;  %v2817_v41 = vpop.f32.mrb[132].mxu1 }
 0x540   : > { %3731 = vst [vmem:[#allocation5 + $0x650] sm:$0xff] %v3504_v44  ;;  %v2819_v11 = vpop.f32.mrb[133].mxu1 }
 0x541   : > { %3732 = vst [vmem:[#allocation5 + $0x658] sm:$0xff] %v3505_v45  ;;  %v2821_v46 = vpop.f32.mrb[134].mxu1 }
 0x542   : > { %v3394_v48 = vpack.c.bf16 %v2821_v46, %v2817_v41  ;;  %v2823_v49 = vpop.f32.mrb[135].mxu1 }
 0x543   : > { %v3395_v50 = vpack.c.bf16 %v2823_v49, %v2819_v11  ;;  %v2714_v51 = vpop.f32.mrb[176].mxu0 }
 0x544   : > { %3621 = vst [vmem:[#allocation5 + $0x2e0] sm:$0xff] %v3394_v48  ;;  %v2716_v53 = vpop.f32.mrb[177].mxu0 }
 0x545   : > { %3622 = vst [vmem:[#allocation5 + $0x2e8] sm:$0xff] %v3395_v50  ;;  %v2718_v56 = vpop.f32.mrb[178].mxu0 }
 0x546   : > { %v3518_v60 = vpack.c.bf16 %v2718_v56, %v2714_v51  ;;  %v2720_v57 = vpop.f32.mrb[179].mxu0 }
 0x547   : > { %v3519_v58 = vpack.c.bf16 %v2720_v57, %v2716_v53  ;;  %v2827_v54 = vpop.f32.mrb[136].mxu1 }
 0x548   : > { %3745 = vst [vmem:[#allocation5 + $0x6c0] sm:$0xff] %v3518_v60  ;;  %v2829_v59 = vpop.f32.mrb[137].mxu1 }
 0x549   : > { %3746 = vst [vmem:[#allocation5 + $0x6c8] sm:$0xff] %v3519_v58  ;;  %v2831_v61 = vpop.f32.mrb[138].mxu1 }
 0x54a   : > { %v3408_v20 = vpack.c.bf16 %v2831_v61, %v2827_v54  ;;  %v2833_v62 = vpop.f32.mrb[139].mxu1 }
 0x54b   : > { %v3409_v63 = vpack.c.bf16 %v2833_v62, %v2829_v59  ;;  %v2950_v0 = vpop.f32.mrb[180].mxu0 }
 0x54c   : > { %3635 = vst [vmem:[#allocation5 + $0x350] sm:$0xff] %v3408_v20  ;;  %v2952_v1 = vpop.f32.mrb[181].mxu0 }
 0x54d   : > { %3636 = vst [vmem:[#allocation5 + $0x358] sm:$0xff] %v3409_v63  ;;  %v2954_v3 = vpop.f32.mrb[182].mxu0 }
 0x54e   : > { %v3312_v5 = vpack.c.bf16 %v2954_v3, %v2950_v0  ;;  %v2956_v6 = vpop.f32.mrb[183].mxu0 }
 0x54f   : > { %v3313_v8 = vpack.c.bf16 %v2956_v6, %v2952_v1  ;;  %v2837_v4 = vpop.f32.mrb[140].mxu1 }
 0x550   : > { %3539 = vst [vmem:[#allocation5 + $0x50] sm:$0xff] %v3312_v5  ;;  %v2839_v7 = vpop.f32.mrb[141].mxu1 }
 0x551   : > { %3540 = vst [vmem:[#allocation5 + $0x58] sm:$0xff] %v3313_v8  ;;  %v2841_v9 = vpop.f32.mrb[142].mxu1 }
 0x552   : > { %v3422_v10 = vpack.c.bf16 %v2841_v9, %v2837_v4  ;;  %v2843_v12 = vpop.f32.mrb[143].mxu1 }
 0x553   : > { %v3423_v29 = vpack.c.bf16 %v2843_v12, %v2839_v7  ;;  %v2960_v13 = vpop.f32.mrb[184].mxu0 }
 0x554   : > { %3649 = vst [vmem:[#allocation5 + $0x3c0] sm:$0xff] %v3422_v10  ;;  %v2962_v14 = vpop.f32.mrb[185].mxu0 }
 0x555   : > { %3650 = vst [vmem:[#allocation5 + $0x3c8] sm:$0xff] %v3423_v29  ;;  %v2964_v15 = vpop.f32.mrb[186].mxu0 }
 0x556   : > { %v3326_v17 = vpack.c.bf16 %v2964_v15, %v2960_v13  ;;  %v2966_v18 = vpop.f32.mrb[187].mxu0 }
 0x557   : > { %v3327_v19 = vpack.c.bf16 %v2966_v18, %v2962_v14  ;;  %v2847_v16 = vpop.f32.mrb[144].mxu1 }
 0x558   : > { %3553 = vst [vmem:[#allocation5 + $0xc0] sm:$0xff] %v3326_v17  ;;  %v2849_v21 = vpop.f32.mrb[145].mxu1 }
 0x559   : > { %3554 = vst [vmem:[#allocation5 + $0xc8] sm:$0xff] %v3327_v19  ;;  %v2851_v22 = vpop.f32.mrb[146].mxu1 }
 0x55a   : > { %v3436_v23 = vpack.c.bf16 %v2851_v22, %v2847_v16  ;;  %v2853_v24 = vpop.f32.mrb[147].mxu1 }
 0x55b   : > { %v3437_v25 = vpack.c.bf16 %v2853_v24, %v2849_v21  ;;  %v2970_v26 = vpop.f32.mrb[188].mxu0 }
 0x55c   : > { %3663 = vst [vmem:[#allocation5 + $0x430] sm:$0xff] %v3436_v23  ;;  %v2972_v38 = vpop.f32.mrb[189].mxu0 }
 0x55d   : > { %3664 = vst [vmem:[#allocation5 + $0x438] sm:$0xff] %v3437_v25  ;;  %v2974_v28 = vpop.f32.mrb[190].mxu0 }
 0x55e   : > { %v3340_v30 = vpack.c.bf16 %v2974_v28, %v2970_v26  ;;  %v2976_v32 = vpop.f32.mrb[191].mxu0 }
 0x55f   : > { %v3341_v2 = vpack.c.bf16 %v2976_v32, %v2972_v38  ;;  %v2857_v27 = vpop.f32.mrb[148].mxu1 }
 0x560   : > { %3567 = vst [vmem:[#allocation5 + $0x130] sm:$0xff] %v3340_v30  ;;  %v2859_v33 = vpop.f32.mrb[149].mxu1 }
 0x561   : > { %3568 = vst [vmem:[#allocation5 + $0x138] sm:$0xff] %v3341_v2  ;;  %v2861_v52 = vpop.f32.mrb[150].mxu1 }
 0x562   : > { %v3450_v31 = vpack.c.bf16 %v2861_v52, %v2857_v27  ;;  %v2863_v34 = vpop.f32.mrb[151].mxu1 }
 0x563   : > { %v3451_v36 = vpack.c.bf16 %v2863_v34, %v2859_v33  ;;  %v2980_v37 = vpop.f32.mrb[192].mxu0 }
 0x564   : > { %3677 = vst [vmem:[#allocation5 + $0x4a0] sm:$0xff] %v3450_v31  ;;  %v2982_v55 = vpop.f32.mrb[193].mxu0 }
 0x565   : > { %3678 = vst [vmem:[#allocation5 + $0x4a8] sm:$0xff] %v3451_v36  ;;  %v2984_v39 = vpop.f32.mrb[194].mxu0 }
 0x566   : > { %v3354_v40 = vpack.c.bf16 %v2984_v39, %v2980_v37  ;;  %v2986_v47 = vpop.f32.mrb[195].mxu0 }
 0x567   : > { %v3355_v42 = vpack.c.bf16 %v2986_v47, %v2982_v55  ;;  %v2867_v43 = vpop.f32.mrb[152].mxu1 }
 0x568   : > { %3581 = vst [vmem:[#allocation5 + $0x1a0] sm:$0xff] %v3354_v40  ;;  %v2869_v44 = vpop.f32.mrb[153].mxu1 }
 0x569   : > { %3582 = vst [vmem:[#allocation5 + $0x1a8] sm:$0xff] %v3355_v42  ;;  %v2871_v35 = vpop.f32.mrb[154].mxu1 }
 0x56a   : > { %v3464_v45 = vpack.c.bf16 %v2871_v35, %v2867_v43  ;;  %v2873_v41 = vpop.f32.mrb[155].mxu1 }
 0x56b   : > { %v3465_v11 = vpack.c.bf16 %v2873_v41, %v2869_v44  ;;  %v2990_v46 = vpop.f32.mrb[196].mxu0 }
 0x56c   : > { %3691 = vst [vmem:[#allocation5 + $0x510] sm:$0xff] %v3464_v45  ;;  %v2992_v48 = vpop.f32.mrb[197].mxu0 }
 0x56d   : > { %3692 = vst [vmem:[#allocation5 + $0x518] sm:$0xff] %v3465_v11  ;;  %v2994_v49 = vpop.f32.mrb[198].mxu0 }
 0x56e   : > { %v3368_v50 = vpack.c.bf16 %v2994_v49, %v2990_v46  ;;  %v2996_v51 = vpop.f32.mrb[199].mxu0 }
 0x56f   : > { %v3369_v53 = vpack.c.bf16 %v2996_v51, %v2992_v48  ;;  %v2877_v56 = vpop.f32.mrb[156].mxu1 }
 0x570   : > { %3595 = vst [vmem:[#allocation5 + $0x210] sm:$0xff] %v3368_v50  ;;  %v2879_v60 = vpop.f32.mrb[157].mxu1 }
 0x571   : > { %3596 = vst [vmem:[#allocation5 + $0x218] sm:$0xff] %v3369_v53  ;;  %v2881_v57 = vpop.f32.mrb[158].mxu1 }
 0x572   : > { %v3478_v58 = vpack.c.bf16 %v2881_v57, %v2877_v56  ;;  %v2883_v54 = vpop.f32.mrb[159].mxu1 }
 0x573   : > { %v3479_v59 = vpack.c.bf16 %v2883_v54, %v2879_v60  ;;  %v3000_v61 = vpop.f32.mrb[200].mxu0 }
 0x574   : > { %3705 = vst [vmem:[#allocation5 + $0x580] sm:$0xff] %v3478_v58  ;;  %v3002_v20 = vpop.f32.mrb[201].mxu0 }
 0x575   : > { %3706 = vst [vmem:[#allocation5 + $0x588] sm:$0xff] %v3479_v59  ;;  %v3004_v62 = vpop.f32.mrb[202].mxu0 }
 0x576   : > { %v3382_v63 = vpack.c.bf16 %v3004_v62, %v3000_v61  ;;  %v3006_v0 = vpop.f32.mrb[203].mxu0 }
 0x577   : > { %v3383_v1 = vpack.c.bf16 %v3006_v0, %v3002_v20  ;;  %v2887_v3 = vpop.f32.mrb[160].mxu1 }
 0x578   : > { %3609 = vst [vmem:[#allocation5 + $0x280] sm:$0xff] %v3382_v63  ;;  %v2889_v5 = vpop.f32.mrb[161].mxu1 }
 0x579   : > { %3610 = vst [vmem:[#allocation5 + $0x288] sm:$0xff] %v3383_v1  ;;  %v2891_v6 = vpop.f32.mrb[162].mxu1 }
 0x57a   : > { %v3492_v8 = vpack.c.bf16 %v2891_v6, %v2887_v3  ;;  %v2893_v4 = vpop.f32.mrb[163].mxu1 }
 0x57b   : > { %v3493_v7 = vpack.c.bf16 %v2893_v4, %v2889_v5  ;;  %v3010_v9 = vpop.f32.mrb[204].mxu0 }
 0x57c   : > { %3719 = vst [vmem:[#allocation5 + $0x5f0] sm:$0xff] %v3492_v8  ;;  %v3012_v10 = vpop.f32.mrb[205].mxu0 }
 0x57d   : > { %3720 = vst [vmem:[#allocation5 + $0x5f8] sm:$0xff] %v3493_v7  ;;  %v3014_v12 = vpop.f32.mrb[206].mxu0 }
 0x57e   : > { %v3396_v29 = vpack.c.bf16 %v3014_v12, %v3010_v9  ;;  %v3016_v13 = vpop.f32.mrb[207].mxu0 }
 0x57f   : > { %v3397_v14 = vpack.c.bf16 %v3016_v13, %v3012_v10  ;;  %v2897_v15 = vpop.f32.mrb[164].mxu1 }
 0x580   : > { %3623 = vst [vmem:[#allocation5 + $0x2f0] sm:$0xff] %v3396_v29  ;;  %v2899_v17 = vpop.f32.mrb[165].mxu1 }
 0x581   : > { %3624 = vst [vmem:[#allocation5 + $0x2f8] sm:$0xff] %v3397_v14  ;;  %v2901_v18 = vpop.f32.mrb[166].mxu1 }
 0x582   : > { %v3506_v19 = vpack.c.bf16 %v2901_v18, %v2897_v15  ;;  %v2903_v16 = vpop.f32.mrb[167].mxu1 }
 0x583   : > { %v3507_v21 = vpack.c.bf16 %v2903_v16, %v2899_v17  ;;  %v3020_v22 = vpop.f32.mrb[208].mxu0 }
 0x584   : > { %3733 = vst [vmem:[#allocation5 + $0x660] sm:$0xff] %v3506_v19  ;;  %v3022_v23 = vpop.f32.mrb[209].mxu0 }
 0x585   : > { %3734 = vst [vmem:[#allocation5 + $0x668] sm:$0xff] %v3507_v21  ;;  %v3024_v24 = vpop.f32.mrb[210].mxu0 }
 0x586   : > { %v3410_v25 = vpack.c.bf16 %v3024_v24, %v3020_v22  ;;  %v3026_v26 = vpop.f32.mrb[211].mxu0 }
 0x587   : > { %v3411_v38 = vpack.c.bf16 %v3026_v26, %v3022_v23  ;;  %v2907_v28 = vpop.f32.mrb[168].mxu1 }
 0x588   : > { %3637 = vst [vmem:[#allocation5 + $0x360] sm:$0xff] %v3410_v25  ;;  %v2909_v30 = vpop.f32.mrb[169].mxu1 }
 0x589   : > { %3638 = vst [vmem:[#allocation5 + $0x368] sm:$0xff] %v3411_v38  ;;  %v2911_v32 = vpop.f32.mrb[170].mxu1 }
 0x58a   : > { %v3520_v2 = vpack.c.bf16 %v2911_v32, %v2907_v28  ;;  %v2913_v27 = vpop.f32.mrb[171].mxu1 }
 0x58b   : > { %v3521_v33 = vpack.c.bf16 %v2913_v27, %v2909_v30  ;;  %v3030_v52 = vpop.f32.mrb[212].mxu0 }
 0x58c   : > { %3747 = vst [vmem:[#allocation5 + $0x6d0] sm:$0xff] %v3520_v2  ;;  %v3032_v31 = vpop.f32.mrb[213].mxu0 }
 0x58d   : > { %3748 = vst [vmem:[#allocation5 + $0x6d8] sm:$0xff] %v3521_v33  ;;  %v3034_v34 = vpop.f32.mrb[214].mxu0 }
 0x58e   : > { %v3424_v36 = vpack.c.bf16 %v3034_v34, %v3030_v52  ;;  %v3036_v37 = vpop.f32.mrb[215].mxu0 }
 0x58f   : > { %v3425_v55 = vpack.c.bf16 %v3036_v37, %v3032_v31  ;;  %v3143_v39 = vpop.f32.mrb[172].mxu1 }
 0x590   : > { %3651 = vst [vmem:[#allocation5 + $0x3d0] sm:$0xff] %v3424_v36  ;;  %v3145_v40 = vpop.f32.mrb[173].mxu1 }
 0x591   : > { %3652 = vst [vmem:[#allocation5 + $0x3d8] sm:$0xff] %v3425_v55  ;;  %v3147_v47 = vpop.f32.mrb[174].mxu1 }
 0x592   : > { %v3314_v42 = vpack.c.bf16 %v3147_v47, %v3143_v39  ;;  %v3149_v43 = vpop.f32.mrb[175].mxu1 }
 0x593   : > { %v3315_v44 = vpack.c.bf16 %v3149_v43, %v3145_v40  ;;  %v3040_v35 = vpop.f32.mrb[216].mxu0 }
 0x594   : > { %3541 = vst [vmem:[#allocation5 + $0x60] sm:$0xff] %v3314_v42  ;;  %v3042_v45 = vpop.f32.mrb[217].mxu0 }
 0x595   : > { %3542 = vst [vmem:[#allocation5 + $0x68] sm:$0xff] %v3315_v44  ;;  %v3044_v41 = vpop.f32.mrb[218].mxu0 }
 0x596   : > { %v3438_v11 = vpack.c.bf16 %v3044_v41, %v3040_v35  ;;  %v3046_v46 = vpop.f32.mrb[219].mxu0 }
 0x597   : > { %v3439_v48 = vpack.c.bf16 %v3046_v46, %v3042_v45  ;;  %v3153_v49 = vpop.f32.mrb[176].mxu1 }
 0x598   : > { %3665 = vst [vmem:[#allocation5 + $0x440] sm:$0xff] %v3438_v11  ;;  %v3155_v50 = vpop.f32.mrb[177].mxu1 }
 0x599   : > { %3666 = vst [vmem:[#allocation5 + $0x448] sm:$0xff] %v3439_v48  ;;  %v3157_v51 = vpop.f32.mrb[178].mxu1 }
 0x59a   : > { %v3328_v53 = vpack.c.bf16 %v3157_v51, %v3153_v49  ;;  %v3159_v56 = vpop.f32.mrb[179].mxu1 }
 0x59b   : > { %v3329_v60 = vpack.c.bf16 %v3159_v56, %v3155_v50  ;;  %v3050_v57 = vpop.f32.mrb[220].mxu0 }
 0x59c   : > { %3555 = vst [vmem:[#allocation5 + $0xd0] sm:$0xff] %v3328_v53  ;;  %v3052_v58 = vpop.f32.mrb[221].mxu0 }
 0x59d   : > { %3556 = vst [vmem:[#allocation5 + $0xd8] sm:$0xff] %v3329_v60  ;;  %v3054_v54 = vpop.f32.mrb[222].mxu0 }
 0x59e   : > { %v3452_v59 = vpack.c.bf16 %v3054_v54, %v3050_v57  ;;  %v3056_v61 = vpop.f32.mrb[223].mxu0 }
 0x59f   : > { %v3453_v20 = vpack.c.bf16 %v3056_v61, %v3052_v58  ;;  %v3163_v62 = vpop.f32.mrb[180].mxu1 }
 0x5a0   : > { %3679 = vst [vmem:[#allocation5 + $0x4b0] sm:$0xff] %v3452_v59  ;;  %v3165_v63 = vpop.f32.mrb[181].mxu1 }
 0x5a1   : > { %3680 = vst [vmem:[#allocation5 + $0x4b8] sm:$0xff] %v3453_v20  ;;  %v3167_v0 = vpop.f32.mrb[182].mxu1 }
 0x5a2   : > { %v3342_v1 = vpack.c.bf16 %v3167_v0, %v3163_v62  ;;  %v3169_v3 = vpop.f32.mrb[183].mxu1 }
 0x5a3   : > { %v3343_v5 = vpack.c.bf16 %v3169_v3, %v3165_v63  ;;  %v3060_v6 = vpop.f32.mrb[224].mxu0 }
 0x5a4   : > { %3569 = vst [vmem:[#allocation5 + $0x140] sm:$0xff] %v3342_v1  ;;  %v3062_v8 = vpop.f32.mrb[225].mxu0 }
 0x5a5   : > { %3570 = vst [vmem:[#allocation5 + $0x148] sm:$0xff] %v3343_v5  ;;  %v3064_v4 = vpop.f32.mrb[226].mxu0 }
 0x5a6   : > { %v3466_v7 = vpack.c.bf16 %v3064_v4, %v3060_v6  ;;  %v3066_v9 = vpop.f32.mrb[227].mxu0 }
 0x5a7   : > { %v3467_v10 = vpack.c.bf16 %v3066_v9, %v3062_v8  ;;  %v3173_v12 = vpop.f32.mrb[184].mxu1 }
 0x5a8   : > { %3693 = vst [vmem:[#allocation5 + $0x520] sm:$0xff] %v3466_v7  ;;  %v3175_v29 = vpop.f32.mrb[185].mxu1 }
 0x5a9   : > { %3694 = vst [vmem:[#allocation5 + $0x528] sm:$0xff] %v3467_v10  ;;  %v3177_v13 = vpop.f32.mrb[186].mxu1 }
 0x5aa   : > { %v3356_v14 = vpack.c.bf16 %v3177_v13, %v3173_v12  ;;  %v3179_v15 = vpop.f32.mrb[187].mxu1 }
 0x5ab   : > { %v3357_v17 = vpack.c.bf16 %v3179_v15, %v3175_v29  ;;  %v3070_v18 = vpop.f32.mrb[228].mxu0 }
 0x5ac   : > { %3583 = vst [vmem:[#allocation5 + $0x1b0] sm:$0xff] %v3356_v14  ;;  %v3072_v19 = vpop.f32.mrb[229].mxu0 }
 0x5ad   : > { %3584 = vst [vmem:[#allocation5 + $0x1b8] sm:$0xff] %v3357_v17  ;;  %v3074_v16 = vpop.f32.mrb[230].mxu0 }
 0x5ae   : > { %v3480_v21 = vpack.c.bf16 %v3074_v16, %v3070_v18  ;;  %v3076_v22 = vpop.f32.mrb[231].mxu0 }
 0x5af   : > { %v3481_v23 = vpack.c.bf16 %v3076_v22, %v3072_v19  ;;  %v3183_v24 = vpop.f32.mrb[188].mxu1 }
 0x5b0   : > { %3707 = vst [vmem:[#allocation5 + $0x590] sm:$0xff] %v3480_v21  ;;  %v3185_v25 = vpop.f32.mrb[189].mxu1 }
 0x5b1   : > { %3708 = vst [vmem:[#allocation5 + $0x598] sm:$0xff] %v3481_v23  ;;  %v3187_v26 = vpop.f32.mrb[190].mxu1 }
 0x5b2   : > { %v3370_v38 = vpack.c.bf16 %v3187_v26, %v3183_v24  ;;  %v3189_v28 = vpop.f32.mrb[191].mxu1 }
 0x5b3   : > { %v3371_v30 = vpack.c.bf16 %v3189_v28, %v3185_v25  ;;  %v3080_v32 = vpop.f32.mrb[232].mxu0 }
 0x5b4   : > { %3597 = vst [vmem:[#allocation5 + $0x220] sm:$0xff] %v3370_v38  ;;  %v3082_v2 = vpop.f32.mrb[233].mxu0 }
 0x5b5   : > { %3598 = vst [vmem:[#allocation5 + $0x228] sm:$0xff] %v3371_v30  ;;  %v3084_v27 = vpop.f32.mrb[234].mxu0 }
 0x5b6   : > { %v3494_v33 = vpack.c.bf16 %v3084_v27, %v3080_v32  ;;  %v3086_v52 = vpop.f32.mrb[235].mxu0 }
 0x5b7   : > { %v3495_v31 = vpack.c.bf16 %v3086_v52, %v3082_v2  ;;  %v3193_v34 = vpop.f32.mrb[192].mxu1 }
 0x5b8   : > { %3721 = vst [vmem:[#allocation5 + $0x600] sm:$0xff] %v3494_v33  ;;  %v3195_v36 = vpop.f32.mrb[193].mxu1 }
 0x5b9   : > { %3722 = vst [vmem:[#allocation5 + $0x608] sm:$0xff] %v3495_v31  ;;  %v3197_v37 = vpop.f32.mrb[194].mxu1 }
 0x5ba   : > { %v3384_v55 = vpack.c.bf16 %v3197_v37, %v3193_v34  ;;  %v3199_v39 = vpop.f32.mrb[195].mxu1 }
 0x5bb   : > { %v3385_v40 = vpack.c.bf16 %v3199_v39, %v3195_v36  ;;  %v3090_v47 = vpop.f32.mrb[236].mxu0 }
 0x5bc   : > { %3611 = vst [vmem:[#allocation5 + $0x290] sm:$0xff] %v3384_v55  ;;  %v3092_v42 = vpop.f32.mrb[237].mxu0 }
 0x5bd   : > { %3612 = vst [vmem:[#allocation5 + $0x298] sm:$0xff] %v3385_v40  ;;  %v3094_v43 = vpop.f32.mrb[238].mxu0 }
 0x5be   : > { %v3508_v44 = vpack.c.bf16 %v3094_v43, %v3090_v47  ;;  %v3096_v35 = vpop.f32.mrb[239].mxu0 }
 0x5bf   : > { %v3509_v45 = vpack.c.bf16 %v3096_v35, %v3092_v42  ;;  %v3203_v41 = vpop.f32.mrb[196].mxu1 }
 0x5c0   : > { %3735 = vst [vmem:[#allocation5 + $0x670] sm:$0xff] %v3508_v44  ;;  %v3205_v11 = vpop.f32.mrb[197].mxu1 }
 0x5c1   : > { %3736 = vst [vmem:[#allocation5 + $0x678] sm:$0xff] %v3509_v45  ;;  %v3207_v46 = vpop.f32.mrb[198].mxu1 }
 0x5c2   : > { %v3398_v48 = vpack.c.bf16 %v3207_v46, %v3203_v41  ;;  %v3209_v49 = vpop.f32.mrb[199].mxu1 }
 0x5c3   : > { %v3399_v50 = vpack.c.bf16 %v3209_v49, %v3205_v11  ;;  %v3100_v51 = vpop.f32.mrb[240].mxu0 }
 0x5c4   : > { %3625 = vst [vmem:[#allocation5 + $0x300] sm:$0xff] %v3398_v48  ;;  %v3102_v53 = vpop.f32.mrb[241].mxu0 }
 0x5c5   : > { %3626 = vst [vmem:[#allocation5 + $0x308] sm:$0xff] %v3399_v50  ;;  %v3104_v56 = vpop.f32.mrb[242].mxu0 }
 0x5c6   : > { %v3522_v60 = vpack.c.bf16 %v3104_v56, %v3100_v51  ;;  %v3106_v57 = vpop.f32.mrb[243].mxu0 }
 0x5c7   : > { %v3523_v58 = vpack.c.bf16 %v3106_v57, %v3102_v53  ;;  %v3213_v54 = vpop.f32.mrb[200].mxu1 }
 0x5c8   : > { %3749 = vst [vmem:[#allocation5 + $0x6e0] sm:$0xff] %v3522_v60  ;;  %v3215_v59 = vpop.f32.mrb[201].mxu1 }
 0x5c9   : > { %3750 = vst [vmem:[#allocation5 + $0x6e8] sm:$0xff] %v3523_v58  ;;  %v3217_v61 = vpop.f32.mrb[202].mxu1 }
 0x5ca   : > { %v3412_v20 = vpack.c.bf16 %v3217_v61, %v3213_v54  ;;  %v3219_v62 = vpop.f32.mrb[203].mxu1 }
 0x5cb   : > { %v3413_v63 = vpack.c.bf16 %v3219_v62, %v3215_v59 }
 0x5cc   : > { %3639 = vst [vmem:[#allocation5 + $0x370] sm:$0xff] %v3412_v20 }
 0x5cd   : > { %3640 = vst [vmem:[#allocation5 + $0x378] sm:$0xff] %v3413_v63 }
 0x5cf   : > { %v3223_v0 = vpop.f32.mrb[204].mxu1 }
 0x5d0   : > { %v3225_v1 = vpop.f32.mrb[205].mxu1 }
 0x5d1   : > { %v3227_v3 = vpop.f32.mrb[206].mxu1 }
 0x5d2   : > { %v3426_v5 = vpack.c.bf16 %v3227_v3, %v3223_v0  ;;  %v3229_v6 = vpop.f32.mrb[207].mxu1 }
 0x5d3   : > { %v3427_v8 = vpack.c.bf16 %v3229_v6, %v3225_v1 }
 0x5d4   : > { %3653 = vst [vmem:[#allocation5 + $0x3e0] sm:$0xff] %v3426_v5 }
 0x5d5   : > { %3654 = vst [vmem:[#allocation5 + $0x3e8] sm:$0xff] %v3427_v8 }
 0x5d7   : > { %v3233_v4 = vpop.f32.mrb[208].mxu1 }
 0x5d8   : > { %v3235_v7 = vpop.f32.mrb[209].mxu1 }
 0x5d9   : > { %v3237_v9 = vpop.f32.mrb[210].mxu1 }
 0x5da   : > { %v3440_v10 = vpack.c.bf16 %v3237_v9, %v3233_v4  ;;  %v3239_v12 = vpop.f32.mrb[211].mxu1 }
 0x5db   : > { %v3441_v29 = vpack.c.bf16 %v3239_v12, %v3235_v7 }
 0x5dc   : > { %3667 = vst [vmem:[#allocation5 + $0x450] sm:$0xff] %v3440_v10 }
 0x5dd   : > { %3668 = vst [vmem:[#allocation5 + $0x458] sm:$0xff] %v3441_v29 }
 0x5df   : > { %v3243_v13 = vpop.f32.mrb[212].mxu1 }
 0x5e0   : > { %v3245_v14 = vpop.f32.mrb[213].mxu1 }
 0x5e1   : > { %v3247_v15 = vpop.f32.mrb[214].mxu1 }
 0x5e2   : > { %v3454_v17 = vpack.c.bf16 %v3247_v15, %v3243_v13  ;;  %v3249_v18 = vpop.f32.mrb[215].mxu1 }
 0x5e3   : > { %v3455_v19 = vpack.c.bf16 %v3249_v18, %v3245_v14 }
 0x5e4   : > { %3681 = vst [vmem:[#allocation5 + $0x4c0] sm:$0xff] %v3454_v17 }
 0x5e5   : > { %3682 = vst [vmem:[#allocation5 + $0x4c8] sm:$0xff] %v3455_v19 }
 0x5e7   : > { %v3253_v16 = vpop.f32.mrb[216].mxu1 }
 0x5e8   : > { %v3255_v21 = vpop.f32.mrb[217].mxu1 }
 0x5e9   : > { %v3257_v22 = vpop.f32.mrb[218].mxu1 }
 0x5ea   : > { %v3468_v23 = vpack.c.bf16 %v3257_v22, %v3253_v16  ;;  %v3259_v24 = vpop.f32.mrb[219].mxu1 }
 0x5eb   : > { %v3469_v25 = vpack.c.bf16 %v3259_v24, %v3255_v21 }
 0x5ec   : > { %3695 = vst [vmem:[#allocation5 + $0x530] sm:$0xff] %v3468_v23 }
 0x5ed   : > { %3696 = vst [vmem:[#allocation5 + $0x538] sm:$0xff] %v3469_v25 }
 0x5ef   : > { %v3263_v26 = vpop.f32.mrb[220].mxu1 }
 0x5f0   : > { %v3265_v38 = vpop.f32.mrb[221].mxu1 }
 0x5f1   : > { %v3267_v28 = vpop.f32.mrb[222].mxu1 }
 0x5f2   : > { %v3482_v30 = vpack.c.bf16 %v3267_v28, %v3263_v26  ;;  %v3269_v32 = vpop.f32.mrb[223].mxu1 }
 0x5f3   : > { %v3483_v2 = vpack.c.bf16 %v3269_v32, %v3265_v38 }
 0x5f4   : > { %3709 = vst [vmem:[#allocation5 + $0x5a0] sm:$0xff] %v3482_v30 }
 0x5f5   : > { %3710 = vst [vmem:[#allocation5 + $0x5a8] sm:$0xff] %v3483_v2 }
 0x5f7   : > { %v3273_v27 = vpop.f32.mrb[224].mxu1 }
 0x5f8   : > { %v3275_v33 = vpop.f32.mrb[225].mxu1 }
 0x5f9   : > { %v3277_v52 = vpop.f32.mrb[226].mxu1 }
 0x5fa   : > { %v3496_v31 = vpack.c.bf16 %v3277_v52, %v3273_v27  ;;  %v3279_v34 = vpop.f32.mrb[227].mxu1 }
 0x5fb   : > { %v3497_v36 = vpack.c.bf16 %v3279_v34, %v3275_v33 }
 0x5fc   : > { %3723 = vst [vmem:[#allocation5 + $0x610] sm:$0xff] %v3496_v31 }
 0x5fd   : > { %3724 = vst [vmem:[#allocation5 + $0x618] sm:$0xff] %v3497_v36 }
 0x5ff   : > { %v3283_v37 = vpop.f32.mrb[228].mxu1 }
 0x600   : > { %v3285_v55 = vpop.f32.mrb[229].mxu1 }
 0x601   : > { %v3287_v39 = vpop.f32.mrb[230].mxu1 }
 0x602   : > { %v3510_v40 = vpack.c.bf16 %v3287_v39, %v3283_v37  ;;  %v3289_v47 = vpop.f32.mrb[231].mxu1 }
 0x603   : > { %v3511_v42 = vpack.c.bf16 %v3289_v47, %v3285_v55 }
 0x604   : > { %3737 = vst [vmem:[#allocation5 + $0x680] sm:$0xff] %v3510_v40 }
 0x605   : > { %3738 = vst [vmem:[#allocation5 + $0x688] sm:$0xff] %v3511_v42 }
 0x607   : > { %v3293_v43 = vpop.f32.mrb[232].mxu1 }
 0x608   : > { %v3295_v44 = vpop.f32.mrb[233].mxu1 }
 0x609   : > { %v3297_v35 = vpop.f32.mrb[234].mxu1 }
 0x60a   : > { %v3524_v45 = vpack.c.bf16 %v3297_v35, %v3293_v43  ;;  %v3299_v41 = vpop.f32.mrb[235].mxu1 }
 0x60b   : > { %v3525_v11 = vpack.c.bf16 %v3299_v41, %v3295_v44 }
 0x60c   : > { %3751 = vst [vmem:[#allocation5 + $0x6f0] sm:$0xff] %v3524_v45 }
 0x60d   : > { %3752 = vst [vmem:[#allocation5 + $0x6f8] sm:$0xff] %v3525_v11 }
 0x60e PF: > { %v3982_v46 = vld [vmem:[%s16330_s2 + $0x10] sm:$0xff]  ;;  %v3980_v48 = vld [vmem:[%s16330_s2] sm:$0xff]  ;;  %v16362_v49 = vmov 0   ;;  %v3983_v50 = vld [vmem:[%s16330_s2 + $0x18] sm:$0xff]  ;;  %v16358_v22 = vlaneseq  ;;  %vm4224_vm4 = vcmask 130048   ;;  %v12180_v26 = vmov 0.0  }
 0x60f   : > { %11702 = vset.pattern.permute.xlu1 %v16362_v49  ;;  %11701 = vset.pattern.permute.xlu0 %v16362_v49  ;;  %v3981_v51 = vld [vmem:[%s16330_s2 + $0x8] sm:$0xff]  ;;  %v3984_v56 = vld [vmem:[%s16330_s2 + $0x20] sm:$0xff]  ;;  %v3987_v60 = vld [vmem:[%s16330_s2 + $0x38] sm:$0xff]  ;;  %s17792_s18 = sld [smem:[#allocation259_spill]]  ;;  %s17795_s3 = sld [smem:[#allocation261_spill]] }
 0x610   : > { %4022 = vperm.xlu1 %11702, %v3982_v46   ;;  %4016 = vperm.xlu0 %11701, %v3980_v48   ;;  %v3985_v53 = vld [vmem:[%s16330_s2 + $0x28] sm:$0xff]  ;;  %v3986_v57 = vld [vmem:[%s16330_s2 + $0x30] sm:$0xff]  ;;  %v3988_v59 = vld [vmem:[%s16330_s2 + $0x40] sm:$0xff]  ;;  %v13055_v23 = vand.u32 127, %v16358_v22  ;;  %s17796_s21 = sld [smem:[#allocation260_spill]]  ;;  %p9461_p10 = scmp.eq.s32.totalorder %s12159_s24, 2 }
 0x611   : > { %v4223_v58 = vld [vmem:[#allocation3] sm:$0xff]  ;;  %v3989_v54 = vld [vmem:[%s16330_s2 + $0x48] sm:$0xff]  ;;  %v3991_v61 = vld [vmem:[%s16330_s2 + $0x58] sm:$0xff]  ;;  %s17797_s22 = sld [smem:[#allocation262_spill]]  ;;  %s17798_s17 = sld [smem:[#allocation257_spill]] (%p9461_p10) }
 0x612   : > { %11144 = vmatprep.subr.bf16.mxu0 %v4223_v58  ;;  %11446 = vmatprep.subr.bf16.mxu1 %v4223_v58  ;;  %v3990_v20 = vld [vmem:[%s16330_s2 + $0x50] sm:$0xff]  ;;  %v3993_v62 = vld [vmem:[%s16330_s2 + $0x68] sm:$0xff]  ;;  %v3992_v63 = vld [vmem:[%s16330_s2 + $0x60] sm:$0xff] }
 0x613   : > { %11145 = vmatpush3.bf16.msra.mxu0 %v4223_v58  ;;  %11447 = vmatpush3.bf16.msra.mxu1 %v4223_v58  ;;  %v3995_v0 = vld [vmem:[%s16330_s2 + $0x78] sm:$0xff]  ;;  %v3994_v1 = vld [vmem:[%s16330_s2 + $0x70] sm:$0xff]  ;;  %v3997_v3 = vld [vmem:[%s16330_s2 + $0x88] sm:$0xff] }
 0x614   : > { %4025 = vperm.xlu1 %11702, %v3983_v50   ;;  %4019 = vperm.xlu0 %11701, %v3981_v51   ;;  %v3996_v5 = vld [vmem:[%s16330_s2 + $0x80] sm:$0xff]  ;;  %v3999_v6 = vld [vmem:[%s16330_s2 + $0x98] sm:$0xff]  ;;  %v3998_v8 = vld [vmem:[%s16330_s2 + $0x90] sm:$0xff] }
 0x615   : > { %v4001_v4 = vld [vmem:[%s16330_s2 + $0xa8] sm:$0xff]  ;;  %v4000_v7 = vld [vmem:[%s16330_s2 + $0xa0] sm:$0xff]  ;;  %v4003_v9 = vld [vmem:[%s16330_s2 + $0xb8] sm:$0xff] }
 0x616   : > { %v4002_v10 = vld [vmem:[%s16330_s2 + $0xb0] sm:$0xff]  ;;  %v4005_v12 = vld [vmem:[%s16330_s2 + $0xc8] sm:$0xff]  ;;  %v4004_v29 = vld [vmem:[%s16330_s2 + $0xc0] sm:$0xff] }
 0x617   : > { %v4007_v13 = vld [vmem:[%s16330_s2 + $0xd8] sm:$0xff]  ;;  %v4006_v14 = vld [vmem:[%s16330_s2 + $0xd0] sm:$0xff]  ;;  %v4009_v15 = vld [vmem:[%s16330_s2 + $0xe8] sm:$0xff] }
 0x618   : > { %4031 = vperm.xlu1 %11702, %v3985_v53   ;;  %4028 = vperm.xlu0 %11701, %v3984_v56   ;;  %v4008_v17 = vld [vmem:[%s16330_s2 + $0xe0] sm:$0xff]  ;;  %v4011_v18 = vld [vmem:[%s16330_s2 + $0xf8] sm:$0xff]  ;;  %v4010_v19 = vld [vmem:[%s16330_s2 + $0xf0] sm:$0xff] }
 0x619   : > { %v11705_v16 = vld [vmem:[#allocation12 + $0x4] ss:$56 sps:$4 sm:$0xff]   ;;  %v11706_v2 = vld [vmem:[#allocation12 + $0x8] ss:$56 sps:$4 sm:$0xff]   ;;  %v11712_v47 = vld [vmem:[#allocation12 + $0x78] ss:$56 sps:$4 sm:$0xff]  }
 0x61a   : > { %v11708_v21 = vld [vmem:[#allocation12 + $0xc] ss:$56 sps:$4 sm:$0xff]   ;;  %5122 = vmatprep.subr.bf16.mxu1 %v11705_v16  ;;  %v11714_v52 = vld [vmem:[#allocation12 + $0x7c] ss:$56 sps:$4 sm:$0xff]   ;;  %v11718_v11 = vld [vmem:[#allocation12 + $0xe8] ss:$56 sps:$4 sm:$0xff]  }
 0x61b   : > { %5315 = vmatprep.subr.bf16.mxu0 %v11708_v21  ;;  %v11720_v44 = vld [vmem:[#allocation12 + $0xec] ss:$56 sps:$4 sm:$0xff]   ;;  %v11726_v50 = vld [vmem:[#allocation12 + $0x15c] ss:$56 sps:$4 sm:$0xff]  }
 0x61c   : > { %4037 = vperm.xlu1 %11702, %v3987_v60   ;;  %4034 = vperm.xlu0 %11701, %v3986_v57   ;;  %v11724_v60 = vld [vmem:[#allocation12 + $0x158] ss:$56 sps:$4 sm:$0xff]  }
 0x620   : > { %4043 = vperm.xlu1 %11702, %v3989_v54   ;;  %4040 = vperm.xlu0 %11701, %v3988_v59   ;;  %v11732_v54 = vld [vmem:[#allocation12 + $0x1cc] ss:$56 sps:$4 sm:$0xff]  }
 0x624   : > { %4049 = vperm.xlu1 %11702, %v3991_v61   ;;  %4046 = vperm.xlu0 %11701, %v3990_v20  }
 0x628   : > { %4055 = vperm.xlu1 %11702, %v3993_v62   ;;  %4052 = vperm.xlu0 %11701, %v3992_v63   ;;  %v11730_v62 = vld [vmem:[#allocation12 + $0x1c8] ss:$56 sps:$4 sm:$0xff]  }
 0x62c   : > { %4061 = vperm.xlu1 %11702, %v3995_v0   ;;  %4058 = vperm.xlu0 %11701, %v3994_v1   ;;  %v11738_v1 = vld [vmem:[#allocation12 + $0x23c] ss:$56 sps:$4 sm:$0xff]  }
 0x630   : > { %4067 = vperm.xlu1 %11702, %v3997_v3   ;;  %4064 = vperm.xlu0 %11701, %v3996_v5  }
 0x634   : > { %4073 = vperm.xlu1 %11702, %v3999_v6   ;;  %4070 = vperm.xlu0 %11701, %v3998_v8   ;;  %v11736_v8 = vld [vmem:[#allocation12 + $0x238] ss:$56 sps:$4 sm:$0xff]  }
 0x638   : > { %4079 = vperm.xlu1 %11702, %v4001_v4   ;;  %4076 = vperm.xlu0 %11701, %v4000_v7  }
 0x63c   : > { %4085 = vperm.xlu1 %11702, %v4003_v9   ;;  %4082 = vperm.xlu0 %11701, %v4002_v10   ;;  %v11744_v9 = vld [vmem:[#allocation12 + $0x2ac] ss:$56 sps:$4 sm:$0xff]  }
 0x640   : > { %4091 = vperm.xlu1 %11702, %v4005_v12   ;;  %4088 = vperm.xlu0 %11701, %v4004_v29  }
 0x644   : > { %4097 = vperm.xlu1 %11702, %v4007_v13   ;;  %4094 = vperm.xlu0 %11701, %v4006_v14   ;;  %v11742_v13 = vld [vmem:[#allocation12 + $0x2a8] ss:$56 sps:$4 sm:$0xff]  }
 0x648   : > { %4103 = vperm.xlu1 %11702, %v4009_v15   ;;  %4100 = vperm.xlu0 %11701, %v4008_v17  }
 0x64c   : > { %4109 = vperm.xlu1 %11702, %v4011_v18   ;;  %4106 = vperm.xlu0 %11701, %v4010_v19  }
 0x68f   : > { %v4023_v24 = vpop.permute.xlu1 %4022  ;;  %v4017_v25 = vpop.permute.xlu0 %4016 }
 0x690   : > { %vm4113_vm5 = vcmp.eq.s32.totalorder %v13055_v23, %v4023_v24  ;;  %vm4111_vm6 = vcmp.eq.s32.totalorder %v13055_v23, %v4017_v25 }
 0x691   : > { %v9775_v38 = vsel %vm4113_vm5, 1.0, %v12180_v26  ;;  %v9773_v28 = vsel %vm4111_vm6, 1.0, %v12180_v26 }
 0x693   : > { %v4026_v30 = vpop.permute.xlu1 %4025  ;;  %v4020_v32 = vpop.permute.xlu0 %4019 }
 0x694   : > { %vm4114_vm7 = vcmp.eq.s32.totalorder %v13055_v23, %v4026_v30  ;;  %vm4112_vm8 = vcmp.eq.s32.totalorder %v13055_v23, %v4020_v32  ;;  %v11711_v30 = vld [vmem:[#allocation12 + $0x74] ss:$56 sps:$4 sm:$0xff]  }
 0x695   : > { %v9776_v27 = vsel %vm4114_vm7, 1.0, %v12180_v26  ;;  %v9774_v33 = vsel %vm4112_vm8, 1.0, %v12180_v26 }
 0x696   : > { %v4208_v31 = vpack.c.bf16 %v9776_v27, %v9775_v38  ;;  %v4207_v34 = vpack.c.bf16 %v9774_v33, %v9773_v28  ;;  %v11703_v38 = vld [vmem:[#allocation12] ss:$56 sps:$4 sm:$0xff]  }
 0x697   : > { %v4032_v36 = vpop.permute.xlu1 %4031  ;;  %v4029_v37 = vpop.permute.xlu0 %4028 }
 0x698   : > { %vm4116_vm9 = vcmp.eq.s32.totalorder %v13055_v23, %v4032_v36  ;;  %vm4115_vm10 = vcmp.eq.s32.totalorder %v13055_v23, %v4029_v37  ;;  %11146 = vmatprep.mubr.msk.bf16.mxu0 %vm4224_vm4, %v4207_v34  ;;  %v11717_v34 = vld [vmem:[#allocation12 + $0xe4] ss:$56 sps:$4 sm:$0xff]  }
 0x699   : > { %v9778_v55 = vsel %vm4116_vm9, 1.0, %v12180_v26  ;;  %v9777_v39 = vsel %vm4115_vm10, 1.0, %v12180_v26  ;;  %11147 = vmatmul.mubr.msk.bf16.vlgmr.msra.gmra.mrb[0].mxu0 %vm4224_vm4, %v4208_v31 }
 0x69a   : > { %v4209_v40 = vpack.c.bf16 %v9778_v55, %v9777_v39  ;;  %5316 = vmatpush1.bf16.msra.mxu0 %v11706_v2 }
 0x69b   : > { %v4038_v42 = vpop.permute.xlu1 %4037  ;;  %v4035_v43 = vpop.permute.xlu0 %4034  ;;  %5317 = vmatprep.subr.bf16.mxu0 %v11714_v52  ;;  %v11709_v52 = vld [vmem:[#allocation12 + $0x70] ss:$56 sps:$4 sm:$0xff]  }
 0x69c   : > { %vm4118_vm11 = vcmp.eq.s32.totalorder %v13055_v23, %v4038_v42  ;;  %vm4117_vm12 = vcmp.eq.s32.totalorder %v13055_v23, %v4035_v43  ;;  %11150 = vmatprep.mubr.msk.bf16.mxu0 %vm4224_vm4, %v4209_v40  ;;  %v11715_v40 = vld [vmem:[#allocation12 + $0xe0] ss:$56 sps:$4 sm:$0xff]   ;;  %v11723_v42 = vld [vmem:[#allocation12 + $0x154] ss:$56 sps:$4 sm:$0xff]  }
 0x69d   : > { %v9780_v35 = vsel %vm4118_vm11, 1.0, %v12180_v26  ;;  %v9779_v45 = vsel %vm4117_vm12, 1.0, %v12180_v26 }
 0x69e   : > { %v4210_v41 = vpack.c.bf16 %v9780_v35, %v9779_v45  ;;  %5318 = vmatpush1.bf16.msra.mxu0 %v11712_v47 }
 0x69f   : > { %v4044_v46 = vpop.permute.xlu1 %4043  ;;  %v4041_v48 = vpop.permute.xlu0 %4040  ;;  %5319 = vmatprep.subr.bf16.mxu0 %v11720_v44 }
 0x6a0   : > { %vm4120_vm13 = vcmp.eq.s32.totalorder %v13055_v23, %v4044_v46  ;;  %vm4119_vm14 = vcmp.eq.s32.totalorder %v13055_v23, %v4041_v48  ;;  %v11729_v46 = vld [vmem:[#allocation12 + $0x1c4] ss:$56 sps:$4 sm:$0xff]  }
 0x6a1   : > { %v9782_v51 = vsel %vm4120_vm13, 1.0, %v12180_v26  ;;  %v9781_v53 = vsel %vm4119_vm14, 1.0, %v12180_v26  ;;  %11151 = vmatmul.mubr.msk.bf16.gmra.mrb[4].mxu0 %vm4224_vm4, %v4210_v41  ;;  %v11721_v41 = vld [vmem:[#allocation12 + $0x150] ss:$56 sps:$4 sm:$0xff]  }
 0x6a2   : > { %v4211_v56 = vpack.c.bf16 %v9782_v51, %v9781_v53  ;;  %5320 = vmatpush1.bf16.msra.mxu0 %v11718_v11 }
 0x6a3   : > { %v4050_v57 = vpop.permute.xlu1 %4049  ;;  %v4047_v58 = vpop.permute.xlu0 %4046  ;;  %5321 = vmatprep.subr.bf16.mxu0 %v11726_v50 }
 0x6a4   : > { %vm4122_vm15 = vcmp.eq.s32.totalorder %v13055_v23, %v4050_v57  ;;  %vm4121_vm0 = vcmp.eq.s32.totalorder %v13055_v23, %v4047_v58  ;;  %11154 = vmatprep.mubr.msk.bf16.mxu0 %vm4224_vm4, %v4211_v56  ;;  %v11727_v56 = vld [vmem:[#allocation12 + $0x1c0] ss:$56 sps:$4 sm:$0xff]   ;;  %v11735_v57 = vld [vmem:[#allocation12 + $0x234] ss:$56 sps:$4 sm:$0xff]  }
 0x6a5   : > { %v9784_v59 = vsel %vm4122_vm15, 1.0, %v12180_v26  ;;  %v9783_v61 = vsel %vm4121_vm0, 1.0, %v12180_v26 }
 0x6a6   : > { %v4212_v20 = vpack.c.bf16 %v9784_v59, %v9783_v61  ;;  %5322 = vmatpush1.bf16.msra.mxu0 %v11724_v60 }
 0x6a7   : > { %v4056_v63 = vpop.permute.xlu1 %4055  ;;  %v4053_v0 = vpop.permute.xlu0 %4052  ;;  %5323 = vmatprep.subr.bf16.mxu0 %v11732_v54 }
 0x6a8   : > { %vm4124_vm1 = vcmp.eq.s32.totalorder %v13055_v23, %v4056_v63  ;;  %vm4123_vm2 = vcmp.eq.s32.totalorder %v13055_v23, %v4053_v0  ;;  %v11741_v63 = vld [vmem:[#allocation12 + $0x2a4] ss:$56 sps:$4 sm:$0xff]  }
 0x6a9   : > { %v9786_v3 = vsel %vm4124_vm1, 1.0, %v12180_v26  ;;  %v9785_v5 = vsel %vm4123_vm2, 1.0, %v12180_v26  ;;  %11155 = vmatmul.mubr.msk.bf16.gmra.mrb[8].mxu0 %vm4224_vm4, %v4212_v20  ;;  %v11733_v20 = vld [vmem:[#allocation12 + $0x230] ss:$56 sps:$4 sm:$0xff]  }
 0x6aa   : > { %v4213_v6 = vpack.c.bf16 %v9786_v3, %v9785_v5  ;;  %5324 = vmatpush1.bf16.msra.mxu0 %v11730_v62 }
 0x6ab   : > { %v4062_v4 = vpop.permute.xlu1 %4061  ;;  %v4059_v7 = vpop.permute.xlu0 %4058  ;;  %5325 = vmatprep.subr.bf16.mxu0 %v11738_v1 }
 0x6ac   : > { %vm4126_vm3 = vcmp.eq.s32.totalorder %v13055_v23, %v4062_v4  ;;  %vm4125_vm5 = vcmp.eq.s32.totalorder %v13055_v23, %v4059_v7  ;;  %11158 = vmatprep.mubr.msk.bf16.mxu0 %vm4224_vm4, %v4213_v6  ;;  %v11739_v6 = vld [vmem:[#allocation12 + $0x2a0] ss:$56 sps:$4 sm:$0xff]   ;;  %v11747_v4 = vld [vmem:[#allocation12 + $0x314] ss:$56 sps:$4 sm:$0xff]  }
 0x6ad   : > { %v9788_v10 = vsel %vm4126_vm3, 1.0, %v12180_v26  ;;  %v9787_v12 = vsel %vm4125_vm5, 1.0, %v12180_v26  ;;  %v11750_v7 = vld [vmem:[#allocation12 + $0x31c] ss:$56 sps:$4 sm:$0xff]  }
 0x6ae   : > { %v4214_v29 = vpack.c.bf16 %v9788_v10, %v9787_v12  ;;  %5326 = vmatpush1.bf16.msra.mxu0 %v11736_v8  ;;  %v11748_v10 = vld [vmem:[#allocation12 + $0x318] ss:$56 sps:$4 sm:$0xff]  }
 0x6af   : > { %v4068_v14 = vpop.permute.xlu1 %4067  ;;  %v4065_v15 = vpop.permute.xlu0 %4064  ;;  %5327 = vmatprep.subr.bf16.mxu0 %v11744_v9  ;;  %v11745_v9 = vld [vmem:[#allocation12 + $0x310] ss:$56 sps:$4 sm:$0xff]  }
 0x6b0   : > { %vm4128_vm6 = vcmp.eq.s32.totalorder %v13055_v23, %v4068_v14  ;;  %vm4127_vm7 = vcmp.eq.s32.totalorder %v13055_v23, %v4065_v15 }
 0x6b1   : > { %v9790_v17 = vsel %vm4128_vm6, 1.0, %v12180_v26  ;;  %v9789_v18 = vsel %vm4127_vm7, 1.0, %v12180_v26  ;;  %11159 = vmatmul.mubr.msk.bf16.gmra.mrb[12].mxu0 %vm4224_vm4, %v4214_v29 }
 0x6b2   : > { %v4215_v19 = vpack.c.bf16 %v9790_v17, %v9789_v18  ;;  %5328 = vmatpush1.bf16.msra.mxu0 %v11742_v13  ;;  %5347 = vmatprep.mubr.bf16.mxu0 %v16362_v49  ;;  %v11751_v18 = vld [vmem:[#allocation12 + $0x18] ss:$56 sps:$4 sm:$0xff]  }
 0x6b3   : > { %v4074_v16 = vpop.permute.xlu1 %4073  ;;  %v4071_v21 = vpop.permute.xlu0 %4070  ;;  %5329 = vmatprep.subr.bf16.mxu0 %v11750_v7 }
 0x6b4   : > { %vm4130_vm8 = vcmp.eq.s32.totalorder %v13055_v23, %v4074_v16  ;;  %vm4129_vm9 = vcmp.eq.s32.totalorder %v13055_v23, %v4071_v21  ;;  %11162 = vmatprep.mubr.msk.bf16.mxu1 %vm4224_vm4, %v4215_v19  ;;  %v11757_v19 = vld [vmem:[#allocation12 + $0x10] ss:$56 sps:$4 sm:$0xff]   ;;  %v11756_v16 = vld [vmem:[#allocation12 + $0x8c] ss:$56 sps:$4 sm:$0xff]  }
 0x6b5   : > { %v9792_v24 = vsel %vm4130_vm8, 1.0, %v12180_v26  ;;  %v9791_v25 = vsel %vm4129_vm9, 1.0, %v12180_v26  ;;  %v11762_v21 = vld [vmem:[#allocation12 + $0x84] ss:$56 sps:$4 sm:$0xff]  }
 0x6b6   : > { %v4216_v28 = vpack.c.bf16 %v9792_v24, %v9791_v25  ;;  %5330 = vmatpush1.bf16.msra.mxu0 %v11748_v10  ;;  %v11754_v25 = vld [vmem:[#allocation12 + $0x88] ss:$56 sps:$4 sm:$0xff]  }
 0x6b7   : > { %v4080_v32 = vpop.permute.xlu1 %4079  ;;  %v4077_v2 = vpop.permute.xlu0 %4076 }
 0x6b8   : > { %vm4132_vm10 = vcmp.eq.s32.totalorder %v13055_v23, %v4080_v32  ;;  %vm4131_vm11 = vcmp.eq.s32.totalorder %v13055_v23, %v4077_v2  ;;  %11163 = vmatmul.mubr.msk.bf16.vlgmr.msra.gmra.mrb[0].mxu1 %vm4224_vm4, %v4216_v28  ;;  %v11768_v32 = vld [vmem:[#allocation12 + $0xf4] ss:$56 sps:$4 sm:$0xff]  }
 0x6b9   : > { %v9794_v27 = vsel %vm4132_vm10, 1.0, %v12180_v26  ;;  %v9793_v33 = vsel %vm4131_vm11, 1.0, %v12180_v26  ;;  %5123 = vmatpush1.bf16.msra.mxu1 %v11703_v38  ;;  %v11760_v38 = vld [vmem:[#allocation12 + $0x80] ss:$56 sps:$4 sm:$0xff]  }
 0x6ba   : > { %v4217_v31 = vpack.c.bf16 %v9794_v27, %v9793_v33  ;;  %5124 = vmatprep.subr.bf16.mxu1 %v11711_v30  ;;  %v11765_v30 = vld [vmem:[#allocation12 + $0xfc] ss:$56 sps:$4 sm:$0xff]  }
 0x6bb   : > { %v4086_v36 = vpop.permute.xlu1 %4085  ;;  %v4083_v37 = vpop.permute.xlu0 %4082 }
 0x6bc   : > { %vm4134_vm12 = vcmp.eq.s32.totalorder %v13055_v23, %v4086_v36  ;;  %vm4133_vm13 = vcmp.eq.s32.totalorder %v13055_v23, %v4083_v37  ;;  %11166 = vmatprep.mubr.msk.bf16.mxu1 %vm4224_vm4, %v4217_v31  ;;  %v11763_v31 = vld [vmem:[#allocation12 + $0xf8] ss:$56 sps:$4 sm:$0xff]   ;;  %v11771_v36 = vld [vmem:[#allocation12 + $0x164] ss:$56 sps:$4 sm:$0xff]  }
 0x6bd   : > { %v9796_v55 = vsel %vm4134_vm12, 1.0, %v12180_v26  ;;  %v9795_v39 = vsel %vm4133_vm13, 1.0, %v12180_v26  ;;  %5125 = vmatpush1.bf16.msra.mxu1 %v11709_v52  ;;  %v11774_v37 = vld [vmem:[#allocation12 + $0x16c] ss:$56 sps:$4 sm:$0xff]  }
 0x6be   : > { %v4218_v47 = vpack.c.bf16 %v9796_v55, %v9795_v39  ;;  %5126 = vmatprep.subr.bf16.mxu1 %v11717_v34  ;;  %v11766_v34 = vld [vmem:[#allocation12 + $0xf0] ss:$56 sps:$4 sm:$0xff]   ;;  %v11769_v39 = vld [vmem:[#allocation12 + $0x160] ss:$56 sps:$4 sm:$0xff]  }
 0x6bf   : > { %v4092_v43 = vpop.permute.xlu1 %4091  ;;  %v4089_v44 = vpop.permute.xlu0 %4088 }
 0x6c0   : > { %vm4136_vm14 = vcmp.eq.s32.totalorder %v13055_v23, %v4092_v43  ;;  %vm4135_vm15 = vcmp.eq.s32.totalorder %v13055_v23, %v4089_v44  ;;  %11167 = vmatmul.mubr.msk.bf16.gmra.mrb[4].mxu1 %vm4224_vm4, %v4218_v47  ;;  %v11780_v43 = vld [vmem:[#allocation12 + $0x1dc] ss:$56 sps:$4 sm:$0xff]  }
 0x6c1   : > { %v9798_v35 = vsel %vm4136_vm14, 1.0, %v12180_v26  ;;  %v9797_v45 = vsel %vm4135_vm15, 1.0, %v12180_v26  ;;  %5127 = vmatpush1.bf16.msra.mxu1 %v11715_v40  ;;  %v11772_v40 = vld [vmem:[#allocation12 + $0x168] ss:$56 sps:$4 sm:$0xff]  }
 0x6c2   : > { %v4219_v11 = vpack.c.bf16 %v9798_v35, %v9797_v45  ;;  %5128 = vmatprep.subr.bf16.mxu1 %v11723_v42  ;;  %v11777_v42 = vld [vmem:[#allocation12 + $0x1d4] ss:$56 sps:$4 sm:$0xff]  }
 0x6c3   : > { %v4098_v48 = vpop.permute.xlu1 %4097  ;;  %v4095_v50 = vpop.permute.xlu0 %4094 }
 0x6c4   : > { %vm4138_vm0 = vcmp.eq.s32.totalorder %v13055_v23, %v4098_v48  ;;  %vm4137_vm1 = vcmp.eq.s32.totalorder %v13055_v23, %v4095_v50  ;;  %11170 = vmatprep.mubr.msk.bf16.mxu1 %vm4224_vm4, %v4219_v11  ;;  %v11775_v11 = vld [vmem:[#allocation12 + $0x1d0] ss:$56 sps:$4 sm:$0xff]   ;;  %v11783_v48 = vld [vmem:[#allocation12 + $0x244] ss:$56 sps:$4 sm:$0xff]  }
 0x6c5   : > { %v9800_v51 = vsel %vm4138_vm0, 1.0, %v12180_v26  ;;  %v9799_v53 = vsel %vm4137_vm1, 1.0, %v12180_v26  ;;  %5129 = vmatpush1.bf16.msra.mxu1 %v11721_v41  ;;  %v11786_v50 = vld [vmem:[#allocation12 + $0x24c] ss:$56 sps:$4 sm:$0xff]  }
 0x6c6   : > { %v4220_v60 = vpack.c.bf16 %v9800_v51, %v9799_v53  ;;  %5130 = vmatprep.subr.bf16.mxu1 %v11729_v46  ;;  %v11778_v46 = vld [vmem:[#allocation12 + $0x1d8] ss:$56 sps:$4 sm:$0xff]  }
 0x6c7   : > { %v4104_v58 = vpop.permute.xlu1 %4103  ;;  %v4101_v54 = vpop.permute.xlu0 %4100  ;;  %v11781_v53 = vld [vmem:[#allocation12 + $0x240] ss:$56 sps:$4 sm:$0xff]  }
 0x6c8   : > { %vm4140_vm2 = vcmp.eq.s32.totalorder %v13055_v23, %v4104_v58  ;;  %vm4139_vm3 = vcmp.eq.s32.totalorder %v13055_v23, %v4101_v54  ;;  %11171 = vmatmul.mubr.msk.bf16.gmra.mrb[8].mxu1 %vm4224_vm4, %v4220_v60  ;;  %v11792_v58 = vld [vmem:[#allocation12 + $0x2bc] ss:$56 sps:$4 sm:$0xff]  }
 0x6c9   : > { %v9802_v59 = vsel %vm4140_vm2, 1.0, %v12180_v26  ;;  %v9801_v61 = vsel %vm4139_vm3, 1.0, %v12180_v26  ;;  %5131 = vmatpush1.bf16.msra.mxu1 %v11727_v56  ;;  %v11784_v56 = vld [vmem:[#allocation12 + $0x248] ss:$56 sps:$4 sm:$0xff]  }
 0x6ca   : > { %v4221_v62 = vpack.c.bf16 %v9802_v59, %v9801_v61  ;;  %5132 = vmatprep.subr.bf16.mxu1 %v11735_v57  ;;  %v11789_v57 = vld [vmem:[#allocation12 + $0x2b4] ss:$56 sps:$4 sm:$0xff]  }
 0x6cb   : > { %v4110_v0 = vpop.permute.xlu1 %4109  ;;  %v4107_v1 = vpop.permute.xlu0 %4106 }
 0x6cc   : > { %vm4142_vm5 = vcmp.eq.s32.totalorder %v13055_v23, %v4110_v0  ;;  %vm4141_vm6 = vcmp.eq.s32.totalorder %v13055_v23, %v4107_v1  ;;  %11174 = vmatprep.mubr.msk.bf16.mxu1 %vm4224_vm4, %v4221_v62  ;;  %v11753_v23 = vld [vmem:[#allocation12 + $0x1c] ss:$56 sps:$4 sm:$0xff]   ;;  %v11787_v62 = vld [vmem:[#allocation12 + $0x2b0] ss:$56 sps:$4 sm:$0xff]   ;;  %v11798_v1 = vld [vmem:[#allocation12 + $0x32c] ss:$56 sps:$4 sm:$0xff]  }
 0x6cd   : > { %v9804_v3 = vsel %vm4142_vm5, 1.0, %v12180_v26  ;;  %v9803_v5 = vsel %vm4141_vm6, 1.0, %v12180_v26  ;;  %5133 = vmatpush1.bf16.msra.mxu1 %v11733_v20  ;;  %5701 = vmatprep.subr.bf16.mxu0 %v11753_v23  ;;  %v11759_v26 = vld [vmem:[#allocation12 + $0x14] ss:$56 sps:$4 sm:$0xff]   ;;  %v11795_v0 = vld [vmem:[#allocation12 + $0x324] ss:$56 sps:$4 sm:$0xff]  }
 0x6ce   : > { %v4222_v8 = vpack.c.bf16 %v9804_v3, %v9803_v5  ;;  %5134 = vmatprep.subr.bf16.mxu1 %v11741_v63  ;;  %v11790_v63 = vld [vmem:[#allocation12 + $0x2b8] ss:$56 sps:$4 sm:$0xff]  }
 0x6d0   : > { %11175 = vmatmul.mubr.msk.bf16.gmra.mrb[12].mxu1 %vm4224_vm4, %v4222_v8  ;;  %v11796_v8 = vld [vmem:[#allocation12 + $0x328] ss:$56 sps:$4 sm:$0xff]  }
 0x6d1   : > { %5135 = vmatpush1.bf16.msra.mxu1 %v11739_v6  ;;  %5154 = vmatprep.mubr.bf16.mxu1 %v16362_v49  ;;  %v11793_v6 = vld [vmem:[#allocation12 + $0x320] ss:$56 sps:$4 sm:$0xff]  }
 0x6d2   : > { %5136 = vmatprep.subr.bf16.mxu1 %v11747_v4 }
 0x6d5   : > { %5137 = vmatpush1.bf16.msra.mxu1 %v11745_v9 }
 0x6d6   : > { %5508 = vmatprep.subr.bf16.mxu1 %v11759_v26 }
 0x76c   : > { %v11148_v12 = vpop.f32.mrb[0].mxu0 }
 0x76d   : > { %v4307_v29 = vpop.f32.mrb[1].mxu0 }
 0x76e   : > { %v11149_v13 = vpop.f32.mrb[2].mxu0 }
 0x76f   : > { %v13139_v14 = vpack.c.bf16 %v11149_v13, %v11148_v12  ;;  %v4310_v15 = vpop.f32.mrb[3].mxu0 }
 0x770   : > { %v13141_v17 = vpack.c.bf16 %v4310_v15, %v4307_v29 }
 0x772   : > { %5155 = vmatmul.mubr.bf16.vlgmr.msra.gmra.mrb[16].mxu1 %v13141_v17  ;;  %5348 = vmatmul.mubr.bf16.vlgmr.msra.gmra.mrb[16].mxu0 %v13141_v17 }
 0x773   : > { %5164 = vmatprep.mubr.bf16.mxu1 %v16362_v49  ;;  %5357 = vmatprep.mubr.bf16.mxu0 %v16362_v49 }
 0x774   : > { %v11152_v24 = vpop.f32.mrb[4].mxu0  ;;  %5702 = vmatpush1.bf16.msra.mxu0 %v11751_v18  ;;  %5509 = vmatpush1.bf16.msra.mxu1 %v11757_v19 }
 0x775   : > { %v4323_v28 = vpop.f32.mrb[5].mxu0  ;;  %5703 = vmatprep.subr.bf16.mxu0 %v11756_v16  ;;  %5510 = vmatprep.subr.bf16.mxu1 %v11762_v21 }
 0x776   : > { %v11153_v2 = vpop.f32.mrb[6].mxu0 }
 0x777   : > { %v13147_v27 = vpack.c.bf16 %v11153_v2, %v11152_v24  ;;  %v4326_v33 = vpop.f32.mrb[7].mxu0 }
 0x778   : > { %v13149_v52 = vpack.c.bf16 %v4326_v33, %v4323_v28  ;;  %5704 = vmatpush1.bf16.msra.mxu0 %v11754_v25  ;;  %5511 = vmatpush1.bf16.msra.mxu1 %v11760_v38 }
 0x779   : > { %5705 = vmatprep.subr.bf16.mxu0 %v11765_v30  ;;  %5512 = vmatprep.subr.bf16.mxu1 %v11768_v32 }
 0x77a   : > { %5165 = vmatmul.mubr.bf16.gmra.mrb[20].mxu1 %v13139_v14  ;;  %5358 = vmatmul.mubr.bf16.gmra.mrb[20].mxu0 %v13139_v14 }
 0x77b   : > { %5174 = vmatprep.mubr.bf16.mxu1 %v16362_v49  ;;  %5367 = vmatprep.mubr.bf16.mxu0 %v16362_v49 }
 0x77c   : > { %v11156_v55 = vpop.f32.mrb[8].mxu0  ;;  %5706 = vmatpush1.bf16.msra.mxu0 %v11763_v31  ;;  %5513 = vmatpush1.bf16.msra.mxu1 %v11766_v34  ;;  %v11801_v31 = vld [vmem:[#allocation12 + $0x2c] ss:$56 sps:$4 sm:$0xff]  }
 0x77d   : > { %v4339_v47 = vpop.f32.mrb[9].mxu0  ;;  %5514 = vmatprep.subr.bf16.mxu1 %v11771_v36  ;;  %5707 = vmatprep.subr.bf16.mxu0 %v11774_v37  ;;  %v11807_v34 = vld [vmem:[#allocation12 + $0x24] ss:$56 sps:$4 sm:$0xff]   ;;  %v11799_v36 = vld [vmem:[#allocation12 + $0x28] ss:$56 sps:$4 sm:$0xff]  }
 0x77e   : > { %v11157_v44 = vpop.f32.mrb[10].mxu0  ;;  %v11805_v37 = vld [vmem:[#allocation12 + $0x20] ss:$56 sps:$4 sm:$0xff]  }
 0x77f   : > { %v13155_v35 = vpack.c.bf16 %v11157_v44, %v11156_v55  ;;  %v4342_v45 = vpop.f32.mrb[11].mxu0  ;;  %v11804_v55 = vld [vmem:[#allocation12 + $0x9c] ss:$56 sps:$4 sm:$0xff]   ;;  %v11811_v44 = vld [vmem:[#allocation12 + $0x108] ss:$56 sps:$4 sm:$0xff]  }
 0x780   : > { %v13157_v41 = vpack.c.bf16 %v4342_v45, %v4339_v47  ;;  %5515 = vmatpush1.bf16.msra.mxu1 %v11769_v39  ;;  %5708 = vmatpush1.bf16.msra.mxu0 %v11772_v40  ;;  %v11810_v39 = vld [vmem:[#allocation12 + $0x94] ss:$56 sps:$4 sm:$0xff]   ;;  %v11802_v40 = vld [vmem:[#allocation12 + $0x98] ss:$56 sps:$4 sm:$0xff]  }
 0x781   : > { %5516 = vmatprep.subr.bf16.mxu1 %v11777_v42  ;;  %5709 = vmatprep.subr.bf16.mxu0 %v11780_v43  ;;  %v11808_v47 = vld [vmem:[#allocation12 + $0x90] ss:$56 sps:$4 sm:$0xff]   ;;  %v11813_v42 = vld [vmem:[#allocation12 + $0x10c] ss:$56 sps:$4 sm:$0xff]   ;;  %v11814_v45 = vld [vmem:[#allocation12 + $0x100] ss:$56 sps:$4 sm:$0xff]  }
 0x782   : > { %5175 = vmatmul.mubr.bf16.gmra.mrb[24].mxu1 %v13149_v52  ;;  %5368 = vmatmul.mubr.bf16.gmra.mrb[24].mxu0 %v13149_v52  ;;  %v11816_v43 = vld [vmem:[#allocation12 + $0x104] ss:$56 sps:$4 sm:$0xff]  }
 0x783   : > { %5184 = vmatprep.mubr.bf16.mxu1 %v16362_v49  ;;  %5377 = vmatprep.mubr.bf16.mxu0 %v16362_v49 }
 0x784   : > { %v11160_v51 = vpop.f32.mrb[12].mxu0  ;;  %5517 = vmatpush1.bf16.msra.mxu1 %v11775_v11  ;;  %5710 = vmatpush1.bf16.msra.mxu0 %v11778_v46  ;;  %v11819_v11 = vld [vmem:[#allocation12 + $0x174] ss:$56 sps:$4 sm:$0xff]  }
 0x785   : > { %v4355_v60 = vpop.f32.mrb[13].mxu0  ;;  %5518 = vmatprep.subr.bf16.mxu1 %v11783_v48  ;;  %5711 = vmatprep.subr.bf16.mxu0 %v11786_v50  ;;  %v11822_v46 = vld [vmem:[#allocation12 + $0x17c] ss:$56 sps:$4 sm:$0xff]   ;;  %v11817_v48 = vld [vmem:[#allocation12 + $0x170] ss:$56 sps:$4 sm:$0xff]  }
 0x786   : > { %v11161_v54 = vpop.f32.mrb[14].mxu0  ;;  %v11820_v50 = vld [vmem:[#allocation12 + $0x178] ss:$56 sps:$4 sm:$0xff]  }
 0x787   : > { %v13163_v59 = vpack.c.bf16 %v11161_v54, %v11160_v51  ;;  %v4358_v61 = vpop.f32.mrb[15].mxu0  ;;  %v11825_v51 = vld [vmem:[#allocation12 + $0x1e4] ss:$56 sps:$4 sm:$0xff]   ;;  %v11829_v54 = vld [vmem:[#allocation12 + $0x250] ss:$56 sps:$4 sm:$0xff]  }
 0x788   : > { %v13165_v20 = vpack.c.bf16 %v4358_v61, %v4355_v60  ;;  %5519 = vmatpush1.bf16.msra.mxu1 %v11781_v53  ;;  %5712 = vmatpush1.bf16.msra.mxu0 %v11784_v56  ;;  %v11828_v53 = vld [vmem:[#allocation12 + $0x1ec] ss:$56 sps:$4 sm:$0xff]   ;;  %v11823_v56 = vld [vmem:[#allocation12 + $0x1e0] ss:$56 sps:$4 sm:$0xff]  }
 0x789   : > { %5520 = vmatprep.subr.bf16.mxu1 %v11789_v57  ;;  %5713 = vmatprep.subr.bf16.mxu0 %v11792_v58  ;;  %v11826_v60 = vld [vmem:[#allocation12 + $0x1e8] ss:$56 sps:$4 sm:$0xff]   ;;  %v11831_v57 = vld [vmem:[#allocation12 + $0x254] ss:$56 sps:$4 sm:$0xff]   ;;  %v11832_v61 = vld [vmem:[#allocation12 + $0x258] ss:$56 sps:$4 sm:$0xff]  }
 0x78a   : > { %5185 = vmatmul.mubr.bf16.gmra.mrb[28].mxu1 %v13147_v27  ;;  %5378 = vmatmul.mubr.bf16.gmra.mrb[28].mxu0 %v13147_v27  ;;  %v11834_v58 = vld [vmem:[#allocation12 + $0x25c] ss:$56 sps:$4 sm:$0xff]  }
 0x78b   : > { %v11164_v3 = vpop.f32.mrb[0].mxu1  ;;  %5194 = vmatprep.mubr.bf16.mxu1 %v16362_v49  ;;  %5387 = vmatprep.mubr.bf16.mxu0 %v16362_v49 }
 0x78c   : > { %v4371_v5 = vpop.f32.mrb[1].mxu1  ;;  %5521 = vmatpush1.bf16.msra.mxu1 %v11787_v62  ;;  %5714 = vmatpush1.bf16.msra.mxu0 %v11790_v63  ;;  %v11837_v62 = vld [vmem:[#allocation12 + $0x2c4] ss:$56 sps:$4 sm:$0xff]  }
 0x78d   : > { %v11165_v4 = vpop.f32.mrb[2].mxu1  ;;  %5522 = vmatprep.subr.bf16.mxu1 %v11795_v0  ;;  %5715 = vmatprep.subr.bf16.mxu0 %v11798_v1  ;;  %v11840_v63 = vld [vmem:[#allocation12 + $0x2cc] ss:$56 sps:$4 sm:$0xff]   ;;  %v11835_v0 = vld [vmem:[#allocation12 + $0x2c0] ss:$56 sps:$4 sm:$0xff]  }
 0x78e   : > { %v13171_v7 = vpack.c.bf16 %v11165_v4, %v11164_v3  ;;  %v4374_v9 = vpop.f32.mrb[3].mxu1  ;;  %v11838_v1 = vld [vmem:[#allocation12 + $0x2c8] ss:$56 sps:$4 sm:$0xff]   ;;  %v11843_v3 = vld [vmem:[#allocation12 + $0x334] ss:$56 sps:$4 sm:$0xff]  }
 0x78f   : > { %v13173_v10 = vpack.c.bf16 %v4374_v9, %v4371_v5  ;;  %v11846_v5 = vld [vmem:[#allocation12 + $0x33c] ss:$56 sps:$4 sm:$0xff]   ;;  %v13271_v4 = vld [vmem:[#allocation9] sm:$0xff]  }
 0x790   : > { %5523 = vmatpush1.bf16.msra.mxu1 %v11793_v6  ;;  %5716 = vmatpush1.bf16.msra.mxu0 %v11796_v8  ;;  %v11841_v6 = vld [vmem:[#allocation12 + $0x330] ss:$56 sps:$4 sm:$0xff]  }
 0x791   : > { %6087 = vmatprep.subr.bf16.mxu0 %v11801_v31  ;;  %5894 = vmatprep.subr.bf16.mxu1 %v11807_v34  ;;  %v11844_v8 = vld [vmem:[#allocation12 + $0x338] ss:$56 sps:$4 sm:$0xff]  }
 0x792   : > { %5195 = vmatmul.mubr.bf16.gmra.mrb[32].mxu1 %v13157_v41  ;;  %5388 = vmatmul.mubr.bf16.gmra.mrb[32].mxu0 %v13157_v41 }
 0x793   : > { %v11168_v23 = vpop.f32.mrb[4].mxu1  ;;  %5204 = vmatprep.mubr.bf16.mxu1 %v16362_v49  ;;  %5397 = vmatprep.mubr.bf16.mxu0 %v16362_v49 }
 0x794   : > { %v4387_v26 = vpop.f32.mrb[5].mxu1 }
 0x795   : > { %v11169_v12 = vpop.f32.mrb[6].mxu1 }
 0x796   : > { %v13179_v29 = vpack.c.bf16 %v11169_v12, %v11168_v23  ;;  %v4390_v13 = vpop.f32.mrb[7].mxu1 }
 0x797   : > { %v13181_v15 = vpack.c.bf16 %v4390_v13, %v4387_v26 }
 0x79a   : > { %5205 = vmatmul.mubr.bf16.gmra.mrb[36].mxu1 %v13155_v35  ;;  %5398 = vmatmul.mubr.bf16.gmra.mrb[36].mxu0 %v13155_v35 }
 0x79b   : > { %v11172_v18 = vpop.f32.mrb[8].mxu1  ;;  %5214 = vmatprep.mubr.bf16.mxu1 %v16362_v49  ;;  %5407 = vmatprep.mubr.bf16.mxu0 %v16362_v49 }
 0x79c   : > { %v4403_v19 = vpop.f32.mrb[9].mxu1 }
 0x79d   : > { %v11173_v16 = vpop.f32.mrb[10].mxu1 }
 0x79e   : > { %v13187_v21 = vpack.c.bf16 %v11173_v16, %v11172_v18  ;;  %v4406_v24 = vpop.f32.mrb[11].mxu1 }
 0x79f   : > { %v13189_v25 = vpack.c.bf16 %v4406_v24, %v4403_v19 }
 0x7a2   : > { %5215 = vmatmul.mubr.bf16.gmra.mrb[40].mxu1 %v13165_v20  ;;  %5408 = vmatmul.mubr.bf16.gmra.mrb[40].mxu0 %v13165_v20 }
 0x7a3   : > { %v11176_v38 = vpop.f32.mrb[12].mxu1  ;;  %5224 = vmatprep.mubr.bf16.mxu1 %v16362_v49  ;;  %5417 = vmatprep.mubr.bf16.mxu0 %v16362_v49 }
 0x7a4   : > { %v4419_v28 = vpop.f32.mrb[13].mxu1 }
 0x7a5   : > { %v11177_v30 = vpop.f32.mrb[14].mxu1 }
 0x7a6   : > { %v13195_v32 = vpack.c.bf16 %v11177_v30, %v11176_v38  ;;  %v4422_v2 = vpop.f32.mrb[15].mxu1 }
 0x7a7   : > { %v13197_v33 = vpack.c.bf16 %v4422_v2, %v4419_v28 }
 0x7aa   : > { %5225 = vmatmul.mubr.bf16.gmra.mrb[44].mxu1 %v13163_v59  ;;  %5418 = vmatmul.mubr.bf16.gmra.mrb[44].mxu0 %v13163_v59 }
 0x7ab   : > { %5234 = vmatprep.mubr.bf16.mxu1 %v16362_v49  ;;  %5427 = vmatprep.mubr.bf16.mxu0 %v16362_v49 }
 0x7b2   : > { %5235 = vmatmul.mubr.bf16.gmra.mrb[48].mxu1 %v13173_v10  ;;  %5428 = vmatmul.mubr.bf16.gmra.mrb[48].mxu0 %v13173_v10 }
 0x7b3   : > { %5244 = vmatprep.mubr.bf16.mxu1 %v16362_v49  ;;  %5437 = vmatprep.mubr.bf16.mxu0 %v16362_v49 }
 0x7ba   : > { %5245 = vmatmul.mubr.bf16.gmra.mrb[52].mxu1 %v13171_v7  ;;  %5438 = vmatmul.mubr.bf16.gmra.mrb[52].mxu0 %v13171_v7 }
 0x7bb   : > { %5254 = vmatprep.mubr.bf16.mxu1 %v16362_v49  ;;  %5447 = vmatprep.mubr.bf16.mxu0 %v16362_v49 }
 0x7c2   : > { %5255 = vmatmul.mubr.bf16.gmra.mrb[56].mxu1 %v13181_v15  ;;  %5448 = vmatmul.mubr.bf16.gmra.mrb[56].mxu0 %v13181_v15 }
 0x7c3   : > { %5264 = vmatprep.mubr.bf16.mxu1 %v16362_v49  ;;  %5457 = vmatprep.mubr.bf16.mxu0 %v16362_v49 }
 0x7ca   : > { %5265 = vmatmul.mubr.bf16.gmra.mrb[60].mxu1 %v13179_v29  ;;  %5458 = vmatmul.mubr.bf16.gmra.mrb[60].mxu0 %v13179_v29 }
 0x7cb   : > { %5274 = vmatprep.mubr.bf16.mxu1 %v16362_v49  ;;  %5467 = vmatprep.mubr.bf16.mxu0 %v16362_v49 }
 0x7d2   : > { %5275 = vmatmul.mubr.bf16.gmra.mrb[64].mxu1 %v13189_v25  ;;  %5468 = vmatmul.mubr.bf16.gmra.mrb[64].mxu0 %v13189_v25 }
 0x7d3   : > { %5284 = vmatprep.mubr.bf16.mxu1 %v16362_v49  ;;  %5477 = vmatprep.mubr.bf16.mxu0 %v16362_v49 }
 0x7da   : > { %5285 = vmatmul.mubr.bf16.gmra.mrb[68].mxu1 %v13187_v21  ;;  %5478 = vmatmul.mubr.bf16.gmra.mrb[68].mxu0 %v13187_v21 }
 0x7db   : > { %5294 = vmatprep.mubr.bf16.mxu1 %v16362_v49  ;;  %5487 = vmatprep.mubr.bf16.mxu0 %v16362_v49 }
 0x7e2   : > { %5295 = vmatmul.mubr.bf16.gmra.mrb[72].mxu1 %v13197_v33  ;;  %5488 = vmatmul.mubr.bf16.gmra.mrb[72].mxu0 %v13197_v33 }
 0x7e3   : > { %5304 = vmatprep.mubr.bf16.mxu1 %v16362_v49  ;;  %5497 = vmatprep.mubr.bf16.mxu0 %v16362_v49 }
 0x7ea   : > { %5305 = vmatmul.mubr.bf16.gmra.mrb[76].mxu1 %v13195_v32  ;;  %5498 = vmatmul.mubr.bf16.gmra.mrb[76].mxu0 %v13195_v32 }
 0x7eb   : > { %5540 = vmatprep.mubr.bf16.mxu1 %v16362_v49  ;;  %5733 = vmatprep.mubr.bf16.mxu0 %v16362_v49 }
 0x7f2   : > { %5541 = vmatmul.mubr.bf16.vlgmr.msra.gmra.mrb[80].mxu1 %v13141_v17  ;;  %5734 = vmatmul.mubr.bf16.vlgmr.msra.gmra.mrb[80].mxu0 %v13141_v17 }
 0x7f3   : > { %5550 = vmatprep.mubr.bf16.mxu1 %v16362_v49  ;;  %5743 = vmatprep.mubr.bf16.mxu0 %v16362_v49 }
 0x7f4   : > { %6088 = vmatpush1.bf16.msra.mxu0 %v11799_v36  ;;  %5895 = vmatpush1.bf16.msra.mxu1 %v11805_v37 }
 0x7f5   : > { %6089 = vmatprep.subr.bf16.mxu0 %v11804_v55  ;;  %5896 = vmatprep.subr.bf16.mxu1 %v11810_v39 }
 0x7f8   : > { %6090 = vmatpush1.bf16.msra.mxu0 %v11802_v40  ;;  %5897 = vmatpush1.bf16.msra.mxu1 %v11808_v47 }
 0x7f9   : > { %6091 = vmatprep.subr.bf16.mxu0 %v11813_v42  ;;  %5898 = vmatprep.subr.bf16.mxu1 %v11816_v43  ;;  %v11851_v43 = vld [vmem:[#allocation12 + $0x34] ss:$56 sps:$4 sm:$0xff]  }
 0x7fa   : > { %5551 = vmatmul.mubr.bf16.gmra.mrb[84].mxu1 %v13139_v14  ;;  %5744 = vmatmul.mubr.bf16.gmra.mrb[84].mxu0 %v13139_v14 }
 0x7fb   : > { %5560 = vmatprep.mubr.bf16.mxu1 %v16362_v49  ;;  %5753 = vmatprep.mubr.bf16.mxu0 %v16362_v49 }
 0x7fc   : > { %6092 = vmatpush1.bf16.msra.mxu0 %v11811_v44  ;;  %5899 = vmatpush1.bf16.msra.mxu1 %v11814_v45  ;;  %v16788_v44 = vmov 0  }
 0x7fd   : > { %5900 = vmatprep.subr.bf16.mxu1 %v11819_v11  ;;  %6093 = vmatprep.subr.bf16.mxu0 %v11822_v46 }
 0x800   : > { %5901 = vmatpush1.bf16.msra.mxu1 %v11817_v48  ;;  %6094 = vmatpush1.bf16.msra.mxu0 %v11820_v50 }
 0x801   : > { %5902 = vmatprep.subr.bf16.mxu1 %v11825_v51  ;;  %6095 = vmatprep.subr.bf16.mxu0 %v11828_v53 }
 0x802   : > { %5561 = vmatmul.mubr.bf16.gmra.mrb[88].mxu1 %v13149_v52  ;;  %5754 = vmatmul.mubr.bf16.gmra.mrb[88].mxu0 %v13149_v52 }
 0x803   : > { %5570 = vmatprep.mubr.bf16.mxu1 %v16362_v49  ;;  %5763 = vmatprep.mubr.bf16.mxu0 %v16362_v49 }
 0x804   : > { %5903 = vmatpush1.bf16.msra.mxu1 %v11823_v56  ;;  %6096 = vmatpush1.bf16.msra.mxu0 %v11826_v60 }
 0x805   : > { %5904 = vmatprep.subr.bf16.mxu1 %v11831_v57  ;;  %6097 = vmatprep.subr.bf16.mxu0 %v11834_v58 }
 0x808   : > { %5905 = vmatpush1.bf16.msra.mxu1 %v11829_v54  ;;  %6098 = vmatpush1.bf16.msra.mxu0 %v11832_v61 }
 0x809   : > { %5906 = vmatprep.subr.bf16.mxu1 %v11837_v62  ;;  %6099 = vmatprep.subr.bf16.mxu0 %v11840_v63 }
 0x80a   : > { %5571 = vmatmul.mubr.bf16.gmra.mrb[92].mxu1 %v13147_v27  ;;  %5764 = vmatmul.mubr.bf16.gmra.mrb[92].mxu0 %v13147_v27 }
 0x80b   : > { %5580 = vmatprep.mubr.bf16.mxu1 %v16362_v49  ;;  %5773 = vmatprep.mubr.bf16.mxu0 %v16362_v49 }
 0x80c   : > { %5907 = vmatpush1.bf16.msra.mxu1 %v11835_v0  ;;  %6100 = vmatpush1.bf16.msra.mxu0 %v11838_v1 }
 0x80d   : > { %5908 = vmatprep.subr.bf16.mxu1 %v11843_v3  ;;  %6101 = vmatprep.subr.bf16.mxu0 %v11846_v5 }
 0x810   : > { %5909 = vmatpush1.bf16.msra.mxu1 %v11841_v6  ;;  %6102 = vmatpush1.bf16.msra.mxu0 %v11844_v8 }
 0x811   : > { %11178 = vmatprep.subr.bf16.mxu0 %v13271_v4  ;;  %6280 = vmatprep.subr.bf16.mxu1 %v11851_v43 }
 0x812   : > { %5581 = vmatmul.mubr.bf16.gmra.mrb[96].mxu1 %v13157_v41  ;;  %5774 = vmatmul.mubr.bf16.gmra.mrb[96].mxu0 %v13157_v41 }
 0x813   : > { %5590 = vmatprep.mubr.bf16.mxu1 %v16362_v49  ;;  %5783 = vmatprep.mubr.bf16.mxu0 %v16362_v49 }
 0x81a   : > { %5591 = vmatmul.mubr.bf16.gmra.mrb[100].mxu1 %v13155_v35  ;;  %5784 = vmatmul.mubr.bf16.gmra.mrb[100].mxu0 %v13155_v35 }
 0x81b   : > { %5600 = vmatprep.mubr.bf16.mxu1 %v16362_v49  ;;  %5793 = vmatprep.mubr.bf16.mxu0 %v16362_v49 }
 0x822   : > { %5601 = vmatmul.mubr.bf16.gmra.mrb[104].mxu1 %v13165_v20  ;;  %5794 = vmatmul.mubr.bf16.gmra.mrb[104].mxu0 %v13165_v20 }
 0x823   : > { %5610 = vmatprep.mubr.bf16.mxu1 %v16362_v49  ;;  %5803 = vmatprep.mubr.bf16.mxu0 %v16362_v49 }
 0x82a   : > { %5611 = vmatmul.mubr.bf16.gmra.mrb[108].mxu1 %v13163_v59  ;;  %5804 = vmatmul.mubr.bf16.gmra.mrb[108].mxu0 %v13163_v59 }
 0x82b   : > { %5620 = vmatprep.mubr.bf16.mxu1 %v16362_v49  ;;  %5813 = vmatprep.mubr.bf16.mxu0 %v16362_v49 }
 0x832   : > { %5621 = vmatmul.mubr.bf16.gmra.mrb[112].mxu1 %v13173_v10  ;;  %5814 = vmatmul.mubr.bf16.gmra.mrb[112].mxu0 %v13173_v10 }
 0x833   : > { %5630 = vmatprep.mubr.bf16.mxu1 %v16362_v49  ;;  %5823 = vmatprep.mubr.bf16.mxu0 %v16362_v49 }
 0x83a   : > { %5631 = vmatmul.mubr.bf16.gmra.mrb[116].mxu1 %v13171_v7  ;;  %5824 = vmatmul.mubr.bf16.gmra.mrb[116].mxu0 %v13171_v7 }
 0x83b   : > { %5640 = vmatprep.mubr.bf16.mxu1 %v16362_v49  ;;  %5833 = vmatprep.mubr.bf16.mxu0 %v16362_v49 }
 0x842   : > { %5641 = vmatmul.mubr.bf16.gmra.mrb[120].mxu1 %v13181_v15  ;;  %5834 = vmatmul.mubr.bf16.gmra.mrb[120].mxu0 %v13181_v15 }
 0x843   : > { %5650 = vmatprep.mubr.bf16.mxu1 %v16362_v49  ;;  %5843 = vmatprep.mubr.bf16.mxu0 %v16362_v49 }
 0x845   : > { %v13282_v9 = vpop.f32.mrb[16].mxu1  ;;  %v13284_v23 = vpop.f32.mrb[16].mxu0 }
 0x846   : > { %16764 = vst [vmem:[#allocation21_spill] sm:$0xff] %v13284_v23  ;;  %v13286_v26 = vpop.f32.mrb[17].mxu1  ;;  %v13288_v12 = vpop.f32.mrb[17].mxu0 }
 0x847   : > { %16765 = vst [vmem:[#allocation22_spill] sm:$0xff] %v13288_v12  ;;  %v13290_v13 = vpop.f32.mrb[18].mxu1  ;;  %v13292_v18 = vpop.f32.mrb[18].mxu0  ;;  %v11869_v12 = vld [vmem:[#allocation12 + $0x264] ss:$56 sps:$4 sm:$0xff]  }
 0x848   : > { %16766 = vst [vmem:[#allocation23_spill] sm:$0xff] %v13292_v18  ;;  %v13298_v24 = vpop.f32.mrb[19].mxu1  ;;  %v13300_v38 = vpop.f32.mrb[19].mxu0  ;;  %v11874_v18 = vld [vmem:[#allocation9 + $0x30] sm:$0xff]  }
 0x849   : > { %16767 = vst [vmem:[#allocation24_spill] sm:$0xff] %v13300_v38  ;;  %v11871_v38 = vld [vmem:[#allocation12 + $0x2d0] ss:$56 sps:$4 sm:$0xff]  }
 0x84a   : > { %5651 = vmatmul.mubr.bf16.gmra.mrb[124].mxu1 %v13179_v29  ;;  %5844 = vmatmul.mubr.bf16.gmra.mrb[124].mxu0 %v13179_v29 }
 0x84b   : > { %5660 = vmatprep.mubr.bf16.mxu1 %v16362_v49  ;;  %5853 = vmatprep.mubr.bf16.mxu0 %v16362_v49 }
 0x84d   : > { %v13310_v2 = vpop.f32.mrb[20].mxu1  ;;  %v13312_v31 = vpop.f32.mrb[20].mxu0 }
 0x84e   : > { %16768 = vst [vmem:[#allocation25_spill] sm:$0xff] %v13312_v31  ;;  %v13314_v34 = vpop.f32.mrb[21].mxu1  ;;  %v13316_v36 = vpop.f32.mrb[21].mxu0 }
 0x84f   : > { %16769 = vst [vmem:[#allocation26_spill] sm:$0xff] %v13316_v36  ;;  %v13318_v37 = vpop.f32.mrb[22].mxu1  ;;  %v13320_v55 = vpop.f32.mrb[22].mxu0  ;;  %v11861_v36 = vld [vmem:[#allocation12 + $0x184] ss:$56 sps:$4 sm:$0xff]  }
 0x850   : > { %16770 = vst [vmem:[#allocation27_spill] sm:$0xff] %v13320_v55  ;;  %v13326_v47 = vpop.f32.mrb[23].mxu1  ;;  %v13328_v42 = vpop.f32.mrb[23].mxu0  ;;  %v11866_v55 = vld [vmem:[#allocation9 + $0x20] sm:$0xff]  }
 0x851   : > { %16771 = vst [vmem:[#allocation28_spill] sm:$0xff] %v13328_v42  ;;  %v11863_v42 = vld [vmem:[#allocation12 + $0x1f0] ss:$56 sps:$4 sm:$0xff]  }
 0x852   : > { %5661 = vmatmul.mubr.bf16.gmra.mrb[128].mxu1 %v13189_v25  ;;  %5854 = vmatmul.mubr.bf16.gmra.mrb[128].mxu0 %v13189_v25 }
 0x853   : > { %5670 = vmatprep.mubr.bf16.mxu1 %v16362_v49  ;;  %5863 = vmatprep.mubr.bf16.mxu0 %v16362_v49 }
 0x855   : > { %v13338_v11 = vpop.f32.mrb[24].mxu1  ;;  %v13340_v46 = vpop.f32.mrb[24].mxu0 }
 0x856   : > { %16772 = vst [vmem:[#allocation29_spill] sm:$0xff] %v13340_v46  ;;  %v13342_v48 = vpop.f32.mrb[25].mxu1  ;;  %v13344_v50 = vpop.f32.mrb[25].mxu0 }
 0x857   : > { %16773 = vst [vmem:[#allocation30_spill] sm:$0xff] %v13344_v50  ;;  %v13346_v51 = vpop.f32.mrb[26].mxu1  ;;  %v13348_v53 = vpop.f32.mrb[26].mxu0 }
 0x858   : > { %16774 = vst [vmem:[#allocation31_spill] sm:$0xff] %v13348_v53  ;;  %v13354_v57 = vpop.f32.mrb[27].mxu1  ;;  %v13356_v58 = vpop.f32.mrb[27].mxu0 }
 0x859   : > { %16775 = vst [vmem:[#allocation32_spill] sm:$0xff] %v13356_v58 }
 0x85a   : > { %5671 = vmatmul.mubr.bf16.gmra.mrb[132].mxu1 %v13187_v21  ;;  %5864 = vmatmul.mubr.bf16.gmra.mrb[132].mxu0 %v13187_v21 }
 0x85b   : > { %5680 = vmatprep.mubr.bf16.mxu1 %v16362_v49  ;;  %5873 = vmatprep.mubr.bf16.mxu0 %v16362_v49 }
 0x85d   : > { %v13366_v62 = vpop.f32.mrb[28].mxu1  ;;  %v13368_v63 = vpop.f32.mrb[28].mxu0 }
 0x85e   : > { %16776 = vst [vmem:[#allocation33_spill] sm:$0xff] %v13368_v63  ;;  %v13370_v0 = vpop.f32.mrb[29].mxu1  ;;  %v13372_v1 = vpop.f32.mrb[29].mxu0 }
 0x85f   : > { %16777 = vst [vmem:[#allocation34_spill] sm:$0xff] %v13372_v1  ;;  %v13374_v3 = vpop.f32.mrb[30].mxu1  ;;  %v13376_v5 = vpop.f32.mrb[30].mxu0  ;;  %v11848_v1 = vld [vmem:[#allocation9 + $0x8] sm:$0xff]  }
 0x860   : > { %16778 = vst [vmem:[#allocation35_spill] sm:$0xff] %v13376_v5  ;;  %v13382_v43 = vpop.f32.mrb[31].mxu1  ;;  %v13384_v22 = vpop.f32.mrb[31].mxu0  ;;  %v11855_v5 = vld [vmem:[#allocation9 + $0x10] sm:$0xff]  }
 0x861   : > { %16779 = vst [vmem:[#allocation36_spill] sm:$0xff] %v13384_v22  ;;  %v11854_v22 = vld [vmem:[#allocation12 + $0xa4] ss:$56 sps:$4 sm:$0xff]  }
 0x862   : > { %5681 = vmatmul.mubr.bf16.gmra.mrb[136].mxu1 %v13197_v33  ;;  %5874 = vmatmul.mubr.bf16.gmra.mrb[136].mxu0 %v13197_v33 }
 0x863   : > { %5690 = vmatprep.mubr.bf16.mxu1 %v16362_v49  ;;  %5883 = vmatprep.mubr.bf16.mxu0 %v16362_v49 }
 0x865   : > { %v13394_v40 = vpop.f32.mrb[32].mxu1  ;;  %v13396_v8 = vpop.f32.mrb[32].mxu0 }
 0x866   : > { %16780 = vst [vmem:[#allocation37_spill] sm:$0xff] %v13396_v8  ;;  %v13398_v45 = vpop.f32.mrb[33].mxu1  ;;  %v13400_v16 = vpop.f32.mrb[33].mxu0 }
 0x867   : > { %16781 = vst [vmem:[#allocation38_spill] sm:$0xff] %v13400_v16  ;;  %v13402_v30 = vpop.f32.mrb[34].mxu1  ;;  %v13404_v6 = vpop.f32.mrb[34].mxu0 }
 0x868   : > { %16782 = vst [vmem:[#allocation39_spill] sm:$0xff] %v13404_v6  ;;  %v13410_v56 = vpop.f32.mrb[35].mxu1  ;;  %v13412_v54 = vpop.f32.mrb[35].mxu0  ;;  %v11852_v6 = vld [vmem:[#allocation12 + $0xa0] ss:$56 sps:$4 sm:$0xff]  }
 0x869   : > { %16783 = vst [vmem:[#allocation40_spill] sm:$0xff] %v13412_v54  ;;  %v11849_v54 = vld [vmem:[#allocation12 + $0x30] ss:$56 sps:$4 sm:$0xff]  }
 0x86a   : > { %5691 = vmatmul.mubr.bf16.gmra.mrb[140].mxu1 %v13195_v32  ;;  %5884 = vmatmul.mubr.bf16.gmra.mrb[140].mxu0 %v13195_v32 }
 0x86b   : > { %5926 = vmatprep.mubr.bf16.mxu1 %v16362_v49  ;;  %6119 = vmatprep.mubr.bf16.mxu0 %v16362_v49 }
 0x86d   : > { %v13422_v61 = vpop.f32.mrb[36].mxu1  ;;  %v13424_v60 = vpop.f32.mrb[36].mxu0 }
 0x86e   : > { %16784 = vst [vmem:[#allocation41_spill] sm:$0xff] %v13424_v60  ;;  %v13426_v19 = vpop.f32.mrb[37].mxu1  ;;  %v13428_v28 = vpop.f32.mrb[37].mxu0 }
 0x86f   : > { %16785 = vst [vmem:[#allocation42_spill] sm:$0xff] %v13428_v28  ;;  %v13430_v39 = vpop.f32.mrb[38].mxu1  ;;  %v13432_v8 = vpop.f32.mrb[38].mxu0 }
 0x870   : > { %16786 = vst [vmem:[#allocation43_spill] sm:$0xff] %v13432_v8  ;;  %v13438_v16 = vpop.f32.mrb[39].mxu1  ;;  %v13440_v49 = vpop.f32.mrb[39].mxu0  ;;  %v11858_v8 = vld [vmem:[#allocation12 + $0x114] ss:$56 sps:$4 sm:$0xff]  }
 0x871   : > { %16787 = vst [vmem:[#allocation44_spill] sm:$0xff] %v13440_v49 }
 0x872   : > { %5927 = vmatmul.mubr.bf16.vlgmr.msra.gmra.mrb[144].mxu1 %v13141_v17  ;;  %6120 = vmatmul.mubr.bf16.vlgmr.msra.gmra.mrb[144].mxu0 %v13141_v17 }
 0x873   : > { %5936 = vmatprep.mubr.bf16.mxu1 %v16788_v44  ;;  %6129 = vmatprep.mubr.bf16.mxu0 %v16788_v44 }
 0x874   : > { %11179 = vmatpush3.bf16.msra.mxu0 %v13271_v4  ;;  %6281 = vmatpush1.bf16.msra.mxu1 %v11849_v54  ;;  %v11862_v4 = vld [vmem:[#allocation9 + $0x18] sm:$0xff]  }
 0x875   : > { %v13451_v60 = vpop.f32.mrb[40].mxu1  ;;  %v13453_v63 = vpop.f32.mrb[40].mxu0  ;;  %11180 = vmatprep.subr.bf16.mxu0 %v11848_v1  ;;  %6282 = vmatprep.subr.bf16.mxu1 %v11854_v22  ;;  %v11856_v22 = vld [vmem:[#allocation12 + $0x110] ss:$56 sps:$4 sm:$0xff]  }
 0x876   : > { %16789 = vst [vmem:[#allocation45_spill] sm:$0xff] %v13453_v63  ;;  %v13455_v28 = vpop.f32.mrb[41].mxu1  ;;  %v13457_v49 = vpop.f32.mrb[41].mxu0 }
 0x877   : > { %16790 = vst [vmem:[#allocation46_spill] sm:$0xff] %v13457_v49  ;;  %v13459_v46 = vpop.f32.mrb[42].mxu1  ;;  %v13461_v53 = vpop.f32.mrb[42].mxu0 }
 0x878   : > { %16791 = vst [vmem:[#allocation47_spill] sm:$0xff] %v13461_v53  ;;  %v13467_v50 = vpop.f32.mrb[43].mxu1  ;;  %v13469_v58 = vpop.f32.mrb[43].mxu0  ;;  %11181 = vmatpush3.bf16.msra.mxu0 %v11848_v1  ;;  %6283 = vmatpush1.bf16.msra.mxu1 %v11852_v6  ;;  %v11859_v1 = vld [vmem:[#allocation12 + $0x180] ss:$56 sps:$4 sm:$0xff]  }
 0x879   : > { %16792 = vst [vmem:[#allocation48_spill] sm:$0xff] %v13469_v58  ;;  %11182 = vmatprep.subr.bf16.mxu0 %v11855_v5  ;;  %6284 = vmatprep.subr.bf16.mxu1 %v11858_v8  ;;  %v11865_v8 = vld [vmem:[#allocation12 + $0x1f4] ss:$56 sps:$4 sm:$0xff]  }
 0x87a   : > { %5937 = vmatmul.mubr.bf16.gmra.mrb[148].mxu1 %v13139_v14  ;;  %6130 = vmatmul.mubr.bf16.gmra.mrb[148].mxu0 %v13139_v14 }
 0x87b   : > { %5946 = vmatprep.mubr.bf16.mxu1 %v16788_v44  ;;  %6139 = vmatprep.mubr.bf16.mxu0 %v16788_v44 }
 0x87c   : > { %11183 = vmatpush3.bf16.msra.mxu0 %v11855_v5  ;;  %6285 = vmatpush1.bf16.msra.mxu1 %v11856_v22  ;;  %v11870_v5 = vld [vmem:[#allocation9 + $0x28] sm:$0xff]  }
 0x87d   : > { %v13479_v6 = vpop.f32.mrb[44].mxu1  ;;  %v13481_v54 = vpop.f32.mrb[44].mxu0  ;;  %6286 = vmatprep.subr.bf16.mxu1 %v11861_v36  ;;  %11184 = vmatprep.subr.bf16.mxu0 %v11862_v4 }
 0x87e   : > { %16793 = vst [vmem:[#allocation49_spill] sm:$0xff] %v13479_v6  ;;  %16794 = vst [vmem:[#allocation50_spill] sm:$0xff] %v13481_v54  ;;  %v13483_v31 = vpop.f32.mrb[45].mxu1  ;;  %v13485_v63 = vpop.f32.mrb[45].mxu0 }
 0x87f   : > { %16795 = vst [vmem:[#allocation51_spill] sm:$0xff] %v13483_v31  ;;  %16796 = vst [vmem:[#allocation52_spill] sm:$0xff] %v13485_v63  ;;  %v13487_v53 = vpop.f32.mrb[46].mxu1  ;;  %v13489_v49 = vpop.f32.mrb[46].mxu0  ;;  %v11877_v31 = vld [vmem:[#allocation12 + $0x344] ss:$56 sps:$4 sm:$0xff]  }
 0x880   : > { %16797 = vst [vmem:[#allocation53_spill] sm:$0xff] %v13487_v53  ;;  %16798 = vst [vmem:[#allocation54_spill] sm:$0xff] %v13489_v49  ;;  %v13495_v58 = vpop.f32.mrb[47].mxu1  ;;  %v13497_v36 = vpop.f32.mrb[47].mxu0  ;;  %6287 = vmatpush1.bf16.msra.mxu1 %v11859_v1  ;;  %11185 = vmatpush3.bf16.msra.mxu0 %v11862_v4  ;;  %v11867_v4 = vld [vmem:[#allocation12 + $0x260] ss:$56 sps:$4 sm:$0xff]  }
 0x881   : > { %16799 = vst [vmem:[#allocation55_spill] sm:$0xff] %v13497_v36  ;;  %6288 = vmatprep.subr.bf16.mxu1 %v11865_v8  ;;  %11186 = vmatprep.subr.bf16.mxu0 %v11866_v55  ;;  %v11873_v8 = vld [vmem:[#allocation12 + $0x2d4] ss:$56 sps:$4 sm:$0xff]  }
 0x882   : > { %5947 = vmatmul.mubr.bf16.gmra.mrb[152].mxu1 %v13149_v52  ;;  %6140 = vmatmul.mubr.bf16.gmra.mrb[152].mxu0 %v13149_v52 }
 0x883   : > { %5956 = vmatprep.mubr.bf16.mxu1 %v16788_v44  ;;  %6149 = vmatprep.mubr.bf16.mxu0 %v16788_v44 }
 0x884   : > { %6289 = vmatpush1.bf16.msra.mxu1 %v11863_v42  ;;  %11187 = vmatpush3.bf16.msra.mxu0 %v11866_v55  ;;  %v11878_v55 = vld [vmem:[#allocation9 + $0x38] sm:$0xff]  }
 0x885   : > { %v13507_v1 = vpop.f32.mrb[48].mxu1  ;;  %v13509_v22 = vpop.f32.mrb[48].mxu0  ;;  %6290 = vmatprep.subr.bf16.mxu1 %v11869_v12  ;;  %11188 = vmatprep.subr.bf16.mxu0 %v11870_v5 }
 0x886   : > { %16800 = vst [vmem:[#allocation56_spill] sm:$0xff] %v13507_v1  ;;  %16801 = vst [vmem:[#allocation57_spill] sm:$0xff] %v13509_v22  ;;  %v13511_v23 = vpop.f32.mrb[49].mxu1  ;;  %v13513_v54 = vpop.f32.mrb[49].mxu0 }
 0x887   : > { %16802 = vst [vmem:[#allocation58_spill] sm:$0xff] %v13511_v23  ;;  %16803 = vst [vmem:[#allocation59_spill] sm:$0xff] %v13513_v54  ;;  %v13515_v49 = vpop.f32.mrb[50].mxu1  ;;  %v13517_v63 = vpop.f32.mrb[50].mxu0 }
 0x888   : > { %16804 = vst [vmem:[#allocation60_spill] sm:$0xff] %v13515_v49  ;;  %16805 = vst [vmem:[#allocation61_spill] sm:$0xff] %v13517_v63  ;;  %v13523_v36 = vpop.f32.mrb[51].mxu1  ;;  %v13525_v12 = vpop.f32.mrb[51].mxu0  ;;  %6291 = vmatpush1.bf16.msra.mxu1 %v11867_v4  ;;  %11189 = vmatpush3.bf16.msra.mxu0 %v11870_v5  ;;  %v11875_v5 = vld [vmem:[#allocation12 + $0x340] ss:$56 sps:$4 sm:$0xff]  }
 0x889   : > { %16806 = vst [vmem:[#allocation62_spill] sm:$0xff] %v13523_v36  ;;  %16807 = vst [vmem:[#allocation63_spill] sm:$0xff] %v13525_v12  ;;  %6292 = vmatprep.subr.bf16.mxu1 %v11873_v8  ;;  %11190 = vmatprep.subr.bf16.mxu0 %v11874_v18  ;;  %v11897_v49 = vld [vmem:[#allocation6 + $0xc8] sm:$0xff]   ;;  %v11885_v36 = vld [vmem:[#allocation6 + $0x58] sm:$0xff]  }
 0x88a   : > { %5957 = vmatmul.mubr.bf16.gmra.mrb[156].mxu1 %v13147_v27  ;;  %6150 = vmatmul.mubr.bf16.gmra.mrb[156].mxu0 %v13147_v27 }
 0x88b   : > { %5966 = vmatprep.mubr.bf16.mxu1 %v16788_v44  ;;  %6159 = vmatprep.mubr.bf16.mxu0 %v16788_v44 }
 0x88c   : > { %6293 = vmatpush1.bf16.msra.mxu1 %v11871_v38  ;;  %11191 = vmatpush3.bf16.msra.mxu0 %v11874_v18 }
 0x88d   : > { %v13535_v4 = vpop.f32.mrb[52].mxu1  ;;  %v13537_v42 = vpop.f32.mrb[52].mxu0  ;;  %6294 = vmatprep.subr.bf16.mxu1 %v11877_v31  ;;  %11192 = vmatprep.subr.bf16.mxu0 %v11878_v55  ;;  %v11879_v31 = vld [vmem:[#allocation6 + $0x40] sm:$0xff]  }
 0x88e   : > { %16808 = vst [vmem:[#allocation64_spill] sm:$0xff] %v13535_v4  ;;  %16809 = vst [vmem:[#allocation65_spill] sm:$0xff] %v13537_v42  ;;  %v13539_v8 = vpop.f32.mrb[53].mxu1  ;;  %v13541_v53 = vpop.f32.mrb[53].mxu0 }
 0x88f   : > { %16810 = vst [vmem:[#allocation66_spill] sm:$0xff] %v13539_v8  ;;  %16811 = vst [vmem:[#allocation67_spill] sm:$0xff] %v13541_v53  ;;  %v13543_v6 = vpop.f32.mrb[54].mxu1  ;;  %v13545_v22 = vpop.f32.mrb[54].mxu0  ;;  %v11883_v8 = vld [vmem:[#allocation6 + $0x50] sm:$0xff]  }
 0x890   : > { %16812 = vst [vmem:[#allocation68_spill] sm:$0xff] %v13543_v6  ;;  %16813 = vst [vmem:[#allocation69_spill] sm:$0xff] %v13545_v22  ;;  %v13551_v38 = vpop.f32.mrb[55].mxu1  ;;  %v13553_v54 = vpop.f32.mrb[55].mxu0  ;;  %6295 = vmatpush1.bf16.msra.mxu1 %v11875_v5  ;;  %11193 = vmatpush3.bf16.msra.mxu0 %v11878_v55 }
 0x891   : > { %16814 = vst [vmem:[#allocation70_spill] sm:$0xff] %v13551_v38  ;;  %16815 = vst [vmem:[#allocation71_spill] sm:$0xff] %v13553_v54  ;;  %10180 = vmatprep.subr.bf16.mxu0 %v11879_v31  ;;  %v11881_v38 = vld [vmem:[#allocation6 + $0x48] sm:$0xff]  }
 0x892   : > { %5967 = vmatmul.mubr.bf16.gmra.mrb[160].mxu1 %v13157_v41  ;;  %6160 = vmatmul.mubr.bf16.gmra.mrb[160].mxu0 %v13157_v41 }
 0x893   : > { %5976 = vmatprep.mubr.bf16.mxu1 %v16788_v44  ;;  %6169 = vmatprep.mubr.bf16.mxu0 %v16788_v44 }
 0x895   : > { %v13563_v18 = vpop.f32.mrb[56].mxu1  ;;  %v13565_v5 = vpop.f32.mrb[56].mxu0 }
 0x896   : > { %16816 = vst [vmem:[#allocation72_spill] sm:$0xff] %v13563_v18  ;;  %16817 = vst [vmem:[#allocation73_spill] sm:$0xff] %v13565_v5  ;;  %v13567_v55 = vpop.f32.mrb[57].mxu1  ;;  %v13569_v63 = vpop.f32.mrb[57].mxu0 }
 0x897   : > { %16818 = vst [vmem:[#allocation74_spill] sm:$0xff] %v13567_v55  ;;  %16819 = vst [vmem:[#allocation75_spill] sm:$0xff] %v13569_v63  ;;  %v13571_v12 = vpop.f32.mrb[58].mxu1  ;;  %v13573_v1 = vpop.f32.mrb[58].mxu0 }
 0x898   : > { %16820 = vst [vmem:[#allocation76_spill] sm:$0xff] %v13571_v12  ;;  %16821 = vst [vmem:[#allocation77_spill] sm:$0xff] %v13573_v1  ;;  %v13579_v53 = vpop.f32.mrb[59].mxu1  ;;  %v13581_v31 = vpop.f32.mrb[59].mxu0 }
 0x899   : > { %16822 = vst [vmem:[#allocation78_spill] sm:$0xff] %v13579_v53  ;;  %16823 = vst [vmem:[#allocation79_spill] sm:$0xff] %v13581_v31 }
 0x89a   : > { %5977 = vmatmul.mubr.bf16.gmra.mrb[164].mxu1 %v13155_v35  ;;  %6170 = vmatmul.mubr.bf16.gmra.mrb[164].mxu0 %v13155_v35 }
 0x89b   : > { %5986 = vmatprep.mubr.bf16.mxu1 %v16788_v44  ;;  %6179 = vmatprep.mubr.bf16.mxu0 %v16788_v44 }
 0x89d   : > { %v13591_v42 = vpop.f32.mrb[60].mxu1  ;;  %v13593_v22 = vpop.f32.mrb[60].mxu0 }
 0x89e   : > { %16824 = vst [vmem:[#allocation80_spill] sm:$0xff] %v13591_v42  ;;  %16825 = vst [vmem:[#allocation81_spill] sm:$0xff] %v13593_v22  ;;  %v13595_v5 = vpop.f32.mrb[61].mxu1  ;;  %v13597_v1 = vpop.f32.mrb[61].mxu0 }
 0x89f   : > { %16826 = vst [vmem:[#allocation82_spill] sm:$0xff] %v13595_v5  ;;  %16827 = vst [vmem:[#allocation83_spill] sm:$0xff] %v13597_v1  ;;  %v13599_v54 = vpop.f32.mrb[62].mxu1  ;;  %v13601_v18 = vpop.f32.mrb[62].mxu0 }
 0x8a0   : > { %16828 = vst [vmem:[#allocation84_spill] sm:$0xff] %v13599_v54  ;;  %16829 = vst [vmem:[#allocation85_spill] sm:$0xff] %v13601_v18  ;;  %v13607_v31 = vpop.f32.mrb[63].mxu1  ;;  %v13609_v12 = vpop.f32.mrb[63].mxu0 }
 0x8a1   : > { %16830 = vst [vmem:[#allocation86_spill] sm:$0xff] %v13607_v31  ;;  %16831 = vst [vmem:[#allocation87_spill] sm:$0xff] %v13609_v12 }
 0x8a2   : > { %5987 = vmatmul.mubr.bf16.gmra.mrb[168].mxu1 %v13165_v20  ;;  %6180 = vmatmul.mubr.bf16.gmra.mrb[168].mxu0 %v13165_v20 }
 0x8a3   : > { %5996 = vmatprep.mubr.bf16.mxu1 %v16788_v44  ;;  %6189 = vmatprep.mubr.bf16.mxu0 %v16788_v44 }
 0x8a5   : > { %v13619_v4 = vpop.f32.mrb[64].mxu1  ;;  %v13621_v63 = vpop.f32.mrb[64].mxu0 }
 0x8a6   : > { %16832 = vst [vmem:[#allocation88_spill] sm:$0xff] %v13619_v4  ;;  %16833 = vst [vmem:[#allocation89_spill] sm:$0xff] %v13621_v63  ;;  %v13623_v22 = vpop.f32.mrb[65].mxu1  ;;  %v13625_v18 = vpop.f32.mrb[65].mxu0 }
 0x8a7   : > { %16834 = vst [vmem:[#allocation90_spill] sm:$0xff] %v13623_v22  ;;  %16835 = vst [vmem:[#allocation91_spill] sm:$0xff] %v13625_v18  ;;  %v13627_v55 = vpop.f32.mrb[66].mxu1  ;;  %v13629_v42 = vpop.f32.mrb[66].mxu0 }
 0x8a8   : > { %16836 = vst [vmem:[#allocation92_spill] sm:$0xff] %v13627_v55  ;;  %16837 = vst [vmem:[#allocation93_spill] sm:$0xff] %v13629_v42  ;;  %v13635_v12 = vpop.f32.mrb[67].mxu1  ;;  %v13637_v54 = vpop.f32.mrb[67].mxu0 }
 0x8a9   : > { %16838 = vst [vmem:[#allocation94_spill] sm:$0xff] %v13635_v12  ;;  %16839 = vst [vmem:[#allocation95_spill] sm:$0xff] %v13637_v54 }
 0x8aa   : > { %5997 = vmatmul.mubr.bf16.gmra.mrb[172].mxu1 %v13163_v59  ;;  %6190 = vmatmul.mubr.bf16.gmra.mrb[172].mxu0 %v13163_v59 }
 0x8ab   : > { %6006 = vmatprep.mubr.bf16.mxu1 %v16788_v44  ;;  %6199 = vmatprep.mubr.bf16.mxu0 %v16788_v44 }
 0x8ad   : > { %v13647_v53 = vpop.f32.mrb[68].mxu1  ;;  %v13649_v1 = vpop.f32.mrb[68].mxu0 }
 0x8ae   : > { %16840 = vst [vmem:[#allocation96_spill] sm:$0xff] %v13647_v53  ;;  %16841 = vst [vmem:[#allocation97_spill] sm:$0xff] %v13649_v1  ;;  %v13651_v63 = vpop.f32.mrb[69].mxu1  ;;  %v13653_v42 = vpop.f32.mrb[69].mxu0 }
 0x8af   : > { %16842 = vst [vmem:[#allocation98_spill] sm:$0xff] %v13651_v63  ;;  %16843 = vst [vmem:[#allocation99_spill] sm:$0xff] %v13653_v42  ;;  %v13655_v5 = vpop.f32.mrb[70].mxu1  ;;  %v13657_v4 = vpop.f32.mrb[70].mxu0 }
 0x8b0   : > { %16844 = vst [vmem:[#allocation100_spill] sm:$0xff] %v13655_v5  ;;  %16845 = vst [vmem:[#allocation101_spill] sm:$0xff] %v13657_v4  ;;  %v13663_v54 = vpop.f32.mrb[71].mxu1  ;;  %v13665_v55 = vpop.f32.mrb[71].mxu0 }
 0x8b1   : > { %16846 = vst [vmem:[#allocation102_spill] sm:$0xff] %v13663_v54  ;;  %16847 = vst [vmem:[#allocation103_spill] sm:$0xff] %v13665_v55 }
 0x8b2   : > { %6007 = vmatmul.mubr.bf16.gmra.mrb[176].mxu1 %v13173_v10  ;;  %6200 = vmatmul.mubr.bf16.gmra.mrb[176].mxu0 %v13173_v10 }
 0x8b3   : > { %6016 = vmatprep.mubr.bf16.mxu1 %v16788_v44  ;;  %6209 = vmatprep.mubr.bf16.mxu0 %v16788_v44 }
 0x8b5   : > { %v13675_v31 = vpop.f32.mrb[72].mxu1  ;;  %v13677_v18 = vpop.f32.mrb[72].mxu0 }
 0x8b6   : > { %16848 = vst [vmem:[#allocation104_spill] sm:$0xff] %v13675_v31  ;;  %16849 = vst [vmem:[#allocation105_spill] sm:$0xff] %v13677_v18  ;;  %v13679_v1 = vpop.f32.mrb[73].mxu1  ;;  %v13681_v4 = vpop.f32.mrb[73].mxu0 }
 0x8b7   : > { %16850 = vst [vmem:[#allocation106_spill] sm:$0xff] %v13679_v1  ;;  %16851 = vst [vmem:[#allocation107_spill] sm:$0xff] %v13681_v4  ;;  %v13683_v22 = vpop.f32.mrb[74].mxu1  ;;  %v13685_v53 = vpop.f32.mrb[74].mxu0 }
 0x8b8   : > { %16852 = vst [vmem:[#allocation108_spill] sm:$0xff] %v13683_v22  ;;  %16853 = vst [vmem:[#allocation109_spill] sm:$0xff] %v13685_v53  ;;  %v13691_v55 = vpop.f32.mrb[75].mxu1  ;;  %v13693_v5 = vpop.f32.mrb[75].mxu0 }
 0x8b9   : > { %16854 = vst [vmem:[#allocation110_spill] sm:$0xff] %v13691_v55  ;;  %16855 = vst [vmem:[#allocation111_spill] sm:$0xff] %v13693_v5 }
 0x8ba   : > { %6017 = vmatmul.mubr.bf16.gmra.mrb[180].mxu1 %v13171_v7  ;;  %6210 = vmatmul.mubr.bf16.gmra.mrb[180].mxu0 %v13171_v7 }
 0x8bb   : > { %6026 = vmatprep.mubr.bf16.mxu1 %v16788_v44  ;;  %6219 = vmatprep.mubr.bf16.mxu0 %v16788_v44 }
 0x8bd   : > { %v13703_v12 = vpop.f32.mrb[76].mxu1  ;;  %v13705_v42 = vpop.f32.mrb[76].mxu0 }
 0x8be   : > { %16856 = vst [vmem:[#allocation112_spill] sm:$0xff] %v13703_v12  ;;  %16857 = vst [vmem:[#allocation113_spill] sm:$0xff] %v13705_v42  ;;  %v13707_v18 = vpop.f32.mrb[77].mxu1  ;;  %v13709_v53 = vpop.f32.mrb[77].mxu0 }
 0x8bf   : > { %16858 = vst [vmem:[#allocation114_spill] sm:$0xff] %v13707_v18  ;;  %16859 = vst [vmem:[#allocation115_spill] sm:$0xff] %v13709_v53  ;;  %v13711_v63 = vpop.f32.mrb[78].mxu1  ;;  %v13713_v31 = vpop.f32.mrb[78].mxu0 }
 0x8c0   : > { %16860 = vst [vmem:[#allocation116_spill] sm:$0xff] %v13711_v63  ;;  %16861 = vst [vmem:[#allocation117_spill] sm:$0xff] %v13713_v31  ;;  %v13719_v5 = vpop.f32.mrb[79].mxu1  ;;  %v13721_v22 = vpop.f32.mrb[79].mxu0 }
 0x8c1   : > { %16862 = vst [vmem:[#allocation118_spill] sm:$0xff] %v13719_v5  ;;  %16863 = vst [vmem:[#allocation119_spill] sm:$0xff] %v13721_v22 }
 0x8c2   : > { %6027 = vmatmul.mubr.bf16.gmra.mrb[184].mxu1 %v13181_v15  ;;  %6220 = vmatmul.mubr.bf16.gmra.mrb[184].mxu0 %v13181_v15 }
 0x8c3   : > { %6036 = vmatprep.mubr.bf16.mxu1 %v16788_v44  ;;  %6229 = vmatprep.mubr.bf16.mxu0 %v16788_v44 }
 0x8c5   : > { %v13731_v54 = vpop.f32.mrb[80].mxu1  ;;  %v13733_v4 = vpop.f32.mrb[80].mxu0 }
 0x8c6   : > { %16864 = vst [vmem:[#allocation120_spill] sm:$0xff] %v13731_v54  ;;  %16865 = vst [vmem:[#allocation121_spill] sm:$0xff] %v13733_v4  ;;  %v13735_v42 = vpop.f32.mrb[81].mxu1  ;;  %v13737_v31 = vpop.f32.mrb[81].mxu0 }
 0x8c7   : > { %16866 = vst [vmem:[#allocation122_spill] sm:$0xff] %v13735_v42  ;;  %16867 = vst [vmem:[#allocation123_spill] sm:$0xff] %v13737_v31  ;;  %v13739_v1 = vpop.f32.mrb[82].mxu1  ;;  %v13741_v12 = vpop.f32.mrb[82].mxu0  ;;  %v11895_v42 = vld [vmem:[#allocation6 + $0xc0] sm:$0xff]  }
 0x8c8   : > { %16868 = vst [vmem:[#allocation124_spill] sm:$0xff] %v13739_v1  ;;  %16869 = vst [vmem:[#allocation125_spill] sm:$0xff] %v13741_v12  ;;  %v13747_v22 = vpop.f32.mrb[83].mxu1  ;;  %v13749_v63 = vpop.f32.mrb[83].mxu0  ;;  %10292 = vmatprep.subr.bf16.mxu1 %v11895_v42 }
 0x8c9   : > { %16870 = vst [vmem:[#allocation126_spill] sm:$0xff] %v13747_v22  ;;  %16871 = vst [vmem:[#allocation127_spill] sm:$0xff] %v13749_v63 }
 0x8ca   : > { %6037 = vmatmul.mubr.bf16.gmra.mrb[188].mxu1 %v13179_v29  ;;  %6230 = vmatmul.mubr.bf16.gmra.mrb[188].mxu0 %v13179_v29 }
 0x8cb   : > { %6046 = vmatprep.mubr.bf16.mxu1 %v16788_v44  ;;  %6239 = vmatprep.mubr.bf16.mxu0 %v16788_v44 }
 0x8cd   : > { %v13759_v55 = vpop.f32.mrb[84].mxu1  ;;  %v13761_v53 = vpop.f32.mrb[84].mxu0 }
 0x8ce   : > { %16872 = vst [vmem:[#allocation128_spill] sm:$0xff] %v13759_v55  ;;  %16873 = vst [vmem:[#allocation129_spill] sm:$0xff] %v13761_v53  ;;  %v13763_v4 = vpop.f32.mrb[85].mxu1  ;;  %v13765_v12 = vpop.f32.mrb[85].mxu0 }
 0x8cf   : > { %16874 = vst [vmem:[#allocation130_spill] sm:$0xff] %v13763_v4  ;;  %16875 = vst [vmem:[#allocation131_spill] sm:$0xff] %v13765_v12  ;;  %v13767_v18 = vpop.f32.mrb[86].mxu1  ;;  %v13769_v54 = vpop.f32.mrb[86].mxu0 }
 0x8d0   : > { %16876 = vst [vmem:[#allocation132_spill] sm:$0xff] %v13767_v18  ;;  %16877 = vst [vmem:[#allocation133_spill] sm:$0xff] %v13769_v54  ;;  %v13775_v63 = vpop.f32.mrb[87].mxu1  ;;  %v13777_v1 = vpop.f32.mrb[87].mxu0 }
 0x8d1   : > { %16878 = vst [vmem:[#allocation134_spill] sm:$0xff] %v13775_v63  ;;  %16879 = vst [vmem:[#allocation135_spill] sm:$0xff] %v13777_v1 }
 0x8d2   : > { %6047 = vmatmul.mubr.bf16.gmra.mrb[192].mxu1 %v13189_v25  ;;  %6240 = vmatmul.mubr.bf16.gmra.mrb[192].mxu0 %v13189_v25 }
 0x8d3   : > { %6056 = vmatprep.mubr.bf16.mxu1 %v16788_v44  ;;  %6249 = vmatprep.mubr.bf16.mxu0 %v16788_v44 }
 0x8d5   : > { %v13787_v31 = vpop.f32.mrb[88].mxu1  ;;  %v13789_v5 = vpop.f32.mrb[88].mxu0 }
 0x8d6   : > { %16880 = vst [vmem:[#allocation136_spill] sm:$0xff] %v13787_v31  ;;  %16881 = vst [vmem:[#allocation137_spill] sm:$0xff] %v13789_v5  ;;  %v13791_v53 = vpop.f32.mrb[89].mxu1  ;;  %v13793_v54 = vpop.f32.mrb[89].mxu0 }
 0x8d7   : > { %16882 = vst [vmem:[#allocation138_spill] sm:$0xff] %v13791_v53  ;;  %16883 = vst [vmem:[#allocation139_spill] sm:$0xff] %v13793_v54  ;;  %v13795_v22 = vpop.f32.mrb[90].mxu1  ;;  %v13797_v6 = vpop.f32.mrb[90].mxu0 }
 0x8d8   : > { %16884 = vst [vmem:[#allocation140_spill] sm:$0xff] %v13795_v22  ;;  %16885 = vst [vmem:[#allocation141_spill] sm:$0xff] %v13797_v6  ;;  %v13803_v55 = vpop.f32.mrb[91].mxu1  ;;  %v13805_v42 = vpop.f32.mrb[91].mxu0 }
 0x8d9   : > { %16886 = vst [vmem:[#allocation142_spill] sm:$0xff] %v13803_v55  ;;  %16887 = vst [vmem:[#allocation143_spill] sm:$0xff] %v13805_v42 }
 0x8da   : > { %6057 = vmatmul.mubr.bf16.gmra.mrb[196].mxu1 %v13187_v21  ;;  %6250 = vmatmul.mubr.bf16.gmra.mrb[196].mxu0 %v13187_v21 }
 0x8db   : > { %6066 = vmatprep.mubr.bf16.mxu1 %v16788_v44  ;;  %6259 = vmatprep.mubr.bf16.mxu0 %v16788_v44 }
 0x8dd   : > { %v13815_v12 = vpop.f32.mrb[92].mxu1  ;;  %v13817_v1 = vpop.f32.mrb[92].mxu0 }
 0x8de   : > { %16888 = vst [vmem:[#allocation144_spill] sm:$0xff] %v13815_v12  ;;  %16889 = vst [vmem:[#allocation145_spill] sm:$0xff] %v13817_v1  ;;  %v13819_v5 = vpop.f32.mrb[93].mxu1  ;;  %v13821_v6 = vpop.f32.mrb[93].mxu0 }
 0x8df   : > { %16890 = vst [vmem:[#allocation146_spill] sm:$0xff] %v13819_v5  ;;  %16891 = vst [vmem:[#allocation147_spill] sm:$0xff] %v13821_v6  ;;  %v13823_v18 = vpop.f32.mrb[94].mxu1  ;;  %v13825_v31 = vpop.f32.mrb[94].mxu0 }
 0x8e0   : > { %16892 = vst [vmem:[#allocation148_spill] sm:$0xff] %v13823_v18  ;;  %16893 = vst [vmem:[#allocation149_spill] sm:$0xff] %v13825_v31  ;;  %v13831_v42 = vpop.f32.mrb[95].mxu1  ;;  %v13833_v22 = vpop.f32.mrb[95].mxu0 }
 0x8e1   : > { %16894 = vst [vmem:[#allocation150_spill] sm:$0xff] %v13831_v42  ;;  %16895 = vst [vmem:[#allocation151_spill] sm:$0xff] %v13833_v22  ;;  %v11898_v42 = vld [vmem:[#allocation6 + $0x88] sm:$0xff]  }
 0x8e2   : > { %6067 = vmatmul.mubr.bf16.gmra.mrb[200].mxu1 %v13197_v33  ;;  %6260 = vmatmul.mubr.bf16.gmra.mrb[200].mxu0 %v13197_v33 }
 0x8e3   : > { %6076 = vmatprep.mubr.bf16.mxu1 %v16788_v44  ;;  %6269 = vmatprep.mubr.bf16.mxu0 %v16788_v44 }
 0x8e5   : > { %v13843_v4 = vpop.f32.mrb[96].mxu1  ;;  %v13845_v54 = vpop.f32.mrb[96].mxu0 }
 0x8e6   : > { %16896 = vst [vmem:[#allocation152_spill] sm:$0xff] %v13843_v4  ;;  %16897 = vst [vmem:[#allocation153_spill] sm:$0xff] %v13845_v54  ;;  %v13847_v1 = vpop.f32.mrb[97].mxu1  ;;  %v13849_v31 = vpop.f32.mrb[97].mxu0 }
 0x8e7   : > { %16898 = vst [vmem:[#allocation154_spill] sm:$0xff] %v13847_v1  ;;  %16899 = vst [vmem:[#allocation155_spill] sm:$0xff] %v13849_v31  ;;  %v13851_v53 = vpop.f32.mrb[98].mxu1  ;;  %v13853_v12 = vpop.f32.mrb[98].mxu0  ;;  %v11880_v1 = vld [vmem:[#allocation6] sm:$0xff]   ;;  %v11882_v31 = vld [vmem:[#allocation6 + $0x8] sm:$0xff]  }
 0x8e8   : > { %16900 = vst [vmem:[#allocation156_spill] sm:$0xff] %v13851_v53  ;;  %16901 = vst [vmem:[#allocation157_spill] sm:$0xff] %v13853_v12  ;;  %v13859_v22 = vpop.f32.mrb[99].mxu1  ;;  %v13861_v18 = vpop.f32.mrb[99].mxu0 }
 0x8e9   : > { %16902 = vst [vmem:[#allocation158_spill] sm:$0xff] %v13859_v22  ;;  %16903 = vst [vmem:[#allocation159_spill] sm:$0xff] %v13861_v18  ;;  %v11896_v22 = vld [vmem:[#allocation6 + $0x80] sm:$0xff]  }
 0x8ea   : > { %6077 = vmatmul.mubr.bf16.gmra.mrb[204].mxu1 %v13195_v32  ;;  %6270 = vmatmul.mubr.bf16.gmra.mrb[204].mxu0 %v13195_v32 }
 0x8eb   : > { %11194 = vmatprep.mubr.bf16.mxu0 %v13141_v17  ;;  %6312 = vmatprep.mubr.bf16.mxu1 %v16788_v44 }
 0x8ed   : > { %v13871_v55 = vpop.f32.mrb[100].mxu1  ;;  %v13873_v6 = vpop.f32.mrb[100].mxu0 }
 0x8ee   : > { %16904 = vst [vmem:[#allocation160_spill] sm:$0xff] %v13871_v55  ;;  %16905 = vst [vmem:[#allocation161_spill] sm:$0xff] %v13873_v6  ;;  %v13875_v54 = vpop.f32.mrb[101].mxu1  ;;  %v13877_v12 = vpop.f32.mrb[101].mxu0 }
 0x8ef   : > { %16906 = vst [vmem:[#allocation162_spill] sm:$0xff] %v13875_v54  ;;  %16907 = vst [vmem:[#allocation163_spill] sm:$0xff] %v13877_v12  ;;  %v13879_v5 = vpop.f32.mrb[102].mxu1  ;;  %v13881_v4 = vpop.f32.mrb[102].mxu0  ;;  %v11900_v54 = vld [vmem:[#allocation6 + $0x90] sm:$0xff]  }
 0x8f0   : > { %16908 = vst [vmem:[#allocation164_spill] sm:$0xff] %v13879_v5  ;;  %16909 = vst [vmem:[#allocation165_spill] sm:$0xff] %v13881_v4  ;;  %v13887_v18 = vpop.f32.mrb[103].mxu1  ;;  %v13889_v53 = vpop.f32.mrb[103].mxu0  ;;  %v11899_v4 = vld [vmem:[#allocation6 + $0xd0] sm:$0xff]  }
 0x8f1   : > { %16910 = vst [vmem:[#allocation166_spill] sm:$0xff] %v13887_v18  ;;  %16911 = vst [vmem:[#allocation167_spill] sm:$0xff] %v13889_v53 }
 0x8f2   : > { %6313 = vmatmul.mubr.bf16.vlgmr.msra.gmra.mrb[208].mxu1 %v13141_v17  ;;  %11195 = vmatmul.mubr.bf16.vlgmr.msra.gmra.mrb[208].mxu0 %v13139_v14 }
 0x8f3   : > { %11198 = vmatprep.mubr.bf16.mxu0 %v13149_v52  ;;  %6322 = vmatprep.mubr.bf16.mxu1 %v16788_v44 }
 0x8f4   : > { %10181 = vmatpush3.bf16.msra.mxu0 %v11880_v1  ;;  %10293 = vmatpush3.bf16.msra.mxu1 %v11896_v22  ;;  %v11901_v22 = vld [vmem:[#allocation6 + $0xd8] sm:$0xff]  }
 0x8f5   : > { %v13899_v6 = vpop.f32.mrb[104].mxu1  ;;  %v13901_v63 = vpop.f32.mrb[104].mxu0  ;;  %10182 = vmatprep.subr.bf16.mxu0 %v11881_v38  ;;  %10294 = vmatprep.subr.bf16.mxu1 %v11897_v49  ;;  %v11884_v49 = vld [vmem:[#allocation6 + $0x10] sm:$0xff]  }
 0x8f6   : > { %16912 = vst [vmem:[#allocation168_spill] sm:$0xff] %v13899_v6  ;;  %16913 = vst [vmem:[#allocation169_spill] sm:$0xff] %v13901_v63  ;;  %v13903_v12 = vpop.f32.mrb[105].mxu1  ;;  %v13905_v17 = vpop.f32.mrb[105].mxu0 }
 0x8f7   : > { %16914 = vst [vmem:[#allocation170_spill] sm:$0xff] %v13903_v12  ;;  %16915 = vst [vmem:[#allocation171_spill] sm:$0xff] %v13905_v17  ;;  %v13907_v53 = vpop.f32.mrb[106].mxu1  ;;  %v13909_v55 = vpop.f32.mrb[106].mxu0  ;;  %v11889_v12 = vld [vmem:[#allocation6 + $0x68] sm:$0xff]  }
 0x8f8   : > { %16916 = vst [vmem:[#allocation172_spill] sm:$0xff] %v13907_v53  ;;  %16917 = vst [vmem:[#allocation173_spill] sm:$0xff] %v13909_v55  ;;  %v13915_v5 = vpop.f32.mrb[107].mxu1  ;;  %v13917_v38 = vpop.f32.mrb[107].mxu0  ;;  %10183 = vmatpush3.bf16.msra.mxu0 %v11882_v31  ;;  %10295 = vmatpush3.bf16.msra.mxu1 %v11898_v42  ;;  %v11886_v31 = vld [vmem:[#allocation6 + $0x18] sm:$0xff]  }
 0x8f9   : > { %16918 = vst [vmem:[#allocation174_spill] sm:$0xff] %v13917_v38  ;;  %10184 = vmatprep.subr.bf16.mxu0 %v11883_v8  ;;  %10296 = vmatprep.subr.bf16.mxu1 %v11899_v4  ;;  %v11902_v42 = vld [vmem:[#allocation6 + $0x98] sm:$0xff]   ;;  %v11887_v8 = vld [vmem:[#allocation6 + $0x60] sm:$0xff]  }
 0x8fa   : > { %6323 = vmatmul.mubr.bf16.gmra.mrb[212].mxu1 %v13139_v14  ;;  %11199 = vmatmul.mubr.bf16.gmra.mrb[212].mxu0 %v13147_v27  ;;  %v11903_v4 = vld [vmem:[#allocation6 + $0xe0] sm:$0xff]  }
 0x8fb   : > { %11202 = vmatprep.mubr.bf16.mxu0 %v13157_v41  ;;  %6332 = vmatprep.mubr.bf16.mxu1 %v16788_v44  ;;  %v11904_v38 = vld [vmem:[#allocation6 + $0xa0] sm:$0xff]  }
 0x8fc   : > { %10185 = vmatpush3.bf16.msra.mxu0 %v11884_v49  ;;  %10297 = vmatpush3.bf16.msra.mxu1 %v11900_v54  ;;  %v11905_v54 = vld [vmem:[#allocation6 + $0xe8] sm:$0xff]  }
 0x8fd   : > { %v13927_v1 = vpop.f32.mrb[108].mxu1  ;;  %v13929_v18 = vpop.f32.mrb[108].mxu0  ;;  %10186 = vmatprep.subr.bf16.mxu0 %v11885_v36  ;;  %10298 = vmatprep.subr.bf16.mxu1 %v11901_v22  ;;  %v11888_v22 = vld [vmem:[#allocation6 + $0x20] sm:$0xff]  }
 0x8fe   : > { %16919 = vst [vmem:[#allocation175_spill] sm:$0xff] %v13927_v1  ;;  %16920 = vst [vmem:[#allocation176_spill] sm:$0xff] %v13929_v18  ;;  %v13931_v23 = vpop.f32.mrb[109].mxu1  ;;  %v13933_v14 = vpop.f32.mrb[109].mxu0 }
 0x8ff   : > { %16921 = vst [vmem:[#allocation177_spill] sm:$0xff] %v13931_v23  ;;  %16922 = vst [vmem:[#allocation178_spill] sm:$0xff] %v13933_v14  ;;  %v13935_v63 = vpop.f32.mrb[110].mxu1  ;;  %v13937_v55 = vpop.f32.mrb[110].mxu0  ;;  %v11893_v23 = vld [vmem:[#allocation6 + $0x78] sm:$0xff]  }
 0x900   : > { %16923 = vst [vmem:[#allocation179_spill] sm:$0xff] %v13935_v63  ;;  %16924 = vst [vmem:[#allocation180_spill] sm:$0xff] %v13937_v55  ;;  %v13943_v17 = vpop.f32.mrb[111].mxu1  ;;  %v13945_v36 = vpop.f32.mrb[111].mxu0  ;;  %10187 = vmatpush3.bf16.msra.mxu0 %v11886_v31  ;;  %10299 = vmatpush3.bf16.msra.mxu1 %v11902_v42  ;;  %v11890_v31 = vld [vmem:[#allocation6 + $0x28] sm:$0xff]  }
 0x901   : > { %16925 = vst [vmem:[#allocation181_spill] sm:$0xff] %v13945_v36  ;;  %10188 = vmatprep.subr.bf16.mxu0 %v11887_v8  ;;  %10300 = vmatprep.subr.bf16.mxu1 %v11903_v4  ;;  %v11906_v42 = vld [vmem:[#allocation6 + $0xa8] sm:$0xff]   ;;  %v11891_v8 = vld [vmem:[#allocation6 + $0x70] sm:$0xff]  }
 0x902   : > { %6333 = vmatmul.mubr.bf16.gmra.mrb[216].mxu1 %v13149_v52  ;;  %11203 = vmatmul.mubr.bf16.gmra.mrb[216].mxu0 %v13155_v35  ;;  %v11907_v4 = vld [vmem:[#allocation6 + $0xf0] sm:$0xff]  }
 0x903   : > { %11206 = vmatprep.mubr.bf16.mxu0 %v13165_v20  ;;  %6342 = vmatprep.mubr.bf16.mxu1 %v16788_v44  ;;  %v11908_v36 = vld [vmem:[#allocation6 + $0xb0] sm:$0xff]  }
 0x904   : > { %10189 = vmatpush3.bf16.msra.mxu0 %v11888_v22  ;;  %10301 = vmatpush3.bf16.msra.mxu1 %v11904_v38  ;;  %v11909_v38 = vld [vmem:[#allocation6 + $0xf8] sm:$0xff]  }
 0x905   : > { %v13955_v49 = vpop.f32.mrb[112].mxu1  ;;  %v13957_v6 = vpop.f32.mrb[112].mxu0  ;;  %10190 = vmatprep.subr.bf16.mxu0 %v11889_v12  ;;  %10302 = vmatprep.subr.bf16.mxu1 %v11905_v54  ;;  %v11892_v54 = vld [vmem:[#allocation6 + $0x30] sm:$0xff]  }
 0x906   : > { %16926 = vst [vmem:[#allocation182_spill] sm:$0xff] %v13957_v6  ;;  %v13959_v53 = vpop.f32.mrb[113].mxu1  ;;  %v13961_v52 = vpop.f32.mrb[113].mxu0 }
 0x907   : > { %16927 = vst [vmem:[#allocation183_spill] sm:$0xff] %v13961_v52  ;;  %v13963_v18 = vpop.f32.mrb[114].mxu1  ;;  %v13965_v55 = vpop.f32.mrb[114].mxu0 }
 0x908   : > { %16928 = vst [vmem:[#allocation184_spill] sm:$0xff] %v13965_v55  ;;  %v13971_v14 = vpop.f32.mrb[115].mxu1  ;;  %v13973_v12 = vpop.f32.mrb[115].mxu0  ;;  %10191 = vmatpush3.bf16.msra.mxu0 %v11890_v31  ;;  %10303 = vmatpush3.bf16.msra.mxu1 %v11906_v42  ;;  %v11894_v31 = vld [vmem:[#allocation6 + $0x38] sm:$0xff]  }
 0x909   : > { %16929 = vst [vmem:[#allocation185_spill] sm:$0xff] %v13973_v12  ;;  %10192 = vmatprep.subr.bf16.mxu0 %v11891_v8  ;;  %10304 = vmatprep.subr.bf16.mxu1 %v11907_v4  ;;  %v11910_v42 = vld [vmem:[#allocation6 + $0xb8] sm:$0xff]   ;;  %v11911_v8 = vld [vmem:[#allocation6 + $0x140] sm:$0xff]  }
 0x90a   : > { %6343 = vmatmul.mubr.bf16.gmra.mrb[220].mxu1 %v13147_v27  ;;  %11207 = vmatmul.mubr.bf16.gmra.mrb[220].mxu0 %v13163_v59 }
 0x90b   : > { %11210 = vmatprep.mubr.bf16.mxu0 %v13173_v10  ;;  %6352 = vmatprep.mubr.bf16.mxu1 %v16788_v44 }
 0x90c   : > { %10193 = vmatpush3.bf16.msra.mxu0 %v11892_v54  ;;  %10305 = vmatpush3.bf16.msra.mxu1 %v11908_v36 }
 0x90d   : > { %v13983_v22 = vpop.f32.mrb[116].mxu1  ;;  %v13985_v1 = vpop.f32.mrb[116].mxu0  ;;  %10194 = vmatprep.subr.bf16.mxu0 %v11893_v23  ;;  %10306 = vmatprep.subr.bf16.mxu1 %v11909_v38 }
 0x90e   : > { %16930 = vst [vmem:[#allocation186_spill] sm:$0xff] %v13985_v1  ;;  %v13987_v4 = vpop.f32.mrb[117].mxu1  ;;  %v13989_v27 = vpop.f32.mrb[117].mxu0 }
 0x90f   : > { %16931 = vst [vmem:[#allocation187_spill] sm:$0xff] %v13989_v27  ;;  %v13991_v63 = vpop.f32.mrb[118].mxu1  ;;  %v13993_v6 = vpop.f32.mrb[118].mxu0 }
 0x910   : > { %16932 = vst [vmem:[#allocation188_spill] sm:$0xff] %v13993_v6  ;;  %v13999_v55 = vpop.f32.mrb[119].mxu1  ;;  %v14001_v52 = vpop.f32.mrb[119].mxu0  ;;  %10195 = vmatpush3.bf16.msra.mxu0 %v11894_v31  ;;  %10307 = vmatpush3.bf16.msra.mxu1 %v11910_v42 }
 0x911   : > { %16933 = vst [vmem:[#allocation189_spill] sm:$0xff] %v14001_v52  ;;  %10404 = vmatprep.subr.bf16.mxu0 %v11911_v8 }
 0x912   : > { %6353 = vmatmul.mubr.bf16.gmra.mrb[224].mxu1 %v13157_v41  ;;  %11211 = vmatmul.mubr.bf16.gmra.mrb[224].mxu0 %v13171_v7 }
 0x913   : > { %11214 = vmatprep.mubr.bf16.mxu0 %v13181_v15  ;;  %6362 = vmatprep.mubr.bf16.mxu1 %v16788_v44 }
 0x915   : > { %v14011_v36 = vpop.f32.mrb[120].mxu1  ;;  %v14013_v54 = vpop.f32.mrb[120].mxu0 }
 0x916   : > { %16934 = vst [vmem:[#allocation190_spill] sm:$0xff] %v14011_v36  ;;  %16935 = vst [vmem:[#allocation191_spill] sm:$0xff] %v14013_v54  ;;  %v14015_v31 = vpop.f32.mrb[121].mxu1  ;;  %v14017_v42 = vpop.f32.mrb[121].mxu0  ;;  %v3757_v36 = vld [vmem:[#allocation5 + $0x8] sm:$0xff] }
 0x917   : > { %16936 = vst [vmem:[#allocation192_spill] sm:$0xff] %v14015_v31  ;;  %16937 = vst [vmem:[#allocation193_spill] sm:$0xff] %v14017_v42  ;;  %v14019_v23 = vpop.f32.mrb[122].mxu1  ;;  %v14021_v38 = vpop.f32.mrb[122].mxu0  ;;  %v16957_v31 = vpack.c.bf16 %v13298_v24, %v13286_v26 }
 0x918   : > { %16938 = vst [vmem:[#allocation194_spill] sm:$0xff] %v14019_v23  ;;  %16939 = vst [vmem:[#allocation195_spill] sm:$0xff] %v14021_v38  ;;  %v14027_v1 = vpop.f32.mrb[123].mxu1  ;;  %v14029_v6 = vpop.f32.mrb[123].mxu0 }
 0x919   : > { %16940 = vst [vmem:[#allocation196_spill] sm:$0xff] %v14027_v1  ;;  %16941 = vst [vmem:[#allocation197_spill] sm:$0xff] %v14029_v6  ;;  %v6698_v1 = vmul.bf16 %v16957_v31, %v3757_v36 }
 0x91a   : > { %6363 = vmatmul.mubr.bf16.gmra.mrb[228].mxu1 %v13155_v35  ;;  %11215 = vmatmul.mubr.bf16.gmra.mrb[228].mxu0 %v13179_v29 }
 0x91b   : > { %11218 = vmatprep.mubr.bf16.mxu0 %v13189_v25  ;;  %6372 = vmatprep.mubr.bf16.mxu1 %v16788_v44 }
 0x91d   : > { %v14039_v41 = vpop.f32.mrb[124].mxu1  ;;  %v14041_v8 = vpop.f32.mrb[124].mxu0 }
 0x91e   : > { %16942 = vst [vmem:[#allocation198_spill] sm:$0xff] %v14039_v41  ;;  %16943 = vst [vmem:[#allocation199_spill] sm:$0xff] %v14041_v8  ;;  %v14043_v54 = vpop.f32.mrb[125].mxu1  ;;  %v14045_v38 = vpop.f32.mrb[125].mxu0 }
 0x91f   : > { %16944 = vst [vmem:[#allocation200_spill] sm:$0xff] %v14043_v54  ;;  %16945 = vst [vmem:[#allocation201_spill] sm:$0xff] %v14045_v38  ;;  %v14047_v27 = vpop.f32.mrb[126].mxu1  ;;  %v14049_v12 = vpop.f32.mrb[126].mxu0  ;;  %v3756_v38 = vld [vmem:[#allocation5] sm:$0xff] }
 0x920   : > { %16946 = vst [vmem:[#allocation202_spill] sm:$0xff] %v14047_v27  ;;  %16947 = vst [vmem:[#allocation203_spill] sm:$0xff] %v14049_v12  ;;  %v14055_v42 = vpop.f32.mrb[127].mxu1  ;;  %v14057_v6 = vpop.f32.mrb[127].mxu0 }
 0x921   : > { %16948 = vst [vmem:[#allocation204_spill] sm:$0xff] %v14055_v42  ;;  %16949 = vst [vmem:[#allocation205_spill] sm:$0xff] %v14057_v6  ;;  %v3771_v42 = vld [vmem:[#allocation5 + $0x78] sm:$0xff] }
 0x922   : > { %6373 = vmatmul.mubr.bf16.gmra.mrb[232].mxu1 %v13165_v20  ;;  %11219 = vmatmul.mubr.bf16.gmra.mrb[232].mxu0 %v13187_v21 }
 0x923   : > { %11222 = vmatprep.mubr.bf16.mxu0 %v13197_v33  ;;  %6382 = vmatprep.mubr.bf16.mxu1 %v16788_v44 }
 0x925   : > { %v14067_v35 = vpop.f32.mrb[128].mxu1  ;;  %v14069_v52 = vpop.f32.mrb[128].mxu0 }
 0x926   : > { %16950 = vst [vmem:[#allocation206_spill] sm:$0xff] %v14067_v35  ;;  %16951 = vst [vmem:[#allocation207_spill] sm:$0xff] %v14069_v52  ;;  %v14071_v8 = vpop.f32.mrb[129].mxu1  ;;  %v14073_v12 = vpop.f32.mrb[129].mxu0  ;;  %v11912_v35 = vld [vmem:[#allocation6 + $0x100] sm:$0xff]  }
 0x927   : > { %16952 = vst [vmem:[#allocation208_spill] sm:$0xff] %v14071_v8  ;;  %16953 = vst [vmem:[#allocation209_spill] sm:$0xff] %v14073_v12  ;;  %v14075_v41 = vpop.f32.mrb[130].mxu1  ;;  %v14077_v23 = vpop.f32.mrb[130].mxu0  ;;  %v11915_v8 = vld [vmem:[#allocation6 + $0x150] sm:$0xff]  }
 0x928   : > { %16954 = vst [vmem:[#allocation210_spill] sm:$0xff] %v14075_v41  ;;  %16955 = vst [vmem:[#allocation211_spill] sm:$0xff] %v14077_v23  ;;  %v14083_v6 = vpop.f32.mrb[131].mxu1  ;;  %v14085_v27 = vpop.f32.mrb[131].mxu0  ;;  %v3770_v41 = vld [vmem:[#allocation5 + $0x70] sm:$0xff] }
 0x929   : > { %16956 = vst [vmem:[#allocation212_spill] sm:$0xff] %v14085_v27 }
 0x92a   : > { %6383 = vmatmul.mubr.bf16.gmra.mrb[236].mxu1 %v13163_v59  ;;  %11223 = vmatmul.mubr.bf16.gmra.mrb[236].mxu0 %v13195_v32  ;;  %v16962_v59 = vpack.c.bf16 %v13290_v13, %v13282_v9  ;;  %v16964_v9 = vpack.c.bf16 %v13326_v47, %v13314_v34  ;;  %v3785_v47 = vld [vmem:[#allocation5 + $0xe8] sm:$0xff] }
 0x92b   : > { %8074 = vmatprep.mubr.bf16.mxu0 %v6698_v1  ;;  %6392 = vmatprep.mubr.bf16.mxu1 %v16788_v44 }
 0x92c   : > { %v6697_v24 = vmul.bf16 %v16962_v59, %v3756_v38  ;;  %v6712_v13 = vmul.bf16 %v16964_v9, %v3771_v42  ;;  %v11913_v38 = vld [vmem:[#allocation6 + $0x148] sm:$0xff]  }
 0x92d   : > { %v14097_v20 = vpop.f32.mrb[132].mxu1  ;;  %v14099_v52 = vpop.f32.mrb[132].mxu0  ;;  %v11914_v59 = vld [vmem:[#allocation6 + $0x108] sm:$0xff]  }
 0x92e   : > { %16958 = vst [vmem:[#allocation213_spill] sm:$0xff] %v14097_v20  ;;  %16959 = vst [vmem:[#allocation214_spill] sm:$0xff] %v14099_v52  ;;  %v14101_v54 = vpop.f32.mrb[133].mxu1  ;;  %v14103_v23 = vpop.f32.mrb[133].mxu0 }
 0x92f   : > { %16960 = vst [vmem:[#allocation215_spill] sm:$0xff] %v14103_v23  ;;  %v14105_v12 = vpop.f32.mrb[134].mxu1  ;;  %v14107_v26 = vpop.f32.mrb[134].mxu0  ;;  %v11916_v23 = vld [vmem:[#allocation6 + $0x110] sm:$0xff]  }
 0x930   : > { %16961 = vst [vmem:[#allocation216_spill] sm:$0xff] %v14107_v26  ;;  %v14116_v31 = vpop.f32.mrb[135].mxu1  ;;  %v14118_v27 = vpop.f32.mrb[135].mxu0 }
 0x931   : > { %16963 = vst [vmem:[#allocation217_spill] sm:$0xff] %v14118_v27  ;;  %v11920_v27 = vld [vmem:[#allocation6 + $0x120] sm:$0xff]  }
 0x932   : > { %6393 = vmatmul.mubr.bf16.gmra.mrb[240].mxu1 %v13173_v10  ;;  %8075 = vmatmul.mubr.bf16.vlgmr.msra.gmra.mrb[240].mxu0 %v6697_v24 }
 0x933   : > { %8082 = vmatprep.mubr.bf16.mxu0 %v6712_v13  ;;  %6402 = vmatprep.mubr.bf16.mxu1 %v16788_v44 }
 0x934   : > { %10405 = vmatpush3.bf16.msra.mxu0 %v11912_v35  ;;  %v16970_v35 = vpack.c.bf16 %v13354_v57, %v13342_v48  ;;  %v3799_v57 = vld [vmem:[#allocation5 + $0x158] sm:$0xff] }
 0x935   : > { %v14129_v36 = vpop.f32.mrb[136].mxu1  ;;  %v14131_v1 = vpop.f32.mrb[136].mxu0  ;;  %10406 = vmatprep.subr.bf16.mxu0 %v11913_v38  ;;  %v16969_v38 = vpack.c.bf16 %v13318_v37, %v13310_v2  ;;  %v11918_v2 = vld [vmem:[#allocation6 + $0x118] sm:$0xff]  }
 0x936   : > { %16965 = vst [vmem:[#allocation218_spill] sm:$0xff] %v14131_v1  ;;  %v14133_v52 = vpop.f32.mrb[137].mxu1  ;;  %v14135_v34 = vpop.f32.mrb[137].mxu0  ;;  %v6726_v24 = vmul.bf16 %v16970_v35, %v3785_v47  ;;  %v11917_v1 = vld [vmem:[#allocation6 + $0x158] sm:$0xff]  }
 0x937   : > { %16966 = vst [vmem:[#allocation219_spill] sm:$0xff] %v14135_v34  ;;  %v14137_v42 = vpop.f32.mrb[138].mxu1  ;;  %v14139_v10 = vpop.f32.mrb[138].mxu0  ;;  %v6711_v26 = vmul.bf16 %v16969_v38, %v3770_v41  ;;  %v11919_v38 = vld [vmem:[#allocation6 + $0x160] sm:$0xff]  }
 0x938   : > { %16967 = vst [vmem:[#allocation220_spill] sm:$0xff] %v14139_v10  ;;  %v14145_v9 = vpop.f32.mrb[139].mxu1  ;;  %v14147_v13 = vpop.f32.mrb[139].mxu0  ;;  %10407 = vmatpush3.bf16.msra.mxu0 %v11914_v59  ;;  %v3784_v59 = vld [vmem:[#allocation5 + $0xe0] sm:$0xff]  ;;  %v11924_v10 = vld [vmem:[#allocation6 + $0x130] sm:$0xff]  }
 0x939   : > { %16968 = vst [vmem:[#allocation221_spill] sm:$0xff] %v14147_v13  ;;  %10408 = vmatprep.subr.bf16.mxu0 %v11915_v8 }
 0x93a   : > { %6403 = vmatmul.mubr.bf16.gmra.mrb[244].mxu1 %v13171_v7  ;;  %8083 = vmatmul.mubr.bf16.gmra.mrb[244].mxu0 %v6711_v26 }
 0x93b   : > { %8090 = vmatprep.mubr.bf16.mxu0 %v6726_v24  ;;  %6412 = vmatprep.mubr.bf16.mxu1 %v16788_v44 }
 0x93c   : > { %10409 = vmatpush3.bf16.msra.mxu0 %v11916_v23  ;;  %v16976_v23 = vpack.c.bf16 %v13382_v43, %v13370_v0  ;;  %v3813_v43 = vld [vmem:[#allocation5 + $0x1c8] sm:$0xff] }
 0x93d   : > { %v14161_v37 = vpop.f32.mrb[140].mxu1  ;;  %v14163_v41 = vpop.f32.mrb[140].mxu0  ;;  %10410 = vmatprep.subr.bf16.mxu0 %v11917_v1  ;;  %v16975_v1 = vpack.c.bf16 %v13346_v51, %v13338_v11  ;;  %v11922_v11 = vld [vmem:[#allocation6 + $0x128] sm:$0xff]  }
 0x93e   : > { %16971 = vst [vmem:[#allocation222_spill] sm:$0xff] %v14163_v41  ;;  %v14165_v20 = vpop.f32.mrb[141].mxu1  ;;  %v14167_v48 = vpop.f32.mrb[141].mxu0  ;;  %v6740_v26 = vmul.bf16 %v16976_v23, %v3799_v57  ;;  %v11921_v41 = vld [vmem:[#allocation6 + $0x168] sm:$0xff]  }
 0x93f   : > { %16972 = vst [vmem:[#allocation223_spill] sm:$0xff] %v14167_v48  ;;  %v14169_v8 = vpop.f32.mrb[142].mxu1  ;;  %v14171_v7 = vpop.f32.mrb[142].mxu0  ;;  %v6725_v24 = vmul.bf16 %v16975_v1, %v3784_v59  ;;  %v3798_v59 = vld [vmem:[#allocation5 + $0x150] sm:$0xff]  ;;  %v11927_v48 = vld [vmem:[#allocation6 + $0x1c0] sm:$0xff]  }
 0x940   : > { %16973 = vst [vmem:[#allocation224_spill] sm:$0xff] %v14171_v7  ;;  %v14177_v47 = vpop.f32.mrb[143].mxu1  ;;  %v14179_v35 = vpop.f32.mrb[143].mxu0  ;;  %10411 = vmatpush3.bf16.msra.mxu0 %v11918_v2  ;;  %v11923_v1 = vld [vmem:[#allocation6 + $0x170] sm:$0xff]   ;;  %10516 = vmatprep.subr.bf16.mxu1 %v11927_v48 }
 0x941   : > { %16974 = vst [vmem:[#allocation225_spill] sm:$0xff] %v14179_v35  ;;  %10412 = vmatprep.subr.bf16.mxu0 %v11919_v38 }
 0x942   : > { %6413 = vmatmul.mubr.bf16.gmra.mrb[248].mxu1 %v13181_v15  ;;  %8091 = vmatmul.mubr.bf16.gmra.mrb[248].mxu0 %v6725_v24 }
 0x943   : > { %8098 = vmatprep.mubr.bf16.mxu0 %v6740_v26  ;;  %6422 = vmatprep.mubr.bf16.mxu1 %v16788_v44 }
 0x944   : > { %10413 = vmatpush3.bf16.msra.mxu0 %v11920_v27  ;;  %v16982_v27 = vpack.c.bf16 %v13410_v56, %v13398_v45  ;;  %v3827_v56 = vld [vmem:[#allocation5 + $0x238] sm:$0xff] }
 0x945   : > { %v14193_v51 = vpop.f32.mrb[144].mxu1  ;;  %v14195_v2 = vpop.f32.mrb[144].mxu0  ;;  %10414 = vmatprep.subr.bf16.mxu0 %v11921_v41  ;;  %v16981_v41 = vpack.c.bf16 %v13374_v3, %v13366_v62  ;;  %v11926_v62 = vld [vmem:[#allocation6 + $0x138] sm:$0xff]   ;;  %v3812_v3 = vld [vmem:[#allocation5 + $0x1c0] sm:$0xff] }
 0x946   : > { %16977 = vst [vmem:[#allocation226_spill] sm:$0xff] %v14195_v2  ;;  %v14197_v34 = vpop.f32.mrb[145].mxu1  ;;  %v14199_v0 = vpop.f32.mrb[145].mxu0  ;;  %v6754_v57 = vmul.bf16 %v16982_v27, %v3813_v43  ;;  %v11925_v2 = vld [vmem:[#allocation6 + $0x178] sm:$0xff]   ;;  %v16986_v43 = vpack.c.bf16 %v13402_v30, %v13394_v40  ;;  %v16988_v30 = vpack.c.bf16 %v13438_v16, %v13426_v19 }
 0x947   : > { %16978 = vst [vmem:[#allocation227_spill] sm:$0xff] %v14199_v0  ;;  %v14201_v38 = vpop.f32.mrb[146].mxu1  ;;  %v14203_v15 = vpop.f32.mrb[146].mxu0  ;;  %v6739_v24 = vmul.bf16 %v16981_v41, %v3798_v59 }
 0x948   : > { %16979 = vst [vmem:[#allocation228_spill] sm:$0xff] %v14203_v15  ;;  %v14209_v23 = vpop.f32.mrb[147].mxu1  ;;  %v14211_v26 = vpop.f32.mrb[147].mxu0  ;;  %10415 = vmatpush3.bf16.msra.mxu0 %v11922_v11  ;;  %v6768_v40 = vmul.bf16 %v16988_v30, %v3827_v56  ;;  %v3841_v15 = vld [vmem:[#allocation5 + $0x2a8] sm:$0xff] }
 0x949   : > { %16980 = vst [vmem:[#allocation229_spill] sm:$0xff] %v14211_v26  ;;  %10416 = vmatprep.subr.bf16.mxu0 %v11923_v1  ;;  %v11929_v26 = vld [vmem:[#allocation6 + $0x1c8] sm:$0xff]  }
 0x94a   : > { %6423 = vmatmul.mubr.bf16.gmra.mrb[252].mxu1 %v13179_v29  ;;  %8099 = vmatmul.mubr.bf16.gmra.mrb[252].mxu0 %v6739_v24 }
 0x94b   : > { %8106 = vmatprep.mubr.bf16.mxu0 %v6754_v57  ;;  %6432 = vmatprep.mubr.bf16.mxu1 %v16788_v44 }
 0x94c   : > { %10417 = vmatpush3.bf16.msra.mxu0 %v11924_v10  ;;  %v6753_v10 = vmul.bf16 %v16986_v43, %v3812_v3  ;;  %v3826_v3 = vld [vmem:[#allocation5 + $0x230] sm:$0xff] }
 0x94d   : > { %v14225_v11 = vpop.f32.mrb[148].mxu1  ;;  %v14227_v59 = vpop.f32.mrb[148].mxu0  ;;  %10418 = vmatprep.subr.bf16.mxu0 %v11925_v2 }
 0x94e   : > { %16983 = vst [vmem:[#allocation230_spill] sm:$0xff] %v14227_v59  ;;  %v14229_v41 = vpop.f32.mrb[149].mxu1  ;;  %v14231_v45 = vpop.f32.mrb[149].mxu0  ;;  %v3855_v59 = vld [vmem:[#allocation5 + $0x318] sm:$0xff] }
 0x94f   : > { %16984 = vst [vmem:[#allocation231_spill] sm:$0xff] %v14231_v45  ;;  %v14233_v1 = vpop.f32.mrb[150].mxu1  ;;  %v14235_v29 = vpop.f32.mrb[150].mxu0  ;;  %v17021_v45 = vld [vmem:[#allocation62_spill] sm:$0xff] }
 0x950   : > { %16985 = vst [vmem:[#allocation232_spill] sm:$0xff] %v14235_v29  ;;  %v14244_v2 = vpop.f32.mrb[151].mxu1  ;;  %v14246_v24 = vpop.f32.mrb[151].mxu0  ;;  %10419 = vmatpush3.bf16.msra.mxu0 %v11926_v62 }
 0x951   : > { %16987 = vst [vmem:[#allocation233_spill] sm:$0xff] %v14246_v24  ;;  %v17022_v24 = vld [vmem:[#allocation58_spill] sm:$0xff] }
 0x952   : > { %6433 = vmatmul.mubr.bf16.gmra.mrb[0].mxu1 %v13189_v25  ;;  %8107 = vmatmul.mubr.bf16.gmra.mrb[0].mxu0 %v6753_v10  ;;  %v16995_v25 = vpack.c.bf16 %v13430_v39, %v13422_v61  ;;  %v16998_v39 = vpack.c.bf16 %v13467_v50, %v13455_v28 }
 0x953   : > { %8114 = vmatprep.mubr.bf16.mxu0 %v6768_v40  ;;  %6442 = vmatprep.mubr.bf16.mxu1 %v16788_v44 }
 0x954   : > { %v6767_v16 = vmul.bf16 %v16995_v25, %v3826_v3  ;;  %v6782_v61 = vmul.bf16 %v16998_v39, %v3841_v15  ;;  %v3840_v3 = vld [vmem:[#allocation5 + $0x2a0] sm:$0xff] }
 0x955   : > { %v14257_v62 = vpop.f32.mrb[152].mxu1  ;;  %v14259_v43 = vpop.f32.mrb[152].mxu0 }
 0x956   : > { %16989 = vst [vmem:[#allocation234_spill] sm:$0xff] %v14257_v62  ;;  %16990 = vst [vmem:[#allocation235_spill] sm:$0xff] %v14259_v43  ;;  %v14261_v57 = vpop.f32.mrb[153].mxu1  ;;  %v14263_v27 = vpop.f32.mrb[153].mxu0  ;;  %v17289_v62 = vld [vmem:[#allocation111_spill] sm:$0xff] }
 0x957   : > { %16991 = vst [vmem:[#allocation236_spill] sm:$0xff] %v14261_v57  ;;  %16992 = vst [vmem:[#allocation237_spill] sm:$0xff] %v14263_v27  ;;  %v14265_v7 = vpop.f32.mrb[154].mxu1  ;;  %v14267_v19 = vpop.f32.mrb[154].mxu0  ;;  %v3869_v27 = vld [vmem:[#allocation5 + $0x388] sm:$0xff] }
 0x958   : > { %16993 = vst [vmem:[#allocation238_spill] sm:$0xff] %v14265_v7  ;;  %16994 = vst [vmem:[#allocation239_spill] sm:$0xff] %v14267_v19  ;;  %v14276_v10 = vpop.f32.mrb[155].mxu1  ;;  %v14278_v30 = vpop.f32.mrb[155].mxu0  ;;  %v17290_v7 = vld [vmem:[#allocation107_spill] sm:$0xff] }
 0x959   : > { %16996 = vst [vmem:[#allocation240_spill] sm:$0xff] %v14276_v10  ;;  %16997 = vst [vmem:[#allocation241_spill] sm:$0xff] %v14278_v30  ;;  %v17008_v30 = vld [vmem:[#allocation51_spill] sm:$0xff]  ;;  %v17291_v57 = vpack.c.bf16 %v17289_v62, %v17290_v7  ;;  %v3969_v7 = vld [vmem:[#allocation5 + $0x6a8] sm:$0xff] }
 0x95a   : > { %6443 = vmatmul.mubr.bf16.gmra.mrb[4].mxu1 %v13187_v21  ;;  %8115 = vmatmul.mubr.bf16.gmra.mrb[4].mxu0 %v6767_v16  ;;  %v17005_v21 = vpack.c.bf16 %v13459_v46, %v13451_v60  ;;  %v17009_v46 = vpack.c.bf16 %v13495_v58, %v17008_v30 }
 0x95b   : > { %8122 = vmatprep.mubr.bf16.mxu0 %v6782_v61  ;;  %6452 = vmatprep.mubr.bf16.mxu1 %v16788_v44 }
 0x95c   : > { %v6781_v50 = vmul.bf16 %v17005_v21, %v3840_v3  ;;  %v6796_v60 = vmul.bf16 %v17009_v46, %v3855_v59  ;;  %v3854_v3 = vld [vmem:[#allocation5 + $0x310] sm:$0xff] }
 0x95d   : > { %v14289_v25 = vpop.f32.mrb[156].mxu1  ;;  %v14291_v56 = vpop.f32.mrb[156].mxu0  ;;  %v17017_v59 = vld [vmem:[#allocation49_spill] sm:$0xff] }
 0x95e   : > { %16999 = vst [vmem:[#allocation242_spill] sm:$0xff] %v14289_v25  ;;  %17000 = vst [vmem:[#allocation243_spill] sm:$0xff] %v14291_v56  ;;  %v14293_v48 = vpop.f32.mrb[157].mxu1  ;;  %v14295_v40 = vpop.f32.mrb[157].mxu0  ;;  %v3759_v56 = vld [vmem:[#allocation5 + $0x18] sm:$0xff]  ;;  %v3758_v46 = vld [vmem:[#allocation5 + $0x10] sm:$0xff] }
 0x95f   : > { %17001 = vst [vmem:[#allocation244_spill] sm:$0xff] %v14293_v48  ;;  %17002 = vst [vmem:[#allocation245_spill] sm:$0xff] %v14295_v40  ;;  %v14297_v43 = vpop.f32.mrb[158].mxu1  ;;  %v14299_v28 = vpop.f32.mrb[158].mxu0  ;;  %v17258_v25 = vld [vmem:[#allocation91_spill] sm:$0xff] }
 0x960   : > { %17003 = vst [vmem:[#allocation246_spill] sm:$0xff] %v14297_v43  ;;  %17004 = vst [vmem:[#allocation247_spill] sm:$0xff] %v14299_v28  ;;  %v14308_v39 = vpop.f32.mrb[159].mxu1  ;;  %v14310_v61 = vpop.f32.mrb[159].mxu0  ;;  %v17273_v48 = vld [vmem:[#allocation103_spill] sm:$0xff] }
 0x961   : > { %17006 = vst [vmem:[#allocation248_spill] sm:$0xff] %v14308_v39  ;;  %17007 = vst [vmem:[#allocation249_spill] sm:$0xff] %v14310_v61  ;;  %v17274_v39 = vld [vmem:[#allocation99_spill] sm:$0xff] }
 0x962   : > { %6453 = vmatmul.mubr.bf16.gmra.mrb[8].mxu1 %v13197_v33  ;;  %8123 = vmatmul.mubr.bf16.gmra.mrb[8].mxu0 %v6781_v50  ;;  %v17016_v33 = vld [vmem:[#allocation53_spill] sm:$0xff] }
 0x963   : > { %8130 = vmatprep.mubr.bf16.mxu0 %v6796_v60  ;;  %6462 = vmatprep.mubr.bf16.mxu1 %v16788_v44  ;;  %v17018_v30 = vpack.c.bf16 %v17016_v33, %v17017_v59  ;;  %v17023_v33 = vpack.c.bf16 %v17021_v45, %v17022_v24  ;;  %v17024_v59 = vld [vmem:[#allocation24_spill] sm:$0xff]  ;;  %v3883_v45 = vld [vmem:[#allocation5 + $0x3f8] sm:$0xff] }
 0x965   : > { %v14321_v21 = vpop.f32.mrb[160].mxu1  ;;  %v14323_v16 = vpop.f32.mrb[160].mxu0  ;;  %v6795_v50 = vmul.bf16 %v17018_v30, %v3854_v3  ;;  %v6810_v3 = vmul.bf16 %v17023_v33, %v3869_v27  ;;  %v17025_v30 = vld [vmem:[#allocation22_spill] sm:$0xff]  ;;  %v3773_v27 = vld [vmem:[#allocation5 + $0x88] sm:$0xff] }
 0x966   : > { %17010 = vst [vmem:[#allocation51_spill] sm:$0xff] %v14321_v21  ;;  %17011 = vst [vmem:[#allocation250_spill] sm:$0xff] %v14323_v16  ;;  %v14325_v15 = vpop.f32.mrb[161].mxu1  ;;  %v14327_v19 = vpop.f32.mrb[161].mxu0  ;;  %v17026_v44 = vpack.c.bf16 %v17024_v59, %v17025_v30  ;;  %v3868_v16 = vld [vmem:[#allocation5 + $0x380] sm:$0xff]  ;;  %v17036_v33 = vld [vmem:[#allocation60_spill] sm:$0xff] }
 0x967   : > { %17012 = vst [vmem:[#allocation251_spill] sm:$0xff] %v14325_v15  ;;  %17013 = vst [vmem:[#allocation252_spill] sm:$0xff] %v14327_v19  ;;  %v14329_v28 = vpop.f32.mrb[162].mxu1  ;;  %v14331_v58 = vpop.f32.mrb[162].mxu0  ;;  %v11928_v21 = vld [vmem:[#allocation6 + $0x180] sm:$0xff]  }
 0x968   : > { %17014 = vst [vmem:[#allocation253_spill] sm:$0xff] %v14329_v28  ;;  %17015 = vst [vmem:[#allocation254_spill] sm:$0xff] %v14331_v58  ;;  %v14340_v60 = vpop.f32.mrb[163].mxu1  ;;  %v14342_v40 = vpop.f32.mrb[163].mxu0  ;;  %v6700_v0 = vmul.bf16 %v17026_v44, %v3759_v56  ;;  %v3882_v28 = vld [vmem:[#allocation5 + $0x3f0] sm:$0xff] }
 0x969   : > { %17019 = vst [vmem:[#allocation53_spill] sm:$0xff] %v14340_v60  ;;  %17020 = vst [vmem:[#allocation49_spill] sm:$0xff] %v14342_v40  ;;  %v17257_v60 = vld [vmem:[#allocation95_spill] sm:$0xff] }
 0x96a   : > { %6463 = vmatmul.mubr.bf16.gmra.mrb[12].mxu1 %v13195_v32  ;;  %8131 = vmatmul.mubr.bf16.gmra.mrb[12].mxu0 %v6795_v50  ;;  %v17033_v32 = vld [vmem:[#allocation23_spill] sm:$0xff]  ;;  %v17034_v50 = vld [vmem:[#allocation21_spill] sm:$0xff] }
 0x96b   : > { %8138 = vmatprep.mubr.bf16.mxu0 %v6810_v3  ;;  %8235 = vmatprep.mubr.bf16.mxu1 %v6700_v0  ;;  %v17035_v44 = vpack.c.bf16 %v17033_v32, %v17034_v50  ;;  %v17037_v3 = vld [vmem:[#allocation56_spill] sm:$0xff]  ;;  %v17041_v32 = vld [vmem:[#allocation70_spill] sm:$0xff] }
 0x96c   : > { %v17038_v59 = vpack.c.bf16 %v17036_v33, %v17037_v3  ;;  %v17042_v50 = vld [vmem:[#allocation66_spill] sm:$0xff]  ;;  %v17044_v33 = vld [vmem:[#allocation28_spill] sm:$0xff] }
 0x96d   : > { %v14355_v58 = vpop.f32.mrb[164].mxu1  ;;  %v14357_v61 = vpop.f32.mrb[164].mxu0  ;;  %v6699_v0 = vmul.bf16 %v17035_v44, %v3758_v46  ;;  %v17045_v3 = vld [vmem:[#allocation26_spill] sm:$0xff] }
 0x96e   : > { %17027 = vst [vmem:[#allocation62_spill] sm:$0xff] %v14355_v58  ;;  %17028 = vst [vmem:[#allocation58_spill] sm:$0xff] %v14357_v61  ;;  %v14359_v29 = vpop.f32.mrb[165].mxu1  ;;  %v14361_v19 = vpop.f32.mrb[165].mxu0  ;;  %v6809_v30 = vmul.bf16 %v17038_v59, %v3868_v16  ;;  %v17043_v16 = vpack.c.bf16 %v17041_v32, %v17042_v50  ;;  %v17046_v59 = vpack.c.bf16 %v17044_v33, %v17045_v3  ;;  %v3772_v61 = vld [vmem:[#allocation5 + $0x80] sm:$0xff]  ;;  %v11931_v32 = vld [vmem:[#allocation6 + $0x1d0] sm:$0xff]  }
 0x96f   : > { %17029 = vst [vmem:[#allocation24_spill] sm:$0xff] %v14359_v29  ;;  %17030 = vst [vmem:[#allocation22_spill] sm:$0xff] %v14361_v19  ;;  %v14363_v24 = vpop.f32.mrb[166].mxu1  ;;  %v14365_v56 = vpop.f32.mrb[166].mxu0  ;;  %v17057_v19 = vld [vmem:[#allocation64_spill] sm:$0xff] }
 0x970   : > { %17031 = vst [vmem:[#allocation255_spill] sm:$0xff] %v14363_v24  ;;  %17032 = vst [vmem:[#allocation256_spill] sm:$0xff] %v14365_v56  ;;  %v14377_v35 = vpop.f32.mrb[167].mxu1  ;;  %v14379_v13 = vpop.f32.mrb[167].mxu0  ;;  %v6824_v44 = vmul.bf16 %v17043_v16, %v3883_v45  ;;  %v6714_v40 = vmul.bf16 %v17046_v59, %v3773_v27  ;;  %v11930_v56 = vld [vmem:[#allocation6 + $0x188] sm:$0xff]   ;;  %v3787_v16 = vld [vmem:[#allocation5 + $0xf8] sm:$0xff] }
 0x971   : > { %17039 = vst [vmem:[#allocation23_spill] sm:$0xff] %v14377_v35  ;;  %17040 = vst [vmem:[#allocation21_spill] sm:$0xff] %v14379_v13  ;;  %v3897_v27 = vld [vmem:[#allocation5 + $0x468] sm:$0xff]  ;;  %v17065_v24 = vld [vmem:[#allocation30_spill] sm:$0xff] }
 0x972   : > { %8139 = vmatmul.mubr.bf16.gmra.mrb[16].mxu0 %v6809_v30  ;;  %8236 = vmatmul.mubr.bf16.vlgmr.msra.gmra.mrb[16].mxu1 %v6699_v0  ;;  %v11943_v30 = vld [vmem:[#allocation6 + $0x240] sm:$0xff]   ;;  %v17056_v59 = vld [vmem:[#allocation68_spill] sm:$0xff] }
 0x973   : > { %8146 = vmatprep.mubr.bf16.mxu0 %v6824_v44  ;;  %8243 = vmatprep.mubr.bf16.mxu1 %v6714_v40  ;;  %v17051_v0 = vld [vmem:[#allocation27_spill] sm:$0xff]  ;;  %v17052_v44 = vld [vmem:[#allocation25_spill] sm:$0xff]  ;;  %v17058_v13 = vpack.c.bf16 %v17056_v59, %v17057_v19  ;;  %v17064_v59 = vld [vmem:[#allocation32_spill] sm:$0xff] }
 0x974   : > { %10517 = vmatpush3.bf16.msra.mxu1 %v11928_v21  ;;  %v17053_v40 = vpack.c.bf16 %v17051_v0, %v17052_v44  ;;  %10628 = vmatprep.subr.bf16.mxu0 %v11943_v30  ;;  %v17066_v29 = vpack.c.bf16 %v17064_v59, %v17065_v24  ;;  %v3786_v30 = vld [vmem:[#allocation5 + $0xf0] sm:$0xff]  ;;  %v3896_v0 = vld [vmem:[#allocation5 + $0x460] sm:$0xff] }
 0x975   : > { %v14391_v58 = vpop.f32.mrb[168].mxu1  ;;  %v14393_v46 = vpop.f32.mrb[168].mxu0  ;;  %10518 = vmatprep.subr.bf16.mxu1 %v11929_v26  ;;  %v6823_v26 = vmul.bf16 %v17058_v13, %v3882_v28  ;;  %v17061_v13 = vld [vmem:[#allocation78_spill] sm:$0xff] }
 0x976   : > { %17047 = vst [vmem:[#allocation60_spill] sm:$0xff] %v14391_v58  ;;  %17048 = vst [vmem:[#allocation56_spill] sm:$0xff] %v14393_v46  ;;  %v14395_v45 = vpop.f32.mrb[169].mxu1  ;;  %v14397_v50 = vpop.f32.mrb[169].mxu0  ;;  %v6713_v33 = vmul.bf16 %v17053_v40, %v3772_v61  ;;  %v11932_v61 = vld [vmem:[#allocation6 + $0x190] sm:$0xff]   ;;  %v17062_v28 = vld [vmem:[#allocation74_spill] sm:$0xff]  ;;  %v6728_v46 = vmul.bf16 %v17066_v29, %v3787_v16 }
 0x977   : > { %17049 = vst [vmem:[#allocation70_spill] sm:$0xff] %v14395_v45  ;;  %17050 = vst [vmem:[#allocation66_spill] sm:$0xff] %v14397_v50  ;;  %v14402_v21 = vpop.f32.mrb[170].mxu1  ;;  %v14404_v3 = vpop.f32.mrb[170].mxu0  ;;  %v17063_v44 = vpack.c.bf16 %v17061_v13, %v17062_v28  ;;  %v3911_v29 = vld [vmem:[#allocation5 + $0x4d8] sm:$0xff] }
 0x978   : > { %17054 = vst [vmem:[#allocation28_spill] sm:$0xff] %v14402_v21  ;;  %17055 = vst [vmem:[#allocation26_spill] sm:$0xff] %v14404_v3  ;;  %v14413_v35 = vpop.f32.mrb[171].mxu1  ;;  %v14415_v15 = vpop.f32.mrb[171].mxu0  ;;  %10519 = vmatpush3.bf16.msra.mxu1 %v11930_v56  ;;  %v11933_v3 = vld [vmem:[#allocation6 + $0x1d8] sm:$0xff]  }
 0x979   : > { %17059 = vst [vmem:[#allocation27_spill] sm:$0xff] %v14413_v35  ;;  %17060 = vst [vmem:[#allocation25_spill] sm:$0xff] %v14415_v15  ;;  %v6838_v40 = vmul.bf16 %v17063_v44, %v3897_v27  ;;  %10520 = vmatprep.subr.bf16.mxu1 %v11931_v32  ;;  %v11934_v56 = vld [vmem:[#allocation6 + $0x198] sm:$0xff]   ;;  %v11935_v27 = vld [vmem:[#allocation6 + $0x1e0] sm:$0xff]  }
 0x97a   : > { %8147 = vmatmul.mubr.bf16.gmra.mrb[20].mxu0 %v6823_v26  ;;  %8244 = vmatmul.mubr.bf16.gmra.mrb[20].mxu1 %v6713_v33  ;;  %v3801_v32 = vld [vmem:[#allocation5 + $0x168] sm:$0xff]  ;;  %v17074_v26 = vld [vmem:[#allocation29_spill] sm:$0xff]  ;;  %v11936_v35 = vld [vmem:[#allocation6 + $0x1a0] sm:$0xff]  }
 0x97b   : > { %8154 = vmatprep.mubr.bf16.mxu0 %v6838_v40  ;;  %8251 = vmatprep.mubr.bf16.mxu1 %v6728_v46  ;;  %v17073_v46 = vld [vmem:[#allocation31_spill] sm:$0xff]  ;;  %v17076_v44 = vld [vmem:[#allocation76_spill] sm:$0xff] }
 0x97c   : > { %10521 = vmatpush3.bf16.msra.mxu1 %v11932_v61  ;;  %v17075_v61 = vpack.c.bf16 %v17073_v46, %v17074_v26  ;;  %v17077_v40 = vld [vmem:[#allocation72_spill] sm:$0xff]  ;;  %v17081_v26 = vld [vmem:[#allocation86_spill] sm:$0xff]  ;;  %v3800_v46 = vld [vmem:[#allocation5 + $0x160] sm:$0xff] }
 0x97d   : > { %v14427_v58 = vpop.f32.mrb[172].mxu1  ;;  %v14429_v19 = vpop.f32.mrb[172].mxu0  ;;  %10522 = vmatprep.subr.bf16.mxu1 %v11933_v3  ;;  %v17078_v59 = vpack.c.bf16 %v17076_v44, %v17077_v40  ;;  %v17084_v40 = vld [vmem:[#allocation36_spill] sm:$0xff] }
 0x97e   : > { %17067 = vst [vmem:[#allocation68_spill] sm:$0xff] %v14427_v58  ;;  %17068 = vst [vmem:[#allocation64_spill] sm:$0xff] %v14429_v19  ;;  %v14431_v13 = vpop.f32.mrb[173].mxu1  ;;  %v14433_v24 = vpop.f32.mrb[173].mxu0  ;;  %v6727_v28 = vmul.bf16 %v17075_v61, %v3786_v30  ;;  %v11937_v19 = vld [vmem:[#allocation6 + $0x1e8] sm:$0xff]  }
 0x97f   : > { %17069 = vst [vmem:[#allocation78_spill] sm:$0xff] %v14431_v13  ;;  %17070 = vst [vmem:[#allocation74_spill] sm:$0xff] %v14433_v24  ;;  %v14435_v16 = vpop.f32.mrb[174].mxu1  ;;  %v14437_v33 = vpop.f32.mrb[174].mxu0  ;;  %v6837_v50 = vmul.bf16 %v17078_v59, %v3896_v0  ;;  %v17082_v0 = vld [vmem:[#allocation82_spill] sm:$0xff] }
 0x980   : > { %17071 = vst [vmem:[#allocation32_spill] sm:$0xff] %v14435_v16  ;;  %17072 = vst [vmem:[#allocation30_spill] sm:$0xff] %v14437_v33  ;;  %v14449_v21 = vpop.f32.mrb[175].mxu1  ;;  %v14451_v45 = vpop.f32.mrb[175].mxu0  ;;  %10523 = vmatpush3.bf16.msra.mxu1 %v11934_v56  ;;  %v17083_v61 = vpack.c.bf16 %v17081_v26, %v17082_v0  ;;  %v17085_v59 = vld [vmem:[#allocation34_spill] sm:$0xff]  ;;  %v11938_v56 = vld [vmem:[#allocation6 + $0x1a8] sm:$0xff]  }
 0x981   : > { %17079 = vst [vmem:[#allocation31_spill] sm:$0xff] %v14449_v21  ;;  %17080 = vst [vmem:[#allocation29_spill] sm:$0xff] %v14451_v45  ;;  %v17086_v3 = vpack.c.bf16 %v17084_v40, %v17085_v59  ;;  %10524 = vmatprep.subr.bf16.mxu1 %v11935_v27  ;;  %v3910_v33 = vld [vmem:[#allocation5 + $0x4d0] sm:$0xff]  ;;  %v3925_v27 = vld [vmem:[#allocation5 + $0x548] sm:$0xff] }
 0x982   : > { %v6852_v44 = vmul.bf16 %v17083_v61, %v3911_v29  ;;  %8155 = vmatmul.mubr.bf16.gmra.mrb[24].mxu0 %v6837_v50  ;;  %8252 = vmatmul.mubr.bf16.gmra.mrb[24].mxu1 %v6727_v28  ;;  %v11939_v29 = vld [vmem:[#allocation6 + $0x1f0] sm:$0xff]   ;;  %v17097_v40 = vld [vmem:[#allocation80_spill] sm:$0xff] }
 0x983   : > { %v6742_v15 = vmul.bf16 %v17086_v3, %v3801_v32  ;;  %v3815_v32 = vld [vmem:[#allocation5 + $0x1d8] sm:$0xff]  ;;  %v11940_v21 = vld [vmem:[#allocation6 + $0x1b0] sm:$0xff]  }
 0x984   : > { %8162 = vmatprep.mubr.bf16.mxu0 %v6852_v44  ;;  %10525 = vmatpush3.bf16.msra.mxu1 %v11936_v35  ;;  %v17093_v35 = vld [vmem:[#allocation35_spill] sm:$0xff]  ;;  %v17096_v44 = vld [vmem:[#allocation84_spill] sm:$0xff] }
 0x985   : > { %8259 = vmatprep.mubr.bf16.mxu1 %v6742_v15  ;;  %v14463_v58 = vpop.f32.mrb[176].mxu1  ;;  %v14465_v30 = vpop.f32.mrb[176].mxu0  ;;  %10526 = vmatprep.subr.bf16.mxu1 %v11937_v19  ;;  %v17094_v15 = vld [vmem:[#allocation33_spill] sm:$0xff]  ;;  %v17098_v59 = vpack.c.bf16 %v17096_v44, %v17097_v40  ;;  %v17104_v40 = vld [vmem:[#allocation40_spill] sm:$0xff] }
 0x986   : > { %17087 = vst [vmem:[#allocation76_spill] sm:$0xff] %v14463_v58  ;;  %17088 = vst [vmem:[#allocation72_spill] sm:$0xff] %v14465_v30  ;;  %v14467_v26 = vpop.f32.mrb[177].mxu1  ;;  %v14469_v0 = vpop.f32.mrb[177].mxu0  ;;  %v17095_v3 = vpack.c.bf16 %v17093_v35, %v17094_v15  ;;  %v17101_v15 = vld [vmem:[#allocation94_spill] sm:$0xff]  ;;  %v3814_v35 = vld [vmem:[#allocation5 + $0x1d0] sm:$0xff] }
 0x987   : > { %17089 = vst [vmem:[#allocation86_spill] sm:$0xff] %v14467_v26  ;;  %17090 = vst [vmem:[#allocation82_spill] sm:$0xff] %v14469_v0  ;;  %v14471_v50 = vpop.f32.mrb[178].mxu1  ;;  %v14473_v28 = vpop.f32.mrb[178].mxu0  ;;  %v6851_v24 = vmul.bf16 %v17098_v59, %v3910_v33  ;;  %v17102_v33 = vld [vmem:[#allocation90_spill] sm:$0xff]  ;;  %v3828_v0 = vld [vmem:[#allocation5 + $0x240] sm:$0xff] }
 0x988   : > { %17091 = vst [vmem:[#allocation36_spill] sm:$0xff] %v14471_v50  ;;  %17092 = vst [vmem:[#allocation34_spill] sm:$0xff] %v14473_v28  ;;  %v6741_v61 = vmul.bf16 %v17095_v3, %v3800_v46  ;;  %v14485_v16 = vpop.f32.mrb[179].mxu1  ;;  %v14487_v13 = vpop.f32.mrb[179].mxu0  ;;  %10527 = vmatpush3.bf16.msra.mxu1 %v11938_v56  ;;  %v17103_v3 = vpack.c.bf16 %v17101_v15, %v17102_v33  ;;  %v17105_v59 = vld [vmem:[#allocation38_spill] sm:$0xff]  ;;  %v3924_v28 = vld [vmem:[#allocation5 + $0x540] sm:$0xff] }
 0x989   : > { %17099 = vst [vmem:[#allocation35_spill] sm:$0xff] %v14485_v16  ;;  %17100 = vst [vmem:[#allocation33_spill] sm:$0xff] %v14487_v13  ;;  %v17106_v19 = vpack.c.bf16 %v17104_v40, %v17105_v59  ;;  %10528 = vmatprep.subr.bf16.mxu1 %v11939_v29  ;;  %v11941_v30 = vld [vmem:[#allocation6 + $0x1f8] sm:$0xff]   ;;  %v3829_v29 = vld [vmem:[#allocation5 + $0x248] sm:$0xff] }
 0x98a   : > { %v6866_v44 = vmul.bf16 %v17103_v3, %v3925_v27  ;;  %8163 = vmatmul.mubr.bf16.gmra.mrb[28].mxu0 %v6851_v24  ;;  %8260 = vmatmul.mubr.bf16.gmra.mrb[28].mxu1 %v6741_v61  ;;  %v11942_v56 = vld [vmem:[#allocation6 + $0x1b8] sm:$0xff]   ;;  %v17116_v3 = vld [vmem:[#allocation92_spill] sm:$0xff]  ;;  %v11948_v16 = vld [vmem:[#allocation6 + $0x210] sm:$0xff]  }
 0x98b   : > { %v6756_v45 = vmul.bf16 %v17106_v19, %v3815_v32  ;;  %v3939_v32 = vld [vmem:[#allocation5 + $0x5b8] sm:$0xff] }
 0x98c   : > { %8170 = vmatprep.mubr.bf16.mxu0 %v6866_v44  ;;  %10529 = vmatpush3.bf16.msra.mxu1 %v11940_v21  ;;  %v17114_v21 = vld [vmem:[#allocation37_spill] sm:$0xff]  ;;  %v17117_v44 = vld [vmem:[#allocation88_spill] sm:$0xff] }
 0x98d   : > { %8267 = vmatprep.mubr.bf16.mxu1 %v6756_v45  ;;  %v14499_v58 = vpop.f32.mrb[180].mxu1  ;;  %v14501_v46 = vpop.f32.mrb[180].mxu0  ;;  %10530 = vmatprep.subr.bf16.mxu1 %v11941_v30  ;;  %v17113_v45 = vld [vmem:[#allocation39_spill] sm:$0xff]  ;;  %v17118_v40 = vpack.c.bf16 %v17116_v3, %v17117_v44  ;;  %v17124_v3 = vld [vmem:[#allocation44_spill] sm:$0xff]  ;;  %v17125_v44 = vld [vmem:[#allocation42_spill] sm:$0xff] }
 0x98e   : > { %17107 = vst [vmem:[#allocation84_spill] sm:$0xff] %v14499_v58  ;;  %17108 = vst [vmem:[#allocation80_spill] sm:$0xff] %v14501_v46  ;;  %v14503_v27 = vpop.f32.mrb[181].mxu1  ;;  %v14505_v15 = vpop.f32.mrb[181].mxu0  ;;  %v17115_v61 = vpack.c.bf16 %v17113_v45, %v17114_v21  ;;  %v17121_v45 = vld [vmem:[#allocation102_spill] sm:$0xff] }
 0x98f   : > { %17109 = vst [vmem:[#allocation94_spill] sm:$0xff] %v14503_v27  ;;  %17110 = vst [vmem:[#allocation90_spill] sm:$0xff] %v14505_v15  ;;  %v14507_v19 = vpop.f32.mrb[182].mxu1  ;;  %v14509_v24 = vpop.f32.mrb[182].mxu0  ;;  %v6865_v59 = vmul.bf16 %v17118_v40, %v3924_v28  ;;  %v17122_v21 = vld [vmem:[#allocation98_spill] sm:$0xff]  ;;  %v17126_v40 = vpack.c.bf16 %v17124_v3, %v17125_v44  ;;  %v17137_v3 = vld [vmem:[#allocation96_spill] sm:$0xff] }
 0x990   : > { %17111 = vst [vmem:[#allocation40_spill] sm:$0xff] %v14507_v19  ;;  %17112 = vst [vmem:[#allocation38_spill] sm:$0xff] %v14509_v24  ;;  %v6755_v33 = vmul.bf16 %v17115_v61, %v3814_v35  ;;  %v14521_v13 = vpop.f32.mrb[183].mxu1  ;;  %v14523_v50 = vpop.f32.mrb[183].mxu0  ;;  %10531 = vmatpush3.bf16.msra.mxu1 %v11942_v56  ;;  %v17123_v28 = vpack.c.bf16 %v17121_v45, %v17122_v21  ;;  %v3938_v56 = vld [vmem:[#allocation5 + $0x5b0] sm:$0xff]  ;;  %v3953_v45 = vld [vmem:[#allocation5 + $0x628] sm:$0xff] }
 0x991   : > { %17119 = vst [vmem:[#allocation39_spill] sm:$0xff] %v14521_v13  ;;  %17120 = vst [vmem:[#allocation37_spill] sm:$0xff] %v14523_v50  ;;  %v6770_v30 = vmul.bf16 %v17126_v40, %v3829_v29  ;;  %v17133_v29 = vld [vmem:[#allocation43_spill] sm:$0xff]  ;;  %v3842_v50 = vld [vmem:[#allocation5 + $0x2b0] sm:$0xff] }
 0x992   : > { %v6880_v61 = vmul.bf16 %v17123_v28, %v3939_v32  ;;  %8171 = vmatmul.mubr.bf16.gmra.mrb[32].mxu0 %v6865_v59  ;;  %8268 = vmatmul.mubr.bf16.gmra.mrb[32].mxu1 %v6755_v33  ;;  %v3843_v32 = vld [vmem:[#allocation5 + $0x2b8] sm:$0xff]  ;;  %v17134_v33 = vld [vmem:[#allocation41_spill] sm:$0xff] }
 0x993   : > { %8275 = vmatprep.mubr.bf16.mxu1 %v6770_v30  ;;  %v17135_v59 = vpack.c.bf16 %v17133_v29, %v17134_v33  ;;  %v17141_v29 = vld [vmem:[#allocation110_spill] sm:$0xff]  ;;  %v3774_v13 = vld [vmem:[#allocation5 + $0x90] sm:$0xff] }
 0x994   : > { %8178 = vmatprep.mubr.bf16.mxu0 %v6880_v61  ;;  %v17136_v61 = vld [vmem:[#allocation100_spill] sm:$0xff]  ;;  %v17142_v33 = vld [vmem:[#allocation106_spill] sm:$0xff] }
 0x995   : > { %v14535_v46 = vpop.f32.mrb[184].mxu1  ;;  %v14537_v26 = vpop.f32.mrb[184].mxu0  ;;  %v6769_v30 = vmul.bf16 %v17135_v59, %v3828_v0  ;;  %v17138_v44 = vpack.c.bf16 %v17136_v61, %v17137_v3  ;;  %v17143_v59 = vpack.c.bf16 %v17141_v29, %v17142_v33  ;;  %v17144_v61 = vld [vmem:[#allocation48_spill] sm:$0xff]  ;;  %v17145_v3 = vld [vmem:[#allocation46_spill] sm:$0xff] }
 0x996   : > { %17127 = vst [vmem:[#allocation92_spill] sm:$0xff] %v14535_v46  ;;  %17128 = vst [vmem:[#allocation88_spill] sm:$0xff] %v14537_v26  ;;  %v14539_v24 = vpop.f32.mrb[185].mxu1  ;;  %v14541_v35 = vpop.f32.mrb[185].mxu0  ;;  %v3952_v26 = vld [vmem:[#allocation5 + $0x620] sm:$0xff]  ;;  %v3967_v29 = vld [vmem:[#allocation5 + $0x698] sm:$0xff] }
 0x997   : > { %17129 = vst [vmem:[#allocation102_spill] sm:$0xff] %v14539_v24  ;;  %17130 = vst [vmem:[#allocation98_spill] sm:$0xff] %v14541_v35  ;;  %v14543_v21 = vpop.f32.mrb[186].mxu1  ;;  %v14545_v28 = vpop.f32.mrb[186].mxu0  ;;  %v6879_v40 = vmul.bf16 %v17138_v44, %v3938_v56  ;;  %v6894_v56 = vmul.bf16 %v17143_v59, %v3953_v45  ;;  %v17146_v44 = vpack.c.bf16 %v17144_v61, %v17145_v3  ;;  %v3857_v45 = vld [vmem:[#allocation5 + $0x328] sm:$0xff] }
 0x998   : > { %17131 = vst [vmem:[#allocation44_spill] sm:$0xff] %v14543_v21  ;;  %17132 = vst [vmem:[#allocation42_spill] sm:$0xff] %v14545_v28  ;;  %v14557_v58 = vpop.f32.mrb[187].mxu1  ;;  %v14559_v19 = vpop.f32.mrb[187].mxu0  ;;  %v17157_v61 = vld [vmem:[#allocation104_spill] sm:$0xff] }
 0x999   : > { %17139 = vst [vmem:[#allocation43_spill] sm:$0xff] %v14557_v58  ;;  %17140 = vst [vmem:[#allocation41_spill] sm:$0xff] %v14559_v19  ;;  %v6784_v15 = vmul.bf16 %v17146_v44, %v3843_v32  ;;  %v17153_v32 = vld [vmem:[#allocation47_spill] sm:$0xff] }
 0x99a   : > { %8179 = vmatmul.mubr.bf16.gmra.mrb[36].mxu0 %v6879_v40  ;;  %8276 = vmatmul.mubr.bf16.gmra.mrb[36].mxu1 %v6769_v30  ;;  %v17154_v30 = vld [vmem:[#allocation45_spill] sm:$0xff]  ;;  %v3856_v19 = vld [vmem:[#allocation5 + $0x320] sm:$0xff] }
 0x99b   : > { %8186 = vmatprep.mubr.bf16.mxu0 %v6894_v56  ;;  %8283 = vmatprep.mubr.bf16.mxu1 %v6784_v15  ;;  %v17155_v40 = vpack.c.bf16 %v17153_v32, %v17154_v30  ;;  %v17156_v56 = vld [vmem:[#allocation108_spill] sm:$0xff]  ;;  %v17161_v32 = vld [vmem:[#allocation118_spill] sm:$0xff] }
 0x99c   : > { %v17158_v3 = vpack.c.bf16 %v17156_v56, %v17157_v61  ;;  %v17162_v30 = vld [vmem:[#allocation114_spill] sm:$0xff]  ;;  %v17164_v56 = vld [vmem:[#allocation55_spill] sm:$0xff]  ;;  %v17165_v61 = vld [vmem:[#allocation52_spill] sm:$0xff] }
 0x99d   : > { %v14571_v28 = vpop.f32.mrb[188].mxu1  ;;  %v14573_v27 = vpop.f32.mrb[188].mxu0  ;;  %v6783_v15 = vmul.bf16 %v17155_v40, %v3842_v50  ;;  %v17163_v40 = vpack.c.bf16 %v17161_v32, %v17162_v30  ;;  %v3871_v32 = vld [vmem:[#allocation5 + $0x398] sm:$0xff] }
 0x99e   : > { %17147 = vst [vmem:[#allocation100_spill] sm:$0xff] %v14571_v28  ;;  %17148 = vst [vmem:[#allocation96_spill] sm:$0xff] %v14573_v27  ;;  %v14575_v46 = vpop.f32.mrb[189].mxu1  ;;  %v14577_v0 = vpop.f32.mrb[189].mxu0  ;;  %v6893_v44 = vmul.bf16 %v17158_v3, %v3952_v26  ;;  %v17166_v3 = vpack.c.bf16 %v17164_v56, %v17165_v61  ;;  %v3966_v27 = vld [vmem:[#allocation5 + $0x690] sm:$0xff]  ;;  %v17177_v56 = vld [vmem:[#allocation112_spill] sm:$0xff] }
 0x99f   : > { %17149 = vst [vmem:[#allocation110_spill] sm:$0xff] %v14575_v46  ;;  %17150 = vst [vmem:[#allocation106_spill] sm:$0xff] %v14577_v0  ;;  %v14579_v33 = vpop.f32.mrb[190].mxu1  ;;  %v14581_v59 = vpop.f32.mrb[190].mxu0  ;;  %v6908_v26 = vmul.bf16 %v17163_v40, %v3967_v29  ;;  %v3761_v29 = vld [vmem:[#allocation5 + $0x28] sm:$0xff] }
 0x9a0   : > { %17151 = vst [vmem:[#allocation48_spill] sm:$0xff] %v14579_v33  ;;  %17152 = vst [vmem:[#allocation46_spill] sm:$0xff] %v14581_v59  ;;  %v14593_v21 = vpop.f32.mrb[191].mxu1  ;;  %v14595_v24 = vpop.f32.mrb[191].mxu0  ;;  %v6798_v35 = vmul.bf16 %v17166_v3, %v3857_v45  ;;  %v17173_v45 = vld [vmem:[#allocation54_spill] sm:$0xff] }
 0x9a1   : > { %17159 = vst [vmem:[#allocation47_spill] sm:$0xff] %v14593_v21  ;;  %17160 = vst [vmem:[#allocation45_spill] sm:$0xff] %v14595_v24  ;;  %v3870_v24 = vld [vmem:[#allocation5 + $0x390] sm:$0xff] }
 0x9a2   : > { %8187 = vmatmul.mubr.bf16.gmra.mrb[40].mxu0 %v6893_v44  ;;  %8284 = vmatmul.mubr.bf16.gmra.mrb[40].mxu1 %v6783_v15  ;;  %v17174_v15 = vld [vmem:[#allocation50_spill] sm:$0xff] }
 0x9a3   : > { %8194 = vmatprep.mubr.bf16.mxu0 %v6908_v26  ;;  %8291 = vmatprep.mubr.bf16.mxu1 %v6798_v35  ;;  %v17175_v44 = vpack.c.bf16 %v17173_v45, %v17174_v15  ;;  %v17176_v26 = vld [vmem:[#allocation116_spill] sm:$0xff]  ;;  %v17181_v45 = vld [vmem:[#allocation63_spill] sm:$0xff] }
 0x9a4   : > { %v17178_v61 = vpack.c.bf16 %v17176_v26, %v17177_v56  ;;  %v17182_v15 = vld [vmem:[#allocation59_spill] sm:$0xff]  ;;  %v17184_v26 = vld [vmem:[#allocation126_spill] sm:$0xff] }
 0x9a5   : > { %v14607_v59 = vpop.f32.mrb[192].mxu1  ;;  %v14609_v58 = vpop.f32.mrb[192].mxu0  ;;  %v6797_v35 = vmul.bf16 %v17175_v44, %v3856_v19  ;;  %v17183_v44 = vpack.c.bf16 %v17181_v45, %v17182_v15  ;;  %v17185_v56 = vld [vmem:[#allocation122_spill] sm:$0xff]  ;;  %v3885_v45 = vld [vmem:[#allocation5 + $0x408] sm:$0xff] }
 0x9a6   : > { %17167 = vst [vmem:[#allocation108_spill] sm:$0xff] %v14607_v59  ;;  %17168 = vst [vmem:[#allocation104_spill] sm:$0xff] %v14609_v58  ;;  %v14611_v28 = vpop.f32.mrb[193].mxu1  ;;  %v14613_v50 = vpop.f32.mrb[193].mxu0  ;;  %v6907_v3 = vmul.bf16 %v17178_v61, %v3966_v27  ;;  %v17186_v61 = vpack.c.bf16 %v17184_v26, %v17185_v56  ;;  %v3760_v58 = vld [vmem:[#allocation5 + $0x20] sm:$0xff]  ;;  %v17197_v26 = vld [vmem:[#allocation120_spill] sm:$0xff] }
 0x9a7   : > { %17169 = vst [vmem:[#allocation118_spill] sm:$0xff] %v14611_v28  ;;  %17170 = vst [vmem:[#allocation114_spill] sm:$0xff] %v14613_v50  ;;  %v14615_v30 = vpop.f32.mrb[194].mxu1  ;;  %v14617_v40 = vpop.f32.mrb[194].mxu0  ;;  %v6812_v27 = vmul.bf16 %v17183_v44, %v3871_v32  ;;  %v3775_v32 = vld [vmem:[#allocation5 + $0x98] sm:$0xff] }
 0x9a8   : > { %17171 = vst [vmem:[#allocation55_spill] sm:$0xff] %v14615_v30  ;;  %17172 = vst [vmem:[#allocation52_spill] sm:$0xff] %v14617_v40  ;;  %v14629_v33 = vpop.f32.mrb[195].mxu1  ;;  %v14631_v46 = vpop.f32.mrb[195].mxu0  ;;  %v6702_v0 = vmul.bf16 %v17186_v61, %v3761_v29  ;;  %v17193_v29 = vld [vmem:[#allocation61_spill] sm:$0xff] }
 0x9a9   : > { %17179 = vst [vmem:[#allocation54_spill] sm:$0xff] %v14629_v33  ;;  %17180 = vst [vmem:[#allocation50_spill] sm:$0xff] %v14631_v46  ;;  %v11944_v33 = vld [vmem:[#allocation6 + $0x200] sm:$0xff]   ;;  %v11945_v46 = vld [vmem:[#allocation6 + $0x248] sm:$0xff]  }
 0x9aa   : > { %8195 = vmatmul.mubr.bf16.gmra.mrb[44].mxu0 %v6907_v3  ;;  %8292 = vmatmul.mubr.bf16.gmra.mrb[44].mxu1 %v6797_v35  ;;  %v17194_v35 = vld [vmem:[#allocation57_spill] sm:$0xff] }
 0x9ab   : > { %8299 = vmatprep.mubr.bf16.mxu1 %v6812_v27  ;;  %8396 = vmatprep.mubr.bf16.mxu0 %v6702_v0  ;;  %v17195_v3 = vpack.c.bf16 %v17193_v29, %v17194_v35  ;;  %v17196_v27 = vld [vmem:[#allocation124_spill] sm:$0xff]  ;;  %v17201_v29 = vld [vmem:[#allocation71_spill] sm:$0xff] }
 0x9ac   : > { %v17198_v56 = vpack.c.bf16 %v17196_v27, %v17197_v26  ;;  %v17202_v35 = vld [vmem:[#allocation67_spill] sm:$0xff]  ;;  %v17204_v27 = vld [vmem:[#allocation134_spill] sm:$0xff] }
 0x9ad   : > { %v14643_v40 = vpop.f32.mrb[196].mxu1  ;;  %v14645_v21 = vpop.f32.mrb[196].mxu0  ;;  %v6811_v0 = vmul.bf16 %v17195_v3, %v3870_v24  ;;  %v17205_v26 = vld [vmem:[#allocation130_spill] sm:$0xff] }
 0x9ae   : > { %17187 = vst [vmem:[#allocation116_spill] sm:$0xff] %v14643_v40  ;;  %17188 = vst [vmem:[#allocation112_spill] sm:$0xff] %v14645_v21  ;;  %v14647_v59 = vpop.f32.mrb[197].mxu1  ;;  %v14649_v19 = vpop.f32.mrb[197].mxu0  ;;  %v6701_v61 = vmul.bf16 %v17198_v56, %v3760_v58  ;;  %v17203_v58 = vpack.c.bf16 %v17201_v29, %v17202_v35  ;;  %v17206_v56 = vpack.c.bf16 %v17204_v27, %v17205_v26  ;;  %v11946_v21 = vld [vmem:[#allocation6 + $0x208] sm:$0xff]   ;;  %v11947_v29 = vld [vmem:[#allocation6 + $0x250] sm:$0xff]  }
 0x9af   : > { %17189 = vst [vmem:[#allocation63_spill] sm:$0xff] %v14647_v59  ;;  %17190 = vst [vmem:[#allocation59_spill] sm:$0xff] %v14649_v19  ;;  %v14651_v15 = vpop.f32.mrb[198].mxu1  ;;  %v14653_v44 = vpop.f32.mrb[198].mxu0  ;;  %v17216_v26 = vld [vmem:[#allocation132_spill] sm:$0xff] }
 0x9b0   : > { %17191 = vst [vmem:[#allocation126_spill] sm:$0xff] %v14651_v15  ;;  %17192 = vst [vmem:[#allocation122_spill] sm:$0xff] %v14653_v44  ;;  %v14665_v30 = vpop.f32.mrb[199].mxu1  ;;  %v14667_v28 = vpop.f32.mrb[199].mxu0  ;;  %v6826_v3 = vmul.bf16 %v17203_v58, %v3885_v45  ;;  %v6716_v50 = vmul.bf16 %v17206_v56, %v3775_v32  ;;  %v3884_v44 = vld [vmem:[#allocation5 + $0x400] sm:$0xff]  ;;  %v3899_v32 = vld [vmem:[#allocation5 + $0x478] sm:$0xff] }
 0x9b1   : > { %17199 = vst [vmem:[#allocation61_spill] sm:$0xff] %v14665_v30  ;;  %17200 = vst [vmem:[#allocation57_spill] sm:$0xff] %v14667_v28  ;;  %v3789_v58 = vld [vmem:[#allocation5 + $0x108] sm:$0xff] }
 0x9b2   : > { %8300 = vmatmul.mubr.bf16.gmra.mrb[48].mxu1 %v6811_v0  ;;  %8397 = vmatmul.mubr.bf16.vlgmr.msra.gmra.mrb[48].mxu0 %v6701_v61  ;;  %v17217_v56 = vld [vmem:[#allocation128_spill] sm:$0xff] }
 0x9b3   : > { %8307 = vmatprep.mubr.bf16.mxu1 %v6826_v3  ;;  %8404 = vmatprep.mubr.bf16.mxu0 %v6716_v50  ;;  %v17214_v50 = vld [vmem:[#allocation65_spill] sm:$0xff]  ;;  %v17218_v19 = vpack.c.bf16 %v17216_v26, %v17217_v56  ;;  %v17224_v26 = vld [vmem:[#allocation142_spill] sm:$0xff] }
 0x9b4   : > { %10629 = vmatpush3.bf16.msra.mxu0 %v11944_v33  ;;  %v17213_v33 = vld [vmem:[#allocation69_spill] sm:$0xff]  ;;  %v17225_v56 = vld [vmem:[#allocation138_spill] sm:$0xff] }
 0x9b5   : > { %v14679_v40 = vpop.f32.mrb[200].mxu1  ;;  %v14681_v24 = vpop.f32.mrb[200].mxu0  ;;  %10630 = vmatprep.subr.bf16.mxu0 %v11945_v46  ;;  %v17215_v3 = vpack.c.bf16 %v17213_v33, %v17214_v50  ;;  %v6715_v28 = vmul.bf16 %v17218_v19, %v3774_v13  ;;  %v17221_v50 = vld [vmem:[#allocation79_spill] sm:$0xff]  ;;  %v17226_v46 = vpack.c.bf16 %v17224_v26, %v17225_v56  ;;  %v3898_v33 = vld [vmem:[#allocation5 + $0x470] sm:$0xff]  ;;  %v17237_v26 = vld [vmem:[#allocation136_spill] sm:$0xff] }
 0x9b6   : > { %17207 = vst [vmem:[#allocation124_spill] sm:$0xff] %v14679_v40  ;;  %17208 = vst [vmem:[#allocation120_spill] sm:$0xff] %v14681_v24  ;;  %v14683_v45 = vpop.f32.mrb[201].mxu1  ;;  %v14685_v35 = vpop.f32.mrb[201].mxu0  ;;  %v17222_v13 = vld [vmem:[#allocation75_spill] sm:$0xff]  ;;  %v11949_v24 = vld [vmem:[#allocation6 + $0x258] sm:$0xff]  }
 0x9b7   : > { %17209 = vst [vmem:[#allocation71_spill] sm:$0xff] %v14683_v45  ;;  %17210 = vst [vmem:[#allocation67_spill] sm:$0xff] %v14685_v35  ;;  %v14687_v0 = vpop.f32.mrb[202].mxu1  ;;  %v14689_v61 = vpop.f32.mrb[202].mxu0  ;;  %v6825_v27 = vmul.bf16 %v17215_v3, %v3884_v44  ;;  %v17223_v19 = vpack.c.bf16 %v17221_v50, %v17222_v13  ;;  %v6730_v15 = vmul.bf16 %v17226_v46, %v3789_v58  ;;  %v3803_v58 = vld [vmem:[#allocation5 + $0x178] sm:$0xff] }
 0x9b8   : > { %17211 = vst [vmem:[#allocation134_spill] sm:$0xff] %v14687_v0  ;;  %17212 = vst [vmem:[#allocation130_spill] sm:$0xff] %v14689_v61  ;;  %v14701_v59 = vpop.f32.mrb[203].mxu1  ;;  %v14703_v30 = vpop.f32.mrb[203].mxu0  ;;  %10631 = vmatpush3.bf16.msra.mxu0 %v11946_v21  ;;  %v11950_v21 = vld [vmem:[#allocation6 + $0x218] sm:$0xff]   ;;  %v3788_v61 = vld [vmem:[#allocation5 + $0x100] sm:$0xff] }
 0x9b9   : > { %17219 = vst [vmem:[#allocation69_spill] sm:$0xff] %v14701_v59  ;;  %17220 = vst [vmem:[#allocation65_spill] sm:$0xff] %v14703_v30  ;;  %v6840_v3 = vmul.bf16 %v17223_v19, %v3899_v32  ;;  %10632 = vmatprep.subr.bf16.mxu0 %v11947_v29  ;;  %v11951_v32 = vld [vmem:[#allocation6 + $0x260] sm:$0xff]   ;;  %v3913_v29 = vld [vmem:[#allocation5 + $0x4e8] sm:$0xff] }
 0x9ba   : > { %8308 = vmatmul.mubr.bf16.gmra.mrb[52].mxu1 %v6825_v27  ;;  %8405 = vmatmul.mubr.bf16.gmra.mrb[52].mxu0 %v6715_v28  ;;  %v11952_v59 = vld [vmem:[#allocation6 + $0x220] sm:$0xff]  }
 0x9bb   : > { %8315 = vmatprep.mubr.bf16.mxu1 %v6840_v3  ;;  %8412 = vmatprep.mubr.bf16.mxu0 %v6730_v15  ;;  %v17234_v15 = vld [vmem:[#allocation73_spill] sm:$0xff]  ;;  %v17236_v3 = vld [vmem:[#allocation140_spill] sm:$0xff] }
 0x9bc   : > { %10633 = vmatpush3.bf16.msra.mxu0 %v11948_v16  ;;  %v17233_v16 = vld [vmem:[#allocation77_spill] sm:$0xff]  ;;  %v17238_v56 = vpack.c.bf16 %v17236_v3, %v17237_v26  ;;  %v17244_v26 = vld [vmem:[#allocation150_spill] sm:$0xff] }
 0x9bd   : > { %v14715_v40 = vpop.f32.mrb[204].mxu1  ;;  %v14717_v44 = vpop.f32.mrb[204].mxu0  ;;  %10634 = vmatprep.subr.bf16.mxu0 %v11949_v24  ;;  %v17235_v46 = vpack.c.bf16 %v17233_v16, %v17234_v15  ;;  %v17241_v15 = vld [vmem:[#allocation87_spill] sm:$0xff] }
 0x9be   : > { %17227 = vst [vmem:[#allocation132_spill] sm:$0xff] %v14715_v40  ;;  %17228 = vst [vmem:[#allocation128_spill] sm:$0xff] %v14717_v44  ;;  %v14719_v50 = vpop.f32.mrb[205].mxu1  ;;  %v14721_v13 = vpop.f32.mrb[205].mxu0  ;;  %v6729_v35 = vmul.bf16 %v17238_v56, %v3788_v61  ;;  %v17242_v61 = vld [vmem:[#allocation83_spill] sm:$0xff]  ;;  %v17245_v56 = vld [vmem:[#allocation146_spill] sm:$0xff] }
 0x9bf   : > { %17229 = vst [vmem:[#allocation79_spill] sm:$0xff] %v14719_v50  ;;  %17230 = vst [vmem:[#allocation75_spill] sm:$0xff] %v14721_v13  ;;  %v14723_v27 = vpop.f32.mrb[206].mxu1  ;;  %v14725_v28 = vpop.f32.mrb[206].mxu0  ;;  %v6839_v19 = vmul.bf16 %v17235_v46, %v3898_v33  ;;  %v17243_v46 = vpack.c.bf16 %v17241_v15, %v17242_v61  ;;  %v17246_v24 = vpack.c.bf16 %v17244_v26, %v17245_v56  ;;  %v11953_v44 = vld [vmem:[#allocation6 + $0x268] sm:$0xff]   ;;  %v3912_v16 = vld [vmem:[#allocation5 + $0x4e0] sm:$0xff] }
 0x9c0   : > { %17231 = vst [vmem:[#allocation142_spill] sm:$0xff] %v14723_v27  ;;  %17232 = vst [vmem:[#allocation138_spill] sm:$0xff] %v14725_v28  ;;  %v14737_v0 = vpop.f32.mrb[207].mxu1  ;;  %v14739_v45 = vpop.f32.mrb[207].mxu0  ;;  %10635 = vmatpush3.bf16.msra.mxu0 %v11950_v21  ;;  %v11954_v21 = vld [vmem:[#allocation6 + $0x228] sm:$0xff]   ;;  %v3802_v28 = vld [vmem:[#allocation5 + $0x170] sm:$0xff] }
 0x9c1   : > { %17239 = vst [vmem:[#allocation77_spill] sm:$0xff] %v14737_v0  ;;  %17240 = vst [vmem:[#allocation73_spill] sm:$0xff] %v14739_v45  ;;  %v6854_v3 = vmul.bf16 %v17243_v46, %v3913_v29  ;;  %v6744_v30 = vmul.bf16 %v17246_v24, %v3803_v58  ;;  %10636 = vmatprep.subr.bf16.mxu0 %v11951_v32  ;;  %v11955_v29 = vld [vmem:[#allocation6 + $0x270] sm:$0xff]   ;;  %v3927_v32 = vld [vmem:[#allocation5 + $0x558] sm:$0xff] }
 0x9c2   : > { %8316 = vmatmul.mubr.bf16.gmra.mrb[56].mxu1 %v6839_v19  ;;  %8413 = vmatmul.mubr.bf16.gmra.mrb[56].mxu0 %v6729_v35  ;;  %v3817_v58 = vld [vmem:[#allocation5 + $0x1e8] sm:$0xff]  ;;  %v11956_v50 = vld [vmem:[#allocation6 + $0x230] sm:$0xff]  }
 0x9c3   : > { %8323 = vmatprep.mubr.bf16.mxu1 %v6854_v3  ;;  %8420 = vmatprep.mubr.bf16.mxu0 %v6744_v30  ;;  %v17251_v30 = vld [vmem:[#allocation81_spill] sm:$0xff]  ;;  %v17253_v3 = vld [vmem:[#allocation148_spill] sm:$0xff] }
 0x9c4   : > { %10637 = vmatpush3.bf16.msra.mxu0 %v11952_v59  ;;  %v17250_v59 = vld [vmem:[#allocation85_spill] sm:$0xff]  ;;  %v17254_v26 = vld [vmem:[#allocation144_spill] sm:$0xff] }
 0x9c5   : > { %v14751_v40 = vpop.f32.mrb[208].mxu1  ;;  %v14753_v33 = vpop.f32.mrb[208].mxu0  ;;  %10638 = vmatprep.subr.bf16.mxu0 %v11953_v44  ;;  %v17252_v24 = vpack.c.bf16 %v17250_v59, %v17251_v30  ;;  %v17255_v56 = vpack.c.bf16 %v17253_v3, %v17254_v26  ;;  %v17259_v59 = vpack.c.bf16 %v17257_v60, %v17258_v25  ;;  %v17260_v30 = vld [vmem:[#allocation158_spill] sm:$0xff]  ;;  %v3816_v44 = vld [vmem:[#allocation5 + $0x1e0] sm:$0xff] }
 0x9c6   : > { %17247 = vst [vmem:[#allocation140_spill] sm:$0xff] %v14751_v40  ;;  %v14755_v15 = vpop.f32.mrb[209].mxu1  ;;  %v14757_v61 = vpop.f32.mrb[209].mxu0  ;;  %v11957_v26 = vld [vmem:[#allocation6 + $0x278] sm:$0xff]  }
 0x9c7   : > { %17248 = vst [vmem:[#allocation136_spill] sm:$0xff] %v14755_v15  ;;  %v14759_v19 = vpop.f32.mrb[210].mxu1  ;;  %v14761_v35 = vpop.f32.mrb[210].mxu0  ;;  %v6853_v46 = vmul.bf16 %v17252_v24, %v3912_v16  ;;  %v6743_v13 = vmul.bf16 %v17255_v56, %v3802_v28  ;;  %v6868_v16 = vmul.bf16 %v17259_v59, %v3927_v32  ;;  %v17261_v24 = vld [vmem:[#allocation154_spill] sm:$0xff]  ;;  %v3926_v56 = vld [vmem:[#allocation5 + $0x550] sm:$0xff]  ;;  %v3941_v32 = vld [vmem:[#allocation5 + $0x5c8] sm:$0xff] }
 0x9c8   : > { %17249 = vst [vmem:[#allocation87_spill] sm:$0xff] %v14759_v19  ;;  %v14771_v45 = vpop.f32.mrb[211].mxu1  ;;  %v14773_v27 = vpop.f32.mrb[211].mxu0  ;;  %10639 = vmatpush3.bf16.msra.mxu0 %v11954_v21  ;;  %v17262_v3 = vpack.c.bf16 %v17260_v30, %v17261_v24  ;;  %v11958_v21 = vld [vmem:[#allocation6 + $0x238] sm:$0xff]   ;;  %v17269_v30 = vld [vmem:[#allocation156_spill] sm:$0xff] }
 0x9c9   : > { %17256 = vst [vmem:[#allocation83_spill] sm:$0xff] %v14771_v45  ;;  %10640 = vmatprep.subr.bf16.mxu0 %v11955_v29  ;;  %v3831_v29 = vld [vmem:[#allocation5 + $0x258] sm:$0xff]  ;;  %v17270_v24 = vld [vmem:[#allocation152_spill] sm:$0xff]  ;;  %v11959_v45 = vld [vmem:[#allocation6 + $0x2c0] sm:$0xff]  }
 0x9ca   : > { %v6758_v28 = vmul.bf16 %v17262_v3, %v3817_v58  ;;  %8324 = vmatmul.mubr.bf16.gmra.mrb[60].mxu1 %v6853_v46  ;;  %8421 = vmatmul.mubr.bf16.gmra.mrb[60].mxu0 %v6743_v13  ;;  %v17266_v46 = vld [vmem:[#allocation93_spill] sm:$0xff]  ;;  %v17271_v3 = vpack.c.bf16 %v17269_v30, %v17270_v24  ;;  %v3940_v24 = vld [vmem:[#allocation5 + $0x5c0] sm:$0xff] }
 0x9cb   : > { %8331 = vmatprep.mubr.bf16.mxu1 %v6868_v16  ;;  %10740 = vmatprep.subr.bf16.mxu1 %v11959_v45 }
 0x9cc   : > { %8428 = vmatprep.mubr.bf16.mxu0 %v6758_v28  ;;  %10641 = vmatpush3.bf16.msra.mxu0 %v11956_v50  ;;  %v17267_v50 = vld [vmem:[#allocation89_spill] sm:$0xff]  ;;  %v6757_v28 = vmul.bf16 %v17271_v3, %v3816_v44 }
 0x9cd   : > { %v14783_v40 = vpop.f32.mrb[212].mxu1  ;;  %v14785_v0 = vpop.f32.mrb[212].mxu0  ;;  %10642 = vmatprep.subr.bf16.mxu0 %v11957_v26  ;;  %v17268_v59 = vpack.c.bf16 %v17266_v46, %v17267_v50  ;;  %v17275_v46 = vpack.c.bf16 %v17273_v48, %v17274_v39  ;;  %v17276_v50 = vld [vmem:[#allocation166_spill] sm:$0xff]  ;;  %v3830_v3 = vld [vmem:[#allocation5 + $0x250] sm:$0xff]  ;;  %v3845_v39 = vld [vmem:[#allocation5 + $0x2c8] sm:$0xff] }
 0x9ce   : > { %17263 = vst [vmem:[#allocation150_spill] sm:$0xff] %v14783_v40  ;;  %v14787_v25 = vpop.f32.mrb[213].mxu1  ;;  %v14789_v60 = vpop.f32.mrb[213].mxu0  ;;  %v3955_v48 = vld [vmem:[#allocation5 + $0x638] sm:$0xff] }
 0x9cf   : > { %17264 = vst [vmem:[#allocation146_spill] sm:$0xff] %v14787_v25  ;;  %v14791_v58 = vpop.f32.mrb[214].mxu1  ;;  %v14793_v13 = vpop.f32.mrb[214].mxu0  ;;  %v6867_v16 = vmul.bf16 %v17268_v59, %v3926_v56  ;;  %v6882_v56 = vmul.bf16 %v17275_v46, %v3941_v32  ;;  %v17277_v59 = vld [vmem:[#allocation162_spill] sm:$0xff]  ;;  %v6896_v10 = vmul.bf16 %v17291_v57, %v3955_v48  ;;  %v17300_v48 = vld [vmem:[#allocation109_spill] sm:$0xff] }
 0x9d0   : > { %17265 = vst [vmem:[#allocation85_spill] sm:$0xff] %v14791_v58  ;;  %v14803_v19 = vpop.f32.mrb[215].mxu1  ;;  %v14805_v15 = vpop.f32.mrb[215].mxu0  ;;  %10643 = vmatpush3.bf16.msra.mxu0 %v11958_v21  ;;  %v17278_v30 = vpack.c.bf16 %v17276_v50, %v17277_v59  ;;  %v17286_v50 = vld [vmem:[#allocation160_spill] sm:$0xff]  ;;  %v3859_v57 = vld [vmem:[#allocation5 + $0x338] sm:$0xff] }
 0x9d1   : > { %17272 = vst [vmem:[#allocation81_spill] sm:$0xff] %v14803_v19 }
 0x9d2   : > { %v6772_v44 = vmul.bf16 %v17278_v30, %v3831_v29  ;;  %8332 = vmatmul.mubr.bf16.gmra.mrb[64].mxu1 %v6867_v16  ;;  %8429 = vmatmul.mubr.bf16.gmra.mrb[64].mxu0 %v6757_v28  ;;  %v17282_v16 = vld [vmem:[#allocation101_spill] sm:$0xff] }
 0x9d3   : > { %8339 = vmatprep.mubr.bf16.mxu1 %v6882_v56  ;;  %v17283_v28 = vld [vmem:[#allocation97_spill] sm:$0xff]  ;;  %v17285_v56 = vld [vmem:[#allocation164_spill] sm:$0xff] }
 0x9d4   : > { %8436 = vmatprep.mubr.bf16.mxu0 %v6772_v44  ;;  %v17284_v46 = vpack.c.bf16 %v17282_v16, %v17283_v28  ;;  %v17287_v59 = vpack.c.bf16 %v17285_v56, %v17286_v50 }
 0x9d5   : > { %v14815_v21 = vpop.f32.mrb[216].mxu1  ;;  %v14817_v26 = vpop.f32.mrb[216].mxu0 }
 0x9d6   : > { %17279 = vst [vmem:[#allocation148_spill] sm:$0xff] %v14815_v21  ;;  %v14819_v43 = vpop.f32.mrb[217].mxu1  ;;  %v14821_v40 = vpop.f32.mrb[217].mxu0  ;;  %v6881_v45 = vmul.bf16 %v17284_v46, %v3940_v24  ;;  %v6771_v30 = vmul.bf16 %v17287_v59, %v3830_v3  ;;  %v17292_v24 = vld [vmem:[#allocation170_spill] sm:$0xff]  ;;  %v3954_v3 = vld [vmem:[#allocation5 + $0x630] sm:$0xff]  ;;  %v3844_v46 = vld [vmem:[#allocation5 + $0x2c0] sm:$0xff] }
 0x9d7   : > { %17280 = vst [vmem:[#allocation144_spill] sm:$0xff] %v14819_v43  ;;  %v14823_v32 = vpop.f32.mrb[218].mxu1  ;;  %v14825_v29 = vpop.f32.mrb[218].mxu0  ;;  %v17293_v16 = vpack.c.bf16 %v13915_v5, %v17292_v24  ;;  %v17304_v24 = vld [vmem:[#allocation168_spill] sm:$0xff] }
 0x9d8   : > { %17281 = vst [vmem:[#allocation95_spill] sm:$0xff] %v14823_v32  ;;  %v14835_v58 = vpop.f32.mrb[219].mxu1  ;;  %v14837_v25 = vpop.f32.mrb[219].mxu0 }
 0x9d9   : > { %17288 = vst [vmem:[#allocation91_spill] sm:$0xff] %v14835_v58  ;;  %v6786_v28 = vmul.bf16 %v17293_v16, %v3845_v39  ;;  %v17301_v39 = vld [vmem:[#allocation105_spill] sm:$0xff]  ;;  %v17307_v58 = vld [vmem:[#allocation119_spill] sm:$0xff] }
 0x9da   : > { %8340 = vmatmul.mubr.bf16.gmra.mrb[68].mxu1 %v6881_v45  ;;  %8437 = vmatmul.mubr.bf16.gmra.mrb[68].mxu0 %v6771_v30  ;;  %v17303_v30 = vld [vmem:[#allocation172_spill] sm:$0xff] }
 0x9db   : > { %8347 = vmatprep.mubr.bf16.mxu1 %v6896_v10  ;;  %8444 = vmatprep.mubr.bf16.mxu0 %v6786_v28  ;;  %v17302_v10 = vpack.c.bf16 %v17300_v48, %v17301_v39  ;;  %v17305_v16 = vpack.c.bf16 %v17303_v30, %v17304_v24 }
 0x9dd   : > { %v14847_v56 = vpop.f32.mrb[220].mxu1  ;;  %v14849_v50 = vpop.f32.mrb[220].mxu0  ;;  %v6895_v45 = vmul.bf16 %v17302_v10, %v3954_v3  ;;  %v6785_v28 = vmul.bf16 %v17305_v16, %v3844_v46  ;;  %v17310_v3 = vld [vmem:[#allocation177_spill] sm:$0xff]  ;;  %v3968_v46 = vld [vmem:[#allocation5 + $0x6a0] sm:$0xff] }
 0x9de   : > { %17294 = vst [vmem:[#allocation158_spill] sm:$0xff] %v14847_v56  ;;  %17295 = vst [vmem:[#allocation154_spill] sm:$0xff] %v14849_v50  ;;  %v14851_v59 = vpop.f32.mrb[221].mxu1  ;;  %v14853_v44 = vpop.f32.mrb[221].mxu0  ;;  %v17311_v48 = vpack.c.bf16 %v13943_v17, %v17310_v3  ;;  %v3858_v10 = vld [vmem:[#allocation5 + $0x330] sm:$0xff]  ;;  %v17320_v3 = vld [vmem:[#allocation175_spill] sm:$0xff] }
 0x9df   : > { %17296 = vst [vmem:[#allocation93_spill] sm:$0xff] %v14851_v59  ;;  %17297 = vst [vmem:[#allocation89_spill] sm:$0xff] %v14853_v44  ;;  %v14855_v62 = vpop.f32.mrb[222].mxu1  ;;  %v14857_v5 = vpop.f32.mrb[222].mxu0 }
 0x9e0   : > { %17298 = vst [vmem:[#allocation156_spill] sm:$0xff] %v14855_v62  ;;  %17299 = vst [vmem:[#allocation152_spill] sm:$0xff] %v14857_v5  ;;  %v14867_v21 = vpop.f32.mrb[223].mxu1  ;;  %v14869_v32 = vpop.f32.mrb[223].mxu0  ;;  %v17308_v5 = vld [vmem:[#allocation115_spill] sm:$0xff]  ;;  %v6800_v39 = vmul.bf16 %v17311_v48, %v3859_v57  ;;  %v17316_v57 = vld [vmem:[#allocation117_spill] sm:$0xff] }
 0x9e1   : > { %17306 = vst [vmem:[#allocation103_spill] sm:$0xff] %v14867_v21  ;;  %v17309_v50 = vpack.c.bf16 %v17307_v58, %v17308_v5  ;;  %v3873_v58 = vld [vmem:[#allocation5 + $0x3a8] sm:$0xff]  ;;  %v17317_v5 = vld [vmem:[#allocation113_spill] sm:$0xff]  ;;  %v17323_v21 = vpack.c.bf16 %v13971_v14, %v13959_v53  ;;  %v3887_v53 = vld [vmem:[#allocation5 + $0x418] sm:$0xff] }
 0x9e2   : > { %8348 = vmatmul.mubr.bf16.gmra.mrb[72].mxu1 %v6895_v45  ;;  %8445 = vmatmul.mubr.bf16.gmra.mrb[72].mxu0 %v6785_v28  ;;  %v17319_v28 = vld [vmem:[#allocation179_spill] sm:$0xff]  ;;  %v3777_v14 = vld [vmem:[#allocation5 + $0xa8] sm:$0xff] }
 0x9e3   : > { %v6910_v44 = vmul.bf16 %v17309_v50, %v3969_v7  ;;  %8452 = vmatprep.mubr.bf16.mxu0 %v6800_v39  ;;  %v3763_v50 = vld [vmem:[#allocation5 + $0x38] sm:$0xff]  ;;  %v17321_v48 = vpack.c.bf16 %v17319_v28, %v17320_v3  ;;  %v3872_v28 = vld [vmem:[#allocation5 + $0x3a0] sm:$0xff] }
 0x9e5   : > { %8355 = vmatprep.mubr.bf16.mxu1 %v6910_v44  ;;  %v14879_v30 = vpop.f32.mrb[224].mxu1  ;;  %v14881_v24 = vpop.f32.mrb[224].mxu0  ;;  %v17318_v44 = vpack.c.bf16 %v17316_v57, %v17317_v5  ;;  %v6799_v39 = vmul.bf16 %v17321_v48, %v3858_v10  ;;  %v17324_v57 = vld [vmem:[#allocation127_spill] sm:$0xff]  ;;  %v3762_v10 = vld [vmem:[#allocation5 + $0x30] sm:$0xff] }
 0x9e6   : > { %17312 = vst [vmem:[#allocation99_spill] sm:$0xff] %v14879_v30  ;;  %v14883_v16 = vpop.f32.mrb[225].mxu1  ;;  %v14885_v19 = vpop.f32.mrb[225].mxu0 }
 0x9e7   : > { %17313 = vst [vmem:[#allocation166_spill] sm:$0xff] %v14883_v16  ;;  %v14887_v7 = vpop.f32.mrb[226].mxu1  ;;  %v14889_v17 = vpop.f32.mrb[226].mxu0  ;;  %v6909_v45 = vmul.bf16 %v17318_v44, %v3968_v46  ;;  %v17325_v46 = vld [vmem:[#allocation123_spill] sm:$0xff] }
 0x9e8   : > { %17314 = vst [vmem:[#allocation162_spill] sm:$0xff] %v14887_v7  ;;  %17315 = vst [vmem:[#allocation101_spill] sm:$0xff] %v14889_v17  ;;  %v14899_v56 = vpop.f32.mrb[227].mxu1  ;;  %v14901_v62 = vpop.f32.mrb[227].mxu0  ;;  %v6814_v17 = vmul.bf16 %v17323_v21, %v3873_v58  ;;  %v17326_v5 = vpack.c.bf16 %v17324_v57, %v17325_v46  ;;  %v17336_v57 = vpack.c.bf16 %v13963_v18, %v13955_v49  ;;  %v11960_v7 = vld [vmem:[#allocation6 + $0x280] sm:$0xff]   ;;  %v11961_v49 = vld [vmem:[#allocation6 + $0x2c8] sm:$0xff]  }
 0x9e9   : > { %17322 = vst [vmem:[#allocation97_spill] sm:$0xff] %v14899_v56  ;;  %v17339_v56 = vpack.c.bf16 %v13999_v55, %v13987_v4  ;;  %v11963_v55 = vld [vmem:[#allocation6 + $0x2d0] sm:$0xff]  }
 0x9ea   : > { %v6704_v44 = vmul.bf16 %v17326_v5, %v3763_v50  ;;  %8356 = vmatmul.mubr.bf16.gmra.mrb[76].mxu1 %v6909_v45  ;;  %8453 = vmatmul.mubr.bf16.gmra.mrb[76].mxu0 %v6799_v39  ;;  %v17333_v50 = vld [vmem:[#allocation125_spill] sm:$0xff]  ;;  %v6813_v46 = vmul.bf16 %v17336_v57, %v3872_v28  ;;  %v11962_v28 = vld [vmem:[#allocation6 + $0x288] sm:$0xff]   ;;  %v3776_v57 = vld [vmem:[#allocation5 + $0xa0] sm:$0xff] }
 0x9eb   : > { %8460 = vmatprep.mubr.bf16.mxu0 %v6814_v17  ;;  %v17334_v45 = vld [vmem:[#allocation121_spill] sm:$0xff] }
 0x9ec   : > { %8557 = vmatprep.mubr.bf16.mxu1 %v6704_v44  ;;  %v17335_v17 = vpack.c.bf16 %v17333_v50, %v17334_v45  ;;  %v6828_v50 = vmul.bf16 %v17339_v56, %v3887_v53  ;;  %v17341_v45 = vld [vmem:[#allocation131_spill] sm:$0xff]  ;;  %v3886_v5 = vld [vmem:[#allocation5 + $0x410] sm:$0xff]  ;;  %v3901_v53 = vld [vmem:[#allocation5 + $0x488] sm:$0xff] }
 0x9ed   : > { %v14911_v3 = vpop.f32.mrb[228].mxu1  ;;  %v14913_v48 = vpop.f32.mrb[228].mxu0 }
 0x9ee   : > { %17327 = vst [vmem:[#allocation164_spill] sm:$0xff] %v14911_v3  ;;  %17328 = vst [vmem:[#allocation160_spill] sm:$0xff] %v14913_v48  ;;  %v14915_v43 = vpop.f32.mrb[229].mxu1  ;;  %v14917_v59 = vpop.f32.mrb[229].mxu0  ;;  %v6703_v39 = vmul.bf16 %v17335_v17, %v3762_v10  ;;  %v17340_v10 = vld [vmem:[#allocation135_spill] sm:$0xff] }
 0x9ef   : > { %17329 = vst [vmem:[#allocation111_spill] sm:$0xff] %v14915_v43  ;;  %17330 = vst [vmem:[#allocation107_spill] sm:$0xff] %v14917_v59  ;;  %v14919_v21 = vpop.f32.mrb[230].mxu1  ;;  %v14921_v58 = vpop.f32.mrb[230].mxu0  ;;  %v17342_v17 = vpack.c.bf16 %v17340_v10, %v17341_v45  ;;  %v17389_v48 = vld [vmem:[#allocation155_spill] sm:$0xff] }
 0x9f0   : > { %17331 = vst [vmem:[#allocation170_spill] sm:$0xff] %v14919_v21  ;;  %17332 = vst [vmem:[#allocation109_spill] sm:$0xff] %v14921_v58  ;;  %v14931_v44 = vpop.f32.mrb[231].mxu1  ;;  %v14933_v30 = vpop.f32.mrb[231].mxu0  ;;  %v17388_v58 = vld [vmem:[#allocation159_spill] sm:$0xff] }
 0x9f1   : > { %17337 = vst [vmem:[#allocation105_spill] sm:$0xff] %v14931_v44  ;;  %17338 = vst [vmem:[#allocation172_spill] sm:$0xff] %v14933_v30  ;;  %v6718_v18 = vmul.bf16 %v17342_v17, %v3777_v14  ;;  %v3791_v14 = vld [vmem:[#allocation5 + $0x118] sm:$0xff]  ;;  %v17352_v17 = vpack.c.bf16 %v13991_v63, %v13983_v22  ;;  %v11964_v44 = vld [vmem:[#allocation6 + $0x290] sm:$0xff]  }
 0x9f2   : > { %8461 = vmatmul.mubr.bf16.gmra.mrb[80].mxu0 %v6813_v46  ;;  %8558 = vmatmul.mubr.bf16.vlgmr.msra.gmra.mrb[80].mxu1 %v6703_v39  ;;  %v11972_v30 = vld [vmem:[#allocation6 + $0x2b0] sm:$0xff]  }
 0x9f3   : > { %8468 = vmatprep.mubr.bf16.mxu0 %v6828_v50  ;;  %8565 = vmatprep.mubr.bf16.mxu1 %v6718_v18  ;;  %v17350_v50 = vld [vmem:[#allocation129_spill] sm:$0xff]  ;;  %v6827_v18 = vmul.bf16 %v17352_v17, %v3886_v5  ;;  %v11965_v5 = vld [vmem:[#allocation6 + $0x2d8] sm:$0xff]   ;;  %v11975_v17 = vld [vmem:[#allocation6 + $0x340] sm:$0xff]  }
 0x9f4   : > { %10741 = vmatpush3.bf16.msra.mxu1 %v11960_v7  ;;  %v17349_v7 = vld [vmem:[#allocation133_spill] sm:$0xff]  ;;  %10852 = vmatprep.subr.bf16.mxu0 %v11975_v17 }
 0x9f5   : > { %v14943_v3 = vpop.f32.mrb[232].mxu1  ;;  %v14945_v16 = vpop.f32.mrb[232].mxu0  ;;  %10742 = vmatprep.subr.bf16.mxu1 %v11961_v49  ;;  %v17351_v10 = vpack.c.bf16 %v17349_v7, %v17350_v50  ;;  %v17358_v50 = vld [vmem:[#allocation143_spill] sm:$0xff]  ;;  %v3790_v49 = vld [vmem:[#allocation5 + $0x110] sm:$0xff] }
 0x9f6   : > { %17343 = vst [vmem:[#allocation168_spill] sm:$0xff] %v14943_v3  ;;  %17344 = vst [vmem:[#allocation119_spill] sm:$0xff] %v14945_v16  ;;  %v14947_v4 = vpop.f32.mrb[233].mxu1  ;;  %v14949_v56 = vpop.f32.mrb[233].mxu0  ;;  %v17355_v16 = vld [vmem:[#allocation196_spill] sm:$0xff] }
 0x9f7   : > { %17345 = vst [vmem:[#allocation115_spill] sm:$0xff] %v14947_v4  ;;  %17346 = vst [vmem:[#allocation177_spill] sm:$0xff] %v14949_v56  ;;  %v14951_v46 = vpop.f32.mrb[234].mxu1  ;;  %v14953_v39 = vpop.f32.mrb[234].mxu0  ;;  %v6717_v45 = vmul.bf16 %v17351_v10, %v3776_v57  ;;  %v17356_v56 = vld [vmem:[#allocation192_spill] sm:$0xff]  ;;  %v17359_v10 = vld [vmem:[#allocation139_spill] sm:$0xff] }
 0x9f8   : > { %17347 = vst [vmem:[#allocation117_spill] sm:$0xff] %v14951_v46  ;;  %17348 = vst [vmem:[#allocation113_spill] sm:$0xff] %v14953_v39  ;;  %v14963_v21 = vpop.f32.mrb[235].mxu1  ;;  %v14965_v43 = vpop.f32.mrb[235].mxu0  ;;  %10743 = vmatpush3.bf16.msra.mxu1 %v11962_v28  ;;  %v17357_v7 = vpack.c.bf16 %v17355_v16, %v17356_v56  ;;  %v17360_v63 = vpack.c.bf16 %v17358_v50, %v17359_v10  ;;  %v11966_v28 = vld [vmem:[#allocation6 + $0x298] sm:$0xff]   ;;  %v3900_v39 = vld [vmem:[#allocation5 + $0x480] sm:$0xff] }
 0x9f9   : > { %17353 = vst [vmem:[#allocation179_spill] sm:$0xff] %v14963_v21  ;;  %17354 = vst [vmem:[#allocation175_spill] sm:$0xff] %v14965_v43  ;;  %10744 = vmatprep.subr.bf16.mxu1 %v11963_v55  ;;  %v11967_v56 = vld [vmem:[#allocation6 + $0x2e0] sm:$0xff]   ;;  %v17376_v43 = vld [vmem:[#allocation200_spill] sm:$0xff] }
 0x9fa   : > { %v6842_v57 = vmul.bf16 %v17357_v7, %v3901_v53  ;;  %v6732_v22 = vmul.bf16 %v17360_v63, %v3791_v14  ;;  %8469 = vmatmul.mubr.bf16.gmra.mrb[84].mxu0 %v6827_v18  ;;  %8566 = vmatmul.mubr.bf16.gmra.mrb[84].mxu1 %v6717_v45  ;;  %v3915_v14 = vld [vmem:[#allocation5 + $0x4f8] sm:$0xff]  ;;  %v3805_v18 = vld [vmem:[#allocation5 + $0x188] sm:$0xff] }
 0x9fb   : > { %v17370_v63 = vld [vmem:[#allocation194_spill] sm:$0xff] }
 0x9fc   : > { %8476 = vmatprep.mubr.bf16.mxu0 %v6842_v57  ;;  %8573 = vmatprep.mubr.bf16.mxu1 %v6732_v22  ;;  %v17368_v57 = vld [vmem:[#allocation137_spill] sm:$0xff]  ;;  %v17371_v22 = vld [vmem:[#allocation190_spill] sm:$0xff] }
 0x9fd   : > { %10745 = vmatpush3.bf16.msra.mxu1 %v11964_v44  ;;  %v14975_v3 = vpop.f32.mrb[236].mxu1  ;;  %v14977_v16 = vpop.f32.mrb[236].mxu0  ;;  %v17367_v44 = vld [vmem:[#allocation141_spill] sm:$0xff]  ;;  %v17372_v17 = vpack.c.bf16 %v17370_v63, %v17371_v22  ;;  %v11969_v22 = vld [vmem:[#allocation6 + $0x2e8] sm:$0xff]  }
 0x9fe   : > { %17361 = vst [vmem:[#allocation127_spill] sm:$0xff] %v14975_v3  ;;  %17362 = vst [vmem:[#allocation123_spill] sm:$0xff] %v14977_v16  ;;  %10746 = vmatprep.subr.bf16.mxu1 %v11965_v5  ;;  %v14979_v53 = vpop.f32.mrb[237].mxu1  ;;  %v14981_v55 = vpop.f32.mrb[237].mxu0  ;;  %v17369_v50 = vpack.c.bf16 %v17367_v44, %v17368_v57  ;;  %v11968_v16 = vld [vmem:[#allocation6 + $0x2a0] sm:$0xff]   ;;  %v3914_v5 = vld [vmem:[#allocation5 + $0x4f0] sm:$0xff] }
 0x9ff   : > { %17363 = vst [vmem:[#allocation125_spill] sm:$0xff] %v14979_v53  ;;  %17364 = vst [vmem:[#allocation121_spill] sm:$0xff] %v14981_v55  ;;  %v14983_v45 = vpop.f32.mrb[238].mxu1  ;;  %v14985_v7 = vpop.f32.mrb[238].mxu0  ;;  %v6841_v46 = vmul.bf16 %v17372_v17, %v3900_v39  ;;  %v17375_v55 = vld [vmem:[#allocation204_spill] sm:$0xff]  ;;  %v17378_v57 = vld [vmem:[#allocation151_spill] sm:$0xff] }
 0xa00   : > { %17365 = vst [vmem:[#allocation135_spill] sm:$0xff] %v14983_v45  ;;  %17366 = vst [vmem:[#allocation131_spill] sm:$0xff] %v14985_v7  ;;  %v6731_v10 = vmul.bf16 %v17369_v50, %v3790_v49  ;;  %v14995_v4 = vpop.f32.mrb[239].mxu1  ;;  %v14997_v21 = vpop.f32.mrb[239].mxu0  ;;  %v17377_v44 = vpack.c.bf16 %v17375_v55, %v17376_v43  ;;  %v17379_v50 = vld [vmem:[#allocation147_spill] sm:$0xff]  ;;  %v3819_v45 = vld [vmem:[#allocation5 + $0x1f8] sm:$0xff] }
 0xa01   : > { %17373 = vst [vmem:[#allocation133_spill] sm:$0xff] %v14995_v4  ;;  %17374 = vst [vmem:[#allocation129_spill] sm:$0xff] %v14997_v21  ;;  %10747 = vmatpush3.bf16.msra.mxu1 %v11966_v28  ;;  %v17380_v63 = vpack.c.bf16 %v17378_v57, %v17379_v50  ;;  %v3804_v17 = vld [vmem:[#allocation5 + $0x180] sm:$0xff]  ;;  %v11970_v28 = vld [vmem:[#allocation6 + $0x2a8] sm:$0xff]  }
 0xa02   : > { %v6856_v49 = vmul.bf16 %v17377_v44, %v3915_v14  ;;  %10748 = vmatprep.subr.bf16.mxu1 %v11967_v56  ;;  %8477 = vmatmul.mubr.bf16.gmra.mrb[88].mxu0 %v6841_v46  ;;  %v11971_v43 = vld [vmem:[#allocation6 + $0x2f0] sm:$0xff]   ;;  %v17385_v50 = vld [vmem:[#allocation202_spill] sm:$0xff] }
 0xa03   : > { %v6746_v39 = vmul.bf16 %v17380_v63, %v3805_v18  ;;  %8574 = vmatmul.mubr.bf16.gmra.mrb[88].mxu1 %v6731_v10  ;;  %v3929_v18 = vld [vmem:[#allocation5 + $0x568] sm:$0xff]  ;;  %v17382_v10 = vld [vmem:[#allocation149_spill] sm:$0xff]  ;;  %v17386_v63 = vld [vmem:[#allocation198_spill] sm:$0xff] }
 0xa04   : > { %8484 = vmatprep.mubr.bf16.mxu0 %v6856_v49  ;;  %v17383_v49 = vld [vmem:[#allocation145_spill] sm:$0xff] }
 0xa05   : > { %8581 = vmatprep.mubr.bf16.mxu1 %v6746_v39  ;;  %10749 = vmatpush3.bf16.msra.mxu1 %v11968_v16  ;;  %v15007_v3 = vpop.f32.mrb[240].mxu1  ;;  %v10196_v7 = vpop.f32.mrb[240].mxu0  ;;  %v17384_v57 = vpack.c.bf16 %v17382_v10, %v17383_v49  ;;  %v17387_v39 = vpack.c.bf16 %v17385_v50, %v17386_v63  ;;  %v11973_v50 = vld [vmem:[#allocation6 + $0x2f8] sm:$0xff]   ;;  %v17397_v63 = vld [vmem:[#allocation153_spill] sm:$0xff] }
 0xa06   : > { %17381 = vst [vmem:[#allocation196_spill] sm:$0xff] %v15007_v3  ;;  %10750 = vmatprep.subr.bf16.mxu1 %v11969_v22  ;;  %v15009_v55 = vpop.f32.mrb[241].mxu1  ;;  %v10197_v14 = vpop.f32.mrb[241].mxu0  ;;  %v17402_v22 = vld [vmem:[#allocation167_spill] sm:$0xff] }
 0xa07   : > { %v10198_v56 = vadd.f32 %v10197_v14, %v10196_v7  ;;  %v15011_v44 = vpop.f32.mrb[242].mxu1  ;;  %v10199_v46 = vpop.f32.mrb[242].mxu0  ;;  %v6745_v16 = vmul.bf16 %v17384_v57, %v3804_v17  ;;  %v6855_v53 = vmul.bf16 %v17387_v39, %v3914_v5  ;;  %v17390_v7 = vpack.c.bf16 %v17388_v58, %v17389_v48  ;;  %v17391_v5 = vld [vmem:[#allocation208_spill] sm:$0xff]  ;;  %v3818_v58 = vld [vmem:[#allocation5 + $0x1f0] sm:$0xff]  ;;  %v17403_v17 = vld [vmem:[#allocation163_spill] sm:$0xff] }
 0xa08   : > { %v15021_v4 = vpop.f32.mrb[243].mxu1  ;;  %v10200_v21 = vpop.f32.mrb[243].mxu0  ;;  %v17392_v49 = vpack.c.bf16 %v14083_v6, %v17391_v5 }
 0xa09   : > { %v6760_v14 = vmul.bf16 %v17390_v7, %v3819_v45  ;;  %10751 = vmatpush3.bf16.msra.mxu1 %v11970_v28  ;;  %v15027_v59 = vadd.f32 %v10198_v56, %v14757_v61  ;;  %v10201_v10 = vadd.f32 %v10200_v21, %v10199_v46  ;;  %v11974_v61 = vld [vmem:[#allocation6 + $0x2b8] sm:$0xff]   ;;  %v3928_v45 = vld [vmem:[#allocation5 + $0x560] sm:$0xff]  ;;  %v3833_v56 = vld [vmem:[#allocation5 + $0x268] sm:$0xff] }
 0xa0a   : > { %v6870_v57 = vmul.bf16 %v17392_v49, %v3929_v18  ;;  %10752 = vmatprep.subr.bf16.mxu1 %v11971_v43  ;;  %8485 = vmatmul.mubr.bf16.gmra.mrb[92].mxu0 %v6855_v53  ;;  %v3943_v18 = vld [vmem:[#allocation5 + $0x5d8] sm:$0xff]  ;;  %v17416_v49 = vld [vmem:[#allocation171_spill] sm:$0xff] }
 0xa0b   : > { %8582 = vmatmul.mubr.bf16.gmra.mrb[92].mxu1 %v6745_v16  ;;  %v15035_v48 = vadd.f32 %v10201_v10, %v14773_v27  ;;  %v17396_v16 = vld [vmem:[#allocation157_spill] sm:$0xff]  ;;  %v17399_v7 = vld [vmem:[#allocation210_spill] sm:$0xff] }
 0xa0c   : > { %8492 = vmatprep.mubr.bf16.mxu0 %v6870_v57  ;;  %8589 = vmatprep.mubr.bf16.mxu1 %v6760_v14  ;;  %v17398_v39 = vpack.c.bf16 %v17396_v16, %v17397_v63  ;;  %v17400_v14 = vld [vmem:[#allocation206_spill] sm:$0xff] }
 0xa0d   : > { %10753 = vmatpush3.bf16.msra.mxu1 %v11972_v30  ;;  %v15037_v28 = vpop.f32.mrb[244].mxu1  ;;  %v10202_v21 = vpop.f32.mrb[244].mxu0  ;;  %v17401_v10 = vpack.c.bf16 %v17399_v7, %v17400_v14  ;;  %v3957_v7 = vld [vmem:[#allocation5 + $0x648] sm:$0xff] }
 0xa0e   : > { %17393 = vst [vmem:[#allocation192_spill] sm:$0xff] %v15037_v28  ;;  %10754 = vmatprep.subr.bf16.mxu1 %v11973_v50  ;;  %v15039_v6 = vpop.f32.mrb[245].mxu1  ;;  %v10203_v43 = vpop.f32.mrb[245].mxu0  ;;  %v6759_v30 = vmul.bf16 %v17398_v39, %v3818_v58  ;;  %v17593_v28 = vld [vmem:[#allocation245_spill] sm:$0xff] }
 0xa0f   : > { %17394 = vst [vmem:[#allocation143_spill] sm:$0xff] %v15039_v6  ;;  %v10204_v53 = vadd.f32 %v10203_v43, %v10202_v21  ;;  %v15041_v46 = vpop.f32.mrb[246].mxu1  ;;  %v10205_v27 = vpop.f32.mrb[246].mxu0  ;;  %v6869_v5 = vmul.bf16 %v17401_v10, %v3928_v45  ;;  %v17404_v21 = vpack.c.bf16 %v17402_v22, %v17403_v17  ;;  %v17405_v45 = vpack.c.bf16 %v14116_v31, %v14101_v54  ;;  %v3832_v22 = vld [vmem:[#allocation5 + $0x260] sm:$0xff]  ;;  %v3942_v17 = vld [vmem:[#allocation5 + $0x5d0] sm:$0xff]  ;;  %v17607_v6 = vld [vmem:[#allocation252_spill] sm:$0xff] }
 0xa10   : > { %17395 = vst [vmem:[#allocation139_spill] sm:$0xff] %v15041_v46  ;;  %v15051_v57 = vpop.f32.mrb[247].mxu1  ;;  %v10206_v50 = vpop.f32.mrb[247].mxu0  ;;  %v17606_v46 = vld [vmem:[#allocation49_spill] sm:$0xff] }
 0xa11   : > { %v6774_v43 = vmul.bf16 %v17404_v21, %v3833_v56  ;;  %10755 = vmatpush3.bf16.msra.mxu1 %v11974_v61  ;;  %v15057_v3 = vadd.f32 %v14753_v33, %v10204_v53  ;;  %v10207_v16 = vadd.f32 %v10206_v50, %v10205_v27  ;;  %v6884_v63 = vmul.bf16 %v17405_v45, %v3943_v18  ;;  %v3847_v56 = vld [vmem:[#allocation5 + $0x2d8] sm:$0xff]  ;;  %v17409_v18 = vld [vmem:[#allocation165_spill] sm:$0xff] }
 0xa12   : > { %8493 = vmatmul.mubr.bf16.gmra.mrb[96].mxu0 %v6869_v5  ;;  %v17412_v5 = vld [vmem:[#allocation213_spill] sm:$0xff] }
 0xa13   : > { %8590 = vmatmul.mubr.bf16.gmra.mrb[96].mxu1 %v6759_v30  ;;  %v15065_v39 = vadd.f32 %v14761_v35, %v10207_v16  ;;  %8500 = vmatprep.mubr.bf16.mxu0 %v6884_v63  ;;  %v17410_v30 = vld [vmem:[#allocation161_spill] sm:$0xff]  ;;  %v17413_v50 = vpack.c.bf16 %v14105_v12, %v17412_v5  ;;  %v17415_v63 = vld [vmem:[#allocation174_spill] sm:$0xff]  ;;  %v17418_v12 = vpack.c.bf16 %v14145_v9, %v14133_v52 }
 0xa14   : > { %8597 = vmatprep.mubr.bf16.mxu1 %v6774_v43  ;;  %v17411_v35 = vpack.c.bf16 %v17409_v18, %v17410_v30  ;;  %v17428_v43 = vld [vmem:[#allocation178_spill] sm:$0xff] }
 0xa15   : > { %v15067_v61 = vpop.f32.mrb[248].mxu1  ;;  %v10208_v33 = vpop.f32.mrb[248].mxu0  ;;  %v6883_v21 = vmul.bf16 %v17413_v50, %v3942_v17  ;;  %v6898_v17 = vmul.bf16 %v17418_v12, %v3957_v7  ;;  %v3971_v50 = vld [vmem:[#allocation5 + $0x6b8] sm:$0xff]  ;;  %v17422_v7 = vld [vmem:[#allocation173_spill] sm:$0xff] }
 0xa16   : > { %17406 = vst [vmem:[#allocation141_spill] sm:$0xff] %v15067_v61  ;;  %v15069_v53 = vpop.f32.mrb[249].mxu1  ;;  %v10209_v27 = vpop.f32.mrb[249].mxu0  ;;  %v6773_v10 = vmul.bf16 %v17411_v35, %v3832_v22  ;;  %v17565_v61 = vld [vmem:[#allocation231_spill] sm:$0xff] }
 0xa17   : > { %17407 = vst [vmem:[#allocation137_spill] sm:$0xff] %v15069_v53  ;;  %v10210_v14 = vadd.f32 %v10209_v27, %v10208_v33  ;;  %v15071_v54 = vpop.f32.mrb[250].mxu1  ;;  %v10211_v31 = vpop.f32.mrb[250].mxu0  ;;  %v17417_v33 = vpack.c.bf16 %v17415_v63, %v17416_v49  ;;  %v3846_v49 = vld [vmem:[#allocation5 + $0x2d0] sm:$0xff]  ;;  %v17425_v63 = vpack.c.bf16 %v14137_v42, %v14129_v36  ;;  %v17430_v36 = vpack.c.bf16 %v14177_v47, %v14165_v20 }
 0xa18   : > { %17408 = vst [vmem:[#allocation194_spill] sm:$0xff] %v15071_v54  ;;  %v15081_v16 = vpop.f32.mrb[251].mxu1  ;;  %v10212_v45 = vpop.f32.mrb[251].mxu0  ;;  %v17578_v54 = vld [vmem:[#allocation241_spill] sm:$0xff] }
 0xa19   : > { %17414 = vst [vmem:[#allocation190_spill] sm:$0xff] %v15081_v16  ;;  %v6788_v27 = vmul.bf16 %v17417_v33, %v3847_v56  ;;  %v15087_v58 = vadd.f32 %v10210_v14, %v14789_v60  ;;  %v10213_v18 = vadd.f32 %v10212_v45, %v10211_v31  ;;  %v3956_v56 = vld [vmem:[#allocation5 + $0x640] sm:$0xff]  ;;  %v3861_v14 = vld [vmem:[#allocation5 + $0x348] sm:$0xff]  ;;  %v6912_v42 = vmul.bf16 %v17430_v36, %v3971_v50  ;;  %v17579_v53 = vld [vmem:[#allocation237_spill] sm:$0xff] }
 0xa1a   : > { %8501 = vmatmul.mubr.bf16.gmra.mrb[100].mxu0 %v6883_v21  ;;  %v6897_v33 = vmul.bf16 %v17425_v63, %v3956_v56  ;;  %v3765_v63 = vld [vmem:[#allocation5 + $0x48] sm:$0xff]  ;;  %v17592_v16 = vld [vmem:[#allocation249_spill] sm:$0xff] }
 0xa1b   : > { %8598 = vmatmul.mubr.bf16.gmra.mrb[100].mxu1 %v6773_v10  ;;  %v15095_v30 = vadd.f32 %v10213_v18, %v14805_v15  ;;  %8508 = vmatprep.mubr.bf16.mxu0 %v6898_v17  ;;  %v17423_v10 = vld [vmem:[#allocation169_spill] sm:$0xff]  ;;  %v17434_v50 = vld [vmem:[#allocation180_spill] sm:$0xff] }
 0xa1c   : > { %8605 = vmatprep.mubr.bf16.mxu1 %v6788_v27  ;;  %v17424_v15 = vpack.c.bf16 %v17422_v7, %v17423_v10  ;;  %v17427_v17 = vld [vmem:[#allocation181_spill] sm:$0xff]  ;;  %v17440_v27 = vld [vmem:[#allocation183_spill] sm:$0xff] }
 0xa1d   : > { %v15097_v35 = vpop.f32.mrb[252].mxu1  ;;  %v10214_v60 = vpop.f32.mrb[252].mxu0 }
 0xa1e   : > { %17419 = vst [vmem:[#allocation204_spill] sm:$0xff] %v15097_v35  ;;  %v15099_v5 = vpop.f32.mrb[253].mxu1  ;;  %v10215_v31 = vpop.f32.mrb[253].mxu0  ;;  %v6787_v21 = vmul.bf16 %v17424_v15, %v3846_v49  ;;  %v17537_v35 = vld [vmem:[#allocation78_spill] sm:$0xff] }
 0xa1f   : > { %17420 = vst [vmem:[#allocation200_spill] sm:$0xff] %v15099_v5  ;;  %v10216_v45 = vadd.f32 %v10215_v31, %v10214_v60  ;;  %v15101_v52 = vpop.f32.mrb[254].mxu1  ;;  %v10217_v9 = vpop.f32.mrb[254].mxu0  ;;  %v17429_v60 = vpack.c.bf16 %v17427_v17, %v17428_v43  ;;  %v3860_v43 = vld [vmem:[#allocation5 + $0x340] sm:$0xff]  ;;  %v17437_v17 = vpack.c.bf16 %v14169_v8, %v14161_v37  ;;  %v17442_v37 = vpack.c.bf16 %v14209_v23, %v14197_v34 }
 0xa20   : > { %17421 = vst [vmem:[#allocation151_spill] sm:$0xff] %v15101_v52  ;;  %v15111_v18 = vpop.f32.mrb[255].mxu1  ;;  %v10218_v12 = vpop.f32.mrb[255].mxu0  ;;  %v17550_v52 = vld [vmem:[#allocation229_spill] sm:$0xff]  ;;  %v17551_v5 = vld [vmem:[#allocation227_spill] sm:$0xff] }
 0xa21   : > { %17426 = vst [vmem:[#allocation147_spill] sm:$0xff] %v15111_v18  ;;  %v6802_v31 = vmul.bf16 %v17429_v60, %v3861_v14  ;;  %v15117_v22 = vadd.f32 %v14785_v0, %v10216_v45  ;;  %v10219_v7 = vadd.f32 %v10218_v12, %v10217_v9  ;;  %v3970_v14 = vld [vmem:[#allocation5 + $0x6b0] sm:$0xff]  ;;  %v3875_v45 = vld [vmem:[#allocation5 + $0x3b8] sm:$0xff]  ;;  %v6706_v8 = vmul.bf16 %v17442_v37, %v3765_v63  ;;  %v17446_v63 = vld [vmem:[#allocation184_spill] sm:$0xff] }
 0xa22   : > { %8509 = vmatmul.mubr.bf16.gmra.mrb[104].mxu0 %v6897_v33  ;;  %v6911_v60 = vmul.bf16 %v17437_v17, %v3970_v14  ;;  %v3779_v17 = vld [vmem:[#allocation5 + $0xb8] sm:$0xff]  ;;  %v17564_v18 = vld [vmem:[#allocation233_spill] sm:$0xff] }
 0xa23   : > { %8606 = vmatmul.mubr.bf16.gmra.mrb[104].mxu1 %v6787_v21  ;;  %v15125_v56 = vadd.f32 %v14793_v13, %v10219_v7  ;;  %8516 = vmatprep.mubr.bf16.mxu0 %v6912_v42  ;;  %v17435_v21 = vld [vmem:[#allocation176_spill] sm:$0xff]  ;;  %v17439_v42 = vld [vmem:[#allocation185_spill] sm:$0xff] }
 0xa24   : > { %8613 = vmatprep.mubr.bf16.mxu1 %v6802_v31  ;;  %v17436_v13 = vpack.c.bf16 %v17434_v50, %v17435_v21  ;;  %v17452_v31 = vld [vmem:[#allocation187_spill] sm:$0xff] }
 0xa25   : > { %v15127_v10 = vpop.f32.mrb[0].mxu1  ;;  %v10220_v0 = vpop.f32.mrb[0].mxu0 }
 0xa26   : > { %17431 = vst [vmem:[#allocation149_spill] sm:$0xff] %v15127_v10  ;;  %v15129_v15 = vpop.f32.mrb[1].mxu1  ;;  %v10221_v9 = vpop.f32.mrb[1].mxu0  ;;  %v6801_v33 = vmul.bf16 %v17436_v13, %v3860_v43  ;;  %v11976_v43 = vld [vmem:[#allocation6 + $0x300] sm:$0xff]  }
 0xa27   : > { %17432 = vst [vmem:[#allocation145_spill] sm:$0xff] %v15129_v15  ;;  %v10222_v12 = vadd.f32 %v10221_v9, %v10220_v0  ;;  %v15131_v20 = vpop.f32.mrb[2].mxu1  ;;  %v10223_v47 = vpop.f32.mrb[2].mxu0  ;;  %v17441_v0 = vpack.c.bf16 %v17439_v42, %v17440_v27  ;;  %v3874_v27 = vld [vmem:[#allocation5 + $0x3b0] sm:$0xff]  ;;  %v17449_v42 = vpack.c.bf16 %v14201_v38, %v14193_v51  ;;  %v17454_v51 = vpack.c.bf16 %v14244_v2, %v14229_v41 }
 0xa28   : > { %17433 = vst [vmem:[#allocation202_spill] sm:$0xff] %v15131_v20  ;;  %v15141_v7 = vpop.f32.mrb[3].mxu1  ;;  %v10224_v36 = vpop.f32.mrb[3].mxu0  ;;  %v17497_v15 = vld [vmem:[#allocation53_spill] sm:$0xff] }
 0xa29   : > { %17438 = vst [vmem:[#allocation198_spill] sm:$0xff] %v15141_v7  ;;  %v6816_v9 = vmul.bf16 %v17441_v0, %v3875_v45  ;;  %v15147_v49 = vadd.f32 %v10222_v12, %v14821_v40  ;;  %v10225_v50 = vadd.f32 %v10224_v36, %v10223_v47  ;;  %v3764_v45 = vld [vmem:[#allocation5 + $0x40] sm:$0xff]  ;;  %v3889_v12 = vld [vmem:[#allocation5 + $0x428] sm:$0xff]  ;;  %v6720_v38 = vmul.bf16 %v17454_v51, %v3779_v17 }
 0xa2a   : > { %8517 = vmatmul.mubr.bf16.gmra.mrb[108].mxu0 %v6911_v60  ;;  %v6705_v0 = vmul.bf16 %v17449_v42, %v3764_v45  ;;  %v11977_v45 = vld [vmem:[#allocation6 + $0x348] sm:$0xff]   ;;  %v11979_v42 = vld [vmem:[#allocation6 + $0x350] sm:$0xff]   ;;  %v17498_v7 = vld [vmem:[#allocation251_spill] sm:$0xff] }
 0xa2b   : > { %8614 = vmatmul.mubr.bf16.gmra.mrb[108].mxu1 %v6801_v33  ;;  %v15155_v14 = vadd.f32 %v10225_v50, %v14837_v25  ;;  %8718 = vmatprep.mubr.bf16.mxu0 %v6706_v8  ;;  %v17447_v33 = vld [vmem:[#allocation182_spill] sm:$0xff]  ;;  %v17451_v8 = vld [vmem:[#allocation189_spill] sm:$0xff]  ;;  %v3793_v17 = vld [vmem:[#allocation5 + $0x128] sm:$0xff] }
 0xa2c   : > { %8621 = vmatprep.mubr.bf16.mxu1 %v6816_v9  ;;  %v17448_v25 = vpack.c.bf16 %v17446_v63, %v17447_v33  ;;  %v17463_v9 = vld [vmem:[#allocation197_spill] sm:$0xff] }
 0xa2d   : > { %v15157_v21 = vpop.f32.mrb[4].mxu1  ;;  %v10226_v40 = vpop.f32.mrb[4].mxu0 }
 0xa2e   : > { %17443 = vst [vmem:[#allocation159_spill] sm:$0xff] %v15157_v21  ;;  %v15159_v13 = vpop.f32.mrb[5].mxu1  ;;  %v10227_v47 = vpop.f32.mrb[5].mxu0  ;;  %v6815_v60 = vmul.bf16 %v17448_v25, %v3874_v27  ;;  %v17464_v27 = vld [vmem:[#allocation193_spill] sm:$0xff] }
 0xa2f   : > { %17444 = vst [vmem:[#allocation155_spill] sm:$0xff] %v15159_v13  ;;  %v10228_v36 = vadd.f32 %v10227_v47, %v10226_v40  ;;  %v15161_v34 = vpop.f32.mrb[6].mxu1  ;;  %v10229_v23 = vpop.f32.mrb[6].mxu0  ;;  %v17453_v40 = vpack.c.bf16 %v17451_v8, %v17452_v31  ;;  %v3888_v31 = vld [vmem:[#allocation5 + $0x420] sm:$0xff]  ;;  %v17459_v8 = vld [vmem:[#allocation186_spill] sm:$0xff]  ;;  %v11980_v21 = vld [vmem:[#allocation6 + $0x310] sm:$0xff]  }
 0xa30   : > { %17445 = vst [vmem:[#allocation208_spill] sm:$0xff] %v15161_v34  ;;  %v15171_v50 = vpop.f32.mrb[7].mxu1  ;;  %v10230_v37 = vpop.f32.mrb[7].mxu0  ;;  %v17466_v34 = vld [vmem:[#allocation89_spill] sm:$0xff] }
 0xa31   : > { %17450 = vst [vmem:[#allocation157_spill] sm:$0xff] %v15171_v50  ;;  %v6830_v47 = vmul.bf16 %v17453_v40, %v3889_v12  ;;  %v15177_v10 = vadd.f32 %v14817_v26, %v10228_v36  ;;  %v10231_v63 = vadd.f32 %v10230_v37, %v10229_v23  ;;  %v11978_v26 = vld [vmem:[#allocation6 + $0x308] sm:$0xff]   ;;  %v3778_v12 = vld [vmem:[#allocation5 + $0xb0] sm:$0xff]  ;;  %v3903_v23 = vld [vmem:[#allocation5 + $0x498] sm:$0xff] }
 0xa32   : > { %8719 = vmatmul.mubr.bf16.vlgmr.msra.gmra.mrb[112].mxu0 %v6705_v0  ;;  %v17458_v37 = vld [vmem:[#allocation188_spill] sm:$0xff] }
 0xa33   : > { %8622 = vmatmul.mubr.bf16.gmra.mrb[112].mxu1 %v6815_v60  ;;  %v15185_v33 = vadd.f32 %v14825_v29, %v10231_v63  ;;  %8726 = vmatprep.mubr.bf16.mxu0 %v6720_v38  ;;  %v17460_v40 = vpack.c.bf16 %v17458_v37, %v17459_v8 }
 0xa34   : > { %8629 = vmatprep.mubr.bf16.mxu1 %v6830_v47  ;;  %10853 = vmatpush3.bf16.msra.mxu0 %v11976_v43  ;;  %v17461_v47 = vpack.c.bf16 %v14233_v1, %v14225_v11  ;;  %v17467_v1 = vld [vmem:[#allocation240_spill] sm:$0xff] }
 0xa35   : > { %v15187_v36 = vpop.f32.mrb[8].mxu1  ;;  %v10232_v25 = vpop.f32.mrb[8].mxu0  ;;  %10854 = vmatprep.subr.bf16.mxu0 %v11977_v45  ;;  %v6829_v43 = vmul.bf16 %v17460_v40, %v3888_v31  ;;  %v11981_v40 = vld [vmem:[#allocation6 + $0x358] sm:$0xff]  }
 0xa36   : > { %17455 = vst [vmem:[#allocation153_spill] sm:$0xff] %v15187_v36  ;;  %v15189_v41 = vpop.f32.mrb[9].mxu1  ;;  %v10233_v2 = vpop.f32.mrb[9].mxu0  ;;  %v6719_v63 = vmul.bf16 %v17461_v47, %v3778_v12  ;;  %v17468_v12 = vld [vmem:[#allocation236_spill] sm:$0xff]  ;;  %v11983_v47 = vld [vmem:[#allocation6 + $0x360] sm:$0xff]   ;;  %v17480_v36 = vld [vmem:[#allocation205_spill] sm:$0xff] }
 0xa37   : > { %17456 = vst [vmem:[#allocation210_spill] sm:$0xff] %v15189_v41  ;;  %v10234_v60 = vadd.f32 %v10233_v2, %v10232_v25  ;;  %v15191_v0 = vpop.f32.mrb[10].mxu1  ;;  %v10235_v29 = vpop.f32.mrb[10].mxu0  ;;  %v17465_v25 = vpack.c.bf16 %v17463_v9, %v17464_v27  ;;  %v17469_v37 = vpack.c.bf16 %v17467_v1, %v17468_v12  ;;  %v3902_v27 = vld [vmem:[#allocation5 + $0x490] sm:$0xff]  ;;  %v17476_v1 = vld [vmem:[#allocation238_spill] sm:$0xff]  ;;  %v11984_v41 = vld [vmem:[#allocation6 + $0x320] sm:$0xff]  }
 0xa38   : > { %17457 = vst [vmem:[#allocation206_spill] sm:$0xff] %v15191_v0  ;;  %v15201_v38 = vpop.f32.mrb[11].mxu1  ;;  %v10236_v45 = vpop.f32.mrb[11].mxu0  ;;  %10855 = vmatpush3.bf16.msra.mxu0 %v11978_v26  ;;  %v3792_v26 = vld [vmem:[#allocation5 + $0x120] sm:$0xff]  ;;  %v17477_v12 = vld [vmem:[#allocation234_spill] sm:$0xff]  ;;  %v17481_v0 = vld [vmem:[#allocation201_spill] sm:$0xff] }
 0xa39   : > { %17462 = vst [vmem:[#allocation167_spill] sm:$0xff] %v15201_v38  ;;  %v6844_v2 = vmul.bf16 %v17465_v25, %v3903_v23  ;;  %v15207_v13 = vadd.f32 %v10234_v60, %v17466_v34  ;;  %v10237_v11 = vadd.f32 %v10236_v45, %v10235_v29  ;;  %v6734_v8 = vmul.bf16 %v17469_v37, %v3793_v17  ;;  %v11982_v34 = vld [vmem:[#allocation6 + $0x318] sm:$0xff]   ;;  %v3917_v29 = vld [vmem:[#allocation5 + $0x508] sm:$0xff]  ;;  %v17473_v25 = vld [vmem:[#allocation195_spill] sm:$0xff] }
 0xa3a   : > { %10856 = vmatprep.subr.bf16.mxu0 %v11979_v42  ;;  %8727 = vmatmul.mubr.bf16.gmra.mrb[116].mxu0 %v6719_v63  ;;  %v17478_v37 = vpack.c.bf16 %v17476_v1, %v17477_v12  ;;  %v17483_v38 = vld [vmem:[#allocation154_spill] sm:$0xff]  ;;  %v11985_v12 = vld [vmem:[#allocation6 + $0x368] sm:$0xff]  }
 0xa3b   : > { %8630 = vmatmul.mubr.bf16.gmra.mrb[116].mxu1 %v6829_v43  ;;  %v15215_v9 = vadd.f32 %v10237_v11, %v14869_v32  ;;  %8734 = vmatprep.mubr.bf16.mxu0 %v6734_v8  ;;  %v3807_v43 = vld [vmem:[#allocation5 + $0x198] sm:$0xff] }
 0xa3c   : > { %8637 = vmatprep.mubr.bf16.mxu1 %v6844_v2  ;;  %10857 = vmatpush3.bf16.msra.mxu0 %v11980_v21  ;;  %v17474_v2 = vld [vmem:[#allocation191_spill] sm:$0xff]  ;;  %v6733_v8 = vmul.bf16 %v17478_v37, %v3792_v26  ;;  %v17484_v26 = vld [vmem:[#allocation248_spill] sm:$0xff] }
 0xa3d   : > { %v15217_v23 = vpop.f32.mrb[12].mxu1  ;;  %v10238_v60 = vpop.f32.mrb[12].mxu0  ;;  %10858 = vmatprep.subr.bf16.mxu0 %v11981_v40  ;;  %v17475_v11 = vpack.c.bf16 %v17473_v25, %v17474_v2  ;;  %v17485_v2 = vld [vmem:[#allocation244_spill] sm:$0xff]  ;;  %v17492_v40 = vld [vmem:[#allocation242_spill] sm:$0xff] }
 0xa3e   : > { %17470 = vst [vmem:[#allocation163_spill] sm:$0xff] %v15217_v23  ;;  %v15219_v17 = vpop.f32.mrb[13].mxu1  ;;  %v10239_v42 = vpop.f32.mrb[13].mxu0  ;;  %v17487_v37 = vld [vmem:[#allocation152_spill] sm:$0xff] }
 0xa3f   : > { %17471 = vst [vmem:[#allocation165_spill] sm:$0xff] %v15219_v17  ;;  %v10240_v63 = vadd.f32 %v10239_v42, %v10238_v60  ;;  %v15221_v45 = vpop.f32.mrb[14].mxu1  ;;  %v10241_v32 = vpop.f32.mrb[14].mxu0  ;;  %v6843_v21 = vmul.bf16 %v17475_v11, %v3902_v27  ;;  %v17482_v60 = vpack.c.bf16 %v17480_v36, %v17481_v0  ;;  %v17486_v11 = vpack.c.bf16 %v17484_v26, %v17485_v2  ;;  %v3916_v0 = vld [vmem:[#allocation5 + $0x500] sm:$0xff]  ;;  %v17494_v17 = vld [vmem:[#allocation212_spill] sm:$0xff] }
 0xa40   : > { %17472 = vst [vmem:[#allocation161_spill] sm:$0xff] %v15221_v45  ;;  %v15231_v51 = vpop.f32.mrb[15].mxu1  ;;  %v10242_v31 = vpop.f32.mrb[15].mxu0  ;;  %10859 = vmatpush3.bf16.msra.mxu0 %v11982_v34  ;;  %v11986_v34 = vld [vmem:[#allocation6 + $0x328] sm:$0xff]  }
 0xa41   : > { %17479 = vst [vmem:[#allocation213_spill] sm:$0xff] %v15231_v51  ;;  %v6858_v42 = vmul.bf16 %v17482_v60, %v3917_v29  ;;  %v15237_v50 = vadd.f32 %v17483_v38, %v10240_v63  ;;  %v10243_v25 = vadd.f32 %v10242_v31, %v10241_v32  ;;  %v6748_v1 = vmul.bf16 %v17486_v11, %v3807_v43  ;;  %v3931_v38 = vld [vmem:[#allocation5 + $0x578] sm:$0xff]  ;;  %v3806_v29 = vld [vmem:[#allocation5 + $0x190] sm:$0xff]  ;;  %v3821_v32 = vld [vmem:[#allocation5 + $0x208] sm:$0xff] }
 0xa42   : > { %10860 = vmatprep.subr.bf16.mxu0 %v11983_v47  ;;  %8735 = vmatmul.mubr.bf16.gmra.mrb[120].mxu0 %v6733_v8  ;;  %v11987_v60 = vld [vmem:[#allocation6 + $0x370] sm:$0xff]   ;;  %v17489_v11 = vld [vmem:[#allocation199_spill] sm:$0xff] }
 0xa43   : > { %8638 = vmatmul.mubr.bf16.gmra.mrb[120].mxu1 %v6843_v21  ;;  %v15245_v36 = vadd.f32 %v17487_v37, %v10243_v25  ;;  %8742 = vmatprep.mubr.bf16.mxu0 %v6748_v1  ;;  %v17488_v25 = vld [vmem:[#allocation203_spill] sm:$0xff]  ;;  %v17491_v37 = vld [vmem:[#allocation246_spill] sm:$0xff]  ;;  %v17495_v51 = vld [vmem:[#allocation209_spill] sm:$0xff] }
 0xa44   : > { %8645 = vmatprep.mubr.bf16.mxu1 %v6858_v42  ;;  %10861 = vmatpush3.bf16.msra.mxu0 %v11984_v41  ;;  %v17490_v42 = vpack.c.bf16 %v17488_v25, %v17489_v11  ;;  %v17493_v41 = vpack.c.bf16 %v17491_v37, %v17492_v40  ;;  %v11989_v25 = vld [vmem:[#allocation6 + $0x378] sm:$0xff]   ;;  %v17504_v11 = vld [vmem:[#allocation51_spill] sm:$0xff] }
 0xa45   : > { %v10244_v63 = vpop.f32.mrb[16].mxu0  ;;  %v10308_v31 = vpop.f32.mrb[16].mxu1  ;;  %10862 = vmatprep.subr.bf16.mxu0 %v11985_v12  ;;  %v17496_v12 = vpack.c.bf16 %v17494_v17, %v17495_v51  ;;  %v3820_v17 = vld [vmem:[#allocation5 + $0x200] sm:$0xff] }
 0xa46   : > { %v10245_v43 = vpop.f32.mrb[17].mxu0  ;;  %v10309_v47 = vpop.f32.mrb[17].mxu1  ;;  %v6857_v1 = vmul.bf16 %v17490_v42, %v3916_v0  ;;  %v6747_v27 = vmul.bf16 %v17493_v41, %v3806_v29 }
 0xa47   : > { %v10246_v26 = vadd.f32 %v10245_v43, %v10244_v63  ;;  %v10310_v21 = vadd.f32 %v10309_v47, %v10308_v31  ;;  %v10247_v8 = vpop.f32.mrb[18].mxu0  ;;  %v10311_v2 = vpop.f32.mrb[18].mxu1  ;;  %v6872_v20 = vmul.bf16 %v17496_v12, %v3931_v38  ;;  %v17499_v63 = vpack.c.bf16 %v17497_v15, %v17498_v7  ;;  %v11988_v43 = vld [vmem:[#allocation6 + $0x330] sm:$0xff]  }
 0xa48   : > { %v10248_v23 = vpop.f32.mrb[19].mxu0  ;;  %v10312_v45 = vpop.f32.mrb[19].mxu1  ;;  %10863 = vmatpush3.bf16.msra.mxu0 %v11986_v34  ;;  %v3930_v7 = vld [vmem:[#allocation5 + $0x570] sm:$0xff] }
 0xa49   : > { %v6762_v31 = vmul.bf16 %v17499_v63, %v3821_v32  ;;  %v15260_v47 = vadd.f32 %v10246_v26, %v14885_v19  ;;  %v15263_v0 = vadd.f32 %v10310_v21, %v15027_v59  ;;  %v10249_v40 = vadd.f32 %v10248_v23, %v10247_v8  ;;  %10864 = vmatprep.subr.bf16.mxu0 %v11987_v60  ;;  %v11990_v19 = vld [vmem:[#allocation6 + $0x338] sm:$0xff]   ;;  %v3945_v23 = vld [vmem:[#allocation5 + $0x5e8] sm:$0xff]  ;;  %v17500_v21 = vld [vmem:[#allocation211_spill] sm:$0xff] }
 0xa4a   : > { %v10313_v29 = vadd.f32 %v10312_v45, %v10311_v2  ;;  %8743 = vmatmul.mubr.bf16.gmra.mrb[124].mxu0 %v6747_v27  ;;  %v3835_v45 = vld [vmem:[#allocation5 + $0x278] sm:$0xff]  ;;  %v17503_v2 = vld [vmem:[#allocation253_spill] sm:$0xff]  ;;  %v17507_v63 = vld [vmem:[#allocation215_spill] sm:$0xff] }
 0xa4b   : > { %8646 = vmatmul.mubr.bf16.gmra.mrb[124].mxu1 %v6857_v1  ;;  %v15266_v51 = vadd.f32 %v10249_v40, %v14901_v62  ;;  %8750 = vmatprep.mubr.bf16.mxu0 %v6762_v31  ;;  %v17505_v42 = vpack.c.bf16 %v17503_v2, %v17504_v11  ;;  %v17506_v12 = vld [vmem:[#allocation217_spill] sm:$0xff]  ;;  %v17509_v40 = vld [vmem:[#allocation23_spill] sm:$0xff]  ;;  %v17513_v11 = vld [vmem:[#allocation216_spill] sm:$0xff] }
 0xa4c   : > { %v15269_v15 = vadd.f32 %v10313_v29, %v15035_v48  ;;  %8653 = vmatprep.mubr.bf16.mxu1 %v6872_v20  ;;  %10865 = vmatpush3.bf16.msra.mxu0 %v11988_v43  ;;  %v17501_v48 = vld [vmem:[#allocation207_spill] sm:$0xff]  ;;  %v17508_v31 = vpack.c.bf16 %v17506_v12, %v17507_v63  ;;  %v17510_v29 = vld [vmem:[#allocation24_spill] sm:$0xff] }
 0xa4d   : > { %v10250_v59 = vpop.f32.mrb[20].mxu0  ;;  %v10314_v38 = vpop.f32.mrb[20].mxu1  ;;  %10866 = vmatprep.subr.bf16.mxu0 %v11989_v25  ;;  %v17502_v8 = vpack.c.bf16 %v17500_v21, %v17501_v48  ;;  %v6761_v1 = vmul.bf16 %v17505_v42, %v3820_v17  ;;  %v17511_v25 = vpack.c.bf16 %v17509_v40, %v17510_v29  ;;  %v17512_v17 = vld [vmem:[#allocation101_spill] sm:$0xff]  ;;  %v17514_v42 = vld [vmem:[#allocation214_spill] sm:$0xff]  ;;  %v17520_v29 = vld [vmem:[#allocation219_spill] sm:$0xff] }
 0xa4e   : > { %v10251_v34 = vpop.f32.mrb[21].mxu0  ;;  %v10315_v32 = vpop.f32.mrb[21].mxu1  ;;  %v6886_v43 = vmul.bf16 %v17508_v31, %v3945_v23  ;;  %v17519_v40 = vld [vmem:[#allocation221_spill] sm:$0xff] }
 0xa4f   : > { %v10252_v27 = vadd.f32 %v10251_v34, %v10250_v59  ;;  %v10316_v60 = vadd.f32 %v10315_v32, %v10314_v38  ;;  %v10253_v62 = vpop.f32.mrb[22].mxu0  ;;  %v10317_v26 = vpop.f32.mrb[22].mxu1  ;;  %v6871_v20 = vmul.bf16 %v17502_v8, %v3930_v7  ;;  %v6776_v59 = vmul.bf16 %v17511_v25, %v3835_v45  ;;  %v3944_v45 = vld [vmem:[#allocation5 + $0x5e0] sm:$0xff]  ;;  %v3849_v8 = vld [vmem:[#allocation5 + $0x2e8] sm:$0xff] }
 0xa50   : > { %v10254_v37 = vpop.f32.mrb[23].mxu0  ;;  %v10318_v41 = vpop.f32.mrb[23].mxu1  ;;  %10867 = vmatpush3.bf16.msra.mxu0 %v11990_v19  ;;  %v3834_v19 = vld [vmem:[#allocation5 + $0x270] sm:$0xff]  ;;  %v17521_v25 = vpack.c.bf16 %v17519_v40, %v17520_v29 }
 0xa51   : > { %v15284_v38 = vadd.f32 %v14881_v24, %v10252_v27  ;;  %v15287_v7 = vadd.f32 %v10316_v60, %v15057_v3  ;;  %v10255_v34 = vadd.f32 %v10254_v37, %v10253_v62  ;;  %v10319_v32 = vadd.f32 %v10318_v41, %v10317_v26  ;;  %v3959_v27 = vld [vmem:[#allocation5 + $0x658] sm:$0xff] }
 0xa52   : > { %8751 = vmatmul.mubr.bf16.gmra.mrb[128].mxu0 %v6761_v1  ;;  %v17515_v1 = vpack.c.bf16 %v17513_v11, %v17514_v42  ;;  %v17517_v41 = vld [vmem:[#allocation62_spill] sm:$0xff] }
 0xa53   : > { %8654 = vmatmul.mubr.bf16.gmra.mrb[128].mxu1 %v6871_v20  ;;  %v15290_v21 = vadd.f32 %v17512_v17, %v10255_v34  ;;  %v15293_v23 = vadd.f32 %v10319_v32, %v15065_v39  ;;  %8758 = vmatprep.mubr.bf16.mxu0 %v6776_v59  ;;  %v17516_v39 = vld [vmem:[#allocation255_spill] sm:$0xff]  ;;  %v6900_v59 = vmul.bf16 %v17521_v25, %v3959_v27  ;;  %v17523_v32 = vld [vmem:[#allocation70_spill] sm:$0xff]  ;;  %v3958_v27 = vld [vmem:[#allocation5 + $0x650] sm:$0xff] }
 0xa54   : > { %8661 = vmatprep.mubr.bf16.mxu1 %v6886_v43  ;;  %v6885_v37 = vmul.bf16 %v17515_v1, %v3944_v45  ;;  %v17518_v12 = vpack.c.bf16 %v17516_v39, %v17517_v41  ;;  %v17522_v34 = vld [vmem:[#allocation27_spill] sm:$0xff]  ;;  %v3973_v41 = vld [vmem:[#allocation5 + $0x6c8] sm:$0xff] }
 0xa55   : > { %v10256_v48 = vpop.f32.mrb[24].mxu0  ;;  %v10320_v24 = vpop.f32.mrb[24].mxu1  ;;  %v17524_v17 = vpack.c.bf16 %v17522_v34, %v17523_v32  ;;  %v17531_v25 = vld [vmem:[#allocation60_spill] sm:$0xff] }
 0xa56   : > { %v10257_v3 = vpop.f32.mrb[25].mxu0  ;;  %v10321_v60 = vpop.f32.mrb[25].mxu1  ;;  %v6775_v63 = vmul.bf16 %v17518_v12, %v3834_v19  ;;  %v17526_v19 = vld [vmem:[#allocation172_spill] sm:$0xff]  ;;  %v3863_v12 = vld [vmem:[#allocation5 + $0x358] sm:$0xff] }
 0xa57   : > { %v10258_v62 = vadd.f32 %v10257_v3, %v10256_v48  ;;  %v10322_v26 = vadd.f32 %v10321_v60, %v10320_v24  ;;  %v10259_v20 = vpop.f32.mrb[26].mxu0  ;;  %v10323_v2 = vpop.f32.mrb[26].mxu1  ;;  %v6790_v48 = vmul.bf16 %v17524_v17, %v3849_v8  ;;  %v17525_v24 = vld [vmem:[#allocation107_spill] sm:$0xff] }
 0xa58   : > { %v10260_v31 = vpop.f32.mrb[27].mxu0  ;;  %v10324_v43 = vpop.f32.mrb[27].mxu1  ;;  %v3848_v8 = vld [vmem:[#allocation5 + $0x2e0] sm:$0xff] }
 0xa59   : > { %v15308_v3 = vadd.f32 %v10258_v62, %v17525_v24  ;;  %v15311_v60 = vadd.f32 %v10322_v26, %v15087_v58  ;;  %v10261_v45 = vadd.f32 %v10260_v31, %v10259_v20  ;;  %v10325_v11 = vadd.f32 %v10324_v43, %v10323_v2  ;;  %v17527_v31 = vld [vmem:[#allocation220_spill] sm:$0xff]  ;;  %v17528_v43 = vld [vmem:[#allocation218_spill] sm:$0xff]  ;;  %v17534_v24 = vld [vmem:[#allocation223_spill] sm:$0xff] }
 0xa5a   : > { %8759 = vmatmul.mubr.bf16.gmra.mrb[132].mxu0 %v6775_v63  ;;  %v17529_v40 = vpack.c.bf16 %v17527_v31, %v17528_v43 }
 0xa5b   : > { %8662 = vmatmul.mubr.bf16.gmra.mrb[132].mxu1 %v6885_v37  ;;  %v15314_v42 = vadd.f32 %v10261_v45, %v17526_v19  ;;  %v15317_v1 = vadd.f32 %v10325_v11, %v15095_v30  ;;  %8766 = vmatprep.mubr.bf16.mxu0 %v6790_v48  ;;  %v17530_v30 = vld [vmem:[#allocation28_spill] sm:$0xff]  ;;  %v17533_v48 = vld [vmem:[#allocation225_spill] sm:$0xff]  ;;  %v17536_v19 = vld [vmem:[#allocation31_spill] sm:$0xff] }
 0xa5c   : > { %8669 = vmatprep.mubr.bf16.mxu1 %v6900_v59  ;;  %v6899_v29 = vmul.bf16 %v17529_v40, %v3958_v27  ;;  %v17532_v59 = vpack.c.bf16 %v17530_v30, %v17531_v25  ;;  %v17535_v45 = vpack.c.bf16 %v17533_v48, %v17534_v24  ;;  %v3877_v25 = vld [vmem:[#allocation5 + $0x3c8] sm:$0xff] }
 0xa5d   : > { %v10262_v39 = vpop.f32.mrb[28].mxu0  ;;  %v10326_v62 = vpop.f32.mrb[28].mxu1 }
 0xa5e   : > { %v10263_v58 = vpop.f32.mrb[29].mxu0  ;;  %v10327_v26 = vpop.f32.mrb[29].mxu1  ;;  %v6789_v34 = vmul.bf16 %v17532_v59, %v3848_v8  ;;  %v6914_v11 = vmul.bf16 %v17535_v45, %v3973_v41  ;;  %v17540_v8 = vld [vmem:[#allocation109_spill] sm:$0xff]  ;;  %v3767_v59 = vld [vmem:[#allocation5 + $0x58] sm:$0xff]  ;;  %v17545_v45 = vld [vmem:[#allocation68_spill] sm:$0xff] }
 0xa5f   : > { %v10264_v20 = vadd.f32 %v10263_v58, %v10262_v39  ;;  %v10328_v2 = vadd.f32 %v10327_v26, %v10326_v62  ;;  %v10265_v37 = vpop.f32.mrb[30].mxu0  ;;  %v10329_v63 = vpop.f32.mrb[30].mxu1  ;;  %v17538_v39 = vpack.c.bf16 %v17536_v19, %v17537_v35  ;;  %v17539_v58 = vld [vmem:[#allocation160_spill] sm:$0xff]  ;;  %v3972_v35 = vld [vmem:[#allocation5 + $0x6c0] sm:$0xff]  ;;  %v3862_v41 = vld [vmem:[#allocation5 + $0x350] sm:$0xff] }
 0xa60   : > { %v10266_v32 = vpop.f32.mrb[31].mxu0  ;;  %v10330_v17 = vpop.f32.mrb[31].mxu1 }
 0xa61   : > { %v6804_v62 = vmul.bf16 %v17538_v39, %v3863_v12  ;;  %v15332_v26 = vadd.f32 %v17539_v58, %v10264_v20  ;;  %v15335_v31 = vadd.f32 %v10328_v2, %v15117_v22  ;;  %v10267_v27 = vadd.f32 %v10266_v32, %v10265_v37  ;;  %v17541_v32 = vld [vmem:[#allocation224_spill] sm:$0xff]  ;;  %v17547_v58 = vld [vmem:[#allocation35_spill] sm:$0xff] }
 0xa62   : > { %v10331_v43 = vadd.f32 %v10330_v17, %v10329_v63  ;;  %8767 = vmatmul.mubr.bf16.gmra.mrb[136].mxu0 %v6789_v34  ;;  %v17542_v17 = vld [vmem:[#allocation222_spill] sm:$0xff] }
 0xa63   : > { %8670 = vmatmul.mubr.bf16.gmra.mrb[136].mxu1 %v6899_v29  ;;  %v15338_v40 = vadd.f32 %v17540_v8, %v10267_v27  ;;  %8774 = vmatprep.mubr.bf16.mxu0 %v6804_v62  ;;  %v17543_v48 = vpack.c.bf16 %v17541_v32, %v17542_v17  ;;  %v17548_v27 = vld [vmem:[#allocation86_spill] sm:$0xff] }
 0xa64   : > { %v15341_v30 = vadd.f32 %v10331_v43, %v15125_v56  ;;  %8677 = vmatprep.mubr.bf16.mxu1 %v6914_v11  ;;  %v17544_v56 = vld [vmem:[#allocation32_spill] sm:$0xff]  ;;  %v17549_v43 = vpack.c.bf16 %v17547_v58, %v17548_v27 }
 0xa65   : > { %v10268_v12 = vpop.f32.mrb[32].mxu0  ;;  %v10332_v20 = vpop.f32.mrb[32].mxu1  ;;  %v6913_v24 = vmul.bf16 %v17543_v48, %v3972_v35  ;;  %v17546_v11 = vpack.c.bf16 %v17544_v56, %v17545_v45  ;;  %v3781_v45 = vld [vmem:[#allocation5 + $0xc8] sm:$0xff] }
 0xa66   : > { %v10269_v22 = vpop.f32.mrb[33].mxu0  ;;  %v10333_v2 = vpop.f32.mrb[33].mxu1  ;;  %v6818_v8 = vmul.bf16 %v17549_v43, %v3877_v25  ;;  %v17559_v27 = vld [vmem:[#allocation76_spill] sm:$0xff] }
 0xa67   : > { %v10270_v37 = vadd.f32 %v10269_v22, %v10268_v12  ;;  %v10334_v63 = vadd.f32 %v10333_v2, %v10332_v20  ;;  %v10271_v29 = vpop.f32.mrb[34].mxu0  ;;  %v10335_v34 = vpop.f32.mrb[34].mxu1  ;;  %v6803_v19 = vmul.bf16 %v17546_v11, %v3862_v41  ;;  %v17552_v12 = vpack.c.bf16 %v17550_v52, %v17551_v5  ;;  %v17553_v22 = vld [vmem:[#allocation177_spill] sm:$0xff]  ;;  %v17554_v41 = vld [vmem:[#allocation175_spill] sm:$0xff] }
 0xa68   : > { %v10272_v39 = vpop.f32.mrb[35].mxu0  ;;  %v10336_v62 = vpop.f32.mrb[35].mxu1  ;;  %v3766_v5 = vld [vmem:[#allocation5 + $0x50] sm:$0xff]  ;;  %v3876_v52 = vld [vmem:[#allocation5 + $0x3c0] sm:$0xff] }
 0xa69   : > { %v6708_v20 = vmul.bf16 %v17552_v12, %v3767_v59  ;;  %v15356_v2 = vadd.f32 %v10270_v37, %v17553_v22  ;;  %v15359_v32 = vadd.f32 %v10334_v63, %v15147_v49  ;;  %v10273_v35 = vadd.f32 %v10272_v39, %v10271_v29  ;;  %v3891_v37 = vld [vmem:[#allocation5 + $0x438] sm:$0xff]  ;;  %v17561_v22 = vld [vmem:[#allocation39_spill] sm:$0xff] }
 0xa6a   : > { %v10337_v17 = vadd.f32 %v10336_v62, %v10335_v34  ;;  %8775 = vmatmul.mubr.bf16.gmra.mrb[140].mxu0 %v6803_v19  ;;  %v17555_v19 = vld [vmem:[#allocation228_spill] sm:$0xff]  ;;  %v17556_v39 = vld [vmem:[#allocation226_spill] sm:$0xff] }
 0xa6b   : > { %8678 = vmatmul.mubr.bf16.gmra.mrb[140].mxu1 %v6913_v24  ;;  %v15362_v48 = vadd.f32 %v10273_v35, %v17554_v41  ;;  %8782 = vmatprep.mubr.bf16.mxu0 %v6818_v8  ;;  %v17557_v62 = vpack.c.bf16 %v17555_v19, %v17556_v39  ;;  %v17562_v35 = vld [vmem:[#allocation94_spill] sm:$0xff] }
 0xa6c   : > { %v15365_v56 = vadd.f32 %v10337_v17, %v15155_v14  ;;  %8879 = vmatprep.mubr.bf16.mxu1 %v6708_v20  ;;  %v17558_v14 = vld [vmem:[#allocation36_spill] sm:$0xff]  ;;  %v17563_v17 = vpack.c.bf16 %v17561_v22, %v17562_v35 }
 0xa6d   : > { %v10274_v25 = vpop.f32.mrb[36].mxu0  ;;  %v10338_v59 = vpop.f32.mrb[36].mxu1  ;;  %v6707_v58 = vmul.bf16 %v17557_v62, %v3766_v5  ;;  %v17560_v43 = vpack.c.bf16 %v17558_v14, %v17559_v27  ;;  %v3795_v27 = vld [vmem:[#allocation5 + $0x138] sm:$0xff]  ;;  %v17573_v35 = vld [vmem:[#allocation84_spill] sm:$0xff] }
 0xa6e   : > { %v10275_v49 = vpop.f32.mrb[37].mxu0  ;;  %v10339_v63 = vpop.f32.mrb[37].mxu1  ;;  %v6832_v41 = vmul.bf16 %v17563_v17, %v3891_v37 }
 0xa6f   : > { %v10276_v29 = vadd.f32 %v10275_v49, %v10274_v25  ;;  %v10340_v34 = vadd.f32 %v10339_v63, %v10338_v59  ;;  %v10277_v24 = vpop.f32.mrb[38].mxu0  ;;  %v10341_v11 = vpop.f32.mrb[38].mxu1  ;;  %v6817_v8 = vmul.bf16 %v17560_v43, %v3876_v52  ;;  %v17566_v25 = vpack.c.bf16 %v17564_v18, %v17565_v61  ;;  %v17567_v49 = vld [vmem:[#allocation119_spill] sm:$0xff]  ;;  %v17568_v52 = vld [vmem:[#allocation113_spill] sm:$0xff] }
 0xa70   : > { %v10278_v12 = vpop.f32.mrb[39].mxu0  ;;  %v10342_v20 = vpop.f32.mrb[39].mxu1  ;;  %v3780_v61 = vld [vmem:[#allocation5 + $0xc0] sm:$0xff]  ;;  %v3890_v18 = vld [vmem:[#allocation5 + $0x430] sm:$0xff] }
 0xa71   : > { %v6722_v59 = vmul.bf16 %v17566_v25, %v3781_v45  ;;  %v15380_v63 = vadd.f32 %v17567_v49, %v10276_v29  ;;  %v15383_v19 = vadd.f32 %v10340_v34, %v15177_v10  ;;  %v10279_v5 = vadd.f32 %v10278_v12, %v10277_v24  ;;  %v3905_v29 = vld [vmem:[#allocation5 + $0x4a8] sm:$0xff]  ;;  %v17570_v12 = vld [vmem:[#allocation230_spill] sm:$0xff]  ;;  %v17575_v49 = vld [vmem:[#allocation43_spill] sm:$0xff] }
 0xa72   : > { %v10343_v39 = vadd.f32 %v10342_v20, %v10341_v11  ;;  %8783 = vmatmul.mubr.bf16.gmra.mrb[144].mxu0 %v6817_v8  ;;  %v17569_v8 = vld [vmem:[#allocation232_spill] sm:$0xff] }
 0xa73   : > { %8880 = vmatmul.mubr.bf16.vlgmr.msra.gmra.mrb[144].mxu1 %v6707_v58  ;;  %v15386_v62 = vadd.f32 %v17568_v52, %v10279_v5  ;;  %8790 = vmatprep.mubr.bf16.mxu0 %v6832_v41  ;;  %v17571_v20 = vpack.c.bf16 %v17569_v8, %v17570_v12  ;;  %v17576_v5 = vld [vmem:[#allocation102_spill] sm:$0xff] }
 0xa74   : > { %v15389_v14 = vadd.f32 %v10343_v39, %v15185_v33  ;;  %8887 = vmatprep.mubr.bf16.mxu1 %v6722_v59  ;;  %v17572_v33 = vld [vmem:[#allocation40_spill] sm:$0xff]  ;;  %v17577_v39 = vpack.c.bf16 %v17575_v49, %v17576_v5 }
 0xa75   : > { %v10280_v37 = vpop.f32.mrb[40].mxu0  ;;  %v10344_v45 = vpop.f32.mrb[40].mxu1  ;;  %v6721_v22 = vmul.bf16 %v17571_v20, %v3780_v61  ;;  %v17574_v17 = vpack.c.bf16 %v17572_v33, %v17573_v35  ;;  %v3809_v35 = vld [vmem:[#allocation5 + $0x1a8] sm:$0xff] }
 0xa76   : > { %v10281_v10 = vpop.f32.mrb[41].mxu0  ;;  %v10345_v34 = vpop.f32.mrb[41].mxu1  ;;  %v6846_v52 = vmul.bf16 %v17577_v39, %v3905_v29  ;;  %v17587_v5 = vld [vmem:[#allocation92_spill] sm:$0xff] }
 0xa77   : > { %v10282_v24 = vadd.f32 %v10281_v10, %v10280_v37  ;;  %v10346_v11 = vadd.f32 %v10345_v34, %v10344_v45  ;;  %v10283_v43 = vpop.f32.mrb[42].mxu0  ;;  %v10347_v58 = vpop.f32.mrb[42].mxu1  ;;  %v6831_v41 = vmul.bf16 %v17574_v17, %v3890_v18  ;;  %v17580_v37 = vpack.c.bf16 %v17578_v54, %v17579_v53  ;;  %v17581_v10 = vld [vmem:[#allocation121_spill] sm:$0xff]  ;;  %v3904_v54 = vld [vmem:[#allocation5 + $0x4a0] sm:$0xff] }
 0xa78   : > { %v10284_v25 = vpop.f32.mrb[43].mxu0  ;;  %v10348_v59 = vpop.f32.mrb[43].mxu1  ;;  %v17582_v18 = vld [vmem:[#allocation129_spill] sm:$0xff] }
 0xa79   : > { %v6736_v45 = vmul.bf16 %v17580_v37, %v3795_v27  ;;  %v15404_v34 = vadd.f32 %v10282_v24, %v17581_v10  ;;  %v15407_v8 = vadd.f32 %v10346_v11, %v15207_v13  ;;  %v10285_v61 = vadd.f32 %v10284_v25, %v10283_v43  ;;  %v3794_v53 = vld [vmem:[#allocation5 + $0x130] sm:$0xff]  ;;  %v3919_v24 = vld [vmem:[#allocation5 + $0x518] sm:$0xff]  ;;  %v17584_v25 = vld [vmem:[#allocation235_spill] sm:$0xff] }
 0xa7a   : > { %v10349_v12 = vadd.f32 %v10348_v59, %v10347_v58  ;;  %8791 = vmatmul.mubr.bf16.gmra.mrb[148].mxu0 %v6831_v41  ;;  %v17583_v41 = vld [vmem:[#allocation239_spill] sm:$0xff] }
 0xa7b   : > { %8888 = vmatmul.mubr.bf16.gmra.mrb[148].mxu1 %v6721_v22  ;;  %v15410_v20 = vadd.f32 %v10285_v61, %v17582_v18  ;;  %8798 = vmatprep.mubr.bf16.mxu0 %v6846_v52  ;;  %v17585_v59 = vpack.c.bf16 %v17583_v41, %v17584_v25  ;;  %v17589_v10 = vld [vmem:[#allocation47_spill] sm:$0xff]  ;;  %v17590_v61 = vld [vmem:[#allocation110_spill] sm:$0xff] }
 0xa7c   : > { %v15413_v33 = vadd.f32 %v10349_v12, %v15215_v9  ;;  %8895 = vmatprep.mubr.bf16.mxu1 %v6736_v45  ;;  %v17586_v9 = vld [vmem:[#allocation44_spill] sm:$0xff]  ;;  %v17591_v12 = vpack.c.bf16 %v17589_v10, %v17590_v61 }
 0xa7d   : > { %v10286_v29 = vpop.f32.mrb[44].mxu0  ;;  %v10350_v27 = vpop.f32.mrb[44].mxu1  ;;  %v6735_v49 = vmul.bf16 %v17585_v59, %v3794_v53  ;;  %v17588_v39 = vpack.c.bf16 %v17586_v9, %v17587_v5  ;;  %v3823_v5 = vld [vmem:[#allocation5 + $0x218] sm:$0xff]  ;;  %v17601_v61 = vld [vmem:[#allocation100_spill] sm:$0xff] }
 0xa7e   : > { %v10287_v13 = vpop.f32.mrb[45].mxu0  ;;  %v10351_v11 = vpop.f32.mrb[45].mxu1  ;;  %v6860_v18 = vmul.bf16 %v17591_v12, %v3919_v24 }
 0xa7f   : > { %v10288_v43 = vadd.f32 %v10287_v13, %v10286_v29  ;;  %v10352_v58 = vadd.f32 %v10351_v11, %v10350_v27  ;;  %v10289_v17 = vpop.f32.mrb[46].mxu0  ;;  %v10353_v22 = vpop.f32.mrb[46].mxu1  ;;  %v6845_v52 = vmul.bf16 %v17588_v39, %v3904_v54  ;;  %v17594_v29 = vpack.c.bf16 %v17592_v16, %v17593_v28  ;;  %v17595_v13 = vld [vmem:[#allocation123_spill] sm:$0xff]  ;;  %v3918_v16 = vld [vmem:[#allocation5 + $0x510] sm:$0xff] }
 0xa80   : > { %v10290_v37 = vpop.f32.mrb[47].mxu0  ;;  %v10354_v45 = vpop.f32.mrb[47].mxu1  ;;  %v17596_v54 = vld [vmem:[#allocation131_spill] sm:$0xff] }
 0xa81   : > { %v6750_v27 = vmul.bf16 %v17594_v29, %v3809_v35  ;;  %v15428_v11 = vadd.f32 %v17595_v13, %v10288_v43  ;;  %v15431_v41 = vadd.f32 %v10352_v58, %v15237_v50  ;;  %v10291_v53 = vadd.f32 %v10290_v37, %v10289_v17  ;;  %v3808_v28 = vld [vmem:[#allocation5 + $0x1a0] sm:$0xff]  ;;  %v3933_v43 = vld [vmem:[#allocation5 + $0x588] sm:$0xff]  ;;  %v17603_v13 = vld [vmem:[#allocation54_spill] sm:$0xff] }
 0xa82   : > { %v10355_v25 = vadd.f32 %v10354_v45, %v10353_v22  ;;  %8799 = vmatmul.mubr.bf16.gmra.mrb[152].mxu0 %v6845_v52  ;;  %v17597_v52 = vld [vmem:[#allocation247_spill] sm:$0xff] }
 0xa83   : > { %8896 = vmatmul.mubr.bf16.gmra.mrb[152].mxu1 %v6735_v49  ;;  %v15434_v59 = vadd.f32 %v17596_v54, %v10291_v53  ;;  %8806 = vmatprep.mubr.bf16.mxu0 %v6860_v18  ;;  %v17598_v37 = vld [vmem:[#allocation243_spill] sm:$0xff]  ;;  %v17604_v53 = vld [vmem:[#allocation118_spill] sm:$0xff] }
 0xa84   : > { %v15437_v9 = vadd.f32 %v10355_v25, %v15245_v36  ;;  %8903 = vmatprep.mubr.bf16.mxu1 %v6750_v27  ;;  %v17599_v45 = vpack.c.bf16 %v17597_v52, %v17598_v37  ;;  %v17600_v36 = vld [vmem:[#allocation48_spill] sm:$0xff]  ;;  %v17605_v25 = vpack.c.bf16 %v17603_v13, %v17604_v53 }
 0xa85   : > { %v10356_v24 = vpop.f32.mrb[48].mxu1  ;;  %v10420_v35 = vpop.f32.mrb[48].mxu0  ;;  %v17602_v12 = vpack.c.bf16 %v17600_v36, %v17601_v61  ;;  %v17609_v36 = vld [vmem:[#allocation254_spill] sm:$0xff] }
 0xa86   : > { %v10357_v50 = vpop.f32.mrb[49].mxu1  ;;  %v10421_v58 = vpop.f32.mrb[49].mxu0  ;;  %v6749_v10 = vmul.bf16 %v17599_v45, %v3808_v28  ;;  %v6874_v54 = vmul.bf16 %v17605_v25, %v3933_v43  ;;  %v17615_v25 = vld [vmem:[#allocation61_spill] sm:$0xff] }
 0xa87   : > { %v10358_v17 = vadd.f32 %v10357_v50, %v10356_v24  ;;  %v10422_v22 = vadd.f32 %v10421_v58, %v10420_v35  ;;  %v10359_v39 = vpop.f32.mrb[50].mxu1  ;;  %v10423_v49 = vpop.f32.mrb[50].mxu0  ;;  %v6859_v18 = vmul.bf16 %v17602_v12, %v3918_v16  ;;  %v17608_v24 = vpack.c.bf16 %v17606_v46, %v17607_v6  ;;  %v3822_v6 = vld [vmem:[#allocation5 + $0x210] sm:$0xff]  ;;  %v3932_v46 = vld [vmem:[#allocation5 + $0x580] sm:$0xff] }
 0xa88   : > { %v10360_v29 = vpop.f32.mrb[51].mxu1  ;;  %v10424_v27 = vpop.f32.mrb[51].mxu0 }
 0xa89   : > { %v6764_v35 = vmul.bf16 %v17608_v24, %v3823_v5  ;;  %v15452_v50 = vadd.f32 %v10358_v17, %v15260_v47  ;;  %v15455_v58 = vadd.f32 %v10422_v22, %v15263_v0  ;;  %v10361_v28 = vadd.f32 %v10360_v29, %v10359_v39  ;;  %v3947_v5 = vld [vmem:[#allocation5 + $0x5f8] sm:$0xff]  ;;  %v3837_v17 = vld [vmem:[#allocation5 + $0x288] sm:$0xff] }
 0xa8a   : > { %v10425_v52 = vadd.f32 %v10424_v27, %v10423_v49  ;;  %8807 = vmatmul.mubr.bf16.gmra.mrb[156].mxu0 %v6859_v18  ;;  %v17613_v18 = vld [vmem:[#allocation108_spill] sm:$0xff] }
 0xa8b   : > { %8904 = vmatmul.mubr.bf16.gmra.mrb[156].mxu1 %v6749_v10  ;;  %v15458_v16 = vadd.f32 %v10361_v28, %v15266_v51  ;;  %8814 = vmatprep.mubr.bf16.mxu0 %v6874_v54  ;;  %v17610_v51 = vld [vmem:[#allocation250_spill] sm:$0xff]  ;;  %v17616_v54 = vld [vmem:[#allocation63_spill] sm:$0xff]  ;;  %v17618_v28 = vld [vmem:[#allocation21_spill] sm:$0xff] }
 0xa8c   : > { %v15461_v37 = vadd.f32 %v10425_v52, %v15269_v15  ;;  %8911 = vmatprep.mubr.bf16.mxu1 %v6764_v35  ;;  %v17611_v61 = vpack.c.bf16 %v17609_v36, %v17610_v51  ;;  %v17612_v15 = vld [vmem:[#allocation55_spill] sm:$0xff]  ;;  %v17617_v24 = vpack.c.bf16 %v17615_v25, %v17616_v54  ;;  %v17619_v52 = vld [vmem:[#allocation22_spill] sm:$0xff] }
 0xa8d   : > { %v10362_v43 = vpop.f32.mrb[52].mxu1  ;;  %v10426_v47 = vpop.f32.mrb[52].mxu0  ;;  %v17614_v29 = vpack.c.bf16 %v17612_v15, %v17613_v18  ;;  %v3851_v15 = vld [vmem:[#allocation5 + $0x2f8] sm:$0xff] }
 0xa8e   : > { %v10363_v0 = vpop.f32.mrb[53].mxu1  ;;  %v10427_v22 = vpop.f32.mrb[53].mxu0  ;;  %v6763_v12 = vmul.bf16 %v17611_v61, %v3822_v6  ;;  %v6888_v35 = vmul.bf16 %v17617_v24, %v3947_v5  ;;  %v3836_v5 = vld [vmem:[#allocation5 + $0x280] sm:$0xff] }
 0xa8f   : > { %v10364_v39 = vadd.f32 %v10363_v0, %v10362_v43  ;;  %v10428_v49 = vadd.f32 %v10427_v22, %v10426_v47  ;;  %v10365_v45 = vpop.f32.mrb[54].mxu1  ;;  %v10429_v10 = vpop.f32.mrb[54].mxu0  ;;  %v6873_v27 = vmul.bf16 %v17614_v29, %v3932_v46  ;;  %v17620_v43 = vpack.c.bf16 %v17618_v28, %v17619_v52  ;;  %v17621_v29 = vld [vmem:[#allocation256_spill] sm:$0xff]  ;;  %v17627_v28 = vld [vmem:[#allocation69_spill] sm:$0xff]  ;;  %v17628_v52 = vld [vmem:[#allocation71_spill] sm:$0xff] }
 0xa90   : > { %v10366_v13 = vpop.f32.mrb[55].mxu1  ;;  %v10430_v53 = vpop.f32.mrb[55].mxu0 }
 0xa91   : > { %v6778_v47 = vmul.bf16 %v17620_v43, %v3837_v17  ;;  %v15476_v0 = vadd.f32 %v10364_v39, %v15284_v38  ;;  %v15479_v22 = vadd.f32 %v10428_v49, %v15287_v7  ;;  %v10367_v6 = vadd.f32 %v10366_v13, %v10365_v45  ;;  %v3946_v17 = vld [vmem:[#allocation5 + $0x5f0] sm:$0xff]  ;;  %v3961_v39 = vld [vmem:[#allocation5 + $0x668] sm:$0xff] }
 0xa92   : > { %v10431_v36 = vadd.f32 %v10430_v53, %v10429_v10  ;;  %8815 = vmatmul.mubr.bf16.gmra.mrb[160].mxu0 %v6873_v27  ;;  %v17625_v53 = vld [vmem:[#allocation116_spill] sm:$0xff]  ;;  %v17629_v43 = vpack.c.bf16 %v17627_v28, %v17628_v52 }
 0xa93   : > { %8912 = vmatmul.mubr.bf16.gmra.mrb[160].mxu1 %v6763_v12  ;;  %v15482_v46 = vadd.f32 %v10367_v6, %v15290_v21  ;;  %8822 = vmatprep.mubr.bf16.mxu0 %v6888_v35  ;;  %v17622_v21 = vld [vmem:[#allocation58_spill] sm:$0xff]  ;;  %v17630_v6 = vld [vmem:[#allocation25_spill] sm:$0xff] }
 0xa94   : > { %v15485_v51 = vadd.f32 %v10431_v36, %v15293_v23  ;;  %8919 = vmatprep.mubr.bf16.mxu1 %v6778_v47  ;;  %v17623_v27 = vpack.c.bf16 %v17621_v29, %v17622_v21  ;;  %v17624_v23 = vld [vmem:[#allocation126_spill] sm:$0xff]  ;;  %v6902_v47 = vmul.bf16 %v17629_v43, %v3961_v39  ;;  %v3850_v39 = vld [vmem:[#allocation5 + $0x2f0] sm:$0xff] }
 0xa95   : > { %v10368_v61 = vpop.f32.mrb[56].mxu1  ;;  %v10432_v38 = vpop.f32.mrb[56].mxu0  ;;  %v17626_v25 = vpack.c.bf16 %v17624_v23, %v17625_v53  ;;  %v17631_v36 = vld [vmem:[#allocation66_spill] sm:$0xff]  ;;  %v3865_v23 = vld [vmem:[#allocation5 + $0x368] sm:$0xff] }
 0xa96   : > { %v10369_v7 = vpop.f32.mrb[57].mxu1  ;;  %v10433_v49 = vpop.f32.mrb[57].mxu0  ;;  %v6777_v13 = vmul.bf16 %v17623_v27, %v3836_v5 }
 0xa97   : > { %v10370_v45 = vadd.f32 %v10369_v7, %v10368_v61  ;;  %v10434_v10 = vadd.f32 %v10433_v49, %v10432_v38  ;;  %v10371_v18 = vpop.f32.mrb[58].mxu1  ;;  %v10435_v12 = vpop.f32.mrb[58].mxu0  ;;  %v6887_v54 = vmul.bf16 %v17626_v25, %v3946_v17  ;;  %v17632_v61 = vpack.c.bf16 %v17630_v6, %v17631_v36  ;;  %v17633_v25 = vld [vmem:[#allocation26_spill] sm:$0xff]  ;;  %v17639_v6 = vld [vmem:[#allocation77_spill] sm:$0xff]  ;;  %v17640_v36 = vld [vmem:[#allocation79_spill] sm:$0xff] }
 0xa98   : > { %v10372_v24 = vpop.f32.mrb[59].mxu1  ;;  %v10436_v35 = vpop.f32.mrb[59].mxu0 }
 0xa99   : > { %v6792_v38 = vmul.bf16 %v17632_v61, %v3851_v15  ;;  %v15500_v7 = vadd.f32 %v10370_v45, %v15308_v3  ;;  %v15503_v49 = vadd.f32 %v10434_v10, %v15311_v60  ;;  %v10373_v5 = vadd.f32 %v10372_v24, %v10371_v18  ;;  %v3960_v15 = vld [vmem:[#allocation5 + $0x660] sm:$0xff]  ;;  %v3975_v45 = vld [vmem:[#allocation5 + $0x6d8] sm:$0xff] }
 0xa9a   : > { %v10437_v29 = vadd.f32 %v10436_v35, %v10435_v12  ;;  %8823 = vmatmul.mubr.bf16.gmra.mrb[164].mxu0 %v6887_v54  ;;  %v17637_v35 = vld [vmem:[#allocation124_spill] sm:$0xff]  ;;  %v17641_v61 = vpack.c.bf16 %v17639_v6, %v17640_v36 }
 0xa9b   : > { %8920 = vmatmul.mubr.bf16.gmra.mrb[164].mxu1 %v6777_v13  ;;  %v15506_v17 = vadd.f32 %v10373_v5, %v15314_v42  ;;  %8830 = vmatprep.mubr.bf16.mxu0 %v6902_v47  ;;  %v17634_v42 = vld [vmem:[#allocation56_spill] sm:$0xff]  ;;  %v17642_v5 = vld [vmem:[#allocation29_spill] sm:$0xff] }
 0xa9c   : > { %v15509_v21 = vadd.f32 %v10437_v29, %v15317_v1  ;;  %8927 = vmatprep.mubr.bf16.mxu1 %v6792_v38  ;;  %v17635_v54 = vpack.c.bf16 %v17633_v25, %v17634_v42  ;;  %v17636_v1 = vld [vmem:[#allocation134_spill] sm:$0xff]  ;;  %v6916_v38 = vmul.bf16 %v17641_v61, %v3975_v45  ;;  %v3864_v45 = vld [vmem:[#allocation5 + $0x360] sm:$0xff] }
 0xa9d   : > { %v10374_v27 = vpop.f32.mrb[60].mxu1  ;;  %v10438_v3 = vpop.f32.mrb[60].mxu0  ;;  %v17638_v28 = vpack.c.bf16 %v17636_v1, %v17637_v35  ;;  %v17643_v29 = vld [vmem:[#allocation74_spill] sm:$0xff]  ;;  %v3769_v1 = vld [vmem:[#allocation5 + $0x68] sm:$0xff] }
 0xa9e   : > { %v10375_v60 = vpop.f32.mrb[61].mxu1  ;;  %v10439_v10 = vpop.f32.mrb[61].mxu0  ;;  %v6791_v24 = vmul.bf16 %v17635_v54, %v3850_v39 }
 0xa9f   : > { %v10376_v18 = vadd.f32 %v10375_v60, %v10374_v27  ;;  %v10440_v12 = vadd.f32 %v10439_v10, %v10438_v3  ;;  %v10377_v53 = vpop.f32.mrb[62].mxu1  ;;  %v10441_v13 = vpop.f32.mrb[62].mxu0  ;;  %v6901_v52 = vmul.bf16 %v17638_v28, %v3960_v15  ;;  %v17644_v27 = vpack.c.bf16 %v17642_v5, %v17643_v29  ;;  %v17645_v28 = vld [vmem:[#allocation30_spill] sm:$0xff]  ;;  %v17651_v5 = vld [vmem:[#allocation33_spill] sm:$0xff] }
 0xaa0   : > { %v10378_v43 = vpop.f32.mrb[63].mxu1  ;;  %v10442_v47 = vpop.f32.mrb[63].mxu0  ;;  %v17652_v29 = vld [vmem:[#allocation82_spill] sm:$0xff] }
 0xaa1   : > { %v6806_v3 = vmul.bf16 %v17644_v27, %v3865_v23  ;;  %v15524_v60 = vadd.f32 %v10376_v18, %v15332_v26  ;;  %v15527_v10 = vadd.f32 %v10440_v12, %v15335_v31  ;;  %v10379_v39 = vadd.f32 %v10378_v43, %v10377_v53  ;;  %v3974_v23 = vld [vmem:[#allocation5 + $0x6d0] sm:$0xff]  ;;  %v3879_v18 = vld [vmem:[#allocation5 + $0x3d8] sm:$0xff] }
 0xaa2   : > { %v10443_v25 = vadd.f32 %v10442_v47, %v10441_v13  ;;  %8831 = vmatmul.mubr.bf16.gmra.mrb[168].mxu0 %v6901_v52  ;;  %v17649_v47 = vld [vmem:[#allocation132_spill] sm:$0xff]  ;;  %v17653_v27 = vpack.c.bf16 %v17651_v5, %v17652_v29 }
 0xaa3   : > { %8928 = vmatmul.mubr.bf16.gmra.mrb[168].mxu1 %v6791_v24  ;;  %v15530_v15 = vadd.f32 %v10379_v39, %v15338_v40  ;;  %8838 = vmatprep.mubr.bf16.mxu0 %v6916_v38  ;;  %v17646_v40 = vld [vmem:[#allocation64_spill] sm:$0xff]  ;;  %v17654_v39 = vld [vmem:[#allocation83_spill] sm:$0xff] }
 0xaa4   : > { %v15533_v42 = vadd.f32 %v10443_v25, %v15341_v30  ;;  %8935 = vmatprep.mubr.bf16.mxu1 %v6806_v3  ;;  %v17647_v52 = vpack.c.bf16 %v17645_v28, %v17646_v40  ;;  %v17648_v30 = vld [vmem:[#allocation142_spill] sm:$0xff]  ;;  %v6820_v3 = vmul.bf16 %v17653_v27, %v3879_v18  ;;  %v17655_v25 = vld [vmem:[#allocation136_spill] sm:$0xff]  ;;  %v3878_v18 = vld [vmem:[#allocation5 + $0x3d0] sm:$0xff] }
 0xaa5   : > { %v10380_v54 = vpop.f32.mrb[64].mxu1  ;;  %v10444_v26 = vpop.f32.mrb[64].mxu0  ;;  %v17650_v6 = vpack.c.bf16 %v17648_v30, %v17649_v47  ;;  %v3893_v30 = vld [vmem:[#allocation5 + $0x448] sm:$0xff]  ;;  %v17663_v27 = vld [vmem:[#allocation81_spill] sm:$0xff] }
 0xaa6   : > { %v10381_v31 = vpop.f32.mrb[65].mxu1  ;;  %v10445_v12 = vpop.f32.mrb[65].mxu0  ;;  %v6805_v43 = vmul.bf16 %v17647_v52, %v3864_v45  ;;  %v3783_v52 = vld [vmem:[#allocation5 + $0xd8] sm:$0xff] }
 0xaa7   : > { %v10382_v53 = vadd.f32 %v10381_v31, %v10380_v54  ;;  %v10446_v13 = vadd.f32 %v10445_v12, %v10444_v26  ;;  %v10383_v35 = vpop.f32.mrb[66].mxu1  ;;  %v10447_v24 = vpop.f32.mrb[66].mxu0  ;;  %v6915_v36 = vmul.bf16 %v17650_v6, %v3974_v23  ;;  %v17656_v54 = vpack.c.bf16 %v17654_v39, %v17655_v25  ;;  %v17657_v6 = vld [vmem:[#allocation34_spill] sm:$0xff] }
 0xaa8   : > { %v10384_v61 = vpop.f32.mrb[67].mxu1  ;;  %v10448_v38 = vpop.f32.mrb[67].mxu0 }
 0xaa9   : > { %v6710_v26 = vmul.bf16 %v17656_v54, %v3769_v1  ;;  %v15548_v31 = vadd.f32 %v10382_v53, %v15356_v2  ;;  %v15551_v12 = vadd.f32 %v10446_v13, %v15359_v32  ;;  %v10385_v45 = vadd.f32 %v10384_v61, %v10383_v35  ;;  %v3768_v1 = vld [vmem:[#allocation5 + $0x60] sm:$0xff] }
 0xaaa   : > { %v10449_v28 = vadd.f32 %v10448_v38, %v10447_v24  ;;  %8839 = vmatmul.mubr.bf16.gmra.mrb[172].mxu0 %v6915_v36  ;;  %v17661_v38 = vld [vmem:[#allocation140_spill] sm:$0xff] }
 0xaab   : > { %8936 = vmatmul.mubr.bf16.gmra.mrb[172].mxu1 %v6805_v43  ;;  %v15554_v23 = vadd.f32 %v10385_v45, %v15362_v48  ;;  %9040 = vmatprep.mubr.bf16.mxu0 %v6710_v26  ;;  %v17658_v48 = vld [vmem:[#allocation72_spill] sm:$0xff]  ;;  %v17666_v45 = vld [vmem:[#allocation37_spill] sm:$0xff] }
 0xaac   : > { %v15557_v40 = vadd.f32 %v10449_v28, %v15365_v56  ;;  %8943 = vmatprep.mubr.bf16.mxu1 %v6820_v3  ;;  %v17659_v36 = vpack.c.bf16 %v17657_v6, %v17658_v48  ;;  %v17660_v56 = vld [vmem:[#allocation87_spill] sm:$0xff]  ;;  %v17664_v3 = vld [vmem:[#allocation146_spill] sm:$0xff] }
 0xaad   : > { %v10386_v2 = vpop.f32.mrb[68].mxu1  ;;  %v10450_v53 = vpop.f32.mrb[68].mxu0  ;;  %v17662_v5 = vpack.c.bf16 %v17660_v56, %v17661_v38  ;;  %v17665_v39 = vpack.c.bf16 %v17663_v27, %v17664_v3  ;;  %v17667_v28 = vld [vmem:[#allocation90_spill] sm:$0xff]  ;;  %v3892_v48 = vld [vmem:[#allocation5 + $0x440] sm:$0xff] }
 0xaae   : > { %v10387_v32 = vpop.f32.mrb[69].mxu1  ;;  %v10451_v13 = vpop.f32.mrb[69].mxu0  ;;  %v6819_v61 = vmul.bf16 %v17659_v36, %v3878_v18  ;;  %v3797_v36 = vld [vmem:[#allocation5 + $0x148] sm:$0xff]  ;;  %v3907_v56 = vld [vmem:[#allocation5 + $0x4b8] sm:$0xff] }
 0xaaf   : > { %v10388_v35 = vadd.f32 %v10387_v32, %v10386_v2  ;;  %v10452_v24 = vadd.f32 %v10451_v13, %v10450_v53  ;;  %v10389_v47 = vpop.f32.mrb[70].mxu1  ;;  %v10453_v43 = vpop.f32.mrb[70].mxu0  ;;  %v6709_v29 = vmul.bf16 %v17662_v5, %v3768_v1  ;;  %v6724_v25 = vmul.bf16 %v17665_v39, %v3783_v52  ;;  %v17669_v5 = vld [vmem:[#allocation38_spill] sm:$0xff] }
 0xab0   : > { %v10390_v54 = vpop.f32.mrb[71].mxu1  ;;  %v10454_v26 = vpop.f32.mrb[71].mxu0  ;;  %v17668_v2 = vpack.c.bf16 %v17666_v45, %v17667_v28  ;;  %v17673_v3 = vld [vmem:[#allocation150_spill] sm:$0xff] }
 0xab1   : > { %v15572_v32 = vadd.f32 %v10388_v35, %v15380_v63  ;;  %v15575_v13 = vadd.f32 %v10452_v24, %v15383_v19  ;;  %v10391_v18 = vadd.f32 %v10390_v54, %v10389_v47  ;;  %v10455_v6 = vadd.f32 %v10454_v26, %v10453_v43  ;;  %v17675_v54 = vld [vmem:[#allocation91_spill] sm:$0xff]  ;;  %v17676_v26 = vld [vmem:[#allocation144_spill] sm:$0xff] }
 0xab2   : > { %v6834_v53 = vmul.bf16 %v17668_v2, %v3893_v30  ;;  %9041 = vmatmul.mubr.bf16.vlgmr.msra.gmra.mrb[176].mxu0 %v6709_v29  ;;  %v3782_v30 = vld [vmem:[#allocation5 + $0xd0] sm:$0xff]  ;;  %v17677_v45 = vpack.c.bf16 %v17675_v54, %v17676_v26  ;;  %v17685_v26 = vld [vmem:[#allocation148_spill] sm:$0xff] }
 0xab3   : > { %8944 = vmatmul.mubr.bf16.gmra.mrb[176].mxu1 %v6819_v61  ;;  %v15578_v1 = vadd.f32 %v10391_v18, %v15386_v62  ;;  %v15581_v52 = vadd.f32 %v10455_v6, %v15389_v14  ;;  %9048 = vmatprep.mubr.bf16.mxu0 %v6724_v25  ;;  %v17670_v62 = vld [vmem:[#allocation80_spill] sm:$0xff]  ;;  %v17672_v14 = vld [vmem:[#allocation85_spill] sm:$0xff]  ;;  %v17679_v6 = vld [vmem:[#allocation98_spill] sm:$0xff] }
 0xab4   : > { %8951 = vmatprep.mubr.bf16.mxu1 %v6834_v53  ;;  %v17671_v29 = vpack.c.bf16 %v17669_v5, %v17670_v62  ;;  %v17674_v39 = vpack.c.bf16 %v17672_v14, %v17673_v3  ;;  %v6738_v28 = vmul.bf16 %v17677_v45, %v3797_v36  ;;  %v17678_v18 = vld [vmem:[#allocation41_spill] sm:$0xff]  ;;  %v3921_v14 = vld [vmem:[#allocation5 + $0x528] sm:$0xff] }
 0xab5   : > { %v10392_v63 = vpop.f32.mrb[72].mxu1  ;;  %v10456_v35 = vpop.f32.mrb[72].mxu0  ;;  %v3906_v62 = vld [vmem:[#allocation5 + $0x4b0] sm:$0xff] }
 0xab6   : > { %v10393_v19 = vpop.f32.mrb[73].mxu1  ;;  %v10457_v24 = vpop.f32.mrb[73].mxu0  ;;  %v6833_v27 = vmul.bf16 %v17671_v29, %v3892_v48  ;;  %v6723_v25 = vmul.bf16 %v17674_v39, %v3782_v30  ;;  %v3811_v29 = vld [vmem:[#allocation5 + $0x1b8] sm:$0xff] }
 0xab7   : > { %v10394_v47 = vadd.f32 %v10393_v19, %v10392_v63  ;;  %v10458_v43 = vadd.f32 %v10457_v24, %v10456_v35  ;;  %v10395_v61 = vpop.f32.mrb[74].mxu1  ;;  %v10459_v38 = vpop.f32.mrb[74].mxu0  ;;  %v17680_v63 = vpack.c.bf16 %v17678_v18, %v17679_v6  ;;  %v17681_v39 = vld [vmem:[#allocation42_spill] sm:$0xff] }
 0xab8   : > { %v10396_v2 = vpop.f32.mrb[75].mxu1  ;;  %v10460_v53 = vpop.f32.mrb[75].mxu0 }
 0xab9   : > { %v6848_v35 = vmul.bf16 %v17680_v63, %v3907_v56  ;;  %v15596_v19 = vadd.f32 %v10394_v47, %v15404_v34  ;;  %v15599_v24 = vadd.f32 %v10458_v43, %v15407_v8  ;;  %v10397_v48 = vadd.f32 %v10396_v2, %v10395_v61  ;;  %v3796_v56 = vld [vmem:[#allocation5 + $0x140] sm:$0xff] }
 0xaba   : > { %v10461_v5 = vadd.f32 %v10460_v53, %v10459_v38  ;;  %9049 = vmatmul.mubr.bf16.gmra.mrb[180].mxu0 %v6723_v25  ;;  %v17687_v2 = vld [vmem:[#allocation103_spill] sm:$0xff]  ;;  %v17688_v53 = vld [vmem:[#allocation93_spill] sm:$0xff] }
 0xabb   : > { %8952 = vmatmul.mubr.bf16.gmra.mrb[180].mxu1 %v6833_v27  ;;  %v15602_v30 = vadd.f32 %v10397_v48, %v15410_v20  ;;  %9056 = vmatprep.mubr.bf16.mxu0 %v6738_v28  ;;  %v17682_v20 = vld [vmem:[#allocation88_spill] sm:$0xff]  ;;  %v17689_v18 = vpack.c.bf16 %v17687_v2, %v17688_v53  ;;  %v17690_v48 = vld [vmem:[#allocation45_spill] sm:$0xff]  ;;  %v17697_v53 = vld [vmem:[#allocation158_spill] sm:$0xff] }
 0xabc   : > { %v15605_v36 = vadd.f32 %v10461_v5, %v15413_v33  ;;  %8959 = vmatprep.mubr.bf16.mxu1 %v6848_v35  ;;  %v17683_v25 = vpack.c.bf16 %v17681_v39, %v17682_v20  ;;  %v17684_v33 = vld [vmem:[#allocation95_spill] sm:$0xff]  ;;  %v17691_v5 = vld [vmem:[#allocation106_spill] sm:$0xff] }
 0xabd   : > { %v10398_v34 = vpop.f32.mrb[76].mxu1  ;;  %v10462_v47 = vpop.f32.mrb[76].mxu0  ;;  %v17686_v45 = vpack.c.bf16 %v17684_v33, %v17685_v26  ;;  %v6752_v6 = vmul.bf16 %v17689_v18, %v3811_v29  ;;  %v3920_v20 = vld [vmem:[#allocation5 + $0x520] sm:$0xff]  ;;  %v3935_v33 = vld [vmem:[#allocation5 + $0x598] sm:$0xff] }
 0xabe   : > { %v10399_v8 = vpop.f32.mrb[77].mxu1  ;;  %v10463_v43 = vpop.f32.mrb[77].mxu0  ;;  %v6847_v54 = vmul.bf16 %v17683_v25, %v3906_v62  ;;  %v3825_v25 = vld [vmem:[#allocation5 + $0x228] sm:$0xff] }
 0xabf   : > { %v10400_v61 = vadd.f32 %v10399_v8, %v10398_v34  ;;  %v10464_v38 = vadd.f32 %v10463_v43, %v10462_v47  ;;  %v10401_v27 = vpop.f32.mrb[78].mxu1  ;;  %v10465_v3 = vpop.f32.mrb[78].mxu0  ;;  %v6737_v28 = vmul.bf16 %v17686_v45, %v3796_v56  ;;  %v17692_v34 = vpack.c.bf16 %v17690_v48, %v17691_v5  ;;  %v17693_v45 = vld [vmem:[#allocation46_spill] sm:$0xff] }
 0xac0   : > { %v10402_v63 = vpop.f32.mrb[79].mxu1  ;;  %v10466_v35 = vpop.f32.mrb[79].mxu0 }
 0xac1   : > { %v6862_v47 = vmul.bf16 %v17692_v34, %v3921_v14  ;;  %v15620_v8 = vadd.f32 %v10400_v61, %v15428_v11  ;;  %v15623_v43 = vadd.f32 %v10464_v38, %v15431_v41  ;;  %v10403_v62 = vadd.f32 %v10402_v63, %v10401_v27  ;;  %v3810_v14 = vld [vmem:[#allocation5 + $0x1b0] sm:$0xff] }
 0xac2   : > { %v10467_v39 = vadd.f32 %v10466_v35, %v10465_v3  ;;  %9057 = vmatmul.mubr.bf16.gmra.mrb[184].mxu0 %v6737_v28  ;;  %v17699_v63 = vld [vmem:[#allocation97_spill] sm:$0xff]  ;;  %v17700_v35 = vld [vmem:[#allocation166_spill] sm:$0xff] }
 0xac3   : > { %8960 = vmatmul.mubr.bf16.gmra.mrb[184].mxu1 %v6847_v54  ;;  %v15626_v56 = vadd.f32 %v10403_v62, %v15434_v59  ;;  %9064 = vmatprep.mubr.bf16.mxu0 %v6752_v6  ;;  %v17694_v59 = vld [vmem:[#allocation96_spill] sm:$0xff]  ;;  %v17701_v48 = vpack.c.bf16 %v17699_v63, %v17700_v35  ;;  %v17702_v62 = vld [vmem:[#allocation50_spill] sm:$0xff]  ;;  %v17709_v35 = vld [vmem:[#allocation99_spill] sm:$0xff] }
 0xac4   : > { %v15629_v29 = vadd.f32 %v10467_v39, %v15437_v9  ;;  %8967 = vmatprep.mubr.bf16.mxu1 %v6862_v47  ;;  %v17695_v28 = vpack.c.bf16 %v17693_v45, %v17694_v59  ;;  %v17696_v9 = vld [vmem:[#allocation156_spill] sm:$0xff]  ;;  %v17703_v39 = vld [vmem:[#allocation114_spill] sm:$0xff]  ;;  %v3934_v59 = vld [vmem:[#allocation5 + $0x590] sm:$0xff] }
 0xac5   : > { %v10468_v11 = vpop.f32.mrb[80].mxu0  ;;  %v10532_v61 = vpop.f32.mrb[80].mxu1  ;;  %v17698_v18 = vpack.c.bf16 %v17696_v9, %v17697_v53  ;;  %v6766_v5 = vmul.bf16 %v17701_v48, %v3825_v25  ;;  %v3949_v9 = vld [vmem:[#allocation5 + $0x608] sm:$0xff] }
 0xac6   : > { %v10469_v41 = vpop.f32.mrb[81].mxu0  ;;  %v10533_v38 = vpop.f32.mrb[81].mxu1  ;;  %v6861_v2 = vmul.bf16 %v17695_v28, %v3920_v20  ;;  %v3839_v28 = vld [vmem:[#allocation5 + $0x298] sm:$0xff] }
 0xac7   : > { %v10470_v27 = vadd.f32 %v10469_v41, %v10468_v11  ;;  %v10534_v3 = vadd.f32 %v10533_v38, %v10532_v61  ;;  %v10471_v54 = vpop.f32.mrb[82].mxu0  ;;  %v10535_v26 = vpop.f32.mrb[82].mxu1  ;;  %v6751_v6 = vmul.bf16 %v17698_v18, %v3810_v14  ;;  %v17704_v11 = vpack.c.bf16 %v17702_v62, %v17703_v39  ;;  %v17705_v18 = vld [vmem:[#allocation52_spill] sm:$0xff] }
 0xac8   : > { %v10472_v34 = vpop.f32.mrb[83].mxu0  ;;  %v10536_v47 = vpop.f32.mrb[83].mxu1 }
 0xac9   : > { %v6876_v61 = vmul.bf16 %v17704_v11, %v3935_v33  ;;  %v15644_v41 = vadd.f32 %v10470_v27, %v15452_v50  ;;  %v15647_v38 = vadd.f32 %v10534_v3, %v15455_v58  ;;  %v10473_v20 = vadd.f32 %v10472_v34, %v10471_v54  ;;  %v3824_v33 = vld [vmem:[#allocation5 + $0x220] sm:$0xff]  ;;  %v17711_v34 = vld [vmem:[#allocation105_spill] sm:$0xff] }
 0xaca   : > { %v10537_v45 = vadd.f32 %v10536_v47, %v10535_v26  ;;  %9065 = vmatmul.mubr.bf16.gmra.mrb[188].mxu0 %v6751_v6  ;;  %v17712_v47 = vld [vmem:[#allocation111_spill] sm:$0xff] }
 0xacb   : > { %8968 = vmatmul.mubr.bf16.gmra.mrb[188].mxu1 %v6861_v2  ;;  %v15650_v14 = vadd.f32 %v10473_v20, %v15458_v16  ;;  %9072 = vmatprep.mubr.bf16.mxu0 %v6766_v5  ;;  %v17706_v16 = vld [vmem:[#allocation104_spill] sm:$0xff]  ;;  %v17713_v62 = vpack.c.bf16 %v17711_v34, %v17712_v47  ;;  %v17714_v20 = vld [vmem:[#allocation57_spill] sm:$0xff] }
 0xacc   : > { %v15653_v25 = vadd.f32 %v10537_v45, %v15461_v37  ;;  %8975 = vmatprep.mubr.bf16.mxu1 %v6876_v61  ;;  %v17707_v6 = vpack.c.bf16 %v17705_v18, %v17706_v16  ;;  %v17708_v37 = vld [vmem:[#allocation162_spill] sm:$0xff]  ;;  %v17715_v45 = vld [vmem:[#allocation59_spill] sm:$0xff]  ;;  %v17721_v47 = vld [vmem:[#allocation164_spill] sm:$0xff] }
 0xacd   : > { %v10474_v50 = vpop.f32.mrb[84].mxu0  ;;  %v10538_v27 = vpop.f32.mrb[84].mxu1  ;;  %v17710_v48 = vpack.c.bf16 %v17708_v37, %v17709_v35  ;;  %v6780_v39 = vmul.bf16 %v17713_v62, %v3839_v28  ;;  %v3948_v16 = vld [vmem:[#allocation5 + $0x600] sm:$0xff]  ;;  %v3963_v37 = vld [vmem:[#allocation5 + $0x678] sm:$0xff] }
 0xace   : > { %v10475_v58 = vpop.f32.mrb[85].mxu0  ;;  %v10539_v3 = vpop.f32.mrb[85].mxu1  ;;  %v6875_v63 = vmul.bf16 %v17707_v6, %v3934_v59  ;;  %v3853_v6 = vld [vmem:[#allocation5 + $0x308] sm:$0xff] }
 0xacf   : > { %v10476_v54 = vadd.f32 %v10475_v58, %v10474_v50  ;;  %v10540_v26 = vadd.f32 %v10539_v3, %v10538_v27  ;;  %v10477_v2 = vpop.f32.mrb[86].mxu0  ;;  %v10541_v53 = vpop.f32.mrb[86].mxu1  ;;  %v6765_v5 = vmul.bf16 %v17710_v48, %v3824_v33  ;;  %v17716_v50 = vpack.c.bf16 %v17714_v20, %v17715_v45  ;;  %v17717_v48 = vld [vmem:[#allocation122_spill] sm:$0xff] }
 0xad0   : > { %v10478_v11 = vpop.f32.mrb[87].mxu0  ;;  %v10542_v61 = vpop.f32.mrb[87].mxu1 }
 0xad1   : > { %v6890_v27 = vmul.bf16 %v17716_v50, %v3949_v9  ;;  %v15668_v58 = vadd.f32 %v10476_v54, %v15476_v0  ;;  %v15671_v3 = vadd.f32 %v10540_v26, %v15479_v22  ;;  %v10479_v59 = vadd.f32 %v10478_v11, %v10477_v2  ;;  %v3838_v9 = vld [vmem:[#allocation5 + $0x290] sm:$0xff]  ;;  %v17723_v11 = vld [vmem:[#allocation179_spill] sm:$0xff] }
 0xad2   : > { %v10543_v18 = vadd.f32 %v10542_v61, %v10541_v53  ;;  %9073 = vmatmul.mubr.bf16.gmra.mrb[192].mxu0 %v6765_v5  ;;  %v17724_v61 = vld [vmem:[#allocation115_spill] sm:$0xff] }
 0xad3   : > { %8976 = vmatmul.mubr.bf16.gmra.mrb[192].mxu1 %v6875_v63  ;;  %v15674_v33 = vadd.f32 %v10479_v59, %v15482_v46  ;;  %9080 = vmatprep.mubr.bf16.mxu0 %v6780_v39  ;;  %v17718_v46 = vld [vmem:[#allocation112_spill] sm:$0xff]  ;;  %v17725_v20 = vpack.c.bf16 %v17723_v11, %v17724_v61  ;;  %v17726_v59 = vld [vmem:[#allocation65_spill] sm:$0xff] }
 0xad4   : > { %v15677_v28 = vadd.f32 %v10543_v18, %v15485_v51  ;;  %8983 = vmatprep.mubr.bf16.mxu1 %v6890_v27  ;;  %v17719_v5 = vpack.c.bf16 %v17717_v48, %v17718_v46  ;;  %v17720_v51 = vld [vmem:[#allocation170_spill] sm:$0xff]  ;;  %v17727_v18 = vld [vmem:[#allocation67_spill] sm:$0xff]  ;;  %v3962_v46 = vld [vmem:[#allocation5 + $0x670] sm:$0xff] }
 0xad5   : > { %v10480_v0 = vpop.f32.mrb[88].mxu0  ;;  %v17722_v62 = vpack.c.bf16 %v17720_v51, %v17721_v47  ;;  %v6794_v45 = vmul.bf16 %v17725_v20, %v3853_v6  ;;  %v3977_v51 = vld [vmem:[#allocation5 + $0x6e8] sm:$0xff] }
 0xad6   : > { %v10544_v54 = vpop.f32.mrb[88].mxu1  ;;  %v10481_v22 = vpop.f32.mrb[89].mxu0  ;;  %v6889_v34 = vmul.bf16 %v17719_v5, %v3948_v16  ;;  %v3867_v5 = vld [vmem:[#allocation5 + $0x378] sm:$0xff]  ;;  %v17733_v61 = vld [vmem:[#allocation168_spill] sm:$0xff] }
 0xad7   : > { %v10545_v26 = vpop.f32.mrb[89].mxu1  ;;  %v10482_v2 = vadd.f32 %v10481_v22, %v10480_v0  ;;  %v10483_v63 = vpop.f32.mrb[90].mxu0  ;;  %v6779_v39 = vmul.bf16 %v17722_v62, %v3838_v9  ;;  %v17728_v0 = vpack.c.bf16 %v17726_v59, %v17727_v18  ;;  %v17729_v62 = vld [vmem:[#allocation130_spill] sm:$0xff] }
 0xad8   : > { %v10546_v53 = vadd.f32 %v10545_v26, %v10544_v54  ;;  %v10547_v35 = vpop.f32.mrb[90].mxu1  ;;  %v10484_v50 = vpop.f32.mrb[91].mxu0 }
 0xad9   : > { %v10548_v27 = vpop.f32.mrb[91].mxu1  ;;  %v6904_v54 = vmul.bf16 %v17728_v0, %v3963_v37  ;;  %v15692_v22 = vadd.f32 %v10482_v2, %v15500_v7  ;;  %v10485_v16 = vadd.f32 %v10484_v50, %v10483_v63  ;;  %v3852_v37 = vld [vmem:[#allocation5 + $0x300] sm:$0xff]  ;;  %v17735_v50 = vld [vmem:[#allocation133_spill] sm:$0xff] }
 0xada   : > { %v15695_v26 = vadd.f32 %v10546_v53, %v15503_v49  ;;  %v10549_v48 = vadd.f32 %v10548_v27, %v10547_v35  ;;  %9081 = vmatmul.mubr.bf16.gmra.mrb[196].mxu0 %v6779_v39  ;;  %v17736_v27 = vld [vmem:[#allocation125_spill] sm:$0xff] }
 0xadb   : > { %8984 = vmatmul.mubr.bf16.gmra.mrb[196].mxu1 %v6889_v34  ;;  %v15698_v9 = vadd.f32 %v10485_v16, %v15506_v17  ;;  %9088 = vmatprep.mubr.bf16.mxu0 %v6794_v45  ;;  %v17730_v17 = vld [vmem:[#allocation120_spill] sm:$0xff]  ;;  %v17737_v59 = vpack.c.bf16 %v17735_v50, %v17736_v27  ;;  %v17738_v16 = vld [vmem:[#allocation73_spill] sm:$0xff]  ;;  %v17744_v50 = vld [vmem:[#allocation135_spill] sm:$0xff] }
 0xadc   : > { %v15701_v6 = vadd.f32 %v10549_v48, %v15509_v21  ;;  %8991 = vmatprep.mubr.bf16.mxu1 %v6904_v54  ;;  %v17731_v39 = vpack.c.bf16 %v17729_v62, %v17730_v17  ;;  %v17732_v21 = vld [vmem:[#allocation117_spill] sm:$0xff]  ;;  %v17739_v48 = vld [vmem:[#allocation75_spill] sm:$0xff] }
 0xadd   : > { %v10486_v7 = vpop.f32.mrb[92].mxu0  ;;  %v17734_v20 = vpack.c.bf16 %v17732_v21, %v17733_v61  ;;  %v6808_v18 = vmul.bf16 %v17737_v59, %v3867_v5  ;;  %v3976_v17 = vld [vmem:[#allocation5 + $0x6e0] sm:$0xff]  ;;  %v17741_v61 = vld [vmem:[#allocation138_spill] sm:$0xff] }
 0xade   : > { %v10550_v2 = vpop.f32.mrb[92].mxu1  ;;  %v10487_v49 = vpop.f32.mrb[93].mxu0  ;;  %v6903_v11 = vmul.bf16 %v17731_v39, %v3962_v46  ;;  %v3881_v39 = vld [vmem:[#allocation5 + $0x3e8] sm:$0xff] }
 0xadf   : > { %v10551_v53 = vpop.f32.mrb[93].mxu1  ;;  %v10488_v63 = vadd.f32 %v10487_v49, %v10486_v7  ;;  %v10489_v34 = vpop.f32.mrb[94].mxu0  ;;  %v6793_v45 = vmul.bf16 %v17734_v20, %v3852_v37  ;;  %v17740_v7 = vpack.c.bf16 %v17738_v16, %v17739_v48  ;;  %v17742_v20 = vld [vmem:[#allocation128_spill] sm:$0xff] }
 0xae0   : > { %v10552_v35 = vadd.f32 %v10551_v53, %v10550_v2  ;;  %v10553_v47 = vpop.f32.mrb[94].mxu1  ;;  %v10490_v0 = vpop.f32.mrb[95].mxu0 }
 0xae1   : > { %v10554_v54 = vpop.f32.mrb[95].mxu1  ;;  %v6918_v2 = vmul.bf16 %v17740_v7, %v3977_v51  ;;  %v15716_v49 = vadd.f32 %v10488_v63, %v15524_v60  ;;  %v10491_v46 = vadd.f32 %v10490_v0, %v10489_v34  ;;  %v3866_v51 = vld [vmem:[#allocation5 + $0x370] sm:$0xff] }
 0xae2   : > { %v15719_v53 = vadd.f32 %v10552_v35, %v15527_v10  ;;  %v10555_v62 = vadd.f32 %v10554_v54, %v10553_v47  ;;  %9089 = vmatmul.mubr.bf16.gmra.mrb[200].mxu0 %v6793_v45 }
 0xae3   : > { %8992 = vmatmul.mubr.bf16.gmra.mrb[200].mxu1 %v6903_v11  ;;  %v15722_v37 = vadd.f32 %v10491_v46, %v15530_v15  ;;  %9096 = vmatprep.mubr.bf16.mxu0 %v6808_v18  ;;  %v17743_v15 = vpack.c.bf16 %v17741_v61, %v17742_v20  ;;  %v17747_v18 = vpack.c.bf16 %v15021_v4, %v15009_v55  ;;  %v3880_v4 = vld [vmem:[#allocation5 + $0x3e0] sm:$0xff]  ;;  %v3895_v55 = vld [vmem:[#allocation5 + $0x458] sm:$0xff] }
 0xae4   : > { %v15725_v5 = vadd.f32 %v10555_v62, %v15533_v42  ;;  %8999 = vmatprep.mubr.bf16.mxu1 %v6918_v2  ;;  %v17745_v42 = vld [vmem:[#allocation127_spill] sm:$0xff] }
 0xae5   : > { %v10492_v60 = vpop.f32.mrb[96].mxu0  ;;  %v6917_v45 = vmul.bf16 %v17743_v15, %v3976_v17  ;;  %v17746_v27 = vpack.c.bf16 %v17744_v50, %v17745_v42  ;;  %v6822_v0 = vmul.bf16 %v17747_v18, %v3881_v39 }
 0xae6   : > { %v10556_v63 = vpop.f32.mrb[96].mxu1  ;;  %v10493_v21 = vpop.f32.mrb[97].mxu0 }
 0xae7   : > { %v10557_v10 = vpop.f32.mrb[97].mxu1  ;;  %v10494_v35 = vadd.f32 %v10493_v21, %v10492_v60  ;;  %v10495_v47 = vpop.f32.mrb[98].mxu0  ;;  %v6807_v59 = vmul.bf16 %v17746_v27, %v3866_v51 }
 0xae8   : > { %v10558_v34 = vadd.f32 %v10557_v10, %v10556_v63  ;;  %v10559_v11 = vpop.f32.mrb[98].mxu1  ;;  %v10496_v54 = vpop.f32.mrb[99].mxu0 }
 0xae9   : > { %v10560_v16 = vpop.f32.mrb[99].mxu1  ;;  %v15737_v48 = vadd.f32 %v10494_v35, %v15548_v31  ;;  %v10497_v2 = vadd.f32 %v10496_v54, %v10495_v47  ;;  %v17748_v35 = vld [vmem:[#allocation196_spill] sm:$0xff] }
 0xaea   : > { %v15740_v7 = vadd.f32 %v10558_v34, %v15551_v12  ;;  %v10561_v46 = vadd.f32 %v10560_v16, %v10559_v11  ;;  %9097 = vmatmul.mubr.bf16.gmra.mrb[204].mxu0 %v6807_v59  ;;  %v17749_v34 = vpack.c.bf16 %v15011_v44, %v17748_v35  ;;  %v3909_v59 = vld [vmem:[#allocation5 + $0x4c8] sm:$0xff] }
 0xaeb   : > { %9000 = vmatmul.mubr.bf16.gmra.mrb[204].mxu1 %v6917_v45  ;;  %v15743_v62 = vadd.f32 %v10497_v2, %v15554_v23  ;;  %9104 = vmatprep.mubr.bf16.mxu0 %v6822_v0  ;;  %v17750_v23 = vld [vmem:[#allocation143_spill] sm:$0xff] }
 0xaec   : > { %v15746_v17 = vadd.f32 %v10561_v46, %v15557_v40  ;;  %v6821_v47 = vmul.bf16 %v17749_v34, %v3880_v4  ;;  %v17751_v11 = vpack.c.bf16 %v15051_v57, %v17750_v23  ;;  %v3894_v57 = vld [vmem:[#allocation5 + $0x450] sm:$0xff]  ;;  %v17752_v4 = vld [vmem:[#allocation139_spill] sm:$0xff] }
 0xaed   : > { %v10498_v51 = vpop.f32.mrb[100].mxu0 }
 0xaee   : > { %v10562_v39 = vpop.f32.mrb[100].mxu1  ;;  %v10499_v31 = vpop.f32.mrb[101].mxu0  ;;  %v6836_v40 = vmul.bf16 %v17751_v11, %v3895_v55  ;;  %v17753_v55 = vld [vmem:[#allocation192_spill] sm:$0xff]  ;;  %v3908_v11 = vld [vmem:[#allocation5 + $0x4c0] sm:$0xff] }
 0xaef   : > { %v10563_v60 = vpop.f32.mrb[101].mxu1  ;;  %v10500_v63 = vadd.f32 %v10499_v31, %v10498_v51  ;;  %v10501_v21 = vpop.f32.mrb[102].mxu0  ;;  %v17754_v51 = vpack.c.bf16 %v17752_v4, %v17753_v55  ;;  %v17756_v31 = vld [vmem:[#allocation137_spill] sm:$0xff] }
 0xaf0   : > { %v10564_v12 = vadd.f32 %v10563_v60, %v10562_v39  ;;  %v10565_v10 = vpop.f32.mrb[102].mxu1  ;;  %v10502_v61 = vpop.f32.mrb[103].mxu0 }
 0xaf1   : > { %v10566_v20 = vpop.f32.mrb[103].mxu1  ;;  %v15755_v15 = vadd.f32 %v10500_v63, %v15572_v32  ;;  %v10503_v50 = vadd.f32 %v10502_v61, %v10501_v21  ;;  %v6835_v39 = vmul.bf16 %v17754_v51, %v3894_v57 }
 0xaf2   : > { %v15758_v45 = vadd.f32 %v10564_v12, %v15575_v13  ;;  %v10567_v42 = vadd.f32 %v10566_v20, %v10565_v10  ;;  %9105 = vmatmul.mubr.bf16.gmra.mrb[208].mxu0 %v6821_v47 }
 0xaf3   : > { %v15761_v27 = vadd.f32 %v10503_v50, %v15578_v1  ;;  %9112 = vmatprep.mubr.bf16.mxu0 %v6836_v40  ;;  %v17755_v1 = vld [vmem:[#allocation190_spill] sm:$0xff] }
 0xaf4   : > { %v15764_v44 = vadd.f32 %v10567_v42, %v15581_v52  ;;  %v17757_v60 = vpack.c.bf16 %v17755_v1, %v17756_v31  ;;  %v3923_v40 = vld [vmem:[#allocation5 + $0x538] sm:$0xff] }
 0xaf5   : > { %v10504_v18 = vpop.f32.mrb[104].mxu0 }
 0xaf6   : > { %v10568_v0 = vpop.f32.mrb[104].mxu1  ;;  %v10505_v54 = vpop.f32.mrb[105].mxu0  ;;  %v6850_v52 = vmul.bf16 %v17757_v60, %v3909_v59  ;;  %v3922_v60 = vld [vmem:[#allocation5 + $0x530] sm:$0xff] }
 0xaf7   : > { %v10569_v32 = vpop.f32.mrb[105].mxu1  ;;  %v10506_v16 = vadd.f32 %v10505_v54, %v10504_v18  ;;  %v10507_v13 = vpop.f32.mrb[106].mxu0  ;;  %v17758_v18 = vld [vmem:[#allocation194_spill] sm:$0xff] }
 0xaf8   : > { %v10570_v2 = vadd.f32 %v10569_v32, %v10568_v0  ;;  %v10571_v46 = vpop.f32.mrb[106].mxu1  ;;  %v10508_v63 = vpop.f32.mrb[107].mxu0  ;;  %v17759_v0 = vld [vmem:[#allocation141_spill] sm:$0xff] }
 0xaf9   : > { %v10572_v12 = vpop.f32.mrb[107].mxu1  ;;  %v15773_v21 = vadd.f32 %v10506_v16, %v15596_v19  ;;  %v10509_v35 = vadd.f32 %v10508_v63, %v10507_v13  ;;  %v17760_v54 = vpack.c.bf16 %v17758_v18, %v17759_v0  ;;  %v17762_v16 = vld [vmem:[#allocation200_spill] sm:$0xff] }
 0xafa   : > { %v15776_v10 = vadd.f32 %v10570_v2, %v15599_v24  ;;  %v10573_v34 = vadd.f32 %v10572_v12, %v10571_v46  ;;  %9113 = vmatmul.mubr.bf16.gmra.mrb[212].mxu0 %v6835_v39 }
 0xafb   : > { %v15779_v47 = vadd.f32 %v10509_v35, %v15602_v30  ;;  %9120 = vmatprep.mubr.bf16.mxu0 %v6850_v52  ;;  %v6849_v32 = vmul.bf16 %v17760_v54, %v3908_v11  ;;  %v17761_v30 = vld [vmem:[#allocation147_spill] sm:$0xff]  ;;  %v3937_v52 = vld [vmem:[#allocation5 + $0x5a8] sm:$0xff] }
 0xafc   : > { %v15782_v23 = vadd.f32 %v10573_v34, %v15605_v36  ;;  %v17763_v2 = vpack.c.bf16 %v17761_v30, %v17762_v16 }
 0xafd   : > { %v10510_v61 = vpop.f32.mrb[108].mxu0 }
 0xafe   : > { %v10574_v20 = vpop.f32.mrb[108].mxu1  ;;  %v10511_v50 = vpop.f32.mrb[109].mxu0  ;;  %v6864_v36 = vmul.bf16 %v17763_v2, %v3923_v40  ;;  %v3936_v2 = vld [vmem:[#allocation5 + $0x5a0] sm:$0xff] }
 0xaff   : > { %v10575_v19 = vpop.f32.mrb[109].mxu1  ;;  %v10512_v42 = vadd.f32 %v10511_v50, %v10510_v61  ;;  %v10513_v24 = vpop.f32.mrb[110].mxu0  ;;  %v17764_v61 = vld [vmem:[#allocation151_spill] sm:$0xff] }
 0xb00   : > { %v10576_v57 = vadd.f32 %v10575_v19, %v10574_v20  ;;  %v10577_v59 = vpop.f32.mrb[110].mxu1  ;;  %v10514_v13 = vpop.f32.mrb[111].mxu0  ;;  %v17765_v20 = vld [vmem:[#allocation204_spill] sm:$0xff] }
 0xb01   : > { %v10578_v46 = vpop.f32.mrb[111].mxu1  ;;  %v15791_v4 = vadd.f32 %v10512_v42, %v15620_v8  ;;  %v10515_v51 = vadd.f32 %v10514_v13, %v10513_v24  ;;  %v17766_v50 = vpack.c.bf16 %v17764_v61, %v17765_v20  ;;  %v17768_v42 = vld [vmem:[#allocation145_spill] sm:$0xff] }
 0xb02   : > { %v15794_v55 = vadd.f32 %v10576_v57, %v15623_v43  ;;  %v10579_v39 = vadd.f32 %v10578_v46, %v10577_v59  ;;  %9121 = vmatmul.mubr.bf16.gmra.mrb[216].mxu0 %v6849_v32 }
 0xb03   : > { %v15797_v1 = vadd.f32 %v10515_v51, %v15626_v56  ;;  %9128 = vmatprep.mubr.bf16.mxu0 %v6864_v36  ;;  %v6863_v19 = vmul.bf16 %v17766_v50, %v3922_v60  ;;  %v17767_v56 = vld [vmem:[#allocation198_spill] sm:$0xff] }
 0xb04   : > { %v15800_v31 = vadd.f32 %v10579_v39, %v15629_v29  ;;  %v17769_v57 = vpack.c.bf16 %v17767_v56, %v17768_v42  ;;  %v3951_v36 = vld [vmem:[#allocation5 + $0x618] sm:$0xff] }
 0xb05   : > { %v10644_v12 = vpop.f32.mrb[112].mxu0 }
 0xb06   : > { %v10580_v63 = vpop.f32.mrb[112].mxu1  ;;  %v10645_v8 = vpop.f32.mrb[113].mxu0  ;;  %v6878_v29 = vmul.bf16 %v17769_v57, %v3937_v52  ;;  %v3950_v57 = vld [vmem:[#allocation5 + $0x610] sm:$0xff] }
 0xb07   : > { %v10581_v35 = vpop.f32.mrb[113].mxu1  ;;  %v10646_v11 = vadd.f32 %v10645_v8, %v10644_v12  ;;  %v10647_v40 = vpop.f32.mrb[114].mxu0  ;;  %v17771_v12 = vld [vmem:[#allocation149_spill] sm:$0xff] }
 0xb08   : > { %v10582_v34 = vadd.f32 %v10581_v35, %v10580_v63  ;;  %v10583_v43 = vpop.f32.mrb[114].mxu1  ;;  %v10648_v59 = vpop.f32.mrb[115].mxu0  ;;  %v17770_v63 = vld [vmem:[#allocation202_spill] sm:$0xff] }
 0xb09   : > { %v10584_v24 = vpop.f32.mrb[115].mxu1  ;;  %v15812_v0 = vadd.f32 %v10646_v11, %v15647_v38  ;;  %v10649_v32 = vadd.f32 %v10648_v59, %v10647_v40  ;;  %v17772_v35 = vpack.c.bf16 %v17770_v63, %v17771_v12 }
 0xb0a   : > { %v15809_v18 = vadd.f32 %v10582_v34, %v15644_v41  ;;  %v10585_v54 = vadd.f32 %v10584_v24, %v10583_v43  ;;  %9129 = vmatmul.mubr.bf16.gmra.mrb[220].mxu0 %v6863_v19  ;;  %v17774_v34 = vld [vmem:[#allocation155_spill] sm:$0xff] }
 0xb0b   : > { %v15818_v16 = vadd.f32 %v10649_v32, %v15653_v25  ;;  %9136 = vmatprep.mubr.bf16.mxu0 %v6878_v29  ;;  %v6877_v8 = vmul.bf16 %v17772_v35, %v3936_v2  ;;  %v3965_v29 = vld [vmem:[#allocation5 + $0x688] sm:$0xff] }
 0xb0c   : > { %v15815_v30 = vadd.f32 %v10585_v54, %v15650_v14  ;;  %v17773_v14 = vld [vmem:[#allocation157_spill] sm:$0xff] }
 0xb0d   : > { %v10650_v46 = vpop.f32.mrb[116].mxu0  ;;  %v17775_v11 = vpack.c.bf16 %v17773_v14, %v17774_v34 }
 0xb0e   : > { %v10586_v13 = vpop.f32.mrb[116].mxu1  ;;  %v10651_v41 = vpop.f32.mrb[117].mxu0 }
 0xb0f   : > { %v10587_v51 = vpop.f32.mrb[117].mxu1  ;;  %v10652_v60 = vadd.f32 %v10651_v41, %v10650_v46  ;;  %v10653_v52 = vpop.f32.mrb[118].mxu0  ;;  %v6892_v25 = vmul.bf16 %v17775_v11, %v3951_v36  ;;  %v17777_v46 = vld [vmem:[#allocation159_spill] sm:$0xff] }
 0xb10   : > { %v10588_v39 = vadd.f32 %v10587_v51, %v10586_v13  ;;  %v10589_v38 = vpop.f32.mrb[118].mxu1  ;;  %v10654_v40 = vpop.f32.mrb[119].mxu0  ;;  %v17776_v13 = vld [vmem:[#allocation208_spill] sm:$0xff]  ;;  %v3964_v11 = vld [vmem:[#allocation5 + $0x680] sm:$0xff] }
 0xb11   : > { %v10590_v43 = vpop.f32.mrb[119].mxu1  ;;  %v15830_v20 = vadd.f32 %v10652_v60, %v15671_v3  ;;  %v10655_v19 = vadd.f32 %v10654_v40, %v10653_v52  ;;  %v17778_v51 = vpack.c.bf16 %v17776_v13, %v17777_v46 }
 0xb12   : > { %v15827_v61 = vadd.f32 %v10588_v39, %v15668_v58  ;;  %v10591_v50 = vadd.f32 %v10590_v43, %v10589_v38  ;;  %9137 = vmatmul.mubr.bf16.gmra.mrb[224].mxu0 %v6877_v8  ;;  %v17780_v39 = vld [vmem:[#allocation210_spill] sm:$0xff] }
 0xb13   : > { %v15836_v42 = vadd.f32 %v10655_v19, %v15677_v28  ;;  %9144 = vmatprep.mubr.bf16.mxu0 %v6892_v25  ;;  %v6891_v41 = vmul.bf16 %v17778_v51, %v3950_v57  ;;  %v3979_v25 = vld [vmem:[#allocation5 + $0x6f8] sm:$0xff] }
 0xb14   : > { %v15833_v56 = vadd.f32 %v10591_v50, %v15674_v33  ;;  %v17779_v33 = vld [vmem:[#allocation167_spill] sm:$0xff] }
 0xb15   : > { %v10656_v59 = vpop.f32.mrb[120].mxu0  ;;  %v17781_v60 = vpack.c.bf16 %v17779_v33, %v17780_v39 }
 0xb16   : > { %v10592_v24 = vpop.f32.mrb[120].mxu1  ;;  %v10657_v58 = vpop.f32.mrb[121].mxu0 }
 0xb17   : > { %v10593_v54 = vpop.f32.mrb[121].mxu1  ;;  %v10658_v2 = vadd.f32 %v10657_v58, %v10656_v59  ;;  %v10659_v36 = vpop.f32.mrb[122].mxu0  ;;  %v6906_v28 = vmul.bf16 %v17781_v60, %v3965_v29  ;;  %v17783_v59 = vld [vmem:[#allocation153_spill] sm:$0xff] }
 0xb18   : > { %v10594_v32 = vadd.f32 %v10593_v54, %v10592_v24  ;;  %v10595_v3 = vpop.f32.mrb[122].mxu1  ;;  %v10660_v52 = vpop.f32.mrb[123].mxu0  ;;  %v17782_v24 = vld [vmem:[#allocation206_spill] sm:$0xff]  ;;  %v3978_v60 = vld [vmem:[#allocation5 + $0x6f0] sm:$0xff] }
 0xb19   : > { %v10596_v38 = vpop.f32.mrb[123].mxu1  ;;  %v15848_v12 = vadd.f32 %v10658_v2, %v15695_v26  ;;  %v10661_v8 = vadd.f32 %v10660_v52, %v10659_v36  ;;  %v17784_v54 = vpack.c.bf16 %v17782_v24, %v17783_v59 }
 0xb1a   : > { %v15845_v63 = vadd.f32 %v10594_v32, %v15692_v22  ;;  %v10597_v35 = vadd.f32 %v10596_v38, %v10595_v3  ;;  %9145 = vmatmul.mubr.bf16.gmra.mrb[228].mxu0 %v6891_v41  ;;  %v17786_v32 = vld [vmem:[#allocation165_spill] sm:$0xff] }
 0xb1b   : > { %v15854_v34 = vadd.f32 %v10661_v8, %v15701_v6  ;;  %9152 = vmatprep.mubr.bf16.mxu0 %v6906_v28  ;;  %v6905_v58 = vmul.bf16 %v17784_v54, %v3964_v11 }
 0xb1c   : > { %v15851_v14 = vadd.f32 %v10597_v35, %v15698_v9  ;;  %v17785_v9 = vld [vmem:[#allocation213_spill] sm:$0xff] }
 0xb1d   : > { %v10662_v40 = vpop.f32.mrb[124].mxu0  ;;  %v17787_v2 = vpack.c.bf16 %v17785_v9, %v17786_v32 }
 0xb1e   : > { %v10598_v43 = vpop.f32.mrb[124].mxu1  ;;  %v10663_v22 = vpop.f32.mrb[125].mxu0 }
 0xb1f   : > { %v10599_v50 = vpop.f32.mrb[125].mxu1  ;;  %v10664_v57 = vadd.f32 %v10663_v22, %v10662_v40  ;;  %v10665_v29 = vpop.f32.mrb[126].mxu0  ;;  %v6920_v6 = vmul.bf16 %v17787_v2, %v3979_v25  ;;  %v17788_v25 = vld [vmem:[#allocation161_spill] sm:$0xff] }
 0xb20   : > { %v10600_v19 = vadd.f32 %v10599_v50, %v10598_v43  ;;  %v10601_v26 = vpop.f32.mrb[126].mxu1  ;;  %v10666_v36 = vpop.f32.mrb[127].mxu0  ;;  %v17789_v43 = vld [vmem:[#allocation163_spill] sm:$0xff] }
 0xb21   : > { %v10602_v3 = vpop.f32.mrb[127].mxu1  ;;  %v15866_v46 = vadd.f32 %v10664_v57, %v15719_v53  ;;  %v10667_v41 = vadd.f32 %v10666_v36, %v10665_v29  ;;  %v17790_v40 = vpack.c.bf16 %v17788_v25, %v17789_v43 }
 0xb22   : > { %v15863_v13 = vadd.f32 %v10600_v19, %v15716_v49  ;;  %v10603_v51 = vadd.f32 %v10602_v3, %v10601_v26  ;;  %9153 = vmatmul.mubr.bf16.gmra.mrb[232].mxu0 %v6905_v58 }
 0xb23   : > { %v15872_v39 = vadd.f32 %v10667_v41, %v15725_v5  ;;  %9160 = vmatprep.mubr.bf16.mxu0 %v6920_v6  ;;  %v6919_v50 = vmul.bf16 %v17790_v40, %v3978_v60 }
 0xb24   : > { %v15869_v33 = vadd.f32 %v10603_v51, %v15722_v37 }
 0xb25   : > { %v10668_v38 = vpop.f32.mrb[128].mxu0 }
 0xb26   : > { %v10604_v28 = vpop.f32.mrb[128].mxu1  ;;  %v10669_v35 = vpop.f32.mrb[129].mxu0 }
 0xb27   : > { %v10605_v52 = vpop.f32.mrb[129].mxu1  ;;  %v10670_v8 = vadd.f32 %v10669_v35, %v10668_v38  ;;  %v10671_v53 = vpop.f32.mrb[130].mxu0 }
 0xb28   : > { %v10606_v49 = vadd.f32 %v10605_v52, %v10604_v28  ;;  %v10607_v11 = vpop.f32.mrb[130].mxu1  ;;  %v10672_v37 = vpop.f32.mrb[131].mxu0 }
 0xb29   : > { %v10608_v22 = vpop.f32.mrb[131].mxu1  ;;  %v15881_v5 = vadd.f32 %v10670_v8, %v15740_v7  ;;  %v10673_v26 = vadd.f32 %v10672_v37, %v10671_v53 }
 0xb2a   : > { %v15878_v19 = vadd.f32 %v10606_v49, %v15737_v48  ;;  %v10609_v57 = vadd.f32 %v10608_v22, %v10607_v11  ;;  %9161 = vmatmul.mubr.bf16.gmra.mrb[236].mxu0 %v6919_v50 }
 0xb2b   : > { %v15887_v24 = vadd.f32 %v10673_v26, %v15746_v17 }
 0xb2c   : > { %v15884_v29 = vadd.f32 %v10609_v57, %v15743_v62 }
 0xb2d   : > { %v10674_v54 = vpop.f32.mrb[132].mxu0 }
 0xb2e   : > { %v10610_v59 = vpop.f32.mrb[132].mxu1  ;;  %v10675_v9 = vpop.f32.mrb[133].mxu0 }
 0xb2f   : > { %v10611_v58 = vpop.f32.mrb[133].mxu1  ;;  %v10676_v2 = vadd.f32 %v10675_v9, %v10674_v54  ;;  %v10677_v6 = vpop.f32.mrb[134].mxu0 }
 0xb30   : > { %v10612_v32 = vadd.f32 %v10611_v58, %v10610_v59  ;;  %v10613_v48 = vpop.f32.mrb[134].mxu1  ;;  %v10678_v7 = vpop.f32.mrb[135].mxu0 }
 0xb31   : > { %v10614_v3 = vpop.f32.mrb[135].mxu1  ;;  %v15893_v51 = vadd.f32 %v10676_v2, %v15758_v45  ;;  %v10679_v41 = vadd.f32 %v10678_v7, %v10677_v6 }
 0xb32   : > { %v15890_v36 = vadd.f32 %v10612_v32, %v15755_v15  ;;  %v10615_v62 = vadd.f32 %v10614_v3, %v10613_v48 }
 0xb33   : > { %v15899_v60 = vadd.f32 %v10679_v41, %v15764_v44 }
 0xb34   : > { %v15896_v17 = vadd.f32 %v10615_v62, %v15761_v27 }
 0xb35   : > { %v10680_v38 = vpop.f32.mrb[136].mxu0 }
 0xb36   : > { %v10616_v28 = vpop.f32.mrb[136].mxu1  ;;  %v10681_v35 = vpop.f32.mrb[137].mxu0 }
 0xb37   : > { %v10617_v52 = vpop.f32.mrb[137].mxu1  ;;  %v10682_v8 = vadd.f32 %v10681_v35, %v10680_v38  ;;  %v10683_v15 = vpop.f32.mrb[138].mxu0 }
 0xb38   : > { %v10618_v49 = vadd.f32 %v10617_v52, %v10616_v28  ;;  %v10619_v11 = vpop.f32.mrb[138].mxu1  ;;  %v10684_v25 = vpop.f32.mrb[139].mxu0 }
 0xb39   : > { %v10620_v53 = vpop.f32.mrb[139].mxu1  ;;  %v15905_v43 = vadd.f32 %v10682_v8, %v15776_v10  ;;  %v10685_v40 = vadd.f32 %v10684_v25, %v10683_v15 }
 0xb3a   : > { %v15902_v45 = vadd.f32 %v10618_v49, %v15773_v21  ;;  %v10621_v27 = vadd.f32 %v10620_v53, %v10619_v11 }
 0xb3b   : > { %v15911_v50 = vadd.f32 %v10685_v40, %v15782_v23 }
 0xb3c   : > { %v15908_v44 = vadd.f32 %v10621_v27, %v15779_v47 }
 0xb3d   : > { %v10686_v37 = vpop.f32.mrb[140].mxu0 }
 0xb3e   : > { %v10622_v22 = vpop.f32.mrb[140].mxu1  ;;  %v10687_v26 = vpop.f32.mrb[141].mxu0 }
 0xb3f   : > { %v10623_v57 = vpop.f32.mrb[141].mxu1  ;;  %v10688_v54 = vadd.f32 %v10687_v26, %v10686_v37  ;;  %v10689_v21 = vpop.f32.mrb[142].mxu0 }
 0xb40   : > { %v10624_v59 = vadd.f32 %v10623_v57, %v10622_v22  ;;  %v10625_v58 = vpop.f32.mrb[142].mxu1  ;;  %v10690_v32 = vpop.f32.mrb[143].mxu0 }
 0xb41   : > { %v10626_v9 = vpop.f32.mrb[143].mxu1  ;;  %v15917_v2 = vadd.f32 %v10688_v54, %v15794_v55  ;;  %v10691_v48 = vadd.f32 %v10690_v32, %v10689_v21 }
 0xb42   : > { %v15914_v10 = vadd.f32 %v10624_v59, %v15791_v4  ;;  %v10627_v47 = vadd.f32 %v10626_v9, %v10625_v58 }
 0xb43   : > { %v15923_v6 = vadd.f32 %v10691_v48, %v15800_v31 }
 0xb44   : > { %v15920_v23 = vadd.f32 %v10627_v47, %v15797_v1 }
 0xb45   : > { %v10692_v3 = vpop.f32.mrb[144].mxu0 }
 0xb46   : > { %v10756_v7 = vpop.f32.mrb[144].mxu1  ;;  %v10693_v62 = vpop.f32.mrb[145].mxu0 }
 0xb47   : > { %v10757_v41 = vpop.f32.mrb[145].mxu1  ;;  %v10694_v28 = vadd.f32 %v10693_v62, %v10692_v3  ;;  %v10695_v52 = vpop.f32.mrb[146].mxu0 }
 0xb48   : > { %v10758_v38 = vadd.f32 %v10757_v41, %v10756_v7  ;;  %v10759_v4 = vpop.f32.mrb[146].mxu1  ;;  %v10696_v35 = vpop.f32.mrb[147].mxu0 }
 0xb49   : > { %v10760_v49 = vpop.f32.mrb[147].mxu1  ;;  %v15926_v55 = vadd.f32 %v10694_v28, %v15809_v18  ;;  %v10697_v1 = vadd.f32 %v10696_v35, %v10695_v52 }
 0xb4a   : > { %v15929_v8 = vadd.f32 %v10758_v38, %v15812_v0  ;;  %v10761_v11 = vadd.f32 %v10760_v49, %v10759_v4 }
 0xb4b   : > { %v15932_v31 = vadd.f32 %v10697_v1, %v15815_v30 }
 0xb4c   : > { %v15935_v15 = vadd.f32 %v10761_v11, %v15818_v16 }
 0xb4d   : > { %v10698_v53 = vpop.f32.mrb[148].mxu0 }
 0xb4e   : > { %v10762_v25 = vpop.f32.mrb[148].mxu1  ;;  %v10699_v27 = vpop.f32.mrb[149].mxu0 }
 0xb4f   : > { %v10763_v40 = vpop.f32.mrb[149].mxu1  ;;  %v10700_v22 = vadd.f32 %v10699_v27, %v10698_v53  ;;  %v10701_v57 = vpop.f32.mrb[150].mxu0 }
 0xb50   : > { %v10764_v37 = vadd.f32 %v10763_v40, %v10762_v25  ;;  %v10765_v18 = vpop.f32.mrb[150].mxu1  ;;  %v10702_v26 = vpop.f32.mrb[151].mxu0 }
 0xb51   : > { %v10766_v59 = vpop.f32.mrb[151].mxu1  ;;  %v15938_v0 = vadd.f32 %v10700_v22, %v15827_v61  ;;  %v10703_v30 = vadd.f32 %v10702_v26, %v10701_v57 }
 0xb52   : > { %v15941_v54 = vadd.f32 %v10764_v37, %v15830_v20  ;;  %v10767_v58 = vadd.f32 %v10766_v59, %v10765_v18 }
 0xb53   : > { %v15944_v16 = vadd.f32 %v10703_v30, %v15833_v56 }
 0xb54   : > { %v15947_v21 = vadd.f32 %v10767_v58, %v15836_v42 }
 0xb55   : > { %v10704_v9 = vpop.f32.mrb[152].mxu0 }
 0xb56   : > { %v10768_v32 = vpop.f32.mrb[152].mxu1  ;;  %v10705_v47 = vpop.f32.mrb[153].mxu0 }
 0xb57   : > { %v10769_v48 = vpop.f32.mrb[153].mxu1  ;;  %v10706_v3 = vadd.f32 %v10705_v47, %v10704_v9  ;;  %v10707_v62 = vpop.f32.mrb[154].mxu0 }
 0xb58   : > { %v10770_v7 = vadd.f32 %v10769_v48, %v10768_v32  ;;  %v10771_v61 = vpop.f32.mrb[154].mxu1  ;;  %v10708_v41 = vpop.f32.mrb[155].mxu0 }
 0xb59   : > { %v10772_v28 = vpop.f32.mrb[155].mxu1  ;;  %v15950_v20 = vadd.f32 %v10706_v3, %v15845_v63  ;;  %v10709_v56 = vadd.f32 %v10708_v41, %v10707_v62 }
 0xb5a   : > { %v15953_v38 = vadd.f32 %v10770_v7, %v15848_v12  ;;  %v10773_v52 = vadd.f32 %v10772_v28, %v10771_v61 }
 0xb5b   : > { %v15956_v42 = vadd.f32 %v10709_v56, %v15851_v14 }
 0xb5c   : > { %v15959_v4 = vadd.f32 %v10773_v52, %v15854_v34 }
 0xb5d   : > { %v10710_v35 = vpop.f32.mrb[156].mxu0 }
 0xb5e   : > { %v10774_v49 = vpop.f32.mrb[156].mxu1  ;;  %v10711_v1 = vpop.f32.mrb[157].mxu0 }
 0xb5f   : > { %v10775_v11 = vpop.f32.mrb[157].mxu1  ;;  %v10712_v53 = vadd.f32 %v10711_v1, %v10710_v35  ;;  %v10713_v27 = vpop.f32.mrb[158].mxu0 }
 0xb60   : > { %v10776_v25 = vadd.f32 %v10775_v11, %v10774_v49  ;;  %v10777_v63 = vpop.f32.mrb[158].mxu1  ;;  %v10714_v40 = vpop.f32.mrb[159].mxu0 }
 0xb61   : > { %v10778_v22 = vpop.f32.mrb[159].mxu1  ;;  %v15962_v12 = vadd.f32 %v10712_v53, %v15863_v13  ;;  %v10715_v14 = vadd.f32 %v10714_v40, %v10713_v27 }
 0xb62   : > { %v15965_v37 = vadd.f32 %v10776_v25, %v15866_v46  ;;  %v10779_v57 = vadd.f32 %v10778_v22, %v10777_v63 }
 0xb63   : > { %v15968_v34 = vadd.f32 %v10715_v14, %v15869_v33 }
 0xb64   : > { %v15971_v18 = vadd.f32 %v10779_v57, %v15872_v39 }
 0xb65   : > { %v10716_v26 = vpop.f32.mrb[160].mxu0 }
 0xb66   : > { %v10780_v59 = vpop.f32.mrb[160].mxu1  ;;  %v10717_v30 = vpop.f32.mrb[161].mxu0 }
 0xb67   : > { %v10781_v58 = vpop.f32.mrb[161].mxu1  ;;  %v10718_v9 = vadd.f32 %v10717_v30, %v10716_v26  ;;  %v10719_v47 = vpop.f32.mrb[162].mxu0 }
 0xb68   : > { %v10782_v32 = vadd.f32 %v10781_v58, %v10780_v59  ;;  %v10783_v13 = vpop.f32.mrb[162].mxu1  ;;  %v10720_v48 = vpop.f32.mrb[163].mxu0 }
 0xb69   : > { %v10784_v3 = vpop.f32.mrb[163].mxu1  ;;  %v15974_v46 = vadd.f32 %v10718_v9, %v15878_v19  ;;  %v10721_v33 = vadd.f32 %v10720_v48, %v10719_v47 }
 0xb6a   : > { %v15977_v7 = vadd.f32 %v10782_v32, %v15881_v5  ;;  %v10785_v62 = vadd.f32 %v10784_v3, %v10783_v13 }
 0xb6b   : > { %v15980_v39 = vadd.f32 %v10721_v33, %v15884_v29 }
 0xb6c   : > { %v15983_v61 = vadd.f32 %v10785_v62, %v15887_v24 }
 0xb6d   : > { %v10722_v41 = vpop.f32.mrb[164].mxu0 }
 0xb6e   : > { %v10786_v28 = vpop.f32.mrb[164].mxu1  ;;  %v10723_v56 = vpop.f32.mrb[165].mxu0 }
 0xb6f   : > { %v10787_v52 = vpop.f32.mrb[165].mxu1  ;;  %v10724_v35 = vadd.f32 %v10723_v56, %v10722_v41  ;;  %v10725_v1 = vpop.f32.mrb[166].mxu0 }
 0xb70   : > { %v10788_v49 = vadd.f32 %v10787_v52, %v10786_v28  ;;  %v10789_v19 = vpop.f32.mrb[166].mxu1  ;;  %v10726_v11 = vpop.f32.mrb[167].mxu0 }
 0xb71   : > { %v10790_v53 = vpop.f32.mrb[167].mxu1  ;;  %v15986_v5 = vadd.f32 %v10724_v35, %v15890_v36  ;;  %v10727_v29 = vadd.f32 %v10726_v11, %v10725_v1 }
 0xb72   : > { %v15989_v25 = vadd.f32 %v10788_v49, %v15893_v51  ;;  %v10791_v27 = vadd.f32 %v10790_v53, %v10789_v19 }
 0xb73   : > { %v15992_v24 = vadd.f32 %v10727_v29, %v15896_v17 }
 0xb74   : > { %v15995_v63 = vadd.f32 %v10791_v27, %v15899_v60 }
 0xb75   : > { %v10728_v40 = vpop.f32.mrb[168].mxu0 }
 0xb76   : > { %v10792_v22 = vpop.f32.mrb[168].mxu1  ;;  %v10729_v14 = vpop.f32.mrb[169].mxu0 }
 0xb77   : > { %v10793_v57 = vpop.f32.mrb[169].mxu1  ;;  %v10730_v26 = vadd.f32 %v10729_v14, %v10728_v40  ;;  %v10731_v30 = vpop.f32.mrb[170].mxu0 }
 0xb78   : > { %v10794_v59 = vadd.f32 %v10793_v57, %v10792_v22  ;;  %v10795_v36 = vpop.f32.mrb[170].mxu1  ;;  %v10732_v58 = vpop.f32.mrb[171].mxu0 }
 0xb79   : > { %v10796_v9 = vpop.f32.mrb[171].mxu1  ;;  %v15998_v51 = vadd.f32 %v10730_v26, %v15902_v45  ;;  %v10733_v17 = vadd.f32 %v10732_v58, %v10731_v30 }
 0xb7a   : > { %v16001_v32 = vadd.f32 %v10794_v59, %v15905_v43  ;;  %v10797_v47 = vadd.f32 %v10796_v9, %v10795_v36 }
 0xb7b   : > { %v16004_v60 = vadd.f32 %v10733_v17, %v15908_v44 }
 0xb7c   : > { %v16007_v13 = vadd.f32 %v10797_v47, %v15911_v50  ;;  %v17791_v50 = vlaneseq }
 0xb7d   : > { %v10734_v48 = vpop.f32.mrb[172].mxu0 }
 0xb7e   : > { %v10798_v3 = vpop.f32.mrb[172].mxu1  ;;  %v10735_v33 = vpop.f32.mrb[173].mxu0  ;;  %v9170_v19 = vshrl.u32 %v17791_v50, 7 }
 0xb7f   : > { %v10799_v62 = vpop.f32.mrb[173].mxu1  ;;  %v10736_v41 = vadd.f32 %v10735_v33, %v10734_v48  ;;  %v10737_v56 = vpop.f32.mrb[174].mxu0  ;;  %v12181_v33 = vmov 1.0|1.0  }
 0xb80   : > { %v10800_v28 = vadd.f32 %v10799_v62, %v10798_v3  ;;  %v10801_v45 = vpop.f32.mrb[174].mxu1  ;;  %v10738_v52 = vpop.f32.mrb[175].mxu0  ;;  %v9178_v29 = vsub.s32 1, %v9170_v19  ;;  %v9174_v22 = vsub.s32 0, %v9170_v19  ;;  %v9171_v57 = vadd.s32 8, %v9170_v19 }
 0xb81   : > { %v10802_v35 = vpop.f32.mrb[175].mxu1  ;;  %v16010_v43 = vadd.f32 %v10736_v41, %v15914_v10  ;;  %v10739_v44 = vadd.f32 %v10738_v52, %v10737_v56  ;;  %v4012_v10 = vld [vmem:[%s17792_s18] sm:$0x3] }
 0xb82   : > { %v16013_v49 = vadd.f32 %v10800_v28, %v15917_v2  ;;  %v10803_v1 = vadd.f32 %v10802_v35, %v10801_v45  ;;  %v9179_v26 = vrot.slane %v4012_v10, %v9178_v29  ;;  %v9175_v58 = vrot.slane %v4012_v10, %v9174_v22 }
 0xb83   : > { %v16017_v11 = vadd.f32 %v10739_v44, %v15920_v23 }
 0xb84   : > { %v16020_v53 = vadd.f32 %v10803_v1, %v15923_v6  ;;  %vm9181_vm4 = vcmp.eq.s32.totalorder %v9170_v19, %v9179_v26  ;;  %vm9183_vm7 = vcmp.eq.s32.totalorder %v9171_v57, %v9179_v26  ;;  %vm9180_vm9 = vcmp.eq.s32.totalorder %v9170_v19, %v9175_v58 }
 0xb85   : > { %v10868_v40 = vpop.f32.mrb[176].mxu0  ;;  %vm10057_vm8 = vmpackc.low %vm9183_vm7, %vm9181_vm4  ;;  %vm9182_vm10 = vcmp.eq.s32.totalorder %v9171_v57, %v9175_v58 }
 0xb86   : > { %v10804_v27 = vpop.f32.mrb[176].mxu1  ;;  %v10869_v14 = vpop.f32.mrb[177].mxu0  ;;  %10058 = vmatprep.mubr.msk.bf16.mxu1 %vm10057_vm8, %v12181_v33  ;;  %vm16038_vm11 = vmpackc.low %vm9182_vm10, %vm9180_vm9 }
 0xb87   : > { %v10805_v2 = vpop.f32.mrb[177].mxu1  ;;  %v10870_v30 = vadd.f32 %v10869_v14, %v10868_v40  ;;  %v10871_v23 = vpop.f32.mrb[178].mxu0 }
 0xb88   : > { %v10806_v59 = vadd.f32 %v10805_v2, %v10804_v27  ;;  %v10807_v36 = vpop.f32.mrb[178].mxu1  ;;  %v10872_v6 = vpop.f32.mrb[179].mxu0 }
 0xb89   : > { %v10808_v9 = vpop.f32.mrb[179].mxu1  ;;  %v16029_v47 = vadd.f32 %v10870_v30, %v15929_v8  ;;  %v10873_v3 = vadd.f32 %v10872_v6, %v10871_v23 }
 0xb8a   : > { %v16026_v17 = vadd.f32 %v10806_v59, %v15926_v55  ;;  %v10809_v48 = vadd.f32 %v10808_v9, %v10807_v36  ;;  %v9290_v55 = vld [vmem:[%s17795_s3 + $0x40] sm:$0xff] }
 0xb8b   : > { %v16036_v41 = vadd.f32 %v10873_v3, %v15935_v15 }
 0xb8c   : > { %v16033_v62 = vadd.f32 %v10809_v48, %v15932_v31 }
 0xb8d   : > { %v9196_v8 = vpack.c.bf16 %v16036_v41, %v16029_v47  ;;  %v10874_v56 = vpop.f32.mrb[180].mxu0 }
 0xb8e   : > { %v10810_v28 = vpop.f32.mrb[180].mxu1  ;;  %v10875_v52 = vpop.f32.mrb[181].mxu0 }
 0xb8f   : > { %v10811_v45 = vpop.f32.mrb[181].mxu1  ;;  %v10876_v44 = vadd.f32 %v10875_v52, %v10874_v56  ;;  %v10877_v50 = vpop.f32.mrb[182].mxu0 }
 0xb90   : > { %v10812_v35 = vadd.f32 %v10811_v45, %v10810_v28  ;;  %v10813_v1 = vpop.f32.mrb[182].mxu1  ;;  %v10878_v19 = vpop.f32.mrb[183].mxu0 }
 0xb91   : > { %v10814_v31 = vpop.f32.mrb[183].mxu1  ;;  %v16048_v29 = vadd.f32 %v10876_v44, %v15941_v54  ;;  %v10879_v40 = vadd.f32 %v10878_v19, %v10877_v50 }
 0xb92   : > { %v16045_v15 = vadd.f32 %v10812_v35, %v15938_v0  ;;  %v10815_v27 = vadd.f32 %v10814_v31, %v10813_v1 }
 0xb93   : > { %v16054_v22 = vadd.f32 %v10879_v40, %v15947_v21 }
 0xb94   : > { %v16051_v10 = vadd.f32 %v10815_v27, %v15944_v16 }
 0xb95   : > { %v9197_v2 = vpack.c.bf16 %v16054_v22, %v16048_v29  ;;  %v10880_v57 = vpop.f32.mrb[184].mxu0 }
 0xb96   : > { %v10816_v14 = vpop.f32.mrb[184].mxu1  ;;  %v10881_v59 = vpop.f32.mrb[185].mxu0 }
 0xb97   : > { %v10817_v26 = vpop.f32.mrb[185].mxu1  ;;  %v10882_v30 = vadd.f32 %v10881_v59, %v10880_v57  ;;  %v10883_v54 = vpop.f32.mrb[186].mxu0 }
 0xb98   : > { %v10818_v0 = vadd.f32 %v10817_v26, %v10816_v14  ;;  %v10819_v36 = vpop.f32.mrb[186].mxu1  ;;  %v10884_v58 = vpop.f32.mrb[187].mxu0 }
 0xb99   : > { %v10820_v23 = vpop.f32.mrb[187].mxu1  ;;  %v16062_v16 = vadd.f32 %v10882_v30, %v15953_v38  ;;  %v10885_v6 = vadd.f32 %v10884_v58, %v10883_v54 }
 0xb9a   : > { %v16059_v9 = vadd.f32 %v10818_v0, %v15950_v20  ;;  %v10821_v21 = vadd.f32 %v10820_v23, %v10819_v36 }
 0xb9b   : > { %v16068_v3 = vadd.f32 %v10885_v6, %v15959_v4 }
 0xb9c   : > { %v16065_v48 = vadd.f32 %v10821_v21, %v15956_v42 }
 0xb9d   : > { %v9198_v28 = vpack.c.bf16 %v16068_v3, %v16062_v16  ;;  %v10886_v45 = vpop.f32.mrb[188].mxu0 }
 0xb9e   : > { %v10822_v56 = vpop.f32.mrb[188].mxu1  ;;  %v10887_v35 = vpop.f32.mrb[189].mxu0 }
 0xb9f   : > { %v10823_v52 = vpop.f32.mrb[189].mxu1  ;;  %v10888_v44 = vadd.f32 %v10887_v35, %v10886_v45  ;;  %v10889_v38 = vpop.f32.mrb[190].mxu0 }
 0xba0   : > { %v10824_v20 = vadd.f32 %v10823_v52, %v10822_v56  ;;  %v10825_v1 = vpop.f32.mrb[190].mxu1  ;;  %v10890_v31 = vpop.f32.mrb[191].mxu0 }
 0xba1   : > { %v10826_v50 = vpop.f32.mrb[191].mxu1  ;;  %v16076_v42 = vadd.f32 %v10888_v44, %v15965_v37  ;;  %v10891_v27 = vadd.f32 %v10890_v31, %v10889_v38 }
 0xba2   : > { %v16073_v19 = vadd.f32 %v10824_v20, %v15962_v12  ;;  %v10827_v4 = vadd.f32 %v10826_v50, %v10825_v1 }
 0xba3   : > { %v16082_v14 = vadd.f32 %v10891_v27, %v15971_v18 }
 0xba4   : > { %v16079_v40 = vadd.f32 %v10827_v4, %v15968_v34 }
 0xba5   : > { %v9199_v57 = vpack.c.bf16 %v16082_v14, %v16076_v42  ;;  %v10892_v59 = vpop.f32.mrb[192].mxu0 }
 0xba6   : > { %v10828_v26 = vpop.f32.mrb[192].mxu1  ;;  %v10893_v30 = vpop.f32.mrb[193].mxu0 }
 0xba7   : > { %v10829_v0 = vpop.f32.mrb[193].mxu1  ;;  %v10894_v36 = vadd.f32 %v10893_v30, %v10892_v59  ;;  %v10895_v37 = vpop.f32.mrb[194].mxu0 }
 0xba8   : > { %v10830_v12 = vadd.f32 %v10829_v0, %v10828_v26  ;;  %v10831_v54 = vpop.f32.mrb[194].mxu1  ;;  %v10896_v58 = vpop.f32.mrb[195].mxu0 }
 0xba9   : > { %v10832_v23 = vpop.f32.mrb[195].mxu1  ;;  %v16090_v34 = vadd.f32 %v10894_v36, %v15977_v7  ;;  %v10897_v6 = vadd.f32 %v10896_v58, %v10895_v37 }
 0xbaa   : > { %v16087_v21 = vadd.f32 %v10830_v12, %v15974_v46  ;;  %v10833_v18 = vadd.f32 %v10832_v23, %v10831_v54 }
 0xbab   : > { %v16096_v45 = vadd.f32 %v10897_v6, %v15983_v61 }
 0xbac   : > { %v16093_v56 = vadd.f32 %v10833_v18, %v15980_v39 }
 0xbad   : > { %v9200_v52 = vpack.c.bf16 %v16096_v45, %v16090_v34  ;;  %v10898_v20 = vpop.f32.mrb[196].mxu0 }
 0xbae   : > { %v10834_v35 = vpop.f32.mrb[196].mxu1  ;;  %v10899_v1 = vpop.f32.mrb[197].mxu0 }
 0xbaf   : > { %v10835_v44 = vpop.f32.mrb[197].mxu1  ;;  %v10900_v38 = vadd.f32 %v10899_v1, %v10898_v20  ;;  %v10901_v7 = vpop.f32.mrb[198].mxu0 }
 0xbb0   : > { %v10836_v46 = vadd.f32 %v10835_v44, %v10834_v35  ;;  %v10837_v50 = vpop.f32.mrb[198].mxu1  ;;  %v10902_v4 = vpop.f32.mrb[199].mxu0 }
 0xbb1   : > { %v10838_v31 = vpop.f32.mrb[199].mxu1  ;;  %v16104_v39 = vadd.f32 %v10900_v38, %v15989_v25  ;;  %v10903_v26 = vadd.f32 %v10902_v4, %v10901_v7 }
 0xbb2   : > { %v16101_v27 = vadd.f32 %v10836_v46, %v15986_v5  ;;  %v10839_v61 = vadd.f32 %v10838_v31, %v10837_v50 }
 0xbb3   : > { %v16110_v0 = vadd.f32 %v10903_v26, %v15995_v63 }
 0xbb4   : > { %v16107_v59 = vadd.f32 %v10839_v61, %v15992_v24 }
 0xbb5   : > { %v9201_v30 = vpack.c.bf16 %v16110_v0, %v16104_v39  ;;  %v10904_v36 = vpop.f32.mrb[200].mxu0  ;;  %v9282_v0 = vld [vmem:[%s17795_s3] sm:$0xff] }
 0xbb6   : > { %v10840_v12 = vpop.f32.mrb[200].mxu1  ;;  %v10905_v37 = vpop.f32.mrb[201].mxu0 }
 0xbb7   : > { %v10841_v54 = vpop.f32.mrb[201].mxu1  ;;  %v10906_v23 = vadd.f32 %v10905_v37, %v10904_v36  ;;  %v10907_v25 = vpop.f32.mrb[202].mxu0 }
 0xbb8   : > { %v10842_v5 = vadd.f32 %v10841_v54, %v10840_v12  ;;  %v10843_v58 = vpop.f32.mrb[202].mxu1  ;;  %v10908_v6 = vpop.f32.mrb[203].mxu0 }
 0xbb9   : > { %v10844_v18 = vpop.f32.mrb[203].mxu1  ;;  %v16118_v24 = vadd.f32 %v10906_v23, %v16001_v32  ;;  %v10909_v20 = vadd.f32 %v10908_v6, %v10907_v25 }
 0xbba   : > { %v16115_v35 = vadd.f32 %v10842_v5, %v15998_v51  ;;  %v10845_v63 = vadd.f32 %v10844_v18, %v10843_v58 }
 0xbbb   : > { %v16124_v1 = vadd.f32 %v10909_v20, %v16007_v13 }
 0xbbc   : > { %v16121_v44 = vadd.f32 %v10845_v63, %v16004_v60 }
 0xbbd   : > { %v9202_v46 = vpack.c.bf16 %v16124_v1, %v16118_v24  ;;  %v10910_v50 = vpop.f32.mrb[204].mxu0  ;;  %v9284_v24 = vld [vmem:[%s17795_s3 + $0x10] sm:$0xff]  ;;  %v9285_v1 = vld [vmem:[%s17795_s3 + $0x18] sm:$0xff] }
 0xbbe   : > { %v10846_v38 = vpop.f32.mrb[204].mxu1  ;;  %v10911_v31 = vpop.f32.mrb[205].mxu0 }
 0xbbf   : > { %v10847_v7 = vpop.f32.mrb[205].mxu1  ;;  %v10912_v4 = vadd.f32 %v10911_v31, %v10910_v50  ;;  %v10913_v32 = vpop.f32.mrb[206].mxu0 }
 0xbc0   : > { %v10848_v51 = vadd.f32 %v10847_v7, %v10846_v38  ;;  %v10849_v61 = vpop.f32.mrb[206].mxu1  ;;  %v10914_v12 = vpop.f32.mrb[207].mxu0 }
 0xbc1   : > { %v10850_v26 = vpop.f32.mrb[207].mxu1  ;;  %v16132_v60 = vadd.f32 %v10912_v4, %v16013_v49  ;;  %v10915_v54 = vadd.f32 %v10914_v12, %v10913_v32 }
 0xbc2   : > { %v16129_v36 = vadd.f32 %v10848_v51, %v16010_v43  ;;  %v10851_v13 = vadd.f32 %v10850_v26, %v10849_v61 }
 0xbc3   : > { %v16138_v5 = vadd.f32 %v10915_v54, %v16020_v53 }
 0xbc4   : > { %v16135_v37 = vadd.f32 %v10851_v13, %v16017_v11 }
 0xbc5   : > { %v9203_v23 = vpack.c.bf16 %v16138_v5, %v16132_v60  ;;  %v10916_v58 = vpop.f32.mrb[208].mxu0  ;;  %v9288_v5 = vld [vmem:[%s17795_s3 + $0x30] sm:$0xff] }
 0xbc6   : > { %v10917_v25 = vpop.f32.mrb[209].mxu0 }
 0xbc7   : > { %v10918_v18 = vadd.f32 %v10917_v25, %v10916_v58  ;;  %v10919_v6 = vpop.f32.mrb[210].mxu0 }
 0xbc8   : > { %v10920_v43 = vpop.f32.mrb[211].mxu0 }
 0xbc9   : > { %v9107_v63 = vadd.f32 %v10918_v18, %v16026_v17  ;;  %v10921_v49 = vadd.f32 %v10920_v43, %v10919_v6 }
 0xbcb   : > { %v9110_v20 = vadd.f32 %v10921_v49, %v16033_v62 }
 0xbcd   : > { %v10922_v38 = vpop.f32.mrb[212].mxu0  ;;  %v9204_v50 = vpack.c.bf16 %v9110_v20, %v9107_v63 }
 0xbce   : > { %v10923_v11 = vpop.f32.mrb[213].mxu0 }
 0xbcf   : > { %v10924_v7 = vadd.f32 %v10923_v11, %v10922_v38  ;;  %v10925_v31 = vpop.f32.mrb[214].mxu0  ;;  %10964 = vmatprep.subr.bf16.mxu1 %v9204_v50 }
 0xbd0   : > { %v10926_v53 = vpop.f32.mrb[215].mxu0  ;;  %10965 = vmatpush3.bf16.msra.mxu1 %v9196_v8 }
 0xbd1   : > { %v9115_v51 = vadd.f32 %v10924_v7, %v16045_v15  ;;  %v10927_v4 = vadd.f32 %v10926_v53, %v10925_v31 }
 0xbd3   : > { %v9118_v61 = vadd.f32 %v10927_v4, %v16051_v10 }
 0xbd5   : > { %v10928_v17 = vpop.f32.mrb[216].mxu0  ;;  %v9205_v32 = vpack.c.bf16 %v9118_v61, %v9115_v51 }
 0xbd6   : > { %v10929_v26 = vpop.f32.mrb[217].mxu0 }
 0xbd7   : > { %v10930_v62 = vadd.f32 %v10929_v26, %v10928_v17  ;;  %v10931_v12 = vpop.f32.mrb[218].mxu0  ;;  %10966 = vmatprep.subr.bf16.mxu1 %v9205_v32 }
 0xbd8   : > { %v10932_v13 = vpop.f32.mrb[219].mxu0  ;;  %10967 = vmatpush3.bf16.msra.mxu1 %v9197_v2 }
 0xbd9   : > { %v9123_v54 = vadd.f32 %v10930_v62, %v16059_v9  ;;  %v10933_v47 = vadd.f32 %v10932_v13, %v10931_v12  ;;  %v9287_v12 = vld [vmem:[%s17795_s3 + $0x28] sm:$0xff] }
 0xbdb   : > { %v9126_v41 = vadd.f32 %v10933_v47, %v16065_v48  ;;  %v9292_v47 = vld [vmem:[%s17795_s3 + $0x50] sm:$0xff] }
 0xbdd   : > { %v10934_v8 = vpop.f32.mrb[220].mxu0  ;;  %v9206_v15 = vpack.c.bf16 %v9126_v41, %v9123_v54  ;;  %v9293_v41 = vld [vmem:[%s17795_s3 + $0x58] sm:$0xff] }
 0xbde   : > { %v10935_v58 = vpop.f32.mrb[221].mxu0 }
 0xbdf   : > { %v10936_v10 = vadd.f32 %v10935_v58, %v10934_v8  ;;  %v10937_v25 = vpop.f32.mrb[222].mxu0  ;;  %10968 = vmatprep.subr.bf16.mxu1 %v9206_v15  ;;  %v11386_v8 = vpack.c.bf16 %v9293_v41, %v9292_v47  ;;  %v9294_v15 = vld [vmem:[%s17795_s3 + $0x60] sm:$0xff]  ;;  %v9295_v58 = vld [vmem:[%s17795_s3 + $0x68] sm:$0xff] }
 0xbe0   : > { %v10938_v18 = vpop.f32.mrb[223].mxu0  ;;  %10969 = vmatpush3.bf16.msra.mxu1 %v9198_v28 }
 0xbe1   : > { %v9131_v6 = vadd.f32 %v10936_v10, %v16073_v19  ;;  %v10939_v29 = vadd.f32 %v10938_v18, %v10937_v25  ;;  %v11390_v10 = vpack.c.bf16 %v9295_v58, %v9294_v15  ;;  %v9296_v25 = vld [vmem:[%s17795_s3 + $0x70] sm:$0xff]  ;;  %v9297_v18 = vld [vmem:[%s17795_s3 + $0x78] sm:$0xff] }
 0xbe3   : > { %v9134_v22 = vadd.f32 %v10939_v29, %v16079_v40  ;;  %v9266_v29 = vld [vmem:[%s17796_s21] sm:$0xff] }
 0xbe5   : > { %v10940_v2 = vpop.f32.mrb[224].mxu0  ;;  %v9207_v9 = vpack.c.bf16 %v9134_v22, %v9131_v6  ;;  %v11394_v6 = vpack.c.bf16 %v9297_v18, %v9296_v25  ;;  %v9267_v22 = vld [vmem:[%s17796_s21 + $0x8] sm:$0xff] }
 0xbe6   : > { %v10941_v43 = vpop.f32.mrb[225].mxu0 }
 0xbe7   : > { %v10942_v48 = vadd.f32 %v10941_v43, %v10940_v2  ;;  %v10943_v63 = vpop.f32.mrb[226].mxu0  ;;  %10970 = vmatprep.subr.bf16.mxu1 %v9207_v9  ;;  %v11398_v2 = vpack.c.bf16 %v9267_v22, %v9266_v29  ;;  %v9268_v9 = vld [vmem:[%s17796_s21 + $0x10] sm:$0xff]  ;;  %v9269_v43 = vld [vmem:[%s17796_s21 + $0x18] sm:$0xff] }
 0xbe8   : > { %v10944_v49 = vpop.f32.mrb[227].mxu0  ;;  %10971 = vmatpush3.bf16.msra.mxu1 %v9199_v57 }
 0xbe9   : > { %v9139_v20 = vadd.f32 %v10942_v48, %v16087_v21  ;;  %v10945_v16 = vadd.f32 %v10944_v49, %v10943_v63  ;;  %v9261_v48 = vld [vmem:[#allocation2 + $0x8] sm:$0xff]  ;;  %v11402_v63 = vpack.c.bf16 %v9269_v43, %v9268_v9  ;;  %v9270_v49 = vld [vmem:[%s17796_s21 + $0x20] sm:$0xff] }
 0xbeb   : > { %v9142_v3 = vadd.f32 %v10945_v16, %v16093_v56 }
 0xbed   : > { %v10946_v28 = vpop.f32.mrb[228].mxu0  ;;  %v9208_v19 = vpack.c.bf16 %v9142_v3, %v9139_v20  ;;  %v9271_v20 = vld [vmem:[%s17796_s21 + $0x28] sm:$0xff]  ;;  %v9272_v3 = vld [vmem:[%s17796_s21 + $0x30] sm:$0xff] }
 0xbee   : > { %v10947_v38 = vpop.f32.mrb[229].mxu0  ;;  %v11406_v16 = vpack.c.bf16 %v9271_v20, %v9270_v49 }
 0xbef   : > { %v10948_v40 = vadd.f32 %v10947_v38, %v10946_v28  ;;  %v10949_v50 = vpop.f32.mrb[230].mxu0  ;;  %10972 = vmatprep.subr.bf16.mxu1 %v9208_v19  ;;  %v9273_v28 = vld [vmem:[%s17796_s21 + $0x38] sm:$0xff]  ;;  %v9274_v38 = vld [vmem:[%s17796_s21 + $0x40] sm:$0xff] }
 0xbf0   : > { %v10950_v11 = vpop.f32.mrb[231].mxu0  ;;  %10973 = vmatpush3.bf16.msra.mxu1 %v9200_v52  ;;  %v11410_v19 = vpack.c.bf16 %v9273_v28, %v9272_v3 }
 0xbf1   : > { %v9147_v7 = vadd.f32 %v10948_v40, %v16101_v27  ;;  %v10951_v42 = vadd.f32 %v10950_v11, %v10949_v50  ;;  %v9275_v40 = vld [vmem:[%s17796_s21 + $0x48] sm:$0xff]  ;;  %v9276_v11 = vld [vmem:[%s17796_s21 + $0x50] sm:$0xff] }
 0xbf2   : > { %v11414_v50 = vpack.c.bf16 %v9275_v40, %v9274_v38 }
 0xbf3   : > { %v9150_v14 = vadd.f32 %v10951_v42, %v16107_v59 }
 0xbf5   : > { %v10952_v57 = vpop.f32.mrb[232].mxu0  ;;  %v9209_v21 = vpack.c.bf16 %v9150_v14, %v9147_v7  ;;  %v9277_v7 = vld [vmem:[%s17796_s21 + $0x58] sm:$0xff]  ;;  %v9278_v14 = vld [vmem:[%s17796_s21 + $0x60] sm:$0xff] }
 0xbf6   : > { %v10953_v31 = vpop.f32.mrb[233].mxu0  ;;  %v11418_v42 = vpack.c.bf16 %v9277_v7, %v9276_v11 }
 0xbf7   : > { %v10954_v56 = vadd.f32 %v10953_v31, %v10952_v57  ;;  %v10955_v53 = vpop.f32.mrb[234].mxu0  ;;  %10974 = vmatprep.subr.bf16.mxu1 %v9209_v21  ;;  %v9279_v57 = vld [vmem:[%s17796_s21 + $0x68] sm:$0xff]  ;;  %v9280_v31 = vld [vmem:[%s17796_s21 + $0x70] sm:$0xff] }
 0xbf8   : > { %v10956_v51 = vpop.f32.mrb[235].mxu0  ;;  %10975 = vmatpush3.bf16.msra.mxu1 %v9201_v30  ;;  %v9283_v30 = vld [vmem:[%s17795_s3 + $0x8] sm:$0xff]  ;;  %v11422_v21 = vpack.c.bf16 %v9279_v57, %v9278_v14 }
 0xbf9   : > { %v9155_v4 = vadd.f32 %v10954_v56, %v16115_v35  ;;  %v10957_v34 = vadd.f32 %v10956_v51, %v10955_v53  ;;  %v11366_v62 = vpack.c.bf16 %v9283_v30, %v9282_v0  ;;  %v9281_v56 = vld [vmem:[%s17796_s21 + $0x78] sm:$0xff]  ;;  %v10061_v0 = vld [vmem:[%s17797_s22] ss:$0 sm:$0xff] }
 0xbfa   : > { %v11426_v53 = vpack.c.bf16 %v9281_v56, %v9280_v31 }
 0xbfb   : > { %v9158_v45 = vadd.f32 %v10957_v34, %v16121_v44 }
 0xbfd   : > { %v10958_v52 = vpop.f32.mrb[236].mxu0  ;;  %v9210_v27 = vpack.c.bf16 %v9158_v45, %v9155_v4  ;;  %v9194_v4 = vld [vmem:[#allocation4] sm:$0xff] }
 0xbfe   : > { %v10959_v61 = vpop.f32.mrb[237].mxu0 }
 0xbff   : > { %v10960_v59 = vadd.f32 %v10959_v61, %v10958_v52  ;;  %v10961_v17 = vpop.f32.mrb[238].mxu0  ;;  %10976 = vmatprep.subr.bf16.mxu1 %v9210_v27  ;;  %v9195_v27 = vld [vmem:[#allocation4 + $0x8] sm:$0xff] }
 0xc00   : > { %v10962_v32 = vpop.f32.mrb[239].mxu0  ;;  %10977 = vmatpush3.bf16.msra.mxu1 %v9202_v46  ;;  %v11370_v46 = vpack.c.bf16 %v9285_v1, %v9284_v24 }
 0xc01   : > { %v9163_v26 = vadd.f32 %v10960_v59, %v16129_v36  ;;  %v10963_v39 = vadd.f32 %v10962_v32, %v10961_v17  ;;  %v9260_v36 = vld [vmem:[#allocation2] sm:$0xff] }
 0xc03   : > { %v9166_v35 = vadd.f32 %v10963_v39, %v16135_v37  ;;  %v9286_v37 = vld [vmem:[%s17795_s3 + $0x20] sm:$0xff] }
 0xc04   : > { %v11374_v60 = vpack.c.bf16 %v9287_v12, %v9286_v37  ;;  %v9469_v12 = vld [vmem:[%s17798_s17 + $0x8] sm:$0xff] (%p9461_p10) }
 0xc05   : > { %v9211_v44 = vpack.c.bf16 %v9166_v35, %v9163_v26 }
 0xc07   : > { %10978 = vmatprep.subr.bf16.mxu1 %v9211_v44 }
 0xc08   : > { %10979 = vmatpush3.bf16.msra.mxu1 %v9203_v23  ;;  %v9289_v23 = vld [vmem:[%s17795_s3 + $0x38] sm:$0xff] }
 0xc09   : > { %11367 = vmatprep.subr.bf16.mxu1 %v11366_v62  ;;  %v11378_v13 = vpack.c.bf16 %v9289_v23, %v9288_v5 }
 0xc0b   : > { %10060 = vmatmul.mubr.msk.bf16.vlgmr.msra.gmra.mrb[208].mxu1 %vm16038_vm11, %v12181_v33  ;;  %v9291_v33 = vld [vmem:[%s17795_s3 + $0x48] sm:$0xff] }
 0xc0c   : > { %11369 = vmatpush3.bf16.msra.mxu1 %v11366_v62  ;;  %11258 = vmatprep.mubr.f32.mxu1 %v9260_v36  ;;  %v11382_v54 = vpack.c.bf16 %v9291_v33, %v9290_v55 }
 0xc0d   : > { %11371 = vmatprep.subr.bf16.mxu1 %v11370_v46 }
 0xc10   : > { %11373 = vmatpush3.bf16.msra.mxu1 %v11370_v46  ;;  %v9468_v46 = vld [vmem:[%s17798_s17] sm:$0xff] (%p9461_p10) }
 0xc11   : > { %11375 = vmatprep.subr.bf16.mxu1 %v11374_v60 }
 0xc14   : > { %11377 = vmatpush3.bf16.msra.mxu1 %v11374_v60 }
 0xc15   : > { %11379 = vmatprep.subr.bf16.mxu1 %v11378_v13 }
 0xc18   : > { %11381 = vmatpush3.bf16.msra.mxu1 %v11378_v13 }
 0xc19   : > { %11383 = vmatprep.subr.bf16.mxu1 %v11382_v54 }
 0xc1c   : > { %11385 = vmatpush3.bf16.msra.mxu1 %v11382_v54 }
 0xc1d   : > { %11387 = vmatprep.subr.bf16.mxu1 %v11386_v8 }
 0xc20   : > { %11389 = vmatpush3.bf16.msra.mxu1 %v11386_v8 }
 0xc21   : > { %11391 = vmatprep.subr.bf16.mxu1 %v11390_v10 }
 0xc24   : > { %11393 = vmatpush3.bf16.msra.mxu1 %v11390_v10 }
 0xc25   : > { %11395 = vmatprep.subr.bf16.mxu1 %v11394_v6 }
 0xc28   : > { %11397 = vmatpush3.bf16.msra.mxu1 %v11394_v6 }
 0xc29   : > { %11399 = vmatprep.subr.bf16.mxu1 %v11398_v2 }
 0xc2b   : > { %11259 = vmatmul.mubr.f32.vlgmr.msra.gmra.mrb[212].mxu1 %v9261_v48 }
 0xc2c   : > { %11401 = vmatpush3.bf16.msra.mxu1 %v11398_v2 }
 0xc2d   : > { %11403 = vmatprep.subr.bf16.mxu1 %v11402_v63 }
 0xc30   : > { %11405 = vmatpush3.bf16.msra.mxu1 %v11402_v63 }
 0xc31   : > { %11407 = vmatprep.subr.bf16.mxu1 %v11406_v16 }
 0xc34   : > { %11409 = vmatpush3.bf16.msra.mxu1 %v11406_v16 }
 0xc35   : > { %11411 = vmatprep.subr.bf16.mxu1 %v11410_v19 }
 0xc38   : > { %11413 = vmatpush3.bf16.msra.mxu1 %v11410_v19 }
 0xc39   : > { %11415 = vmatprep.subr.bf16.mxu1 %v11414_v50 }
 0xc3c   : > { %11417 = vmatpush3.bf16.msra.mxu1 %v11414_v50 }
 0xc3d   : > { %11419 = vmatprep.subr.bf16.mxu1 %v11418_v42 }
 0xc40   : > { %11421 = vmatpush3.bf16.msra.mxu1 %v11418_v42 }
 0xc41   : > { %11423 = vmatprep.subr.bf16.mxu1 %v11422_v21 }
 0xc44   : > { %11425 = vmatpush3.bf16.msra.mxu1 %v11422_v21 }
 0xc45   : > { %11427 = vmatprep.subr.bf16.mxu1 %v11426_v53 }
 0xc48   : > { %11429 = vmatpush3.bf16.msra.mxu1 %v11426_v53 }
 0xcde   : > { %v10980_v51 = vpop.f32.mrb[208].mxu1 }
 0xcdf   : > { %v10981_v34 = vpop.f32.mrb[209].mxu1 }
 0xce0   : > { %v10982_v45 = vadd.f32 %v10981_v34, %v10980_v51  ;;  %v10983_v52 = vpop.f32.mrb[210].mxu1 }
 0xce1   : > { %v10984_v61 = vpop.f32.mrb[211].mxu1 }
 0xce2   : > { %v9253_v59 = vadd.f32 %v10982_v45, %v9194_v4  ;;  %v10985_v17 = vadd.f32 %v10984_v61, %v10983_v52 }
 0xce4   : > { %9255 = vst [vmem:[#allocation4] sm:$0xff] %v9253_v59  ;;  %v9254_v32 = vadd.f32 %v10985_v17, %v9195_v27  ;;  %v9264_v26 = vmax.f32 %v9253_v59, 0.0 }
 0xce6   : > { %9256 = vst [vmem:[#allocation4 + $0x8] sm:$0xff] %v9254_v32  ;;  %11293 = vmatprep.mubr.f32.mxu1 %v9264_v26  ;;  %v9265_v39 = vmax.f32 %v9254_v32, 0.0 }
 0xce8   : > { %11294 = vmatmul.mubr.f32.vlgmr.msra.gmra.mrb[212].mxu1 %v9265_v39 }
 0xdbb   : > { %v11295_v30 = vpop.f32.mrb[212].mxu1  ;;  %9465 = sbr.rel (!%p9461_p10) target bundleno = 3530 (0xdca), region = 124 }
 0xdbc   : > { %v9456_v35 = vadd.f32 %v11295_v30, %v10061_v0  ;;  %v9439_v44 = vpop.f32.mrb[213].mxu1 }
 0xdbd   : > { %v9455_v62 = vadd.f32 %v10061_v0, %v9439_v44 }
 0xdbe   : > { %9458 = vst [vmem:[#allocation2 + $0x8] sm:$0xff] %v9456_v35 }
 0xdbf   : > { %9457 = vst [vmem:[#allocation2] sm:$0xff] %v9455_v62  ;;  %v9459_v24 = vpack.c.bf16 %v9456_v35, %v9455_v62 }
 0xdc1   : > { %9460 = vst [vmem:[#allocation3] sm:$0xff] %v9459_v24 }
 0xdc5   : > { %v9467_v36 = vld [vmem:[#allocation2 + $0x8] sm:$0xff] }
 0xdc6   : > { %v9466_v1 = vld [vmem:[#allocation2] sm:$0xff]  ;;  %v9471_v60 = vadd.f32 %v9469_v12, %v9467_v36 }
 0xdc7   : > { %v9470_v37 = vadd.f32 %v9468_v46, %v9466_v1 }
 0xdc8   : > { %9473 = vst [vmem:[#allocation14 + $0x8] sm:$0xff] %v9471_v60 }
 0xdc9   : > { %9472 = vst [vmem:[#allocation14] sm:$0xff] %v9470_v37 }
 0xdca PF: > { %s17799_s15 = sld [smem:[#allocation20_spill]]  ;;  %s12182_s26 = smov [#allocation14]  }
 0xdcb   : > { %s9480_s29 = sshll.u32 %s12182_s26, 4  ;;  %s9481_s29 = int_to_ptr.vmem [resolvable:$true] %s9480_s29 }
 0xdcc   : > { %s12103_s18 = scalar_lea.vmem %s9481_s29, 256  ;;  %p12110_p0 = scmp.lt.s32.totalorder %s9481_s29, %s9481_s29 }
 0xdcd   : > { %p12104_p12 = scmp.ne.s32.totalorder %s9481_s29, %s12103_s18  ;;  %p12111_p1 = scmp.lt.s32.totalorder %s12103_s18, %s12103_s18 }
 0xdcf   : > { %p12112_p4 = por %p12111_p1, %p12110_p0 }
 0xdd0   : > { %s17800_s14 = sadd.s32 4294967295, %s17799_s15  }
 0xdd1   : > { %p16293_p11 = scmp.eq.s32.totalorder %s17800_s14, 2 }
 0xdd3   : > { %p12105_p13 = pnand %p12104_p12, %p16293_p11 }
 0xdd5   : > { %p12106_p6 = pneg %p12105_p13 }
 0xdd7   : > { %p12113_p7 = pnand %p12112_p4, %p12106_p6 }
 0xdd9   : > { %12116 = shalt.err (!%p12113_p7)
}
 0xdda   : > { %s17802_s25 = sld [smem:[#allocation263_spill]] }
 0xde0   : > { %s17803_s28 = smov %s17802_s25  ;;  %s12117_s22 = scalar_lea.hbm %s17802_s25, 256 }
 0xde1   : > { %p12118_p9 = scmp.ne.s32.totalorder %s17803_s28, %s12117_s22  ;;  %p12123_p5 = scmp.lt.u32.totalorder %s12117_s22, %s17803_s28 }
 0xde3   : > { %p12119_p2 = pnand %p12118_p9, %p16293_p11 }
 0xde5   : > { %p12120_p3 = pneg %p12119_p2 }
 0xde7   : > { %p12125_p8 = pnand %p12123_p5, %p12120_p3 }
 0xde9   : > { %12128 = shalt.err (!%p12125_p8)
}
 0xdea   : > { %s12183_s30 = smov 128   ;;  %s12184_s15 = smov 8  }
 0xdeb   : > { %11467 = dma.vmem_to_hbm [thread:$0]  (%p16293_p11), %s9481_s29, 256, %s17803_s28, [#allocation8], %s12183_s30, %s12183_s30, %s12184_s15  }
 0xdec   : > { %12154 = dma.done.wait (%p16293_p11), [#allocation8], 256  }
 0xded   : > { %12156 = vsyncadd (%p16293_p11), [#allocation8], 4294967040 }
 0xdee PF: > { %s17804_s18 = sld [smem:[#allocation20_spill]]  ;;  %s17805_s24 = sld [smem:[#allocation19_spill]] }
 0xdef   : > { %s17806_s25 = smov %s17808_s19 }
 0xdf4   : > { %s31_s26 = sadd.s32 1, %s17804_s18  }
 0xdf5   : > { %p28_p10 = scmp.ge.s32.totalorder %s31_s26, 5  }
 0xdf7   :  { %30 = sbr.rel (!%p28_p10) target bundleno = 13 (0xd), region = 160 }
 0xdfe   :  { %9496 = vsyncpa [#allocation7], 1 }
 0xdff   :  { %9498 = vsyncpa [#allocation7 + $0x1], 1 }
 0xe00   :  { %9499 = vsyncpa [#allocation10], 1 }
 0xe01   :  { %9500 = vsyncpa [#allocation13], 1 }
 0xe02   :  { %9501 = vsyncpa [#allocation8], 1 }
 0xe03   :  { %9503 = vsyncpa [#allocation8 + $0x1], 1 }

</bundles_post_ra>
